<compile_context>
chip_gen: v5e
topology: v5e:2x2
jax: 0.10.0
libtpu: 0.0.40
codegen_flags: <defaults>
</compile_context>

<pallas_src>
import numpy as np
import jax
import jax.numpy as jnp
from jax.experimental import pallas as pl
from jax.experimental.pallas import tpu as pltpu


# ---------------------------------------------------------------------------
# Geometry of the LeNet `Net` (input 1x28x28)
# ---------------------------------------------------------------------------
TB = 8                      # images per grid step (sublane-aligned output blocks)

H_IN, W_IN = 28, 28
K = 5                       # conv kernel size
C1, C2 = 6, 16              # conv1 / conv2 output channels
HC1, WC1 = 24, 24           # conv1 output spatial
HP1, WP1 = 12, 12           # pool1 output spatial
HC2, WC2 = 8, 8             # conv2 output spatial
HP2, WP2 = 4, 4             # pool2 output spatial

LC1 = WC1 * C1              # 144  conv1 out lanes, index = j*C1 + c
LP1 = WP1 * C1              # 72   pool1 out lanes
LC2 = WC2 * C2              # 128  conv2 out lanes, index = j*C2 + d
LP2 = WP2 * C2              # 64   pool2 out lanes
FC_IN = C2 * HP2 * WP2      # 256
FPAD = 128                  # padded fc widths (120/84/10 -> 128)


# ---------------------------------------------------------------------------
# Fused kernel: conv1+relu+pool1+conv2+relu+pool2+fc1+fc2+fc3 for TB images
# ---------------------------------------------------------------------------
def lenet_fused_kernel(x_ref, w1k_ref, b1_ref, sw1_ref, sh1_ref,
                       w2k_ref, b2_ref, sw2_ref, sh2_ref,
                       wf1_ref, bf1_ref, wf2_ref, bf2_ref, wf3_ref, bf3_ref,
                       out_ref):
    f32 = jnp.float32
    flats = []
    for t in range(TB):                              # unrolled over the batch tile
        x = x_ref[t]                                 # (28, 28)  rows=H, lanes=W

        # conv1 + bias + relu : (28,28) -> (24, 144) lanes=(j, c)
        acc1 = jnp.zeros((HC1, LC1), f32)
        for kh in range(K):
            acc1 = acc1 + jnp.dot(x[kh:kh + HC1, :], w1k_ref[kh],
                                  preferred_element_type=f32)
        z1 = jnp.maximum(acc1 + b1_ref[...], 0.0)

        # maxpool 2x2 : (24,144) -> (12,72)   pair-max + exact selection matmuls
        mw = jnp.maximum(jnp.dot(z1, sw1_ref[0], preferred_element_type=f32),
                         jnp.dot(z1, sw1_ref[1], preferred_element_type=f32))
        p1 = jnp.maximum(jnp.dot(sh1_ref[0], mw, preferred_element_type=f32),
                         jnp.dot(sh1_ref[1], mw, preferred_element_type=f32))

        # conv2 + bias + relu : (12,72) -> (8, 128) lanes=(j, d)
        acc2 = jnp.zeros((HC2, LC2), f32)
        for kh in range(K):
            acc2 = acc2 + jnp.dot(p1[kh:kh + HC2, :], w2k_ref[kh],
                                  preferred_element_type=f32)
        z2 = jnp.maximum(acc2 + b2_ref[...], 0.0)

        # maxpool 2x2 : (8,128) -> (4,64)
        mw2 = jnp.maximum(jnp.dot(z2, sw2_ref[0], preferred_element_type=f32),
                          jnp.dot(z2, sw2_ref[1], preferred_element_type=f32))
        p2 = jnp.maximum(jnp.dot(sh2_ref[0], mw2, preferred_element_type=f32),
                         jnp.dot(sh2_ref[1], mw2, preferred_element_type=f32))

        # flatten to (1, 256); lane index = i3*64 + j3*16 + d
        flats.append(jnp.concatenate([p2[i:i + 1, :] for i in range(HP2)], axis=1))

    xb = jnp.concatenate(flats, axis=0)              # (TB, 256)

    # fc1 -> relu -> fc2 -> relu -> fc3 (all padded to 128 lanes)
    h = jnp.maximum(jnp.dot(xb, wf1_ref[...], preferred_element_type=f32)
                    + bf1_ref[...], 0.0)
    h = jnp.maximum(jnp.dot(h, wf2_ref[...], preferred_element_type=f32)
                    + bf2_ref[...], 0.0)
    out_ref[...] = (jnp.dot(h, wf3_ref[...], preferred_element_type=f32)
                    + bf3_ref[...])


# ---------------------------------------------------------------------------
# One-time parameter preparation (structured conv matrices, pool selectors,
# padded + permuted fc weights).  Runs once outside the traced forward.
# ---------------------------------------------------------------------------
def prepare_params(p):
    w1 = np.asarray(p["w1"], np.float32)       # (6, 1, 5, 5)
    b1 = np.asarray(p["b1"], np.float32)
    w2 = np.asarray(p["w2"], np.float32)       # (16, 6, 5, 5)
    b2 = np.asarray(p["b2"], np.float32)
    fc1_w = np.asarray(p["fc1_w"], np.float32)  # (120, 256)
    fc1_b = np.asarray(p["fc1_b"], np.float32)
    fc2_w = np.asarray(p["fc2_w"], np.float32)  # (84, 120)
    fc2_b = np.asarray(p["fc2_b"], np.float32)
    fc3_w = np.asarray(p["fc3_w"], np.float32)  # (10, 84)
    fc3_b = np.asarray(p["fc3_b"], np.float32)

    # conv1 as 5 matmuls: row(28 lanes) @ (28 -> 24*6)
    w1k = np.zeros((K, W_IN, LC1), np.float32)
    for kh in range(K):
        for j in range(WC1):
            for kw in range(K):
                for c in range(C1):
                    w1k[kh, j + kw, j * C1 + c] = w1[c, 0, kh, kw]
    b1row = np.tile(b1, WC1).reshape(1, LC1)

    # conv2 as 5 matmuls: (12 rows x 72 lanes) @ (72 -> 8*16)
    w2k = np.zeros((K, LP1, LC2), np.float32)
    for kh in range(K):
        for j2 in range(WC2):
            for kw in range(K):
                for c in range(C1):
                    for d in range(C2):
                        w2k[kh, (j2 + kw) * C1 + c, j2 * C2 + d] = w2[d, c, kh, kw]
    b2row = np.tile(b2, WC2).reshape(1, LC2)

    # 2x2 max-pool = pair-max + exact 0/1 selection matmuls
    def w_sel(w_in, w_out, ch):
        s0 = np.zeros((w_in * ch, w_out * ch), np.float32)
        s1 = np.zeros((w_in * ch, w_out * ch), np.float32)
        for jo in range(w_out):
            for c in range(ch):
                s0[(2 * jo) * ch + c, jo * ch + c] = 1.0
                s1[(2 * jo + 1) * ch + c, jo * ch + c] = 1.0
        return np.stack([s0, s1])

    def h_sel(h_in, h_out):
        s0 = np.zeros((h_out, h_in), np.float32)
        s1 = np.zeros((h_out, h_in), np.float32)
        for io in range(h_out):
            s0[io, 2 * io] = 1.0
            s1[io, 2 * io + 1] = 1.0
        return np.stack([s0, s1])

    sw1 = w_sel(WC1, WP1, C1)      # (2, 144, 72)
    sh1 = h_sel(HC1, HP1)          # (2, 12, 24)
    sw2 = w_sel(WC2, WP2, C2)      # (2, 128, 64)
    sh2 = h_sel(HC2, HP2)          # (2, 4, 8)

    # fc1: absorb the torch NCHW flatten permutation, pad 120 -> 128
    wf1 = np.zeros((FC_IN, FPAD), np.float32)
    for i3 in range(HP2):
        for j3 in range(WP2):
            for d in range(C2):
                wf1[i3 * LP2 + j3 * C2 + d, :120] = \
                    fc1_w[:, d * HP2 * WP2 + i3 * WP2 + j3]
    bf1 = np.zeros((1, FPAD), np.float32); bf1[0, :120] = fc1_b
    wf2 = np.zeros((FPAD, FPAD), np.float32); wf2[:120, :84] = fc2_w.T
    bf2 = np.zeros((1, FPAD), np.float32); bf2[0, :84] = fc2_b
    wf3 = np.zeros((FPAD, FPAD), np.float32); wf3[:84, :10] = fc3_w.T
    bf3 = np.zeros((1, FPAD), np.float32); bf3[0, :10] = fc3_b

    arrs = (w1k, b1row, sw1, sh1, w2k, b2row, sw2, sh2,
            wf1, bf1, wf2, bf2, wf3, bf3)
    return tuple(jnp.asarray(a) for a in arrs)


def _full_spec(a):
    if a.ndim == 2:
        return pl.BlockSpec(a.shape, lambda i: (0, 0))
    return pl.BlockSpec(a.shape, lambda i: (0, 0, 0))


@jax.jit
def net_forward(x_nchw, prep):
    B = x_nchw.shape[0]
    x = x_nchw.reshape(B, H_IN, W_IN).astype(jnp.float32)   # Cin = 1
    Bp = ((B + TB - 1) // TB) * TB
    if Bp != B:
        x = jnp.pad(x, ((0, Bp - B), (0, 0), (0, 0)))

    (w1k, b1row, sw1, sh1, w2k, b2row, sw2, sh2,
     wf1, bf1, wf2, bf2, wf3, bf3) = prep

    out = pl.pallas_call(
        lenet_fused_kernel,
        out_shape=jax.ShapeDtypeStruct((Bp, FPAD), jnp.float32),
        grid=(Bp // TB,),
        in_specs=[pl.BlockSpec((TB, H_IN, W_IN), lambda i: (i, 0, 0)),
                  _full_spec(w1k), _full_spec(b1row),
                  _full_spec(sw1), _full_spec(sh1),
                  _full_spec(w2k), _full_spec(b2row),
                  _full_spec(sw2), _full_spec(sh2),
                  _full_spec(wf1), _full_spec(bf1),
                  _full_spec(wf2), _full_spec(bf2),
                  _full_spec(wf3), _full_spec(bf3)],
        out_specs=pl.BlockSpec((TB, FPAD), lambda i: (i, 0)),
        compiler_params=pltpu.CompilerParams(
            dimension_semantics=("parallel",)),
    )(x, w1k, b1row, sw1, sh1, w2k, b2row, sw2, sh2,
      wf1, bf1, wf2, bf2, wf3, bf3)

    return out[:B, :10]


# ---------------------------------------------------------------------------
# Pure-JAX reference (correctness check)
# ---------------------------------------------------------------------------
def reference_forward(x_nchw, p):
    dn = ("NCHW", "OIHW", "NCHW")
    y = jax.lax.conv_general_dilated(x_nchw, p["w1"], (1, 1), "VALID",
                                     dimension_numbers=dn)
    y = jax.nn.relu(y + p["b1"][None, :, None, None])
    y = jax.lax.reduce_window(y, -jnp.inf, jax.lax.max,
                              (1, 1, 2, 2), (1, 1, 2, 2), "VALID")
    y = jax.lax.conv_general_dilated(y, p["w2"], (1, 1), "VALID",
                                     dimension_numbers=dn)
    y = jax.nn.relu(y + p["b2"][None, :, None, None])
    y = jax.lax.reduce_window(y, -jnp.inf, jax.lax.max,
                              (1, 1, 2, 2), (1, 1, 2, 2), "VALID")
    f = y.reshape(y.shape[0], -1)
    h = jax.nn.relu(f @ p["fc1_w"].T + p["fc1_b"])
    h = jax.nn.relu(h @ p["fc2_w"].T + p["fc2_b"])
    return h @ p["fc3_w"].T + p["fc3_b"]


# ---------------------------------------------------------------------------
# Deterministic parameter init (PyTorch default-style uniform bounds)
# ---------------------------------------------------------------------------
def init_params():
    key = jax.random.PRNGKey(42)
    ks = jax.random.split(key, 10)

    def u(k, shape, fan_in):
        bound = 1.0 / np.sqrt(fan_in)
        return jax.random.uniform(k, shape, jnp.float32, -bound, bound)

    return {
        "w1": u(ks[0], (6, 1, 5, 5), 1 * 5 * 5),
        "b1": u(ks[1], (6,), 1 * 5 * 5),
        "w2": u(ks[2], (16, 6, 5, 5), 6 * 5 * 5),
        "b2": u(ks[3], (16,), 6 * 5 * 5),
        "fc1_w": u(ks[4], (120, 256), 256),
        "fc1_b": u(ks[5], (120,), 256),
        "fc2_w": u(ks[6], (84, 120), 120),
        "fc2_b": u(ks[7], (84,), 120),
        "fc3_w": u(ks[8], (10, 84), 84),
        "fc3_b": u(ks[9], (10,), 84),
    }


if __name__ == "__main__":
    params = init_params()
    prep = prepare_params(params)

    x = jax.random.normal(jax.random.PRNGKey(0), (16, 1, 28, 28), jnp.float32)

    out = jax.block_until_ready(net_forward(x, prep))
    assert out.shape == (16, 10), out.shape

    ref = jax.block_until_ready(reference_forward(x, params))
    if not np.allclose(np.asarray(out), np.asarray(ref), atol=1e-3, rtol=1e-3):
        raise AssertionError(
            "Pallas output does not match JAX reference; max abs diff = "
            f"{np.max(np.abs(np.asarray(out) - np.asarray(ref)))}")

    print("KERNEL_OK")
</pallas_src>

<mosaic_0001>
module attributes {stable_mosaic.version = 11 : i64} {
  func.func @lenet_fused_kernel(%arg0: i32, %arg1: memref<8x28x28xf32, #tpu.memory_space<vmem>>, %arg2: memref<5x28x144xf32, #tpu.memory_space<vmem>>, %arg3: memref<1x144xf32, #tpu.memory_space<vmem>>, %arg4: memref<2x144x72xf32, #tpu.memory_space<vmem>>, %arg5: memref<2x12x24xf32, #tpu.memory_space<vmem>>, %arg6: memref<5x72x128xf32, #tpu.memory_space<vmem>>, %arg7: memref<1x128xf32, #tpu.memory_space<vmem>>, %arg8: memref<2x128x64xf32, #tpu.memory_space<vmem>>, %arg9: memref<2x4x8xf32, #tpu.memory_space<vmem>>, %arg10: memref<256x128xf32, #tpu.memory_space<vmem>>, %arg11: memref<1x128xf32, #tpu.memory_space<vmem>>, %arg12: memref<128x128xf32, #tpu.memory_space<vmem>>, %arg13: memref<1x128xf32, #tpu.memory_space<vmem>>, %arg14: memref<128x128xf32, #tpu.memory_space<vmem>>, %arg15: memref<1x128xf32, #tpu.memory_space<vmem>>, %arg16: memref<8x128xf32, #tpu.memory_space<vmem>>) attributes {dimension_semantics = [#tpu.dimension_semantics<parallel>], iteration_bounds = array<i64: 2>, scalar_prefetch = 0 : i64, scratch_operands = 0 : i64, tpu.core_type = #tpu.core_type<tc>, window_params = [{transform_indices = @transform_0, window_bounds = array<i64: 8, 28, 28>}, {pipeline_mode = #tpu.pipeline_mode<synchronous>, transform_indices = @transform_1, window_bounds = array<i64: 5, 28, 144>}, {pipeline_mode = #tpu.pipeline_mode<synchronous>, transform_indices = @transform_2, window_bounds = array<i64: 1, 144>}, {pipeline_mode = #tpu.pipeline_mode<synchronous>, transform_indices = @transform_3, window_bounds = array<i64: 2, 144, 72>}, {pipeline_mode = #tpu.pipeline_mode<synchronous>, transform_indices = @transform_4, window_bounds = array<i64: 2, 12, 24>}, {pipeline_mode = #tpu.pipeline_mode<synchronous>, transform_indices = @transform_5, window_bounds = array<i64: 5, 72, 128>}, {pipeline_mode = #tpu.pipeline_mode<synchronous>, transform_indices = @transform_6, window_bounds = array<i64: 1, 128>}, {pipeline_mode = #tpu.pipeline_mode<synchronous>, transform_indices = @transform_7, window_bounds = array<i64: 2, 128, 64>}, {pipeline_mode = #tpu.pipeline_mode<synchronous>, transform_indices = @transform_8, window_bounds = array<i64: 2, 4, 8>}, {pipeline_mode = #tpu.pipeline_mode<synchronous>, transform_indices = @transform_9, window_bounds = array<i64: 256, 128>}, {pipeline_mode = #tpu.pipeline_mode<synchronous>, transform_indices = @transform_10, window_bounds = array<i64: 1, 128>}, {pipeline_mode = #tpu.pipeline_mode<synchronous>, transform_indices = @transform_11, window_bounds = array<i64: 128, 128>}, {pipeline_mode = #tpu.pipeline_mode<synchronous>, transform_indices = @transform_12, window_bounds = array<i64: 1, 128>}, {pipeline_mode = #tpu.pipeline_mode<synchronous>, transform_indices = @transform_13, window_bounds = array<i64: 128, 128>}, {pipeline_mode = #tpu.pipeline_mode<synchronous>, transform_indices = @transform_14, window_bounds = array<i64: 1, 128>}, {transform_indices = @transform_15, window_bounds = array<i64: 8, 128>}]} {
    %c0 = arith.constant 0 : index
    %c0_0 = arith.constant 0 : index
    %c0_1 = arith.constant 0 : index
    %0 = vector.load %arg1[%c0, %c0_0, %c0_1] : memref<8x28x28xf32, #tpu.memory_space<vmem>>, vector<1x28x28xf32>
    %1 = vector.shape_cast %0 : vector<1x28x28xf32> to vector<28x28xf32>
    %cst = arith.constant 0.000000e+00 : f32
    %2 = vector.broadcast %cst : f32 to vector<24x144xf32>
    %3 = vector.extract_strided_slice %1 {offsets = [0, 0], sizes = [24, 28], strides = [1, 1]} : vector<28x28xf32> to vector<24x28xf32>
    %c0_2 = arith.constant 0 : index
    %c0_3 = arith.constant 0 : index
    %c0_4 = arith.constant 0 : index
    %4 = vector.load %arg2[%c0_2, %c0_3, %c0_4] : memref<5x28x144xf32, #tpu.memory_space<vmem>>, vector<1x28x144xf32>
    %5 = vector.shape_cast %4 : vector<1x28x144xf32> to vector<28x144xf32>
    %cst_5 = arith.constant dense<0.000000e+00> : vector<24x144xf32>
    %6 = tpu.matmul %3, %5, %cst_5 {dimension_numbers = #tpu.dot_dimension_numbers<[1], [0], [0], [1], [0, 0, 1, 1], [], []>} : vector<24x28xf32>, vector<28x144xf32>, vector<24x144xf32> -> vector<24x144xf32>
    %7 = arith.addf %2, %6 : vector<24x144xf32>
    %8 = vector.extract_strided_slice %1 {offsets = [1, 0], sizes = [24, 28], strides = [1, 1]} : vector<28x28xf32> to vector<24x28xf32>
    %c1 = arith.constant 1 : index
    %c0_6 = arith.constant 0 : index
    %c0_7 = arith.constant 0 : index
    %9 = vector.load %arg2[%c1, %c0_6, %c0_7] : memref<5x28x144xf32, #tpu.memory_space<vmem>>, vector<1x28x144xf32>
    %10 = vector.shape_cast %9 : vector<1x28x144xf32> to vector<28x144xf32>
    %cst_8 = arith.constant dense<0.000000e+00> : vector<24x144xf32>
    %11 = tpu.matmul %8, %10, %cst_8 {dimension_numbers = #tpu.dot_dimension_numbers<[1], [0], [0], [1], [0, 0, 1, 1], [], []>} : vector<24x28xf32>, vector<28x144xf32>, vector<24x144xf32> -> vector<24x144xf32>
    %12 = arith.addf %7, %11 : vector<24x144xf32>
    %13 = vector.extract_strided_slice %1 {offsets = [2, 0], sizes = [24, 28], strides = [1, 1]} : vector<28x28xf32> to vector<24x28xf32>
    %c2 = arith.constant 2 : index
    %c0_9 = arith.constant 0 : index
    %c0_10 = arith.constant 0 : index
    %14 = vector.load %arg2[%c2, %c0_9, %c0_10] : memref<5x28x144xf32, #tpu.memory_space<vmem>>, vector<1x28x144xf32>
    %15 = vector.shape_cast %14 : vector<1x28x144xf32> to vector<28x144xf32>
    %cst_11 = arith.constant dense<0.000000e+00> : vector<24x144xf32>
    %16 = tpu.matmul %13, %15, %cst_11 {dimension_numbers = #tpu.dot_dimension_numbers<[1], [0], [0], [1], [0, 0, 1, 1], [], []>} : vector<24x28xf32>, vector<28x144xf32>, vector<24x144xf32> -> vector<24x144xf32>
    %17 = arith.addf %12, %16 : vector<24x144xf32>
    %18 = vector.extract_strided_slice %1 {offsets = [3, 0], sizes = [24, 28], strides = [1, 1]} : vector<28x28xf32> to vector<24x28xf32>
    %c3 = arith.constant 3 : index
    %c0_12 = arith.constant 0 : index
    %c0_13 = arith.constant 0 : index
    %19 = vector.load %arg2[%c3, %c0_12, %c0_13] : memref<5x28x144xf32, #tpu.memory_space<vmem>>, vector<1x28x144xf32>
    %20 = vector.shape_cast %19 : vector<1x28x144xf32> to vector<28x144xf32>
    %cst_14 = arith.constant dense<0.000000e+00> : vector<24x144xf32>
    %21 = tpu.matmul %18, %20, %cst_14 {dimension_numbers = #tpu.dot_dimension_numbers<[1], [0], [0], [1], [0, 0, 1, 1], [], []>} : vector<24x28xf32>, vector<28x144xf32>, vector<24x144xf32> -> vector<24x144xf32>
    %22 = arith.addf %17, %21 : vector<24x144xf32>
    %23 = vector.extract_strided_slice %1 {offsets = [4, 0], sizes = [24, 28], strides = [1, 1]} : vector<28x28xf32> to vector<24x28xf32>
    %c4 = arith.constant 4 : index
    %c0_15 = arith.constant 0 : index
    %c0_16 = arith.constant 0 : index
    %24 = vector.load %arg2[%c4, %c0_15, %c0_16] : memref<5x28x144xf32, #tpu.memory_space<vmem>>, vector<1x28x144xf32>
    %25 = vector.shape_cast %24 : vector<1x28x144xf32> to vector<28x144xf32>
    %cst_17 = arith.constant dense<0.000000e+00> : vector<24x144xf32>
    %26 = tpu.matmul %23, %25, %cst_17 {dimension_numbers = #tpu.dot_dimension_numbers<[1], [0], [0], [1], [0, 0, 1, 1], [], []>} : vector<24x28xf32>, vector<28x144xf32>, vector<24x144xf32> -> vector<24x144xf32>
    %27 = arith.addf %22, %26 : vector<24x144xf32>
    %c0_18 = arith.constant 0 : index
    %c0_19 = arith.constant 0 : index
    %28 = vector.load %arg3[%c0_18, %c0_19] : memref<1x144xf32, #tpu.memory_space<vmem>>, vector<1x144xf32>
    %29 = vector.broadcast %28 : vector<1x144xf32> to vector<24x144xf32>
    %30 = arith.addf %27, %29 : vector<24x144xf32>
    %cst_20 = arith.constant 0.000000e+00 : f32
    %31 = vector.broadcast %cst_20 : f32 to vector<24x144xf32>
    %32 = arith.maximumf %30, %31 : vector<24x144xf32>
    %c0_21 = arith.constant 0 : index
    %c0_22 = arith.constant 0 : index
    %c0_23 = arith.constant 0 : index
    %33 = vector.load %arg4[%c0_21, %c0_22, %c0_23] : memref<2x144x72xf32, #tpu.memory_space<vmem>>, vector<1x144x72xf32>
    %34 = vector.shape_cast %33 : vector<1x144x72xf32> to vector<144x72xf32>
    %cst_24 = arith.constant dense<0.000000e+00> : vector<24x72xf32>
    %35 = tpu.matmul %32, %34, %cst_24 {dimension_numbers = #tpu.dot_dimension_numbers<[1], [0], [0], [1], [0, 0, 1, 1], [], []>} : vector<24x144xf32>, vector<144x72xf32>, vector<24x72xf32> -> vector<24x72xf32>
    %c1_25 = arith.constant 1 : index
    %c0_26 = arith.constant 0 : index
    %c0_27 = arith.constant 0 : index
    %36 = vector.load %arg4[%c1_25, %c0_26, %c0_27] : memref<2x144x72xf32, #tpu.memory_space<vmem>>, vector<1x144x72xf32>
    %37 = vector.shape_cast %36 : vector<1x144x72xf32> to vector<144x72xf32>
    %cst_28 = arith.constant dense<0.000000e+00> : vector<24x72xf32>
    %38 = tpu.matmul %32, %37, %cst_28 {dimension_numbers = #tpu.dot_dimension_numbers<[1], [0], [0], [1], [0, 0, 1, 1], [], []>} : vector<24x144xf32>, vector<144x72xf32>, vector<24x72xf32> -> vector<24x72xf32>
    %39 = arith.maximumf %35, %38 : vector<24x72xf32>
    %c0_29 = arith.constant 0 : index
    %c0_30 = arith.constant 0 : index
    %c0_31 = arith.constant 0 : index
    %40 = vector.load %arg5[%c0_29, %c0_30, %c0_31] : memref<2x12x24xf32, #tpu.memory_space<vmem>>, vector<1x12x24xf32>
    %41 = vector.shape_cast %40 : vector<1x12x24xf32> to vector<12x24xf32>
    %cst_32 = arith.constant dense<0.000000e+00> : vector<12x72xf32>
    %42 = tpu.matmul %41, %39, %cst_32 {dimension_numbers = #tpu.dot_dimension_numbers<[1], [0], [0], [1], [0, 0, 1, 1], [], []>} : vector<12x24xf32>, vector<24x72xf32>, vector<12x72xf32> -> vector<12x72xf32>
    %c1_33 = arith.constant 1 : index
    %c0_34 = arith.constant 0 : index
    %c0_35 = arith.constant 0 : index
    %43 = vector.load %arg5[%c1_33, %c0_34, %c0_35] : memref<2x12x24xf32, #tpu.memory_space<vmem>>, vector<1x12x24xf32>
    %44 = vector.shape_cast %43 : vector<1x12x24xf32> to vector<12x24xf32>
    %cst_36 = arith.constant dense<0.000000e+00> : vector<12x72xf32>
    %45 = tpu.matmul %44, %39, %cst_36 {dimension_numbers = #tpu.dot_dimension_numbers<[1], [0], [0], [1], [0, 0, 1, 1], [], []>} : vector<12x24xf32>, vector<24x72xf32>, vector<12x72xf32> -> vector<12x72xf32>
    %46 = arith.maximumf %42, %45 : vector<12x72xf32>
    %cst_37 = arith.constant 0.000000e+00 : f32
    %47 = vector.broadcast %cst_37 : f32 to vector<8x128xf32>
    %48 = vector.extract_strided_slice %46 {offsets = [0, 0], sizes = [8, 72], strides = [1, 1]} : vector<12x72xf32> to vector<8x72xf32>
    %c0_38 = arith.constant 0 : index
    %c0_39 = arith.constant 0 : index
    %c0_40 = arith.constant 0 : index
    %49 = vector.load %arg6[%c0_38, %c0_39, %c0_40] : memref<5x72x128xf32, #tpu.memory_space<vmem>>, vector<1x72x128xf32>
    %50 = vector.shape_cast %49 : vector<1x72x128xf32> to vector<72x128xf32>
    %cst_41 = arith.constant dense<0.000000e+00> : vector<8x128xf32>
    %51 = tpu.matmul %48, %50, %cst_41 {dimension_numbers = #tpu.dot_dimension_numbers<[1], [0], [0], [1], [0, 0, 1, 1], [], []>} : vector<8x72xf32>, vector<72x128xf32>, vector<8x128xf32> -> vector<8x128xf32>
    %52 = arith.addf %47, %51 : vector<8x128xf32>
    %53 = vector.extract_strided_slice %46 {offsets = [1, 0], sizes = [8, 72], strides = [1, 1]} : vector<12x72xf32> to vector<8x72xf32>
    %c1_42 = arith.constant 1 : index
    %c0_43 = arith.constant 0 : index
    %c0_44 = arith.constant 0 : index
    %54 = vector.load %arg6[%c1_42, %c0_43, %c0_44] : memref<5x72x128xf32, #tpu.memory_space<vmem>>, vector<1x72x128xf32>
    %55 = vector.shape_cast %54 : vector<1x72x128xf32> to vector<72x128xf32>
    %cst_45 = arith.constant dense<0.000000e+00> : vector<8x128xf32>
    %56 = tpu.matmul %53, %55, %cst_45 {dimension_numbers = #tpu.dot_dimension_numbers<[1], [0], [0], [1], [0, 0, 1, 1], [], []>} : vector<8x72xf32>, vector<72x128xf32>, vector<8x128xf32> -> vector<8x128xf32>
    %57 = arith.addf %52, %56 : vector<8x128xf32>
    %58 = vector.extract_strided_slice %46 {offsets = [2, 0], sizes = [8, 72], strides = [1, 1]} : vector<12x72xf32> to vector<8x72xf32>
    %c2_46 = arith.constant 2 : index
    %c0_47 = arith.constant 0 : index
    %c0_48 = arith.constant 0 : index
    %59 = vector.load %arg6[%c2_46, %c0_47, %c0_48] : memref<5x72x128xf32, #tpu.memory_space<vmem>>, vector<1x72x128xf32>
    %60 = vector.shape_cast %59 : vector<1x72x128xf32> to vector<72x128xf32>
    %cst_49 = arith.constant dense<0.000000e+00> : vector<8x128xf32>
    %61 = tpu.matmul %58, %60, %cst_49 {dimension_numbers = #tpu.dot_dimension_numbers<[1], [0], [0], [1], [0, 0, 1, 1], [], []>} : vector<8x72xf32>, vector<72x128xf32>, vector<8x128xf32> -> vector<8x128xf32>
    %62 = arith.addf %57, %61 : vector<8x128xf32>
    %63 = vector.extract_strided_slice %46 {offsets = [3, 0], sizes = [8, 72], strides = [1, 1]} : vector<12x72xf32> to vector<8x72xf32>
    %c3_50 = arith.constant 3 : index
    %c0_51 = arith.constant 0 : index
    %c0_52 = arith.constant 0 : index
    %64 = vector.load %arg6[%c3_50, %c0_51, %c0_52] : memref<5x72x128xf32, #tpu.memory_space<vmem>>, vector<1x72x128xf32>
    %65 = vector.shape_cast %64 : vector<1x72x128xf32> to vector<72x128xf32>
    %cst_53 = arith.constant dense<0.000000e+00> : vector<8x128xf32>
    %66 = tpu.matmul %63, %65, %cst_53 {dimension_numbers = #tpu.dot_dimension_numbers<[1], [0], [0], [1], [0, 0, 1, 1], [], []>} : vector<8x72xf32>, vector<72x128xf32>, vector<8x128xf32> -> vector<8x128xf32>
    %67 = arith.addf %62, %66 : vector<8x128xf32>
    %68 = vector.extract_strided_slice %46 {offsets = [4, 0], sizes = [8, 72], strides = [1, 1]} : vector<12x72xf32> to vector<8x72xf32>
    %c4_54 = arith.constant 4 : index
    %c0_55 = arith.constant 0 : index
    %c0_56 = arith.constant 0 : index
    %69 = vector.load %arg6[%c4_54, %c0_55, %c0_56] : memref<5x72x128xf32, #tpu.memory_space<vmem>>, vector<1x72x128xf32>
    %70 = vector.shape_cast %69 : vector<1x72x128xf32> to vector<72x128xf32>
    %cst_57 = arith.constant dense<0.000000e+00> : vector<8x128xf32>
    %71 = tpu.matmul %68, %70, %cst_57 {dimension_numbers = #tpu.dot_dimension_numbers<[1], [0], [0], [1], [0, 0, 1, 1], [], []>} : vector<8x72xf32>, vector<72x128xf32>, vector<8x128xf32> -> vector<8x128xf32>
    %72 = arith.addf %67, %71 : vector<8x128xf32>
    %c0_58 = arith.constant 0 : index
    %c0_59 = arith.constant 0 : index
    %73 = vector.load %arg7[%c0_58, %c0_59] : memref<1x128xf32, #tpu.memory_space<vmem>>, vector<1x128xf32>
    %74 = vector.broadcast %73 : vector<1x128xf32> to vector<8x128xf32>
    %75 = arith.addf %72, %74 : vector<8x128xf32>
    %cst_60 = arith.constant 0.000000e+00 : f32
    %76 = vector.broadcast %cst_60 : f32 to vector<8x128xf32>
    %77 = arith.maximumf %75, %76 : vector<8x128xf32>
    %c0_61 = arith.constant 0 : index
    %c0_62 = arith.constant 0 : index
    %c0_63 = arith.constant 0 : index
    %78 = vector.load %arg8[%c0_61, %c0_62, %c0_63] : memref<2x128x64xf32, #tpu.memory_space<vmem>>, vector<1x128x64xf32>
    %79 = vector.shape_cast %78 : vector<1x128x64xf32> to vector<128x64xf32>
    %cst_64 = arith.constant dense<0.000000e+00> : vector<8x64xf32>
    %80 = tpu.matmul %77, %79, %cst_64 {dimension_numbers = #tpu.dot_dimension_numbers<[1], [0], [0], [1], [0, 0, 1, 1], [], []>} : vector<8x128xf32>, vector<128x64xf32>, vector<8x64xf32> -> vector<8x64xf32>
    %c1_65 = arith.constant 1 : index
    %c0_66 = arith.constant 0 : index
    %c0_67 = arith.constant 0 : index
    %81 = vector.load %arg8[%c1_65, %c0_66, %c0_67] : memref<2x128x64xf32, #tpu.memory_space<vmem>>, vector<1x128x64xf32>
    %82 = vector.shape_cast %81 : vector<1x128x64xf32> to vector<128x64xf32>
    %cst_68 = arith.constant dense<0.000000e+00> : vector<8x64xf32>
    %83 = tpu.matmul %77, %82, %cst_68 {dimension_numbers = #tpu.dot_dimension_numbers<[1], [0], [0], [1], [0, 0, 1, 1], [], []>} : vector<8x128xf32>, vector<128x64xf32>, vector<8x64xf32> -> vector<8x64xf32>
    %84 = arith.maximumf %80, %83 : vector<8x64xf32>
    %c0_69 = arith.constant 0 : index
    %c0_70 = arith.constant 0 : index
    %c0_71 = arith.constant 0 : index
    %85 = vector.load %arg9[%c0_69, %c0_70, %c0_71] : memref<2x4x8xf32, #tpu.memory_space<vmem>>, vector<1x4x8xf32>
    %86 = vector.shape_cast %85 : vector<1x4x8xf32> to vector<4x8xf32>
    %cst_72 = arith.constant dense<0.000000e+00> : vector<4x64xf32>
    %87 = tpu.matmul %86, %84, %cst_72 {dimension_numbers = #tpu.dot_dimension_numbers<[1], [0], [0], [1], [0, 0, 1, 1], [], []>} : vector<4x8xf32>, vector<8x64xf32>, vector<4x64xf32> -> vector<4x64xf32>
    %c1_73 = arith.constant 1 : index
    %c0_74 = arith.constant 0 : index
    %c0_75 = arith.constant 0 : index
    %88 = vector.load %arg9[%c1_73, %c0_74, %c0_75] : memref<2x4x8xf32, #tpu.memory_space<vmem>>, vector<1x4x8xf32>
    %89 = vector.shape_cast %88 : vector<1x4x8xf32> to vector<4x8xf32>
    %cst_76 = arith.constant dense<0.000000e+00> : vector<4x64xf32>
    %90 = tpu.matmul %89, %84, %cst_76 {dimension_numbers = #tpu.dot_dimension_numbers<[1], [0], [0], [1], [0, 0, 1, 1], [], []>} : vector<4x8xf32>, vector<8x64xf32>, vector<4x64xf32> -> vector<4x64xf32>
    %91 = arith.maximumf %87, %90 : vector<4x64xf32>
    %92 = vector.extract_strided_slice %91 {offsets = [0, 0], sizes = [1, 64], strides = [1, 1]} : vector<4x64xf32> to vector<1x64xf32>
    %93 = vector.extract_strided_slice %91 {offsets = [1, 0], sizes = [1, 64], strides = [1, 1]} : vector<4x64xf32> to vector<1x64xf32>
    %94 = vector.extract_strided_slice %91 {offsets = [2, 0], sizes = [1, 64], strides = [1, 1]} : vector<4x64xf32> to vector<1x64xf32>
    %95 = vector.extract_strided_slice %91 {offsets = [3, 0], sizes = [1, 64], strides = [1, 1]} : vector<4x64xf32> to vector<1x64xf32>
    %96 = tpu.concatenate %92, %93, %94, %95 in 1 : vector<1x64xf32>, vector<1x64xf32>, vector<1x64xf32>, vector<1x64xf32> -> vector<1x256xf32>
    %c1_77 = arith.constant 1 : index
    %c0_78 = arith.constant 0 : index
    %c0_79 = arith.constant 0 : index
    %97 = vector.load %arg1[%c1_77, %c0_78, %c0_79] : memref<8x28x28xf32, #tpu.memory_space<vmem>>, vector<1x28x28xf32>
    %98 = vector.shape_cast %97 : vector<1x28x28xf32> to vector<28x28xf32>
    %cst_80 = arith.constant 0.000000e+00 : f32
    %99 = vector.broadcast %cst_80 : f32 to vector<24x144xf32>
    %100 = vector.extract_strided_slice %98 {offsets = [0, 0], sizes = [24, 28], strides = [1, 1]} : vector<28x28xf32> to vector<24x28xf32>
    %c0_81 = arith.constant 0 : index
    %c0_82 = arith.constant 0 : index
    %c0_83 = arith.constant 0 : index
    %101 = vector.load %arg2[%c0_81, %c0_82, %c0_83] : memref<5x28x144xf32, #tpu.memory_space<vmem>>, vector<1x28x144xf32>
    %102 = vector.shape_cast %101 : vector<1x28x144xf32> to vector<28x144xf32>
    %cst_84 = arith.constant dense<0.000000e+00> : vector<24x144xf32>
    %103 = tpu.matmul %100, %102, %cst_84 {dimension_numbers = #tpu.dot_dimension_numbers<[1], [0], [0], [1], [0, 0, 1, 1], [], []>} : vector<24x28xf32>, vector<28x144xf32>, vector<24x144xf32> -> vector<24x144xf32>
    %104 = arith.addf %99, %103 : vector<24x144xf32>
    %105 = vector.extract_strided_slice %98 {offsets = [1, 0], sizes = [24, 28], strides = [1, 1]} : vector<28x28xf32> to vector<24x28xf32>
    %c1_85 = arith.constant 1 : index
    %c0_86 = arith.constant 0 : index
    %c0_87 = arith.constant 0 : index
    %106 = vector.load %arg2[%c1_85, %c0_86, %c0_87] : memref<5x28x144xf32, #tpu.memory_space<vmem>>, vector<1x28x144xf32>
    %107 = vector.shape_cast %106 : vector<1x28x144xf32> to vector<28x144xf32>
    %cst_88 = arith.constant dense<0.000000e+00> : vector<24x144xf32>
    %108 = tpu.matmul %105, %107, %cst_88 {dimension_numbers = #tpu.dot_dimension_numbers<[1], [0], [0], [1], [0, 0, 1, 1], [], []>} : vector<24x28xf32>, vector<28x144xf32>, vector<24x144xf32> -> vector<24x144xf32>
    %109 = arith.addf %104, %108 : vector<24x144xf32>
    %110 = vector.extract_strided_slice %98 {offsets = [2, 0], sizes = [24, 28], strides = [1, 1]} : vector<28x28xf32> to vector<24x28xf32>
    %c2_89 = arith.constant 2 : index
    %c0_90 = arith.constant 0 : index
    %c0_91 = arith.constant 0 : index
    %111 = vector.load %arg2[%c2_89, %c0_90, %c0_91] : memref<5x28x144xf32, #tpu.memory_space<vmem>>, vector<1x28x144xf32>
    %112 = vector.shape_cast %111 : vector<1x28x144xf32> to vector<28x144xf32>
    %cst_92 = arith.constant dense<0.000000e+00> : vector<24x144xf32>
    %113 = tpu.matmul %110, %112, %cst_92 {dimension_numbers = #tpu.dot_dimension_numbers<[1], [0], [0], [1], [0, 0, 1, 1], [], []>} : vector<24x28xf32>, vector<28x144xf32>, vector<24x144xf32> -> vector<24x144xf32>
    %114 = arith.addf %109, %113 : vector<24x144xf32>
    %115 = vector.extract_strided_slice %98 {offsets = [3, 0], sizes = [24, 28], strides = [1, 1]} : vector<28x28xf32> to vector<24x28xf32>
    %c3_93 = arith.constant 3 : index
    %c0_94 = arith.constant 0 : index
    %c0_95 = arith.constant 0 : index
    %116 = vector.load %arg2[%c3_93, %c0_94, %c0_95] : memref<5x28x144xf32, #tpu.memory_space<vmem>>, vector<1x28x144xf32>
    %117 = vector.shape_cast %116 : vector<1x28x144xf32> to vector<28x144xf32>
    %cst_96 = arith.constant dense<0.000000e+00> : vector<24x144xf32>
    %118 = tpu.matmul %115, %117, %cst_96 {dimension_numbers = #tpu.dot_dimension_numbers<[1], [0], [0], [1], [0, 0, 1, 1], [], []>} : vector<24x28xf32>, vector<28x144xf32>, vector<24x144xf32> -> vector<24x144xf32>
    %119 = arith.addf %114, %118 : vector<24x144xf32>
    %120 = vector.extract_strided_slice %98 {offsets = [4, 0], sizes = [24, 28], strides = [1, 1]} : vector<28x28xf32> to vector<24x28xf32>
    %c4_97 = arith.constant 4 : index
    %c0_98 = arith.constant 0 : index
    %c0_99 = arith.constant 0 : index
    %121 = vector.load %arg2[%c4_97, %c0_98, %c0_99] : memref<5x28x144xf32, #tpu.memory_space<vmem>>, vector<1x28x144xf32>
    %122 = vector.shape_cast %121 : vector<1x28x144xf32> to vector<28x144xf32>
    %cst_100 = arith.constant dense<0.000000e+00> : vector<24x144xf32>
    %123 = tpu.matmul %120, %122, %cst_100 {dimension_numbers = #tpu.dot_dimension_numbers<[1], [0], [0], [1], [0, 0, 1, 1], [], []>} : vector<24x28xf32>, vector<28x144xf32>, vector<24x144xf32> -> vector<24x144xf32>
    %124 = arith.addf %119, %123 : vector<24x144xf32>
    %c0_101 = arith.constant 0 : index
    %c0_102 = arith.constant 0 : index
    %125 = vector.load %arg3[%c0_101, %c0_102] : memref<1x144xf32, #tpu.memory_space<vmem>>, vector<1x144xf32>
    %126 = vector.broadcast %125 : vector<1x144xf32> to vector<24x144xf32>
    %127 = arith.addf %124, %126 : vector<24x144xf32>
    %cst_103 = arith.constant 0.000000e+00 : f32
    %128 = vector.broadcast %cst_103 : f32 to vector<24x144xf32>
    %129 = arith.maximumf %127, %128 : vector<24x144xf32>
    %c0_104 = arith.constant 0 : index
    %c0_105 = arith.constant 0 : index
    %c0_106 = arith.constant 0 : index
    %130 = vector.load %arg4[%c0_104, %c0_105, %c0_106] : memref<2x144x72xf32, #tpu.memory_space<vmem>>, vector<1x144x72xf32>
    %131 = vector.shape_cast %130 : vector<1x144x72xf32> to vector<144x72xf32>
    %cst_107 = arith.constant dense<0.000000e+00> : vector<24x72xf32>
    %132 = tpu.matmul %129, %131, %cst_107 {dimension_numbers = #tpu.dot_dimension_numbers<[1], [0], [0], [1], [0, 0, 1, 1], [], []>} : vector<24x144xf32>, vector<144x72xf32>, vector<24x72xf32> -> vector<24x72xf32>
    %c1_108 = arith.constant 1 : index
    %c0_109 = arith.constant 0 : index
    %c0_110 = arith.constant 0 : index
    %133 = vector.load %arg4[%c1_108, %c0_109, %c0_110] : memref<2x144x72xf32, #tpu.memory_space<vmem>>, vector<1x144x72xf32>
    %134 = vector.shape_cast %133 : vector<1x144x72xf32> to vector<144x72xf32>
    %cst_111 = arith.constant dense<0.000000e+00> : vector<24x72xf32>
    %135 = tpu.matmul %129, %134, %cst_111 {dimension_numbers = #tpu.dot_dimension_numbers<[1], [0], [0], [1], [0, 0, 1, 1], [], []>} : vector<24x144xf32>, vector<144x72xf32>, vector<24x72xf32> -> vector<24x72xf32>
    %136 = arith.maximumf %132, %135 : vector<24x72xf32>
    %c0_112 = arith.constant 0 : index
    %c0_113 = arith.constant 0 : index
    %c0_114 = arith.constant 0 : index
    %137 = vector.load %arg5[%c0_112, %c0_113, %c0_114] : memref<2x12x24xf32, #tpu.memory_space<vmem>>, vector<1x12x24xf32>
    %138 = vector.shape_cast %137 : vector<1x12x24xf32> to vector<12x24xf32>
    %cst_115 = arith.constant dense<0.000000e+00> : vector<12x72xf32>
    %139 = tpu.matmul %138, %136, %cst_115 {dimension_numbers = #tpu.dot_dimension_numbers<[1], [0], [0], [1], [0, 0, 1, 1], [], []>} : vector<12x24xf32>, vector<24x72xf32>, vector<12x72xf32> -> vector<12x72xf32>
    %c1_116 = arith.constant 1 : index
    %c0_117 = arith.constant 0 : index
    %c0_118 = arith.constant 0 : index
    %140 = vector.load %arg5[%c1_116, %c0_117, %c0_118] : memref<2x12x24xf32, #tpu.memory_space<vmem>>, vector<1x12x24xf32>
    %141 = vector.shape_cast %140 : vector<1x12x24xf32> to vector<12x24xf32>
    %cst_119 = arith.constant dense<0.000000e+00> : vector<12x72xf32>
    %142 = tpu.matmul %141, %136, %cst_119 {dimension_numbers = #tpu.dot_dimension_numbers<[1], [0], [0], [1], [0, 0, 1, 1], [], []>} : vector<12x24xf32>, vector<24x72xf32>, vector<12x72xf32> -> vector<12x72xf32>
    %143 = arith.maximumf %139, %142 : vector<12x72xf32>
    %cst_120 = arith.constant 0.000000e+00 : f32
    %144 = vector.broadcast %cst_120 : f32 to vector<8x128xf32>
    %145 = vector.extract_strided_slice %143 {offsets = [0, 0], sizes = [8, 72], strides = [1, 1]} : vector<12x72xf32> to vector<8x72xf32>
    %c0_121 = arith.constant 0 : index
    %c0_122 = arith.constant 0 : index
    %c0_123 = arith.constant 0 : index
    %146 = vector.load %arg6[%c0_121, %c0_122, %c0_123] : memref<5x72x128xf32, #tpu.memory_space<vmem>>, vector<1x72x128xf32>
    %147 = vector.shape_cast %146 : vector<1x72x128xf32> to vector<72x128xf32>
    %cst_124 = arith.constant dense<0.000000e+00> : vector<8x128xf32>
    %148 = tpu.matmul %145, %147, %cst_124 {dimension_numbers = #tpu.dot_dimension_numbers<[1], [0], [0], [1], [0, 0, 1, 1], [], []>} : vector<8x72xf32>, vector<72x128xf32>, vector<8x128xf32> -> vector<8x128xf32>
    %149 = arith.addf %144, %148 : vector<8x128xf32>
    %150 = vector.extract_strided_slice %143 {offsets = [1, 0], sizes = [8, 72], strides = [1, 1]} : vector<12x72xf32> to vector<8x72xf32>
    %c1_125 = arith.constant 1 : index
    %c0_126 = arith.constant 0 : index
    %c0_127 = arith.constant 0 : index
    %151 = vector.load %arg6[%c1_125, %c0_126, %c0_127] : memref<5x72x128xf32, #tpu.memory_space<vmem>>, vector<1x72x128xf32>
    %152 = vector.shape_cast %151 : vector<1x72x128xf32> to vector<72x128xf32>
    %cst_128 = arith.constant dense<0.000000e+00> : vector<8x128xf32>
    %153 = tpu.matmul %150, %152, %cst_128 {dimension_numbers = #tpu.dot_dimension_numbers<[1], [0], [0], [1], [0, 0, 1, 1], [], []>} : vector<8x72xf32>, vector<72x128xf32>, vector<8x128xf32> -> vector<8x128xf32>
    %154 = arith.addf %149, %153 : vector<8x128xf32>
    %155 = vector.extract_strided_slice %143 {offsets = [2, 0], sizes = [8, 72], strides = [1, 1]} : vector<12x72xf32> to vector<8x72xf32>
    %c2_129 = arith.constant 2 : index
    %c0_130 = arith.constant 0 : index
    %c0_131 = arith.constant 0 : index
    %156 = vector.load %arg6[%c2_129, %c0_130, %c0_131] : memref<5x72x128xf32, #tpu.memory_space<vmem>>, vector<1x72x128xf32>
    %157 = vector.shape_cast %156 : vector<1x72x128xf32> to vector<72x128xf32>
    %cst_132 = arith.constant dense<0.000000e+00> : vector<8x128xf32>
    %158 = tpu.matmul %155, %157, %cst_132 {dimension_numbers = #tpu.dot_dimension_numbers<[1], [0], [0], [1], [0, 0, 1, 1], [], []>} : vector<8x72xf32>, vector<72x128xf32>, vector<8x128xf32> -> vector<8x128xf32>
    %159 = arith.addf %154, %158 : vector<8x128xf32>
    %160 = vector.extract_strided_slice %143 {offsets = [3, 0], sizes = [8, 72], strides = [1, 1]} : vector<12x72xf32> to vector<8x72xf32>
    %c3_133 = arith.constant 3 : index
    %c0_134 = arith.constant 0 : index
    %c0_135 = arith.constant 0 : index
    %161 = vector.load %arg6[%c3_133, %c0_134, %c0_135] : memref<5x72x128xf32, #tpu.memory_space<vmem>>, vector<1x72x128xf32>
    %162 = vector.shape_cast %161 : vector<1x72x128xf32> to vector<72x128xf32>
    %cst_136 = arith.constant dense<0.000000e+00> : vector<8x128xf32>
    %163 = tpu.matmul %160, %162, %cst_136 {dimension_numbers = #tpu.dot_dimension_numbers<[1], [0], [0], [1], [0, 0, 1, 1], [], []>} : vector<8x72xf32>, vector<72x128xf32>, vector<8x128xf32> -> vector<8x128xf32>
    %164 = arith.addf %159, %163 : vector<8x128xf32>
    %165 = vector.extract_strided_slice %143 {offsets = [4, 0], sizes = [8, 72], strides = [1, 1]} : vector<12x72xf32> to vector<8x72xf32>
    %c4_137 = arith.constant 4 : index
    %c0_138 = arith.constant 0 : index
    %c0_139 = arith.constant 0 : index
    %166 = vector.load %arg6[%c4_137, %c0_138, %c0_139] : memref<5x72x128xf32, #tpu.memory_space<vmem>>, vector<1x72x128xf32>
    %167 = vector.shape_cast %166 : vector<1x72x128xf32> to vector<72x128xf32>
    %cst_140 = arith.constant dense<0.000000e+00> : vector<8x128xf32>
    %168 = tpu.matmul %165, %167, %cst_140 {dimension_numbers = #tpu.dot_dimension_numbers<[1], [0], [0], [1], [0, 0, 1, 1], [], []>} : vector<8x72xf32>, vector<72x128xf32>, vector<8x128xf32> -> vector<8x128xf32>
    %169 = arith.addf %164, %168 : vector<8x128xf32>
    %c0_141 = arith.constant 0 : index
    %c0_142 = arith.constant 0 : index
    %170 = vector.load %arg7[%c0_141, %c0_142] : memref<1x128xf32, #tpu.memory_space<vmem>>, vector<1x128xf32>
    %171 = vector.broadcast %170 : vector<1x128xf32> to vector<8x128xf32>
    %172 = arith.addf %169, %171 : vector<8x128xf32>
    %cst_143 = arith.constant 0.000000e+00 : f32
    %173 = vector.broadcast %cst_143 : f32 to vector<8x128xf32>
    %174 = arith.maximumf %172, %173 : vector<8x128xf32>
    %c0_144 = arith.constant 0 : index
    %c0_145 = arith.constant 0 : index
    %c0_146 = arith.constant 0 : index
    %175 = vector.load %arg8[%c0_144, %c0_145, %c0_146] : memref<2x128x64xf32, #tpu.memory_space<vmem>>, vector<1x128x64xf32>
    %176 = vector.shape_cast %175 : vector<1x128x64xf32> to vector<128x64xf32>
    %cst_147 = arith.constant dense<0.000000e+00> : vector<8x64xf32>
    %177 = tpu.matmul %174, %176, %cst_147 {dimension_numbers = #tpu.dot_dimension_numbers<[1], [0], [0], [1], [0, 0, 1, 1], [], []>} : vector<8x128xf32>, vector<128x64xf32>, vector<8x64xf32> -> vector<8x64xf32>
    %c1_148 = arith.constant 1 : index
    %c0_149 = arith.constant 0 : index
    %c0_150 = arith.constant 0 : index
    %178 = vector.load %arg8[%c1_148, %c0_149, %c0_150] : memref<2x128x64xf32, #tpu.memory_space<vmem>>, vector<1x128x64xf32>
    %179 = vector.shape_cast %178 : vector<1x128x64xf32> to vector<128x64xf32>
    %cst_151 = arith.constant dense<0.000000e+00> : vector<8x64xf32>
    %180 = tpu.matmul %174, %179, %cst_151 {dimension_numbers = #tpu.dot_dimension_numbers<[1], [0], [0], [1], [0, 0, 1, 1], [], []>} : vector<8x128xf32>, vector<128x64xf32>, vector<8x64xf32> -> vector<8x64xf32>
    %181 = arith.maximumf %177, %180 : vector<8x64xf32>
    %c0_152 = arith.constant 0 : index
    %c0_153 = arith.constant 0 : index
    %c0_154 = arith.constant 0 : index
    %182 = vector.load %arg9[%c0_152, %c0_153, %c0_154] : memref<2x4x8xf32, #tpu.memory_space<vmem>>, vector<1x4x8xf32>
    %183 = vector.shape_cast %182 : vector<1x4x8xf32> to vector<4x8xf32>
    %cst_155 = arith.constant dense<0.000000e+00> : vector<4x64xf32>
    %184 = tpu.matmul %183, %181, %cst_155 {dimension_numbers = #tpu.dot_dimension_numbers<[1], [0], [0], [1], [0, 0, 1, 1], [], []>} : vector<4x8xf32>, vector<8x64xf32>, vector<4x64xf32> -> vector<4x64xf32>
    %c1_156 = arith.constant 1 : index
    %c0_157 = arith.constant 0 : index
    %c0_158 = arith.constant 0 : index
    %185 = vector.load %arg9[%c1_156, %c0_157, %c0_158] : memref<2x4x8xf32, #tpu.memory_space<vmem>>, vector<1x4x8xf32>
    %186 = vector.shape_cast %185 : vector<1x4x8xf32> to vector<4x8xf32>
    %cst_159 = arith.constant dense<0.000000e+00> : vector<4x64xf32>
    %187 = tpu.matmul %186, %181, %cst_159 {dimension_numbers = #tpu.dot_dimension_numbers<[1], [0], [0], [1], [0, 0, 1, 1], [], []>} : vector<4x8xf32>, vector<8x64xf32>, vector<4x64xf32> -> vector<4x64xf32>
    %188 = arith.maximumf %184, %187 : vector<4x64xf32>
    %189 = vector.extract_strided_slice %188 {offsets = [0, 0], sizes = [1, 64], strides = [1, 1]} : vector<4x64xf32> to vector<1x64xf32>
    %190 = vector.extract_strided_slice %188 {offsets = [1, 0], sizes = [1, 64], strides = [1, 1]} : vector<4x64xf32> to vector<1x64xf32>
    %191 = vector.extract_strided_slice %188 {offsets = [2, 0], sizes = [1, 64], strides = [1, 1]} : vector<4x64xf32> to vector<1x64xf32>
    %192 = vector.extract_strided_slice %188 {offsets = [3, 0], sizes = [1, 64], strides = [1, 1]} : vector<4x64xf32> to vector<1x64xf32>
    %193 = tpu.concatenate %189, %190, %191, %192 in 1 : vector<1x64xf32>, vector<1x64xf32>, vector<1x64xf32>, vector<1x64xf32> -> vector<1x256xf32>
    %c2_160 = arith.constant 2 : index
    %c0_161 = arith.constant 0 : index
    %c0_162 = arith.constant 0 : index
    %194 = vector.load %arg1[%c2_160, %c0_161, %c0_162] : memref<8x28x28xf32, #tpu.memory_space<vmem>>, vector<1x28x28xf32>
    %195 = vector.shape_cast %194 : vector<1x28x28xf32> to vector<28x28xf32>
    %cst_163 = arith.constant 0.000000e+00 : f32
    %196 = vector.broadcast %cst_163 : f32 to vector<24x144xf32>
    %197 = vector.extract_strided_slice %195 {offsets = [0, 0], sizes = [24, 28], strides = [1, 1]} : vector<28x28xf32> to vector<24x28xf32>
    %c0_164 = arith.constant 0 : index
    %c0_165 = arith.constant 0 : index
    %c0_166 = arith.constant 0 : index
    %198 = vector.load %arg2[%c0_164, %c0_165, %c0_166] : memref<5x28x144xf32, #tpu.memory_space<vmem>>, vector<1x28x144xf32>
    %199 = vector.shape_cast %198 : vector<1x28x144xf32> to vector<28x144xf32>
    %cst_167 = arith.constant dense<0.000000e+00> : vector<24x144xf32>
    %200 = tpu.matmul %197, %199, %cst_167 {dimension_numbers = #tpu.dot_dimension_numbers<[1], [0], [0], [1], [0, 0, 1, 1], [], []>} : vector<24x28xf32>, vector<28x144xf32>, vector<24x144xf32> -> vector<24x144xf32>
    %201 = arith.addf %196, %200 : vector<24x144xf32>
    %202 = vector.extract_strided_slice %195 {offsets = [1, 0], sizes = [24, 28], strides = [1, 1]} : vector<28x28xf32> to vector<24x28xf32>
    %c1_168 = arith.constant 1 : index
    %c0_169 = arith.constant 0 : index
    %c0_170 = arith.constant 0 : index
    %203 = vector.load %arg2[%c1_168, %c0_169, %c0_170] : memref<5x28x144xf32, #tpu.memory_space<vmem>>, vector<1x28x144xf32>
    %204 = vector.shape_cast %203 : vector<1x28x144xf32> to vector<28x144xf32>
    %cst_171 = arith.constant dense<0.000000e+00> : vector<24x144xf32>
    %205 = tpu.matmul %202, %204, %cst_171 {dimension_numbers = #tpu.dot_dimension_numbers<[1], [0], [0], [1], [0, 0, 1, 1], [], []>} : vector<24x28xf32>, vector<28x144xf32>, vector<24x144xf32> -> vector<24x144xf32>
    %206 = arith.addf %201, %205 : vector<24x144xf32>
    %207 = vector.extract_strided_slice %195 {offsets = [2, 0], sizes = [24, 28], strides = [1, 1]} : vector<28x28xf32> to vector<24x28xf32>
    %c2_172 = arith.constant 2 : index
    %c0_173 = arith.constant 0 : index
    %c0_174 = arith.constant 0 : index
    %208 = vector.load %arg2[%c2_172, %c0_173, %c0_174] : memref<5x28x144xf32, #tpu.memory_space<vmem>>, vector<1x28x144xf32>
    %209 = vector.shape_cast %208 : vector<1x28x144xf32> to vector<28x144xf32>
    %cst_175 = arith.constant dense<0.000000e+00> : vector<24x144xf32>
    %210 = tpu.matmul %207, %209, %cst_175 {dimension_numbers = #tpu.dot_dimension_numbers<[1], [0], [0], [1], [0, 0, 1, 1], [], []>} : vector<24x28xf32>, vector<28x144xf32>, vector<24x144xf32> -> vector<24x144xf32>
    %211 = arith.addf %206, %210 : vector<24x144xf32>
    %212 = vector.extract_strided_slice %195 {offsets = [3, 0], sizes = [24, 28], strides = [1, 1]} : vector<28x28xf32> to vector<24x28xf32>
    %c3_176 = arith.constant 3 : index
    %c0_177 = arith.constant 0 : index
    %c0_178 = arith.constant 0 : index
    %213 = vector.load %arg2[%c3_176, %c0_177, %c0_178] : memref<5x28x144xf32, #tpu.memory_space<vmem>>, vector<1x28x144xf32>
    %214 = vector.shape_cast %213 : vector<1x28x144xf32> to vector<28x144xf32>
    %cst_179 = arith.constant dense<0.000000e+00> : vector<24x144xf32>
    %215 = tpu.matmul %212, %214, %cst_179 {dimension_numbers = #tpu.dot_dimension_numbers<[1], [0], [0], [1], [0, 0, 1, 1], [], []>} : vector<24x28xf32>, vector<28x144xf32>, vector<24x144xf32> -> vector<24x144xf32>
    %216 = arith.addf %211, %215 : vector<24x144xf32>
    %217 = vector.extract_strided_slice %195 {offsets = [4, 0], sizes = [24, 28], strides = [1, 1]} : vector<28x28xf32> to vector<24x28xf32>
    %c4_180 = arith.constant 4 : index
    %c0_181 = arith.constant 0 : index
    %c0_182 = arith.constant 0 : index
    %218 = vector.load %arg2[%c4_180, %c0_181, %c0_182] : memref<5x28x144xf32, #tpu.memory_space<vmem>>, vector<1x28x144xf32>
    %219 = vector.shape_cast %218 : vector<1x28x144xf32> to vector<28x144xf32>
    %cst_183 = arith.constant dense<0.000000e+00> : vector<24x144xf32>
    %220 = tpu.matmul %217, %219, %cst_183 {dimension_numbers = #tpu.dot_dimension_numbers<[1], [0], [0], [1], [0, 0, 1, 1], [], []>} : vector<24x28xf32>, vector<28x144xf32>, vector<24x144xf32> -> vector<24x144xf32>
    %221 = arith.addf %216, %220 : vector<24x144xf32>
    %c0_184 = arith.constant 0 : index
    %c0_185 = arith.constant 0 : index
    %222 = vector.load %arg3[%c0_184, %c0_185] : memref<1x144xf32, #tpu.memory_space<vmem>>, vector<1x144xf32>
    %223 = vector.broadcast %222 : vector<1x144xf32> to vector<24x144xf32>
    %224 = arith.addf %221, %223 : vector<24x144xf32>
    %cst_186 = arith.constant 0.000000e+00 : f32
    %225 = vector.broadcast %cst_186 : f32 to vector<24x144xf32>
    %226 = arith.maximumf %224, %225 : vector<24x144xf32>
    %c0_187 = arith.constant 0 : index
    %c0_188 = arith.constant 0 : index
    %c0_189 = arith.constant 0 : index
    %227 = vector.load %arg4[%c0_187, %c0_188, %c0_189] : memref<2x144x72xf32, #tpu.memory_space<vmem>>, vector<1x144x72xf32>
    %228 = vector.shape_cast %227 : vector<1x144x72xf32> to vector<144x72xf32>
    %cst_190 = arith.constant dense<0.000000e+00> : vector<24x72xf32>
    %229 = tpu.matmul %226, %228, %cst_190 {dimension_numbers = #tpu.dot_dimension_numbers<[1], [0], [0], [1], [0, 0, 1, 1], [], []>} : vector<24x144xf32>, vector<144x72xf32>, vector<24x72xf32> -> vector<24x72xf32>
    %c1_191 = arith.constant 1 : index
    %c0_192 = arith.constant 0 : index
    %c0_193 = arith.constant 0 : index
    %230 = vector.load %arg4[%c1_191, %c0_192, %c0_193] : memref<2x144x72xf32, #tpu.memory_space<vmem>>, vector<1x144x72xf32>
    %231 = vector.shape_cast %230 : vector<1x144x72xf32> to vector<144x72xf32>
    %cst_194 = arith.constant dense<0.000000e+00> : vector<24x72xf32>
    %232 = tpu.matmul %226, %231, %cst_194 {dimension_numbers = #tpu.dot_dimension_numbers<[1], [0], [0], [1], [0, 0, 1, 1], [], []>} : vector<24x144xf32>, vector<144x72xf32>, vector<24x72xf32> -> vector<24x72xf32>
    %233 = arith.maximumf %229, %232 : vector<24x72xf32>
    %c0_195 = arith.constant 0 : index
    %c0_196 = arith.constant 0 : index
    %c0_197 = arith.constant 0 : index
    %234 = vector.load %arg5[%c0_195, %c0_196, %c0_197] : memref<2x12x24xf32, #tpu.memory_space<vmem>>, vector<1x12x24xf32>
    %235 = vector.shape_cast %234 : vector<1x12x24xf32> to vector<12x24xf32>
    %cst_198 = arith.constant dense<0.000000e+00> : vector<12x72xf32>
    %236 = tpu.matmul %235, %233, %cst_198 {dimension_numbers = #tpu.dot_dimension_numbers<[1], [0], [0], [1], [0, 0, 1, 1], [], []>} : vector<12x24xf32>, vector<24x72xf32>, vector<12x72xf32> -> vector<12x72xf32>
    %c1_199 = arith.constant 1 : index
    %c0_200 = arith.constant 0 : index
    %c0_201 = arith.constant 0 : index
    %237 = vector.load %arg5[%c1_199, %c0_200, %c0_201] : memref<2x12x24xf32, #tpu.memory_space<vmem>>, vector<1x12x24xf32>
    %238 = vector.shape_cast %237 : vector<1x12x24xf32> to vector<12x24xf32>
    %cst_202 = arith.constant dense<0.000000e+00> : vector<12x72xf32>
    %239 = tpu.matmul %238, %233, %cst_202 {dimension_numbers = #tpu.dot_dimension_numbers<[1], [0], [0], [1], [0, 0, 1, 1], [], []>} : vector<12x24xf32>, vector<24x72xf32>, vector<12x72xf32> -> vector<12x72xf32>
    %240 = arith.maximumf %236, %239 : vector<12x72xf32>
    %cst_203 = arith.constant 0.000000e+00 : f32
    %241 = vector.broadcast %cst_203 : f32 to vector<8x128xf32>
    %242 = vector.extract_strided_slice %240 {offsets = [0, 0], sizes = [8, 72], strides = [1, 1]} : vector<12x72xf32> to vector<8x72xf32>
    %c0_204 = arith.constant 0 : index
    %c0_205 = arith.constant 0 : index
    %c0_206 = arith.constant 0 : index
    %243 = vector.load %arg6[%c0_204, %c0_205, %c0_206] : memref<5x72x128xf32, #tpu.memory_space<vmem>>, vector<1x72x128xf32>
    %244 = vector.shape_cast %243 : vector<1x72x128xf32> to vector<72x128xf32>
    %cst_207 = arith.constant dense<0.000000e+00> : vector<8x128xf32>
    %245 = tpu.matmul %242, %244, %cst_207 {dimension_numbers = #tpu.dot_dimension_numbers<[1], [0], [0], [1], [0, 0, 1, 1], [], []>} : vector<8x72xf32>, vector<72x128xf32>, vector<8x128xf32> -> vector<8x128xf32>
    %246 = arith.addf %241, %245 : vector<8x128xf32>
    %247 = vector.extract_strided_slice %240 {offsets = [1, 0], sizes = [8, 72], strides = [1, 1]} : vector<12x72xf32> to vector<8x72xf32>
    %c1_208 = arith.constant 1 : index
    %c0_209 = arith.constant 0 : index
    %c0_210 = arith.constant 0 : index
    %248 = vector.load %arg6[%c1_208, %c0_209, %c0_210] : memref<5x72x128xf32, #tpu.memory_space<vmem>>, vector<1x72x128xf32>
    %249 = vector.shape_cast %248 : vector<1x72x128xf32> to vector<72x128xf32>
    %cst_211 = arith.constant dense<0.000000e+00> : vector<8x128xf32>
    %250 = tpu.matmul %247, %249, %cst_211 {dimension_numbers = #tpu.dot_dimension_numbers<[1], [0], [0], [1], [0, 0, 1, 1], [], []>} : vector<8x72xf32>, vector<72x128xf32>, vector<8x128xf32> -> vector<8x128xf32>
    %251 = arith.addf %246, %250 : vector<8x128xf32>
    %252 = vector.extract_strided_slice %240 {offsets = [2, 0], sizes = [8, 72], strides = [1, 1]} : vector<12x72xf32> to vector<8x72xf32>
    %c2_212 = arith.constant 2 : index
    %c0_213 = arith.constant 0 : index
    %c0_214 = arith.constant 0 : index
    %253 = vector.load %arg6[%c2_212, %c0_213, %c0_214] : memref<5x72x128xf32, #tpu.memory_space<vmem>>, vector<1x72x128xf32>
    %254 = vector.shape_cast %253 : vector<1x72x128xf32> to vector<72x128xf32>
    %cst_215 = arith.constant dense<0.000000e+00> : vector<8x128xf32>
    %255 = tpu.matmul %252, %254, %cst_215 {dimension_numbers = #tpu.dot_dimension_numbers<[1], [0], [0], [1], [0, 0, 1, 1], [], []>} : vector<8x72xf32>, vector<72x128xf32>, vector<8x128xf32> -> vector<8x128xf32>
    %256 = arith.addf %251, %255 : vector<8x128xf32>
    %257 = vector.extract_strided_slice %240 {offsets = [3, 0], sizes = [8, 72], strides = [1, 1]} : vector<12x72xf32> to vector<8x72xf32>
    %c3_216 = arith.constant 3 : index
    %c0_217 = arith.constant 0 : index
    %c0_218 = arith.constant 0 : index
    %258 = vector.load %arg6[%c3_216, %c0_217, %c0_218] : memref<5x72x128xf32, #tpu.memory_space<vmem>>, vector<1x72x128xf32>
    %259 = vector.shape_cast %258 : vector<1x72x128xf32> to vector<72x128xf32>
    %cst_219 = arith.constant dense<0.000000e+00> : vector<8x128xf32>
    %260 = tpu.matmul %257, %259, %cst_219 {dimension_numbers = #tpu.dot_dimension_numbers<[1], [0], [0], [1], [0, 0, 1, 1], [], []>} : vector<8x72xf32>, vector<72x128xf32>, vector<8x128xf32> -> vector<8x128xf32>
    %261 = arith.addf %256, %260 : vector<8x128xf32>
    %262 = vector.extract_strided_slice %240 {offsets = [4, 0], sizes = [8, 72], strides = [1, 1]} : vector<12x72xf32> to vector<8x72xf32>
    %c4_220 = arith.constant 4 : index
    %c0_221 = arith.constant 0 : index
    %c0_222 = arith.constant 0 : index
    %263 = vector.load %arg6[%c4_220, %c0_221, %c0_222] : memref<5x72x128xf32, #tpu.memory_space<vmem>>, vector<1x72x128xf32>
    %264 = vector.shape_cast %263 : vector<1x72x128xf32> to vector<72x128xf32>
    %cst_223 = arith.constant dense<0.000000e+00> : vector<8x128xf32>
    %265 = tpu.matmul %262, %264, %cst_223 {dimension_numbers = #tpu.dot_dimension_numbers<[1], [0], [0], [1], [0, 0, 1, 1], [], []>} : vector<8x72xf32>, vector<72x128xf32>, vector<8x128xf32> -> vector<8x128xf32>
    %266 = arith.addf %261, %265 : vector<8x128xf32>
    %c0_224 = arith.constant 0 : index
    %c0_225 = arith.constant 0 : index
    %267 = vector.load %arg7[%c0_224, %c0_225] : memref<1x128xf32, #tpu.memory_space<vmem>>, vector<1x128xf32>
    %268 = vector.broadcast %267 : vector<1x128xf32> to vector<8x128xf32>
    %269 = arith.addf %266, %268 : vector<8x128xf32>
    %cst_226 = arith.constant 0.000000e+00 : f32
    %270 = vector.broadcast %cst_226 : f32 to vector<8x128xf32>
    %271 = arith.maximumf %269, %270 : vector<8x128xf32>
    %c0_227 = arith.constant 0 : index
    %c0_228 = arith.constant 0 : index
    %c0_229 = arith.constant 0 : index
    %272 = vector.load %arg8[%c0_227, %c0_228, %c0_229] : memref<2x128x64xf32, #tpu.memory_space<vmem>>, vector<1x128x64xf32>
    %273 = vector.shape_cast %272 : vector<1x128x64xf32> to vector<128x64xf32>
    %cst_230 = arith.constant dense<0.000000e+00> : vector<8x64xf32>
    %274 = tpu.matmul %271, %273, %cst_230 {dimension_numbers = #tpu.dot_dimension_numbers<[1], [0], [0], [1], [0, 0, 1, 1], [], []>} : vector<8x128xf32>, vector<128x64xf32>, vector<8x64xf32> -> vector<8x64xf32>
    %c1_231 = arith.constant 1 : index
    %c0_232 = arith.constant 0 : index
    %c0_233 = arith.constant 0 : index
    %275 = vector.load %arg8[%c1_231, %c0_232, %c0_233] : memref<2x128x64xf32, #tpu.memory_space<vmem>>, vector<1x128x64xf32>
    %276 = vector.shape_cast %275 : vector<1x128x64xf32> to vector<128x64xf32>
    %cst_234 = arith.constant dense<0.000000e+00> : vector<8x64xf32>
    %277 = tpu.matmul %271, %276, %cst_234 {dimension_numbers = #tpu.dot_dimension_numbers<[1], [0], [0], [1], [0, 0, 1, 1], [], []>} : vector<8x128xf32>, vector<128x64xf32>, vector<8x64xf32> -> vector<8x64xf32>
    %278 = arith.maximumf %274, %277 : vector<8x64xf32>
    %c0_235 = arith.constant 0 : index
    %c0_236 = arith.constant 0 : index
    %c0_237 = arith.constant 0 : index
    %279 = vector.load %arg9[%c0_235, %c0_236, %c0_237] : memref<2x4x8xf32, #tpu.memory_space<vmem>>, vector<1x4x8xf32>
    %280 = vector.shape_cast %279 : vector<1x4x8xf32> to vector<4x8xf32>
    %cst_238 = arith.constant dense<0.000000e+00> : vector<4x64xf32>
    %281 = tpu.matmul %280, %278, %cst_238 {dimension_numbers = #tpu.dot_dimension_numbers<[1], [0], [0], [1], [0, 0, 1, 1], [], []>} : vector<4x8xf32>, vector<8x64xf32>, vector<4x64xf32> -> vector<4x64xf32>
    %c1_239 = arith.constant 1 : index
    %c0_240 = arith.constant 0 : index
    %c0_241 = arith.constant 0 : index
    %282 = vector.load %arg9[%c1_239, %c0_240, %c0_241] : memref<2x4x8xf32, #tpu.memory_space<vmem>>, vector<1x4x8xf32>
    %283 = vector.shape_cast %282 : vector<1x4x8xf32> to vector<4x8xf32>
    %cst_242 = arith.constant dense<0.000000e+00> : vector<4x64xf32>
    %284 = tpu.matmul %283, %278, %cst_242 {dimension_numbers = #tpu.dot_dimension_numbers<[1], [0], [0], [1], [0, 0, 1, 1], [], []>} : vector<4x8xf32>, vector<8x64xf32>, vector<4x64xf32> -> vector<4x64xf32>
    %285 = arith.maximumf %281, %284 : vector<4x64xf32>
    %286 = vector.extract_strided_slice %285 {offsets = [0, 0], sizes = [1, 64], strides = [1, 1]} : vector<4x64xf32> to vector<1x64xf32>
    %287 = vector.extract_strided_slice %285 {offsets = [1, 0], sizes = [1, 64], strides = [1, 1]} : vector<4x64xf32> to vector<1x64xf32>
    %288 = vector.extract_strided_slice %285 {offsets = [2, 0], sizes = [1, 64], strides = [1, 1]} : vector<4x64xf32> to vector<1x64xf32>
    %289 = vector.extract_strided_slice %285 {offsets = [3, 0], sizes = [1, 64], strides = [1, 1]} : vector<4x64xf32> to vector<1x64xf32>
    %290 = tpu.concatenate %286, %287, %288, %289 in 1 : vector<1x64xf32>, vector<1x64xf32>, vector<1x64xf32>, vector<1x64xf32> -> vector<1x256xf32>
    %c3_243 = arith.constant 3 : index
    %c0_244 = arith.constant 0 : index
    %c0_245 = arith.constant 0 : index
    %291 = vector.load %arg1[%c3_243, %c0_244, %c0_245] : memref<8x28x28xf32, #tpu.memory_space<vmem>>, vector<1x28x28xf32>
    %292 = vector.shape_cast %291 : vector<1x28x28xf32> to vector<28x28xf32>
    %cst_246 = arith.constant 0.000000e+00 : f32
    %293 = vector.broadcast %cst_246 : f32 to vector<24x144xf32>
    %294 = vector.extract_strided_slice %292 {offsets = [0, 0], sizes = [24, 28], strides = [1, 1]} : vector<28x28xf32> to vector<24x28xf32>
    %c0_247 = arith.constant 0 : index
    %c0_248 = arith.constant 0 : index
    %c0_249 = arith.constant 0 : index
    %295 = vector.load %arg2[%c0_247, %c0_248, %c0_249] : memref<5x28x144xf32, #tpu.memory_space<vmem>>, vector<1x28x144xf32>
    %296 = vector.shape_cast %295 : vector<1x28x144xf32> to vector<28x144xf32>
    %cst_250 = arith.constant dense<0.000000e+00> : vector<24x144xf32>
    %297 = tpu.matmul %294, %296, %cst_250 {dimension_numbers = #tpu.dot_dimension_numbers<[1], [0], [0], [1], [0, 0, 1, 1], [], []>} : vector<24x28xf32>, vector<28x144xf32>, vector<24x144xf32> -> vector<24x144xf32>
    %298 = arith.addf %293, %297 : vector<24x144xf32>
    %299 = vector.extract_strided_slice %292 {offsets = [1, 0], sizes = [24, 28], strides = [1, 1]} : vector<28x28xf32> to vector<24x28xf32>
    %c1_251 = arith.constant 1 : index
    %c0_252 = arith.constant 0 : index
    %c0_253 = arith.constant 0 : index
    %300 = vector.load %arg2[%c1_251, %c0_252, %c0_253] : memref<5x28x144xf32, #tpu.memory_space<vmem>>, vector<1x28x144xf32>
    %301 = vector.shape_cast %300 : vector<1x28x144xf32> to vector<28x144xf32>
    %cst_254 = arith.constant dense<0.000000e+00> : vector<24x144xf32>
    %302 = tpu.matmul %299, %301, %cst_254 {dimension_numbers = #tpu.dot_dimension_numbers<[1], [0], [0], [1], [0, 0, 1, 1], [], []>} : vector<24x28xf32>, vector<28x144xf32>, vector<24x144xf32> -> vector<24x144xf32>
    %303 = arith.addf %298, %302 : vector<24x144xf32>
    %304 = vector.extract_strided_slice %292 {offsets = [2, 0], sizes = [24, 28], strides = [1, 1]} : vector<28x28xf32> to vector<24x28xf32>
    %c2_255 = arith.constant 2 : index
    %c0_256 = arith.constant 0 : index
    %c0_257 = arith.constant 0 : index
    %305 = vector.load %arg2[%c2_255, %c0_256, %c0_257] : memref<5x28x144xf32, #tpu.memory_space<vmem>>, vector<1x28x144xf32>
    %306 = vector.shape_cast %305 : vector<1x28x144xf32> to vector<28x144xf32>
    %cst_258 = arith.constant dense<0.000000e+00> : vector<24x144xf32>
    %307 = tpu.matmul %304, %306, %cst_258 {dimension_numbers = #tpu.dot_dimension_numbers<[1], [0], [0], [1], [0, 0, 1, 1], [], []>} : vector<24x28xf32>, vector<28x144xf32>, vector<24x144xf32> -> vector<24x144xf32>
    %308 = arith.addf %303, %307 : vector<24x144xf32>
    %309 = vector.extract_strided_slice %292 {offsets = [3, 0], sizes = [24, 28], strides = [1, 1]} : vector<28x28xf32> to vector<24x28xf32>
    %c3_259 = arith.constant 3 : index
    %c0_260 = arith.constant 0 : index
    %c0_261 = arith.constant 0 : index
    %310 = vector.load %arg2[%c3_259, %c0_260, %c0_261] : memref<5x28x144xf32, #tpu.memory_space<vmem>>, vector<1x28x144xf32>
    %311 = vector.shape_cast %310 : vector<1x28x144xf32> to vector<28x144xf32>
    %cst_262 = arith.constant dense<0.000000e+00> : vector<24x144xf32>
    %312 = tpu.matmul %309, %311, %cst_262 {dimension_numbers = #tpu.dot_dimension_numbers<[1], [0], [0], [1], [0, 0, 1, 1], [], []>} : vector<24x28xf32>, vector<28x144xf32>, vector<24x144xf32> -> vector<24x144xf32>
    %313 = arith.addf %308, %312 : vector<24x144xf32>
    %314 = vector.extract_strided_slice %292 {offsets = [4, 0], sizes = [24, 28], strides = [1, 1]} : vector<28x28xf32> to vector<24x28xf32>
    %c4_263 = arith.constant 4 : index
    %c0_264 = arith.constant 0 : index
    %c0_265 = arith.constant 0 : index
    %315 = vector.load %arg2[%c4_263, %c0_264, %c0_265] : memref<5x28x144xf32, #tpu.memory_space<vmem>>, vector<1x28x144xf32>
    %316 = vector.shape_cast %315 : vector<1x28x144xf32> to vector<28x144xf32>
    %cst_266 = arith.constant dense<0.000000e+00> : vector<24x144xf32>
    %317 = tpu.matmul %314, %316, %cst_266 {dimension_numbers = #tpu.dot_dimension_numbers<[1], [0], [0], [1], [0, 0, 1, 1], [], []>} : vector<24x28xf32>, vector<28x144xf32>, vector<24x144xf32> -> vector<24x144xf32>
    %318 = arith.addf %313, %317 : vector<24x144xf32>
    %c0_267 = arith.constant 0 : index
    %c0_268 = arith.constant 0 : index
    %319 = vector.load %arg3[%c0_267, %c0_268] : memref<1x144xf32, #tpu.memory_space<vmem>>, vector<1x144xf32>
    %320 = vector.broadcast %319 : vector<1x144xf32> to vector<24x144xf32>
    %321 = arith.addf %318, %320 : vector<24x144xf32>
    %cst_269 = arith.constant 0.000000e+00 : f32
    %322 = vector.broadcast %cst_269 : f32 to vector<24x144xf32>
    %323 = arith.maximumf %321, %322 : vector<24x144xf32>
    %c0_270 = arith.constant 0 : index
    %c0_271 = arith.constant 0 : index
    %c0_272 = arith.constant 0 : index
    %324 = vector.load %arg4[%c0_270, %c0_271, %c0_272] : memref<2x144x72xf32, #tpu.memory_space<vmem>>, vector<1x144x72xf32>
    %325 = vector.shape_cast %324 : vector<1x144x72xf32> to vector<144x72xf32>
    %cst_273 = arith.constant dense<0.000000e+00> : vector<24x72xf32>
    %326 = tpu.matmul %323, %325, %cst_273 {dimension_numbers = #tpu.dot_dimension_numbers<[1], [0], [0], [1], [0, 0, 1, 1], [], []>} : vector<24x144xf32>, vector<144x72xf32>, vector<24x72xf32> -> vector<24x72xf32>
    %c1_274 = arith.constant 1 : index
    %c0_275 = arith.constant 0 : index
    %c0_276 = arith.constant 0 : index
    %327 = vector.load %arg4[%c1_274, %c0_275, %c0_276] : memref<2x144x72xf32, #tpu.memory_space<vmem>>, vector<1x144x72xf32>
    %328 = vector.shape_cast %327 : vector<1x144x72xf32> to vector<144x72xf32>
    %cst_277 = arith.constant dense<0.000000e+00> : vector<24x72xf32>
    %329 = tpu.matmul %323, %328, %cst_277 {dimension_numbers = #tpu.dot_dimension_numbers<[1], [0], [0], [1], [0, 0, 1, 1], [], []>} : vector<24x144xf32>, vector<144x72xf32>, vector<24x72xf32> -> vector<24x72xf32>
    %330 = arith.maximumf %326, %329 : vector<24x72xf32>
    %c0_278 = arith.constant 0 : index
    %c0_279 = arith.constant 0 : index
    %c0_280 = arith.constant 0 : index
    %331 = vector.load %arg5[%c0_278, %c0_279, %c0_280] : memref<2x12x24xf32, #tpu.memory_space<vmem>>, vector<1x12x24xf32>
    %332 = vector.shape_cast %331 : vector<1x12x24xf32> to vector<12x24xf32>
    %cst_281 = arith.constant dense<0.000000e+00> : vector<12x72xf32>
    %333 = tpu.matmul %332, %330, %cst_281 {dimension_numbers = #tpu.dot_dimension_numbers<[1], [0], [0], [1], [0, 0, 1, 1], [], []>} : vector<12x24xf32>, vector<24x72xf32>, vector<12x72xf32> -> vector<12x72xf32>
    %c1_282 = arith.constant 1 : index
    %c0_283 = arith.constant 0 : index
    %c0_284 = arith.constant 0 : index
    %334 = vector.load %arg5[%c1_282, %c0_283, %c0_284] : memref<2x12x24xf32, #tpu.memory_space<vmem>>, vector<1x12x24xf32>
    %335 = vector.shape_cast %334 : vector<1x12x24xf32> to vector<12x24xf32>
    %cst_285 = arith.constant dense<0.000000e+00> : vector<12x72xf32>
    %336 = tpu.matmul %335, %330, %cst_285 {dimension_numbers = #tpu.dot_dimension_numbers<[1], [0], [0], [1], [0, 0, 1, 1], [], []>} : vector<12x24xf32>, vector<24x72xf32>, vector<12x72xf32> -> vector<12x72xf32>
    %337 = arith.maximumf %333, %336 : vector<12x72xf32>
    %cst_286 = arith.constant 0.000000e+00 : f32
    %338 = vector.broadcast %cst_286 : f32 to vector<8x128xf32>
    %339 = vector.extract_strided_slice %337 {offsets = [0, 0], sizes = [8, 72], strides = [1, 1]} : vector<12x72xf32> to vector<8x72xf32>
    %c0_287 = arith.constant 0 : index
    %c0_288 = arith.constant 0 : index
    %c0_289 = arith.constant 0 : index
    %340 = vector.load %arg6[%c0_287, %c0_288, %c0_289] : memref<5x72x128xf32, #tpu.memory_space<vmem>>, vector<1x72x128xf32>
    %341 = vector.shape_cast %340 : vector<1x72x128xf32> to vector<72x128xf32>
    %cst_290 = arith.constant dense<0.000000e+00> : vector<8x128xf32>
    %342 = tpu.matmul %339, %341, %cst_290 {dimension_numbers = #tpu.dot_dimension_numbers<[1], [0], [0], [1], [0, 0, 1, 1], [], []>} : vector<8x72xf32>, vector<72x128xf32>, vector<8x128xf32> -> vector<8x128xf32>
    %343 = arith.addf %338, %342 : vector<8x128xf32>
    %344 = vector.extract_strided_slice %337 {offsets = [1, 0], sizes = [8, 72], strides = [1, 1]} : vector<12x72xf32> to vector<8x72xf32>
    %c1_291 = arith.constant 1 : index
    %c0_292 = arith.constant 0 : index
    %c0_293 = arith.constant 0 : index
    %345 = vector.load %arg6[%c1_291, %c0_292, %c0_293] : memref<5x72x128xf32, #tpu.memory_space<vmem>>, vector<1x72x128xf32>
    %346 = vector.shape_cast %345 : vector<1x72x128xf32> to vector<72x128xf32>
    %cst_294 = arith.constant dense<0.000000e+00> : vector<8x128xf32>
    %347 = tpu.matmul %344, %346, %cst_294 {dimension_numbers = #tpu.dot_dimension_numbers<[1], [0], [0], [1], [0, 0, 1, 1], [], []>} : vector<8x72xf32>, vector<72x128xf32>, vector<8x128xf32> -> vector<8x128xf32>
    %348 = arith.addf %343, %347 : vector<8x128xf32>
    %349 = vector.extract_strided_slice %337 {offsets = [2, 0], sizes = [8, 72], strides = [1, 1]} : vector<12x72xf32> to vector<8x72xf32>
    %c2_295 = arith.constant 2 : index
    %c0_296 = arith.constant 0 : index
    %c0_297 = arith.constant 0 : index
    %350 = vector.load %arg6[%c2_295, %c0_296, %c0_297] : memref<5x72x128xf32, #tpu.memory_space<vmem>>, vector<1x72x128xf32>
    %351 = vector.shape_cast %350 : vector<1x72x128xf32> to vector<72x128xf32>
    %cst_298 = arith.constant dense<0.000000e+00> : vector<8x128xf32>
    %352 = tpu.matmul %349, %351, %cst_298 {dimension_numbers = #tpu.dot_dimension_numbers<[1], [0], [0], [1], [0, 0, 1, 1], [], []>} : vector<8x72xf32>, vector<72x128xf32>, vector<8x128xf32> -> vector<8x128xf32>
    %353 = arith.addf %348, %352 : vector<8x128xf32>
    %354 = vector.extract_strided_slice %337 {offsets = [3, 0], sizes = [8, 72], strides = [1, 1]} : vector<12x72xf32> to vector<8x72xf32>
    %c3_299 = arith.constant 3 : index
    %c0_300 = arith.constant 0 : index
    %c0_301 = arith.constant 0 : index
    %355 = vector.load %arg6[%c3_299, %c0_300, %c0_301] : memref<5x72x128xf32, #tpu.memory_space<vmem>>, vector<1x72x128xf32>
    %356 = vector.shape_cast %355 : vector<1x72x128xf32> to vector<72x128xf32>
    %cst_302 = arith.constant dense<0.000000e+00> : vector<8x128xf32>
    %357 = tpu.matmul %354, %356, %cst_302 {dimension_numbers = #tpu.dot_dimension_numbers<[1], [0], [0], [1], [0, 0, 1, 1], [], []>} : vector<8x72xf32>, vector<72x128xf32>, vector<8x128xf32> -> vector<8x128xf32>
    %358 = arith.addf %353, %357 : vector<8x128xf32>
    %359 = vector.extract_strided_slice %337 {offsets = [4, 0], sizes = [8, 72], strides = [1, 1]} : vector<12x72xf32> to vector<8x72xf32>
    %c4_303 = arith.constant 4 : index
    %c0_304 = arith.constant 0 : index
    %c0_305 = arith.constant 0 : index
    %360 = vector.load %arg6[%c4_303, %c0_304, %c0_305] : memref<5x72x128xf32, #tpu.memory_space<vmem>>, vector<1x72x128xf32>
    %361 = vector.shape_cast %360 : vector<1x72x128xf32> to vector<72x128xf32>
    %cst_306 = arith.constant dense<0.000000e+00> : vector<8x128xf32>
    %362 = tpu.matmul %359, %361, %cst_306 {dimension_numbers = #tpu.dot_dimension_numbers<[1], [0], [0], [1], [0, 0, 1, 1], [], []>} : vector<8x72xf32>, vector<72x128xf32>, vector<8x128xf32> -> vector<8x128xf32>
    %363 = arith.addf %358, %362 : vector<8x128xf32>
    %c0_307 = arith.constant 0 : index
    %c0_308 = arith.constant 0 : index
    %364 = vector.load %arg7[%c0_307, %c0_308] : memref<1x128xf32, #tpu.memory_space<vmem>>, vector<1x128xf32>
    %365 = vector.broadcast %364 : vector<1x128xf32> to vector<8x128xf32>
    %366 = arith.addf %363, %365 : vector<8x128xf32>
    %cst_309 = arith.constant 0.000000e+00 : f32
    %367 = vector.broadcast %cst_309 : f32 to vector<8x128xf32>
    %368 = arith.maximumf %366, %367 : vector<8x128xf32>
    %c0_310 = arith.constant 0 : index
    %c0_311 = arith.constant 0 : index
    %c0_312 = arith.constant 0 : index
    %369 = vector.load %arg8[%c0_310, %c0_311, %c0_312] : memref<2x128x64xf32, #tpu.memory_space<vmem>>, vector<1x128x64xf32>
    %370 = vector.shape_cast %369 : vector<1x128x64xf32> to vector<128x64xf32>
    %cst_313 = arith.constant dense<0.000000e+00> : vector<8x64xf32>
    %371 = tpu.matmul %368, %370, %cst_313 {dimension_numbers = #tpu.dot_dimension_numbers<[1], [0], [0], [1], [0, 0, 1, 1], [], []>} : vector<8x128xf32>, vector<128x64xf32>, vector<8x64xf32> -> vector<8x64xf32>
    %c1_314 = arith.constant 1 : index
    %c0_315 = arith.constant 0 : index
    %c0_316 = arith.constant 0 : index
    %372 = vector.load %arg8[%c1_314, %c0_315, %c0_316] : memref<2x128x64xf32, #tpu.memory_space<vmem>>, vector<1x128x64xf32>
    %373 = vector.shape_cast %372 : vector<1x128x64xf32> to vector<128x64xf32>
    %cst_317 = arith.constant dense<0.000000e+00> : vector<8x64xf32>
    %374 = tpu.matmul %368, %373, %cst_317 {dimension_numbers = #tpu.dot_dimension_numbers<[1], [0], [0], [1], [0, 0, 1, 1], [], []>} : vector<8x128xf32>, vector<128x64xf32>, vector<8x64xf32> -> vector<8x64xf32>
    %375 = arith.maximumf %371, %374 : vector<8x64xf32>
    %c0_318 = arith.constant 0 : index
    %c0_319 = arith.constant 0 : index
    %c0_320 = arith.constant 0 : index
    %376 = vector.load %arg9[%c0_318, %c0_319, %c0_320] : memref<2x4x8xf32, #tpu.memory_space<vmem>>, vector<1x4x8xf32>
    %377 = vector.shape_cast %376 : vector<1x4x8xf32> to vector<4x8xf32>
    %cst_321 = arith.constant dense<0.000000e+00> : vector<4x64xf32>
    %378 = tpu.matmul %377, %375, %cst_321 {dimension_numbers = #tpu.dot_dimension_numbers<[1], [0], [0], [1], [0, 0, 1, 1], [], []>} : vector<4x8xf32>, vector<8x64xf32>, vector<4x64xf32> -> vector<4x64xf32>
    %c1_322 = arith.constant 1 : index
    %c0_323 = arith.constant 0 : index
    %c0_324 = arith.constant 0 : index
    %379 = vector.load %arg9[%c1_322, %c0_323, %c0_324] : memref<2x4x8xf32, #tpu.memory_space<vmem>>, vector<1x4x8xf32>
    %380 = vector.shape_cast %379 : vector<1x4x8xf32> to vector<4x8xf32>
    %cst_325 = arith.constant dense<0.000000e+00> : vector<4x64xf32>
    %381 = tpu.matmul %380, %375, %cst_325 {dimension_numbers = #tpu.dot_dimension_numbers<[1], [0], [0], [1], [0, 0, 1, 1], [], []>} : vector<4x8xf32>, vector<8x64xf32>, vector<4x64xf32> -> vector<4x64xf32>
    %382 = arith.maximumf %378, %381 : vector<4x64xf32>
    %383 = vector.extract_strided_slice %382 {offsets = [0, 0], sizes = [1, 64], strides = [1, 1]} : vector<4x64xf32> to vector<1x64xf32>
    %384 = vector.extract_strided_slice %382 {offsets = [1, 0], sizes = [1, 64], strides = [1, 1]} : vector<4x64xf32> to vector<1x64xf32>
    %385 = vector.extract_strided_slice %382 {offsets = [2, 0], sizes = [1, 64], strides = [1, 1]} : vector<4x64xf32> to vector<1x64xf32>
    %386 = vector.extract_strided_slice %382 {offsets = [3, 0], sizes = [1, 64], strides = [1, 1]} : vector<4x64xf32> to vector<1x64xf32>
    %387 = tpu.concatenate %383, %384, %385, %386 in 1 : vector<1x64xf32>, vector<1x64xf32>, vector<1x64xf32>, vector<1x64xf32> -> vector<1x256xf32>
    %c4_326 = arith.constant 4 : index
    %c0_327 = arith.constant 0 : index
    %c0_328 = arith.constant 0 : index
    %388 = vector.load %arg1[%c4_326, %c0_327, %c0_328] : memref<8x28x28xf32, #tpu.memory_space<vmem>>, vector<1x28x28xf32>
    %389 = vector.shape_cast %388 : vector<1x28x28xf32> to vector<28x28xf32>
    %cst_329 = arith.constant 0.000000e+00 : f32
    %390 = vector.broadcast %cst_329 : f32 to vector<24x144xf32>
    %391 = vector.extract_strided_slice %389 {offsets = [0, 0], sizes = [24, 28], strides = [1, 1]} : vector<28x28xf32> to vector<24x28xf32>
    %c0_330 = arith.constant 0 : index
    %c0_331 = arith.constant 0 : index
    %c0_332 = arith.constant 0 : index
    %392 = vector.load %arg2[%c0_330, %c0_331, %c0_332] : memref<5x28x144xf32, #tpu.memory_space<vmem>>, vector<1x28x144xf32>
    %393 = vector.shape_cast %392 : vector<1x28x144xf32> to vector<28x144xf32>
    %cst_333 = arith.constant dense<0.000000e+00> : vector<24x144xf32>
    %394 = tpu.matmul %391, %393, %cst_333 {dimension_numbers = #tpu.dot_dimension_numbers<[1], [0], [0], [1], [0, 0, 1, 1], [], []>} : vector<24x28xf32>, vector<28x144xf32>, vector<24x144xf32> -> vector<24x144xf32>
    %395 = arith.addf %390, %394 : vector<24x144xf32>
    %396 = vector.extract_strided_slice %389 {offsets = [1, 0], sizes = [24, 28], strides = [1, 1]} : vector<28x28xf32> to vector<24x28xf32>
    %c1_334 = arith.constant 1 : index
    %c0_335 = arith.constant 0 : index
    %c0_336 = arith.constant 0 : index
    %397 = vector.load %arg2[%c1_334, %c0_335, %c0_336] : memref<5x28x144xf32, #tpu.memory_space<vmem>>, vector<1x28x144xf32>
    %398 = vector.shape_cast %397 : vector<1x28x144xf32> to vector<28x144xf32>
    %cst_337 = arith.constant dense<0.000000e+00> : vector<24x144xf32>
    %399 = tpu.matmul %396, %398, %cst_337 {dimension_numbers = #tpu.dot_dimension_numbers<[1], [0], [0], [1], [0, 0, 1, 1], [], []>} : vector<24x28xf32>, vector<28x144xf32>, vector<24x144xf32> -> vector<24x144xf32>
    %400 = arith.addf %395, %399 : vector<24x144xf32>
    %401 = vector.extract_strided_slice %389 {offsets = [2, 0], sizes = [24, 28], strides = [1, 1]} : vector<28x28xf32> to vector<24x28xf32>
    %c2_338 = arith.constant 2 : index
    %c0_339 = arith.constant 0 : index
    %c0_340 = arith.constant 0 : index
    %402 = vector.load %arg2[%c2_338, %c0_339, %c0_340] : memref<5x28x144xf32, #tpu.memory_space<vmem>>, vector<1x28x144xf32>
    %403 = vector.shape_cast %402 : vector<1x28x144xf32> to vector<28x144xf32>
    %cst_341 = arith.constant dense<0.000000e+00> : vector<24x144xf32>
    %404 = tpu.matmul %401, %403, %cst_341 {dimension_numbers = #tpu.dot_dimension_numbers<[1], [0], [0], [1], [0, 0, 1, 1], [], []>} : vector<24x28xf32>, vector<28x144xf32>, vector<24x144xf32> -> vector<24x144xf32>
    %405 = arith.addf %400, %404 : vector<24x144xf32>
    %406 = vector.extract_strided_slice %389 {offsets = [3, 0], sizes = [24, 28], strides = [1, 1]} : vector<28x28xf32> to vector<24x28xf32>
    %c3_342 = arith.constant 3 : index
    %c0_343 = arith.constant 0 : index
    %c0_344 = arith.constant 0 : index
    %407 = vector.load %arg2[%c3_342, %c0_343, %c0_344] : memref<5x28x144xf32, #tpu.memory_space<vmem>>, vector<1x28x144xf32>
    %408 = vector.shape_cast %407 : vector<1x28x144xf32> to vector<28x144xf32>
    %cst_345 = arith.constant dense<0.000000e+00> : vector<24x144xf32>
    %409 = tpu.matmul %406, %408, %cst_345 {dimension_numbers = #tpu.dot_dimension_numbers<[1], [0], [0], [1], [0, 0, 1, 1], [], []>} : vector<24x28xf32>, vector<28x144xf32>, vector<24x144xf32> -> vector<24x144xf32>
    %410 = arith.addf %405, %409 : vector<24x144xf32>
    %411 = vector.extract_strided_slice %389 {offsets = [4, 0], sizes = [24, 28], strides = [1, 1]} : vector<28x28xf32> to vector<24x28xf32>
    %c4_346 = arith.constant 4 : index
    %c0_347 = arith.constant 0 : index
    %c0_348 = arith.constant 0 : index
    %412 = vector.load %arg2[%c4_346, %c0_347, %c0_348] : memref<5x28x144xf32, #tpu.memory_space<vmem>>, vector<1x28x144xf32>
    %413 = vector.shape_cast %412 : vector<1x28x144xf32> to vector<28x144xf32>
    %cst_349 = arith.constant dense<0.000000e+00> : vector<24x144xf32>
    %414 = tpu.matmul %411, %413, %cst_349 {dimension_numbers = #tpu.dot_dimension_numbers<[1], [0], [0], [1], [0, 0, 1, 1], [], []>} : vector<24x28xf32>, vector<28x144xf32>, vector<24x144xf32> -> vector<24x144xf32>
    %415 = arith.addf %410, %414 : vector<24x144xf32>
    %c0_350 = arith.constant 0 : index
    %c0_351 = arith.constant 0 : index
    %416 = vector.load %arg3[%c0_350, %c0_351] : memref<1x144xf32, #tpu.memory_space<vmem>>, vector<1x144xf32>
    %417 = vector.broadcast %416 : vector<1x144xf32> to vector<24x144xf32>
    %418 = arith.addf %415, %417 : vector<24x144xf32>
    %cst_352 = arith.constant 0.000000e+00 : f32
    %419 = vector.broadcast %cst_352 : f32 to vector<24x144xf32>
    %420 = arith.maximumf %418, %419 : vector<24x144xf32>
    %c0_353 = arith.constant 0 : index
    %c0_354 = arith.constant 0 : index
    %c0_355 = arith.constant 0 : index
    %421 = vector.load %arg4[%c0_353, %c0_354, %c0_355] : memref<2x144x72xf32, #tpu.memory_space<vmem>>, vector<1x144x72xf32>
    %422 = vector.shape_cast %421 : vector<1x144x72xf32> to vector<144x72xf32>
    %cst_356 = arith.constant dense<0.000000e+00> : vector<24x72xf32>
    %423 = tpu.matmul %420, %422, %cst_356 {dimension_numbers = #tpu.dot_dimension_numbers<[1], [0], [0], [1], [0, 0, 1, 1], [], []>} : vector<24x144xf32>, vector<144x72xf32>, vector<24x72xf32> -> vector<24x72xf32>
    %c1_357 = arith.constant 1 : index
    %c0_358 = arith.constant 0 : index
    %c0_359 = arith.constant 0 : index
    %424 = vector.load %arg4[%c1_357, %c0_358, %c0_359] : memref<2x144x72xf32, #tpu.memory_space<vmem>>, vector<1x144x72xf32>
    %425 = vector.shape_cast %424 : vector<1x144x72xf32> to vector<144x72xf32>
    %cst_360 = arith.constant dense<0.000000e+00> : vector<24x72xf32>
    %426 = tpu.matmul %420, %425, %cst_360 {dimension_numbers = #tpu.dot_dimension_numbers<[1], [0], [0], [1], [0, 0, 1, 1], [], []>} : vector<24x144xf32>, vector<144x72xf32>, vector<24x72xf32> -> vector<24x72xf32>
    %427 = arith.maximumf %423, %426 : vector<24x72xf32>
    %c0_361 = arith.constant 0 : index
    %c0_362 = arith.constant 0 : index
    %c0_363 = arith.constant 0 : index
    %428 = vector.load %arg5[%c0_361, %c0_362, %c0_363] : memref<2x12x24xf32, #tpu.memory_space<vmem>>, vector<1x12x24xf32>
    %429 = vector.shape_cast %428 : vector<1x12x24xf32> to vector<12x24xf32>
    %cst_364 = arith.constant dense<0.000000e+00> : vector<12x72xf32>
    %430 = tpu.matmul %429, %427, %cst_364 {dimension_numbers = #tpu.dot_dimension_numbers<[1], [0], [0], [1], [0, 0, 1, 1], [], []>} : vector<12x24xf32>, vector<24x72xf32>, vector<12x72xf32> -> vector<12x72xf32>
    %c1_365 = arith.constant 1 : index
    %c0_366 = arith.constant 0 : index
    %c0_367 = arith.constant 0 : index
    %431 = vector.load %arg5[%c1_365, %c0_366, %c0_367] : memref<2x12x24xf32, #tpu.memory_space<vmem>>, vector<1x12x24xf32>
    %432 = vector.shape_cast %431 : vector<1x12x24xf32> to vector<12x24xf32>
    %cst_368 = arith.constant dense<0.000000e+00> : vector<12x72xf32>
    %433 = tpu.matmul %432, %427, %cst_368 {dimension_numbers = #tpu.dot_dimension_numbers<[1], [0], [0], [1], [0, 0, 1, 1], [], []>} : vector<12x24xf32>, vector<24x72xf32>, vector<12x72xf32> -> vector<12x72xf32>
    %434 = arith.maximumf %430, %433 : vector<12x72xf32>
    %cst_369 = arith.constant 0.000000e+00 : f32
    %435 = vector.broadcast %cst_369 : f32 to vector<8x128xf32>
    %436 = vector.extract_strided_slice %434 {offsets = [0, 0], sizes = [8, 72], strides = [1, 1]} : vector<12x72xf32> to vector<8x72xf32>
    %c0_370 = arith.constant 0 : index
    %c0_371 = arith.constant 0 : index
    %c0_372 = arith.constant 0 : index
    %437 = vector.load %arg6[%c0_370, %c0_371, %c0_372] : memref<5x72x128xf32, #tpu.memory_space<vmem>>, vector<1x72x128xf32>
    %438 = vector.shape_cast %437 : vector<1x72x128xf32> to vector<72x128xf32>
    %cst_373 = arith.constant dense<0.000000e+00> : vector<8x128xf32>
    %439 = tpu.matmul %436, %438, %cst_373 {dimension_numbers = #tpu.dot_dimension_numbers<[1], [0], [0], [1], [0, 0, 1, 1], [], []>} : vector<8x72xf32>, vector<72x128xf32>, vector<8x128xf32> -> vector<8x128xf32>
    %440 = arith.addf %435, %439 : vector<8x128xf32>
    %441 = vector.extract_strided_slice %434 {offsets = [1, 0], sizes = [8, 72], strides = [1, 1]} : vector<12x72xf32> to vector<8x72xf32>
    %c1_374 = arith.constant 1 : index
    %c0_375 = arith.constant 0 : index
    %c0_376 = arith.constant 0 : index
    %442 = vector.load %arg6[%c1_374, %c0_375, %c0_376] : memref<5x72x128xf32, #tpu.memory_space<vmem>>, vector<1x72x128xf32>
    %443 = vector.shape_cast %442 : vector<1x72x128xf32> to vector<72x128xf32>
    %cst_377 = arith.constant dense<0.000000e+00> : vector<8x128xf32>
    %444 = tpu.matmul %441, %443, %cst_377 {dimension_numbers = #tpu.dot_dimension_numbers<[1], [0], [0], [1], [0, 0, 1, 1], [], []>} : vector<8x72xf32>, vector<72x128xf32>, vector<8x128xf32> -> vector<8x128xf32>
    %445 = arith.addf %440, %444 : vector<8x128xf32>
    %446 = vector.extract_strided_slice %434 {offsets = [2, 0], sizes = [8, 72], strides = [1, 1]} : vector<12x72xf32> to vector<8x72xf32>
    %c2_378 = arith.constant 2 : index
    %c0_379 = arith.constant 0 : index
    %c0_380 = arith.constant 0 : index
    %447 = vector.load %arg6[%c2_378, %c0_379, %c0_380] : memref<5x72x128xf32, #tpu.memory_space<vmem>>, vector<1x72x128xf32>
    %448 = vector.shape_cast %447 : vector<1x72x128xf32> to vector<72x128xf32>
    %cst_381 = arith.constant dense<0.000000e+00> : vector<8x128xf32>
    %449 = tpu.matmul %446, %448, %cst_381 {dimension_numbers = #tpu.dot_dimension_numbers<[1], [0], [0], [1], [0, 0, 1, 1], [], []>} : vector<8x72xf32>, vector<72x128xf32>, vector<8x128xf32> -> vector<8x128xf32>
    %450 = arith.addf %445, %449 : vector<8x128xf32>
    %451 = vector.extract_strided_slice %434 {offsets = [3, 0], sizes = [8, 72], strides = [1, 1]} : vector<12x72xf32> to vector<8x72xf32>
    %c3_382 = arith.constant 3 : index
    %c0_383 = arith.constant 0 : index
    %c0_384 = arith.constant 0 : index
    %452 = vector.load %arg6[%c3_382, %c0_383, %c0_384] : memref<5x72x128xf32, #tpu.memory_space<vmem>>, vector<1x72x128xf32>
    %453 = vector.shape_cast %452 : vector<1x72x128xf32> to vector<72x128xf32>
    %cst_385 = arith.constant dense<0.000000e+00> : vector<8x128xf32>
    %454 = tpu.matmul %451, %453, %cst_385 {dimension_numbers = #tpu.dot_dimension_numbers<[1], [0], [0], [1], [0, 0, 1, 1], [], []>} : vector<8x72xf32>, vector<72x128xf32>, vector<8x128xf32> -> vector<8x128xf32>
    %455 = arith.addf %450, %454 : vector<8x128xf32>
    %456 = vector.extract_strided_slice %434 {offsets = [4, 0], sizes = [8, 72], strides = [1, 1]} : vector<12x72xf32> to vector<8x72xf32>
    %c4_386 = arith.constant 4 : index
    %c0_387 = arith.constant 0 : index
    %c0_388 = arith.constant 0 : index
    %457 = vector.load %arg6[%c4_386, %c0_387, %c0_388] : memref<5x72x128xf32, #tpu.memory_space<vmem>>, vector<1x72x128xf32>
    %458 = vector.shape_cast %457 : vector<1x72x128xf32> to vector<72x128xf32>
    %cst_389 = arith.constant dense<0.000000e+00> : vector<8x128xf32>
    %459 = tpu.matmul %456, %458, %cst_389 {dimension_numbers = #tpu.dot_dimension_numbers<[1], [0], [0], [1], [0, 0, 1, 1], [], []>} : vector<8x72xf32>, vector<72x128xf32>, vector<8x128xf32> -> vector<8x128xf32>
    %460 = arith.addf %455, %459 : vector<8x128xf32>
    %c0_390 = arith.constant 0 : index
    %c0_391 = arith.constant 0 : index
    %461 = vector.load %arg7[%c0_390, %c0_391] : memref<1x128xf32, #tpu.memory_space<vmem>>, vector<1x128xf32>
    %462 = vector.broadcast %461 : vector<1x128xf32> to vector<8x128xf32>
    %463 = arith.addf %460, %462 : vector<8x128xf32>
    %cst_392 = arith.constant 0.000000e+00 : f32
    %464 = vector.broadcast %cst_392 : f32 to vector<8x128xf32>
    %465 = arith.maximumf %463, %464 : vector<8x128xf32>
    %c0_393 = arith.constant 0 : index
    %c0_394 = arith.constant 0 : index
    %c0_395 = arith.constant 0 : index
    %466 = vector.load %arg8[%c0_393, %c0_394, %c0_395] : memref<2x128x64xf32, #tpu.memory_space<vmem>>, vector<1x128x64xf32>
    %467 = vector.shape_cast %466 : vector<1x128x64xf32> to vector<128x64xf32>
    %cst_396 = arith.constant dense<0.000000e+00> : vector<8x64xf32>
    %468 = tpu.matmul %465, %467, %cst_396 {dimension_numbers = #tpu.dot_dimension_numbers<[1], [0], [0], [1], [0, 0, 1, 1], [], []>} : vector<8x128xf32>, vector<128x64xf32>, vector<8x64xf32> -> vector<8x64xf32>
    %c1_397 = arith.constant 1 : index
    %c0_398 = arith.constant 0 : index
    %c0_399 = arith.constant 0 : index
    %469 = vector.load %arg8[%c1_397, %c0_398, %c0_399] : memref<2x128x64xf32, #tpu.memory_space<vmem>>, vector<1x128x64xf32>
    %470 = vector.shape_cast %469 : vector<1x128x64xf32> to vector<128x64xf32>
    %cst_400 = arith.constant dense<0.000000e+00> : vector<8x64xf32>
    %471 = tpu.matmul %465, %470, %cst_400 {dimension_numbers = #tpu.dot_dimension_numbers<[1], [0], [0], [1], [0, 0, 1, 1], [], []>} : vector<8x128xf32>, vector<128x64xf32>, vector<8x64xf32> -> vector<8x64xf32>
    %472 = arith.maximumf %468, %471 : vector<8x64xf32>
    %c0_401 = arith.constant 0 : index
    %c0_402 = arith.constant 0 : index
    %c0_403 = arith.constant 0 : index
    %473 = vector.load %arg9[%c0_401, %c0_402, %c0_403] : memref<2x4x8xf32, #tpu.memory_space<vmem>>, vector<1x4x8xf32>
    %474 = vector.shape_cast %473 : vector<1x4x8xf32> to vector<4x8xf32>
    %cst_404 = arith.constant dense<0.000000e+00> : vector<4x64xf32>
    %475 = tpu.matmul %474, %472, %cst_404 {dimension_numbers = #tpu.dot_dimension_numbers<[1], [0], [0], [1], [0, 0, 1, 1], [], []>} : vector<4x8xf32>, vector<8x64xf32>, vector<4x64xf32> -> vector<4x64xf32>
    %c1_405 = arith.constant 1 : index
    %c0_406 = arith.constant 0 : index
    %c0_407 = arith.constant 0 : index
    %476 = vector.load %arg9[%c1_405, %c0_406, %c0_407] : memref<2x4x8xf32, #tpu.memory_space<vmem>>, vector<1x4x8xf32>
    %477 = vector.shape_cast %476 : vector<1x4x8xf32> to vector<4x8xf32>
    %cst_408 = arith.constant dense<0.000000e+00> : vector<4x64xf32>
    %478 = tpu.matmul %477, %472, %cst_408 {dimension_numbers = #tpu.dot_dimension_numbers<[1], [0], [0], [1], [0, 0, 1, 1], [], []>} : vector<4x8xf32>, vector<8x64xf32>, vector<4x64xf32> -> vector<4x64xf32>
    %479 = arith.maximumf %475, %478 : vector<4x64xf32>
    %480 = vector.extract_strided_slice %479 {offsets = [0, 0], sizes = [1, 64], strides = [1, 1]} : vector<4x64xf32> to vector<1x64xf32>
    %481 = vector.extract_strided_slice %479 {offsets = [1, 0], sizes = [1, 64], strides = [1, 1]} : vector<4x64xf32> to vector<1x64xf32>
    %482 = vector.extract_strided_slice %479 {offsets = [2, 0], sizes = [1, 64], strides = [1, 1]} : vector<4x64xf32> to vector<1x64xf32>
    %483 = vector.extract_strided_slice %479 {offsets = [3, 0], sizes = [1, 64], strides = [1, 1]} : vector<4x64xf32> to vector<1x64xf32>
    %484 = tpu.concatenate %480, %481, %482, %483 in 1 : vector<1x64xf32>, vector<1x64xf32>, vector<1x64xf32>, vector<1x64xf32> -> vector<1x256xf32>
    %c5 = arith.constant 5 : index
    %c0_409 = arith.constant 0 : index
    %c0_410 = arith.constant 0 : index
    %485 = vector.load %arg1[%c5, %c0_409, %c0_410] : memref<8x28x28xf32, #tpu.memory_space<vmem>>, vector<1x28x28xf32>
    %486 = vector.shape_cast %485 : vector<1x28x28xf32> to vector<28x28xf32>
    %cst_411 = arith.constant 0.000000e+00 : f32
    %487 = vector.broadcast %cst_411 : f32 to vector<24x144xf32>
    %488 = vector.extract_strided_slice %486 {offsets = [0, 0], sizes = [24, 28], strides = [1, 1]} : vector<28x28xf32> to vector<24x28xf32>
    %c0_412 = arith.constant 0 : index
    %c0_413 = arith.constant 0 : index
    %c0_414 = arith.constant 0 : index
    %489 = vector.load %arg2[%c0_412, %c0_413, %c0_414] : memref<5x28x144xf32, #tpu.memory_space<vmem>>, vector<1x28x144xf32>
    %490 = vector.shape_cast %489 : vector<1x28x144xf32> to vector<28x144xf32>
    %cst_415 = arith.constant dense<0.000000e+00> : vector<24x144xf32>
    %491 = tpu.matmul %488, %490, %cst_415 {dimension_numbers = #tpu.dot_dimension_numbers<[1], [0], [0], [1], [0, 0, 1, 1], [], []>} : vector<24x28xf32>, vector<28x144xf32>, vector<24x144xf32> -> vector<24x144xf32>
    %492 = arith.addf %487, %491 : vector<24x144xf32>
    %493 = vector.extract_strided_slice %486 {offsets = [1, 0], sizes = [24, 28], strides = [1, 1]} : vector<28x28xf32> to vector<24x28xf32>
    %c1_416 = arith.constant 1 : index
    %c0_417 = arith.constant 0 : index
    %c0_418 = arith.constant 0 : index
    %494 = vector.load %arg2[%c1_416, %c0_417, %c0_418] : memref<5x28x144xf32, #tpu.memory_space<vmem>>, vector<1x28x144xf32>
    %495 = vector.shape_cast %494 : vector<1x28x144xf32> to vector<28x144xf32>
    %cst_419 = arith.constant dense<0.000000e+00> : vector<24x144xf32>
    %496 = tpu.matmul %493, %495, %cst_419 {dimension_numbers = #tpu.dot_dimension_numbers<[1], [0], [0], [1], [0, 0, 1, 1], [], []>} : vector<24x28xf32>, vector<28x144xf32>, vector<24x144xf32> -> vector<24x144xf32>
    %497 = arith.addf %492, %496 : vector<24x144xf32>
    %498 = vector.extract_strided_slice %486 {offsets = [2, 0], sizes = [24, 28], strides = [1, 1]} : vector<28x28xf32> to vector<24x28xf32>
    %c2_420 = arith.constant 2 : index
    %c0_421 = arith.constant 0 : index
    %c0_422 = arith.constant 0 : index
    %499 = vector.load %arg2[%c2_420, %c0_421, %c0_422] : memref<5x28x144xf32, #tpu.memory_space<vmem>>, vector<1x28x144xf32>
    %500 = vector.shape_cast %499 : vector<1x28x144xf32> to vector<28x144xf32>
    %cst_423 = arith.constant dense<0.000000e+00> : vector<24x144xf32>
    %501 = tpu.matmul %498, %500, %cst_423 {dimension_numbers = #tpu.dot_dimension_numbers<[1], [0], [0], [1], [0, 0, 1, 1], [], []>} : vector<24x28xf32>, vector<28x144xf32>, vector<24x144xf32> -> vector<24x144xf32>
    %502 = arith.addf %497, %501 : vector<24x144xf32>
    %503 = vector.extract_strided_slice %486 {offsets = [3, 0], sizes = [24, 28], strides = [1, 1]} : vector<28x28xf32> to vector<24x28xf32>
    %c3_424 = arith.constant 3 : index
    %c0_425 = arith.constant 0 : index
    %c0_426 = arith.constant 0 : index
    %504 = vector.load %arg2[%c3_424, %c0_425, %c0_426] : memref<5x28x144xf32, #tpu.memory_space<vmem>>, vector<1x28x144xf32>
    %505 = vector.shape_cast %504 : vector<1x28x144xf32> to vector<28x144xf32>
    %cst_427 = arith.constant dense<0.000000e+00> : vector<24x144xf32>
    %506 = tpu.matmul %503, %505, %cst_427 {dimension_numbers = #tpu.dot_dimension_numbers<[1], [0], [0], [1], [0, 0, 1, 1], [], []>} : vector<24x28xf32>, vector<28x144xf32>, vector<24x144xf32> -> vector<24x144xf32>
    %507 = arith.addf %502, %506 : vector<24x144xf32>
    %508 = vector.extract_strided_slice %486 {offsets = [4, 0], sizes = [24, 28], strides = [1, 1]} : vector<28x28xf32> to vector<24x28xf32>
    %c4_428 = arith.constant 4 : index
    %c0_429 = arith.constant 0 : index
    %c0_430 = arith.constant 0 : index
    %509 = vector.load %arg2[%c4_428, %c0_429, %c0_430] : memref<5x28x144xf32, #tpu.memory_space<vmem>>, vector<1x28x144xf32>
    %510 = vector.shape_cast %509 : vector<1x28x144xf32> to vector<28x144xf32>
    %cst_431 = arith.constant dense<0.000000e+00> : vector<24x144xf32>
    %511 = tpu.matmul %508, %510, %cst_431 {dimension_numbers = #tpu.dot_dimension_numbers<[1], [0], [0], [1], [0, 0, 1, 1], [], []>} : vector<24x28xf32>, vector<28x144xf32>, vector<24x144xf32> -> vector<24x144xf32>
    %512 = arith.addf %507, %511 : vector<24x144xf32>
    %c0_432 = arith.constant 0 : index
    %c0_433 = arith.constant 0 : index
    %513 = vector.load %arg3[%c0_432, %c0_433] : memref<1x144xf32, #tpu.memory_space<vmem>>, vector<1x144xf32>
    %514 = vector.broadcast %513 : vector<1x144xf32> to vector<24x144xf32>
    %515 = arith.addf %512, %514 : vector<24x144xf32>
    %cst_434 = arith.constant 0.000000e+00 : f32
    %516 = vector.broadcast %cst_434 : f32 to vector<24x144xf32>
    %517 = arith.maximumf %515, %516 : vector<24x144xf32>
    %c0_435 = arith.constant 0 : index
    %c0_436 = arith.constant 0 : index
    %c0_437 = arith.constant 0 : index
    %518 = vector.load %arg4[%c0_435, %c0_436, %c0_437] : memref<2x144x72xf32, #tpu.memory_space<vmem>>, vector<1x144x72xf32>
    %519 = vector.shape_cast %518 : vector<1x144x72xf32> to vector<144x72xf32>
    %cst_438 = arith.constant dense<0.000000e+00> : vector<24x72xf32>
    %520 = tpu.matmul %517, %519, %cst_438 {dimension_numbers = #tpu.dot_dimension_numbers<[1], [0], [0], [1], [0, 0, 1, 1], [], []>} : vector<24x144xf32>, vector<144x72xf32>, vector<24x72xf32> -> vector<24x72xf32>
    %c1_439 = arith.constant 1 : index
    %c0_440 = arith.constant 0 : index
    %c0_441 = arith.constant 0 : index
    %521 = vector.load %arg4[%c1_439, %c0_440, %c0_441] : memref<2x144x72xf32, #tpu.memory_space<vmem>>, vector<1x144x72xf32>
    %522 = vector.shape_cast %521 : vector<1x144x72xf32> to vector<144x72xf32>
    %cst_442 = arith.constant dense<0.000000e+00> : vector<24x72xf32>
    %523 = tpu.matmul %517, %522, %cst_442 {dimension_numbers = #tpu.dot_dimension_numbers<[1], [0], [0], [1], [0, 0, 1, 1], [], []>} : vector<24x144xf32>, vector<144x72xf32>, vector<24x72xf32> -> vector<24x72xf32>
    %524 = arith.maximumf %520, %523 : vector<24x72xf32>
    %c0_443 = arith.constant 0 : index
    %c0_444 = arith.constant 0 : index
    %c0_445 = arith.constant 0 : index
    %525 = vector.load %arg5[%c0_443, %c0_444, %c0_445] : memref<2x12x24xf32, #tpu.memory_space<vmem>>, vector<1x12x24xf32>
    %526 = vector.shape_cast %525 : vector<1x12x24xf32> to vector<12x24xf32>
    %cst_446 = arith.constant dense<0.000000e+00> : vector<12x72xf32>
    %527 = tpu.matmul %526, %524, %cst_446 {dimension_numbers = #tpu.dot_dimension_numbers<[1], [0], [0], [1], [0, 0, 1, 1], [], []>} : vector<12x24xf32>, vector<24x72xf32>, vector<12x72xf32> -> vector<12x72xf32>
    %c1_447 = arith.constant 1 : index
    %c0_448 = arith.constant 0 : index
    %c0_449 = arith.constant 0 : index
    %528 = vector.load %arg5[%c1_447, %c0_448, %c0_449] : memref<2x12x24xf32, #tpu.memory_space<vmem>>, vector<1x12x24xf32>
    %529 = vector.shape_cast %528 : vector<1x12x24xf32> to vector<12x24xf32>
    %cst_450 = arith.constant dense<0.000000e+00> : vector<12x72xf32>
    %530 = tpu.matmul %529, %524, %cst_450 {dimension_numbers = #tpu.dot_dimension_numbers<[1], [0], [0], [1], [0, 0, 1, 1], [], []>} : vector<12x24xf32>, vector<24x72xf32>, vector<12x72xf32> -> vector<12x72xf32>
    %531 = arith.maximumf %527, %530 : vector<12x72xf32>
    %cst_451 = arith.constant 0.000000e+00 : f32
    %532 = vector.broadcast %cst_451 : f32 to vector<8x128xf32>
    %533 = vector.extract_strided_slice %531 {offsets = [0, 0], sizes = [8, 72], strides = [1, 1]} : vector<12x72xf32> to vector<8x72xf32>
    %c0_452 = arith.constant 0 : index
    %c0_453 = arith.constant 0 : index
    %c0_454 = arith.constant 0 : index
    %534 = vector.load %arg6[%c0_452, %c0_453, %c0_454] : memref<5x72x128xf32, #tpu.memory_space<vmem>>, vector<1x72x128xf32>
    %535 = vector.shape_cast %534 : vector<1x72x128xf32> to vector<72x128xf32>
    %cst_455 = arith.constant dense<0.000000e+00> : vector<8x128xf32>
    %536 = tpu.matmul %533, %535, %cst_455 {dimension_numbers = #tpu.dot_dimension_numbers<[1], [0], [0], [1], [0, 0, 1, 1], [], []>} : vector<8x72xf32>, vector<72x128xf32>, vector<8x128xf32> -> vector<8x128xf32>
    %537 = arith.addf %532, %536 : vector<8x128xf32>
    %538 = vector.extract_strided_slice %531 {offsets = [1, 0], sizes = [8, 72], strides = [1, 1]} : vector<12x72xf32> to vector<8x72xf32>
    %c1_456 = arith.constant 1 : index
    %c0_457 = arith.constant 0 : index
    %c0_458 = arith.constant 0 : index
    %539 = vector.load %arg6[%c1_456, %c0_457, %c0_458] : memref<5x72x128xf32, #tpu.memory_space<vmem>>, vector<1x72x128xf32>
    %540 = vector.shape_cast %539 : vector<1x72x128xf32> to vector<72x128xf32>
    %cst_459 = arith.constant dense<0.000000e+00> : vector<8x128xf32>
    %541 = tpu.matmul %538, %540, %cst_459 {dimension_numbers = #tpu.dot_dimension_numbers<[1], [0], [0], [1], [0, 0, 1, 1], [], []>} : vector<8x72xf32>, vector<72x128xf32>, vector<8x128xf32> -> vector<8x128xf32>
    %542 = arith.addf %537, %541 : vector<8x128xf32>
    %543 = vector.extract_strided_slice %531 {offsets = [2, 0], sizes = [8, 72], strides = [1, 1]} : vector<12x72xf32> to vector<8x72xf32>
    %c2_460 = arith.constant 2 : index
    %c0_461 = arith.constant 0 : index
    %c0_462 = arith.constant 0 : index
    %544 = vector.load %arg6[%c2_460, %c0_461, %c0_462] : memref<5x72x128xf32, #tpu.memory_space<vmem>>, vector<1x72x128xf32>
    %545 = vector.shape_cast %544 : vector<1x72x128xf32> to vector<72x128xf32>
    %cst_463 = arith.constant dense<0.000000e+00> : vector<8x128xf32>
    %546 = tpu.matmul %543, %545, %cst_463 {dimension_numbers = #tpu.dot_dimension_numbers<[1], [0], [0], [1], [0, 0, 1, 1], [], []>} : vector<8x72xf32>, vector<72x128xf32>, vector<8x128xf32> -> vector<8x128xf32>
    %547 = arith.addf %542, %546 : vector<8x128xf32>
    %548 = vector.extract_strided_slice %531 {offsets = [3, 0], sizes = [8, 72], strides = [1, 1]} : vector<12x72xf32> to vector<8x72xf32>
    %c3_464 = arith.constant 3 : index
    %c0_465 = arith.constant 0 : index
    %c0_466 = arith.constant 0 : index
    %549 = vector.load %arg6[%c3_464, %c0_465, %c0_466] : memref<5x72x128xf32, #tpu.memory_space<vmem>>, vector<1x72x128xf32>
    %550 = vector.shape_cast %549 : vector<1x72x128xf32> to vector<72x128xf32>
    %cst_467 = arith.constant dense<0.000000e+00> : vector<8x128xf32>
    %551 = tpu.matmul %548, %550, %cst_467 {dimension_numbers = #tpu.dot_dimension_numbers<[1], [0], [0], [1], [0, 0, 1, 1], [], []>} : vector<8x72xf32>, vector<72x128xf32>, vector<8x128xf32> -> vector<8x128xf32>
    %552 = arith.addf %547, %551 : vector<8x128xf32>
    %553 = vector.extract_strided_slice %531 {offsets = [4, 0], sizes = [8, 72], strides = [1, 1]} : vector<12x72xf32> to vector<8x72xf32>
    %c4_468 = arith.constant 4 : index
    %c0_469 = arith.constant 0 : index
    %c0_470 = arith.constant 0 : index
    %554 = vector.load %arg6[%c4_468, %c0_469, %c0_470] : memref<5x72x128xf32, #tpu.memory_space<vmem>>, vector<1x72x128xf32>
    %555 = vector.shape_cast %554 : vector<1x72x128xf32> to vector<72x128xf32>
    %cst_471 = arith.constant dense<0.000000e+00> : vector<8x128xf32>
    %556 = tpu.matmul %553, %555, %cst_471 {dimension_numbers = #tpu.dot_dimension_numbers<[1], [0], [0], [1], [0, 0, 1, 1], [], []>} : vector<8x72xf32>, vector<72x128xf32>, vector<8x128xf32> -> vector<8x128xf32>
    %557 = arith.addf %552, %556 : vector<8x128xf32>
    %c0_472 = arith.constant 0 : index
    %c0_473 = arith.constant 0 : index
    %558 = vector.load %arg7[%c0_472, %c0_473] : memref<1x128xf32, #tpu.memory_space<vmem>>, vector<1x128xf32>
    %559 = vector.broadcast %558 : vector<1x128xf32> to vector<8x128xf32>
    %560 = arith.addf %557, %559 : vector<8x128xf32>
    %cst_474 = arith.constant 0.000000e+00 : f32
    %561 = vector.broadcast %cst_474 : f32 to vector<8x128xf32>
    %562 = arith.maximumf %560, %561 : vector<8x128xf32>
    %c0_475 = arith.constant 0 : index
    %c0_476 = arith.constant 0 : index
    %c0_477 = arith.constant 0 : index
    %563 = vector.load %arg8[%c0_475, %c0_476, %c0_477] : memref<2x128x64xf32, #tpu.memory_space<vmem>>, vector<1x128x64xf32>
    %564 = vector.shape_cast %563 : vector<1x128x64xf32> to vector<128x64xf32>
    %cst_478 = arith.constant dense<0.000000e+00> : vector<8x64xf32>
    %565 = tpu.matmul %562, %564, %cst_478 {dimension_numbers = #tpu.dot_dimension_numbers<[1], [0], [0], [1], [0, 0, 1, 1], [], []>} : vector<8x128xf32>, vector<128x64xf32>, vector<8x64xf32> -> vector<8x64xf32>
    %c1_479 = arith.constant 1 : index
    %c0_480 = arith.constant 0 : index
    %c0_481 = arith.constant 0 : index
    %566 = vector.load %arg8[%c1_479, %c0_480, %c0_481] : memref<2x128x64xf32, #tpu.memory_space<vmem>>, vector<1x128x64xf32>
    %567 = vector.shape_cast %566 : vector<1x128x64xf32> to vector<128x64xf32>
    %cst_482 = arith.constant dense<0.000000e+00> : vector<8x64xf32>
    %568 = tpu.matmul %562, %567, %cst_482 {dimension_numbers = #tpu.dot_dimension_numbers<[1], [0], [0], [1], [0, 0, 1, 1], [], []>} : vector<8x128xf32>, vector<128x64xf32>, vector<8x64xf32> -> vector<8x64xf32>
    %569 = arith.maximumf %565, %568 : vector<8x64xf32>
    %c0_483 = arith.constant 0 : index
    %c0_484 = arith.constant 0 : index
    %c0_485 = arith.constant 0 : index
    %570 = vector.load %arg9[%c0_483, %c0_484, %c0_485] : memref<2x4x8xf32, #tpu.memory_space<vmem>>, vector<1x4x8xf32>
    %571 = vector.shape_cast %570 : vector<1x4x8xf32> to vector<4x8xf32>
    %cst_486 = arith.constant dense<0.000000e+00> : vector<4x64xf32>
    %572 = tpu.matmul %571, %569, %cst_486 {dimension_numbers = #tpu.dot_dimension_numbers<[1], [0], [0], [1], [0, 0, 1, 1], [], []>} : vector<4x8xf32>, vector<8x64xf32>, vector<4x64xf32> -> vector<4x64xf32>
    %c1_487 = arith.constant 1 : index
    %c0_488 = arith.constant 0 : index
    %c0_489 = arith.constant 0 : index
    %573 = vector.load %arg9[%c1_487, %c0_488, %c0_489] : memref<2x4x8xf32, #tpu.memory_space<vmem>>, vector<1x4x8xf32>
    %574 = vector.shape_cast %573 : vector<1x4x8xf32> to vector<4x8xf32>
    %cst_490 = arith.constant dense<0.000000e+00> : vector<4x64xf32>
    %575 = tpu.matmul %574, %569, %cst_490 {dimension_numbers = #tpu.dot_dimension_numbers<[1], [0], [0], [1], [0, 0, 1, 1], [], []>} : vector<4x8xf32>, vector<8x64xf32>, vector<4x64xf32> -> vector<4x64xf32>
    %576 = arith.maximumf %572, %575 : vector<4x64xf32>
    %577 = vector.extract_strided_slice %576 {offsets = [0, 0], sizes = [1, 64], strides = [1, 1]} : vector<4x64xf32> to vector<1x64xf32>
    %578 = vector.extract_strided_slice %576 {offsets = [1, 0], sizes = [1, 64], strides = [1, 1]} : vector<4x64xf32> to vector<1x64xf32>
    %579 = vector.extract_strided_slice %576 {offsets = [2, 0], sizes = [1, 64], strides = [1, 1]} : vector<4x64xf32> to vector<1x64xf32>
    %580 = vector.extract_strided_slice %576 {offsets = [3, 0], sizes = [1, 64], strides = [1, 1]} : vector<4x64xf32> to vector<1x64xf32>
    %581 = tpu.concatenate %577, %578, %579, %580 in 1 : vector<1x64xf32>, vector<1x64xf32>, vector<1x64xf32>, vector<1x64xf32> -> vector<1x256xf32>
    %c6 = arith.constant 6 : index
    %c0_491 = arith.constant 0 : index
    %c0_492 = arith.constant 0 : index
    %582 = vector.load %arg1[%c6, %c0_491, %c0_492] : memref<8x28x28xf32, #tpu.memory_space<vmem>>, vector<1x28x28xf32>
    %583 = vector.shape_cast %582 : vector<1x28x28xf32> to vector<28x28xf32>
    %cst_493 = arith.constant 0.000000e+00 : f32
    %584 = vector.broadcast %cst_493 : f32 to vector<24x144xf32>
    %585 = vector.extract_strided_slice %583 {offsets = [0, 0], sizes = [24, 28], strides = [1, 1]} : vector<28x28xf32> to vector<24x28xf32>
    %c0_494 = arith.constant 0 : index
    %c0_495 = arith.constant 0 : index
    %c0_496 = arith.constant 0 : index
    %586 = vector.load %arg2[%c0_494, %c0_495, %c0_496] : memref<5x28x144xf32, #tpu.memory_space<vmem>>, vector<1x28x144xf32>
    %587 = vector.shape_cast %586 : vector<1x28x144xf32> to vector<28x144xf32>
    %cst_497 = arith.constant dense<0.000000e+00> : vector<24x144xf32>
    %588 = tpu.matmul %585, %587, %cst_497 {dimension_numbers = #tpu.dot_dimension_numbers<[1], [0], [0], [1], [0, 0, 1, 1], [], []>} : vector<24x28xf32>, vector<28x144xf32>, vector<24x144xf32> -> vector<24x144xf32>
    %589 = arith.addf %584, %588 : vector<24x144xf32>
    %590 = vector.extract_strided_slice %583 {offsets = [1, 0], sizes = [24, 28], strides = [1, 1]} : vector<28x28xf32> to vector<24x28xf32>
    %c1_498 = arith.constant 1 : index
    %c0_499 = arith.constant 0 : index
    %c0_500 = arith.constant 0 : index
    %591 = vector.load %arg2[%c1_498, %c0_499, %c0_500] : memref<5x28x144xf32, #tpu.memory_space<vmem>>, vector<1x28x144xf32>
    %592 = vector.shape_cast %591 : vector<1x28x144xf32> to vector<28x144xf32>
    %cst_501 = arith.constant dense<0.000000e+00> : vector<24x144xf32>
    %593 = tpu.matmul %590, %592, %cst_501 {dimension_numbers = #tpu.dot_dimension_numbers<[1], [0], [0], [1], [0, 0, 1, 1], [], []>} : vector<24x28xf32>, vector<28x144xf32>, vector<24x144xf32> -> vector<24x144xf32>
    %594 = arith.addf %589, %593 : vector<24x144xf32>
    %595 = vector.extract_strided_slice %583 {offsets = [2, 0], sizes = [24, 28], strides = [1, 1]} : vector<28x28xf32> to vector<24x28xf32>
    %c2_502 = arith.constant 2 : index
    %c0_503 = arith.constant 0 : index
    %c0_504 = arith.constant 0 : index
    %596 = vector.load %arg2[%c2_502, %c0_503, %c0_504] : memref<5x28x144xf32, #tpu.memory_space<vmem>>, vector<1x28x144xf32>
    %597 = vector.shape_cast %596 : vector<1x28x144xf32> to vector<28x144xf32>
    %cst_505 = arith.constant dense<0.000000e+00> : vector<24x144xf32>
    %598 = tpu.matmul %595, %597, %cst_505 {dimension_numbers = #tpu.dot_dimension_numbers<[1], [0], [0], [1], [0, 0, 1, 1], [], []>} : vector<24x28xf32>, vector<28x144xf32>, vector<24x144xf32> -> vector<24x144xf32>
    %599 = arith.addf %594, %598 : vector<24x144xf32>
    %600 = vector.extract_strided_slice %583 {offsets = [3, 0], sizes = [24, 28], strides = [1, 1]} : vector<28x28xf32> to vector<24x28xf32>
    %c3_506 = arith.constant 3 : index
    %c0_507 = arith.constant 0 : index
    %c0_508 = arith.constant 0 : index
    %601 = vector.load %arg2[%c3_506, %c0_507, %c0_508] : memref<5x28x144xf32, #tpu.memory_space<vmem>>, vector<1x28x144xf32>
    %602 = vector.shape_cast %601 : vector<1x28x144xf32> to vector<28x144xf32>
    %cst_509 = arith.constant dense<0.000000e+00> : vector<24x144xf32>
    %603 = tpu.matmul %600, %602, %cst_509 {dimension_numbers = #tpu.dot_dimension_numbers<[1], [0], [0], [1], [0, 0, 1, 1], [], []>} : vector<24x28xf32>, vector<28x144xf32>, vector<24x144xf32> -> vector<24x144xf32>
    %604 = arith.addf %599, %603 : vector<24x144xf32>
    %605 = vector.extract_strided_slice %583 {offsets = [4, 0], sizes = [24, 28], strides = [1, 1]} : vector<28x28xf32> to vector<24x28xf32>
    %c4_510 = arith.constant 4 : index
    %c0_511 = arith.constant 0 : index
    %c0_512 = arith.constant 0 : index
    %606 = vector.load %arg2[%c4_510, %c0_511, %c0_512] : memref<5x28x144xf32, #tpu.memory_space<vmem>>, vector<1x28x144xf32>
    %607 = vector.shape_cast %606 : vector<1x28x144xf32> to vector<28x144xf32>
    %cst_513 = arith.constant dense<0.000000e+00> : vector<24x144xf32>
    %608 = tpu.matmul %605, %607, %cst_513 {dimension_numbers = #tpu.dot_dimension_numbers<[1], [0], [0], [1], [0, 0, 1, 1], [], []>} : vector<24x28xf32>, vector<28x144xf32>, vector<24x144xf32> -> vector<24x144xf32>
    %609 = arith.addf %604, %608 : vector<24x144xf32>
    %c0_514 = arith.constant 0 : index
    %c0_515 = arith.constant 0 : index
    %610 = vector.load %arg3[%c0_514, %c0_515] : memref<1x144xf32, #tpu.memory_space<vmem>>, vector<1x144xf32>
    %611 = vector.broadcast %610 : vector<1x144xf32> to vector<24x144xf32>
    %612 = arith.addf %609, %611 : vector<24x144xf32>
    %cst_516 = arith.constant 0.000000e+00 : f32
    %613 = vector.broadcast %cst_516 : f32 to vector<24x144xf32>
    %614 = arith.maximumf %612, %613 : vector<24x144xf32>
    %c0_517 = arith.constant 0 : index
    %c0_518 = arith.constant 0 : index
    %c0_519 = arith.constant 0 : index
    %615 = vector.load %arg4[%c0_517, %c0_518, %c0_519] : memref<2x144x72xf32, #tpu.memory_space<vmem>>, vector<1x144x72xf32>
    %616 = vector.shape_cast %615 : vector<1x144x72xf32> to vector<144x72xf32>
    %cst_520 = arith.constant dense<0.000000e+00> : vector<24x72xf32>
    %617 = tpu.matmul %614, %616, %cst_520 {dimension_numbers = #tpu.dot_dimension_numbers<[1], [0], [0], [1], [0, 0, 1, 1], [], []>} : vector<24x144xf32>, vector<144x72xf32>, vector<24x72xf32> -> vector<24x72xf32>
    %c1_521 = arith.constant 1 : index
    %c0_522 = arith.constant 0 : index
    %c0_523 = arith.constant 0 : index
    %618 = vector.load %arg4[%c1_521, %c0_522, %c0_523] : memref<2x144x72xf32, #tpu.memory_space<vmem>>, vector<1x144x72xf32>
    %619 = vector.shape_cast %618 : vector<1x144x72xf32> to vector<144x72xf32>
    %cst_524 = arith.constant dense<0.000000e+00> : vector<24x72xf32>
    %620 = tpu.matmul %614, %619, %cst_524 {dimension_numbers = #tpu.dot_dimension_numbers<[1], [0], [0], [1], [0, 0, 1, 1], [], []>} : vector<24x144xf32>, vector<144x72xf32>, vector<24x72xf32> -> vector<24x72xf32>
    %621 = arith.maximumf %617, %620 : vector<24x72xf32>
    %c0_525 = arith.constant 0 : index
    %c0_526 = arith.constant 0 : index
    %c0_527 = arith.constant 0 : index
    %622 = vector.load %arg5[%c0_525, %c0_526, %c0_527] : memref<2x12x24xf32, #tpu.memory_space<vmem>>, vector<1x12x24xf32>
    %623 = vector.shape_cast %622 : vector<1x12x24xf32> to vector<12x24xf32>
    %cst_528 = arith.constant dense<0.000000e+00> : vector<12x72xf32>
    %624 = tpu.matmul %623, %621, %cst_528 {dimension_numbers = #tpu.dot_dimension_numbers<[1], [0], [0], [1], [0, 0, 1, 1], [], []>} : vector<12x24xf32>, vector<24x72xf32>, vector<12x72xf32> -> vector<12x72xf32>
    %c1_529 = arith.constant 1 : index
    %c0_530 = arith.constant 0 : index
    %c0_531 = arith.constant 0 : index
    %625 = vector.load %arg5[%c1_529, %c0_530, %c0_531] : memref<2x12x24xf32, #tpu.memory_space<vmem>>, vector<1x12x24xf32>
    %626 = vector.shape_cast %625 : vector<1x12x24xf32> to vector<12x24xf32>
    %cst_532 = arith.constant dense<0.000000e+00> : vector<12x72xf32>
    %627 = tpu.matmul %626, %621, %cst_532 {dimension_numbers = #tpu.dot_dimension_numbers<[1], [0], [0], [1], [0, 0, 1, 1], [], []>} : vector<12x24xf32>, vector<24x72xf32>, vector<12x72xf32> -> vector<12x72xf32>
    %628 = arith.maximumf %624, %627 : vector<12x72xf32>
    %cst_533 = arith.constant 0.000000e+00 : f32
    %629 = vector.broadcast %cst_533 : f32 to vector<8x128xf32>
    %630 = vector.extract_strided_slice %628 {offsets = [0, 0], sizes = [8, 72], strides = [1, 1]} : vector<12x72xf32> to vector<8x72xf32>
    %c0_534 = arith.constant 0 : index
    %c0_535 = arith.constant 0 : index
    %c0_536 = arith.constant 0 : index
    %631 = vector.load %arg6[%c0_534, %c0_535, %c0_536] : memref<5x72x128xf32, #tpu.memory_space<vmem>>, vector<1x72x128xf32>
    %632 = vector.shape_cast %631 : vector<1x72x128xf32> to vector<72x128xf32>
    %cst_537 = arith.constant dense<0.000000e+00> : vector<8x128xf32>
    %633 = tpu.matmul %630, %632, %cst_537 {dimension_numbers = #tpu.dot_dimension_numbers<[1], [0], [0], [1], [0, 0, 1, 1], [], []>} : vector<8x72xf32>, vector<72x128xf32>, vector<8x128xf32> -> vector<8x128xf32>
    %634 = arith.addf %629, %633 : vector<8x128xf32>
    %635 = vector.extract_strided_slice %628 {offsets = [1, 0], sizes = [8, 72], strides = [1, 1]} : vector<12x72xf32> to vector<8x72xf32>
    %c1_538 = arith.constant 1 : index
    %c0_539 = arith.constant 0 : index
    %c0_540 = arith.constant 0 : index
    %636 = vector.load %arg6[%c1_538, %c0_539, %c0_540] : memref<5x72x128xf32, #tpu.memory_space<vmem>>, vector<1x72x128xf32>
    %637 = vector.shape_cast %636 : vector<1x72x128xf32> to vector<72x128xf32>
    %cst_541 = arith.constant dense<0.000000e+00> : vector<8x128xf32>
    %638 = tpu.matmul %635, %637, %cst_541 {dimension_numbers = #tpu.dot_dimension_numbers<[1], [0], [0], [1], [0, 0, 1, 1], [], []>} : vector<8x72xf32>, vector<72x128xf32>, vector<8x128xf32> -> vector<8x128xf32>
    %639 = arith.addf %634, %638 : vector<8x128xf32>
    %640 = vector.extract_strided_slice %628 {offsets = [2, 0], sizes = [8, 72], strides = [1, 1]} : vector<12x72xf32> to vector<8x72xf32>
    %c2_542 = arith.constant 2 : index
    %c0_543 = arith.constant 0 : index
    %c0_544 = arith.constant 0 : index
    %641 = vector.load %arg6[%c2_542, %c0_543, %c0_544] : memref<5x72x128xf32, #tpu.memory_space<vmem>>, vector<1x72x128xf32>
    %642 = vector.shape_cast %641 : vector<1x72x128xf32> to vector<72x128xf32>
    %cst_545 = arith.constant dense<0.000000e+00> : vector<8x128xf32>
    %643 = tpu.matmul %640, %642, %cst_545 {dimension_numbers = #tpu.dot_dimension_numbers<[1], [0], [0], [1], [0, 0, 1, 1], [], []>} : vector<8x72xf32>, vector<72x128xf32>, vector<8x128xf32> -> vector<8x128xf32>
    %644 = arith.addf %639, %643 : vector<8x128xf32>
    %645 = vector.extract_strided_slice %628 {offsets = [3, 0], sizes = [8, 72], strides = [1, 1]} : vector<12x72xf32> to vector<8x72xf32>
    %c3_546 = arith.constant 3 : index
    %c0_547 = arith.constant 0 : index
    %c0_548 = arith.constant 0 : index
    %646 = vector.load %arg6[%c3_546, %c0_547, %c0_548] : memref<5x72x128xf32, #tpu.memory_space<vmem>>, vector<1x72x128xf32>
    %647 = vector.shape_cast %646 : vector<1x72x128xf32> to vector<72x128xf32>
    %cst_549 = arith.constant dense<0.000000e+00> : vector<8x128xf32>
    %648 = tpu.matmul %645, %647, %cst_549 {dimension_numbers = #tpu.dot_dimension_numbers<[1], [0], [0], [1], [0, 0, 1, 1], [], []>} : vector<8x72xf32>, vector<72x128xf32>, vector<8x128xf32> -> vector<8x128xf32>
    %649 = arith.addf %644, %648 : vector<8x128xf32>
    %650 = vector.extract_strided_slice %628 {offsets = [4, 0], sizes = [8, 72], strides = [1, 1]} : vector<12x72xf32> to vector<8x72xf32>
    %c4_550 = arith.constant 4 : index
    %c0_551 = arith.constant 0 : index
    %c0_552 = arith.constant 0 : index
    %651 = vector.load %arg6[%c4_550, %c0_551, %c0_552] : memref<5x72x128xf32, #tpu.memory_space<vmem>>, vector<1x72x128xf32>
    %652 = vector.shape_cast %651 : vector<1x72x128xf32> to vector<72x128xf32>
    %cst_553 = arith.constant dense<0.000000e+00> : vector<8x128xf32>
    %653 = tpu.matmul %650, %652, %cst_553 {dimension_numbers = #tpu.dot_dimension_numbers<[1], [0], [0], [1], [0, 0, 1, 1], [], []>} : vector<8x72xf32>, vector<72x128xf32>, vector<8x128xf32> -> vector<8x128xf32>
    %654 = arith.addf %649, %653 : vector<8x128xf32>
    %c0_554 = arith.constant 0 : index
    %c0_555 = arith.constant 0 : index
    %655 = vector.load %arg7[%c0_554, %c0_555] : memref<1x128xf32, #tpu.memory_space<vmem>>, vector<1x128xf32>
    %656 = vector.broadcast %655 : vector<1x128xf32> to vector<8x128xf32>
    %657 = arith.addf %654, %656 : vector<8x128xf32>
    %cst_556 = arith.constant 0.000000e+00 : f32
    %658 = vector.broadcast %cst_556 : f32 to vector<8x128xf32>
    %659 = arith.maximumf %657, %658 : vector<8x128xf32>
    %c0_557 = arith.constant 0 : index
    %c0_558 = arith.constant 0 : index
    %c0_559 = arith.constant 0 : index
    %660 = vector.load %arg8[%c0_557, %c0_558, %c0_559] : memref<2x128x64xf32, #tpu.memory_space<vmem>>, vector<1x128x64xf32>
    %661 = vector.shape_cast %660 : vector<1x128x64xf32> to vector<128x64xf32>
    %cst_560 = arith.constant dense<0.000000e+00> : vector<8x64xf32>
    %662 = tpu.matmul %659, %661, %cst_560 {dimension_numbers = #tpu.dot_dimension_numbers<[1], [0], [0], [1], [0, 0, 1, 1], [], []>} : vector<8x128xf32>, vector<128x64xf32>, vector<8x64xf32> -> vector<8x64xf32>
    %c1_561 = arith.constant 1 : index
    %c0_562 = arith.constant 0 : index
    %c0_563 = arith.constant 0 : index
    %663 = vector.load %arg8[%c1_561, %c0_562, %c0_563] : memref<2x128x64xf32, #tpu.memory_space<vmem>>, vector<1x128x64xf32>
    %664 = vector.shape_cast %663 : vector<1x128x64xf32> to vector<128x64xf32>
    %cst_564 = arith.constant dense<0.000000e+00> : vector<8x64xf32>
    %665 = tpu.matmul %659, %664, %cst_564 {dimension_numbers = #tpu.dot_dimension_numbers<[1], [0], [0], [1], [0, 0, 1, 1], [], []>} : vector<8x128xf32>, vector<128x64xf32>, vector<8x64xf32> -> vector<8x64xf32>
    %666 = arith.maximumf %662, %665 : vector<8x64xf32>
    %c0_565 = arith.constant 0 : index
    %c0_566 = arith.constant 0 : index
    %c0_567 = arith.constant 0 : index
    %667 = vector.load %arg9[%c0_565, %c0_566, %c0_567] : memref<2x4x8xf32, #tpu.memory_space<vmem>>, vector<1x4x8xf32>
    %668 = vector.shape_cast %667 : vector<1x4x8xf32> to vector<4x8xf32>
    %cst_568 = arith.constant dense<0.000000e+00> : vector<4x64xf32>
    %669 = tpu.matmul %668, %666, %cst_568 {dimension_numbers = #tpu.dot_dimension_numbers<[1], [0], [0], [1], [0, 0, 1, 1], [], []>} : vector<4x8xf32>, vector<8x64xf32>, vector<4x64xf32> -> vector<4x64xf32>
    %c1_569 = arith.constant 1 : index
    %c0_570 = arith.constant 0 : index
    %c0_571 = arith.constant 0 : index
    %670 = vector.load %arg9[%c1_569, %c0_570, %c0_571] : memref<2x4x8xf32, #tpu.memory_space<vmem>>, vector<1x4x8xf32>
    %671 = vector.shape_cast %670 : vector<1x4x8xf32> to vector<4x8xf32>
    %cst_572 = arith.constant dense<0.000000e+00> : vector<4x64xf32>
    %672 = tpu.matmul %671, %666, %cst_572 {dimension_numbers = #tpu.dot_dimension_numbers<[1], [0], [0], [1], [0, 0, 1, 1], [], []>} : vector<4x8xf32>, vector<8x64xf32>, vector<4x64xf32> -> vector<4x64xf32>
    %673 = arith.maximumf %669, %672 : vector<4x64xf32>
    %674 = vector.extract_strided_slice %673 {offsets = [0, 0], sizes = [1, 64], strides = [1, 1]} : vector<4x64xf32> to vector<1x64xf32>
    %675 = vector.extract_strided_slice %673 {offsets = [1, 0], sizes = [1, 64], strides = [1, 1]} : vector<4x64xf32> to vector<1x64xf32>
    %676 = vector.extract_strided_slice %673 {offsets = [2, 0], sizes = [1, 64], strides = [1, 1]} : vector<4x64xf32> to vector<1x64xf32>
    %677 = vector.extract_strided_slice %673 {offsets = [3, 0], sizes = [1, 64], strides = [1, 1]} : vector<4x64xf32> to vector<1x64xf32>
    %678 = tpu.concatenate %674, %675, %676, %677 in 1 : vector<1x64xf32>, vector<1x64xf32>, vector<1x64xf32>, vector<1x64xf32> -> vector<1x256xf32>
    %c7 = arith.constant 7 : index
    %c0_573 = arith.constant 0 : index
    %c0_574 = arith.constant 0 : index
    %679 = vector.load %arg1[%c7, %c0_573, %c0_574] : memref<8x28x28xf32, #tpu.memory_space<vmem>>, vector<1x28x28xf32>
    %680 = vector.shape_cast %679 : vector<1x28x28xf32> to vector<28x28xf32>
    %cst_575 = arith.constant 0.000000e+00 : f32
    %681 = vector.broadcast %cst_575 : f32 to vector<24x144xf32>
    %682 = vector.extract_strided_slice %680 {offsets = [0, 0], sizes = [24, 28], strides = [1, 1]} : vector<28x28xf32> to vector<24x28xf32>
    %c0_576 = arith.constant 0 : index
    %c0_577 = arith.constant 0 : index
    %c0_578 = arith.constant 0 : index
    %683 = vector.load %arg2[%c0_576, %c0_577, %c0_578] : memref<5x28x144xf32, #tpu.memory_space<vmem>>, vector<1x28x144xf32>
    %684 = vector.shape_cast %683 : vector<1x28x144xf32> to vector<28x144xf32>
    %cst_579 = arith.constant dense<0.000000e+00> : vector<24x144xf32>
    %685 = tpu.matmul %682, %684, %cst_579 {dimension_numbers = #tpu.dot_dimension_numbers<[1], [0], [0], [1], [0, 0, 1, 1], [], []>} : vector<24x28xf32>, vector<28x144xf32>, vector<24x144xf32> -> vector<24x144xf32>
    %686 = arith.addf %681, %685 : vector<24x144xf32>
    %687 = vector.extract_strided_slice %680 {offsets = [1, 0], sizes = [24, 28], strides = [1, 1]} : vector<28x28xf32> to vector<24x28xf32>
    %c1_580 = arith.constant 1 : index
    %c0_581 = arith.constant 0 : index
    %c0_582 = arith.constant 0 : index
    %688 = vector.load %arg2[%c1_580, %c0_581, %c0_582] : memref<5x28x144xf32, #tpu.memory_space<vmem>>, vector<1x28x144xf32>
    %689 = vector.shape_cast %688 : vector<1x28x144xf32> to vector<28x144xf32>
    %cst_583 = arith.constant dense<0.000000e+00> : vector<24x144xf32>
    %690 = tpu.matmul %687, %689, %cst_583 {dimension_numbers = #tpu.dot_dimension_numbers<[1], [0], [0], [1], [0, 0, 1, 1], [], []>} : vector<24x28xf32>, vector<28x144xf32>, vector<24x144xf32> -> vector<24x144xf32>
    %691 = arith.addf %686, %690 : vector<24x144xf32>
    %692 = vector.extract_strided_slice %680 {offsets = [2, 0], sizes = [24, 28], strides = [1, 1]} : vector<28x28xf32> to vector<24x28xf32>
    %c2_584 = arith.constant 2 : index
    %c0_585 = arith.constant 0 : index
    %c0_586 = arith.constant 0 : index
    %693 = vector.load %arg2[%c2_584, %c0_585, %c0_586] : memref<5x28x144xf32, #tpu.memory_space<vmem>>, vector<1x28x144xf32>
    %694 = vector.shape_cast %693 : vector<1x28x144xf32> to vector<28x144xf32>
    %cst_587 = arith.constant dense<0.000000e+00> : vector<24x144xf32>
    %695 = tpu.matmul %692, %694, %cst_587 {dimension_numbers = #tpu.dot_dimension_numbers<[1], [0], [0], [1], [0, 0, 1, 1], [], []>} : vector<24x28xf32>, vector<28x144xf32>, vector<24x144xf32> -> vector<24x144xf32>
    %696 = arith.addf %691, %695 : vector<24x144xf32>
    %697 = vector.extract_strided_slice %680 {offsets = [3, 0], sizes = [24, 28], strides = [1, 1]} : vector<28x28xf32> to vector<24x28xf32>
    %c3_588 = arith.constant 3 : index
    %c0_589 = arith.constant 0 : index
    %c0_590 = arith.constant 0 : index
    %698 = vector.load %arg2[%c3_588, %c0_589, %c0_590] : memref<5x28x144xf32, #tpu.memory_space<vmem>>, vector<1x28x144xf32>
    %699 = vector.shape_cast %698 : vector<1x28x144xf32> to vector<28x144xf32>
    %cst_591 = arith.constant dense<0.000000e+00> : vector<24x144xf32>
    %700 = tpu.matmul %697, %699, %cst_591 {dimension_numbers = #tpu.dot_dimension_numbers<[1], [0], [0], [1], [0, 0, 1, 1], [], []>} : vector<24x28xf32>, vector<28x144xf32>, vector<24x144xf32> -> vector<24x144xf32>
    %701 = arith.addf %696, %700 : vector<24x144xf32>
    %702 = vector.extract_strided_slice %680 {offsets = [4, 0], sizes = [24, 28], strides = [1, 1]} : vector<28x28xf32> to vector<24x28xf32>
    %c4_592 = arith.constant 4 : index
    %c0_593 = arith.constant 0 : index
    %c0_594 = arith.constant 0 : index
    %703 = vector.load %arg2[%c4_592, %c0_593, %c0_594] : memref<5x28x144xf32, #tpu.memory_space<vmem>>, vector<1x28x144xf32>
    %704 = vector.shape_cast %703 : vector<1x28x144xf32> to vector<28x144xf32>
    %cst_595 = arith.constant dense<0.000000e+00> : vector<24x144xf32>
    %705 = tpu.matmul %702, %704, %cst_595 {dimension_numbers = #tpu.dot_dimension_numbers<[1], [0], [0], [1], [0, 0, 1, 1], [], []>} : vector<24x28xf32>, vector<28x144xf32>, vector<24x144xf32> -> vector<24x144xf32>
    %706 = arith.addf %701, %705 : vector<24x144xf32>
    %c0_596 = arith.constant 0 : index
    %c0_597 = arith.constant 0 : index
    %707 = vector.load %arg3[%c0_596, %c0_597] : memref<1x144xf32, #tpu.memory_space<vmem>>, vector<1x144xf32>
    %708 = vector.broadcast %707 : vector<1x144xf32> to vector<24x144xf32>
    %709 = arith.addf %706, %708 : vector<24x144xf32>
    %cst_598 = arith.constant 0.000000e+00 : f32
    %710 = vector.broadcast %cst_598 : f32 to vector<24x144xf32>
    %711 = arith.maximumf %709, %710 : vector<24x144xf32>
    %c0_599 = arith.constant 0 : index
    %c0_600 = arith.constant 0 : index
    %c0_601 = arith.constant 0 : index
    %712 = vector.load %arg4[%c0_599, %c0_600, %c0_601] : memref<2x144x72xf32, #tpu.memory_space<vmem>>, vector<1x144x72xf32>
    %713 = vector.shape_cast %712 : vector<1x144x72xf32> to vector<144x72xf32>
    %cst_602 = arith.constant dense<0.000000e+00> : vector<24x72xf32>
    %714 = tpu.matmul %711, %713, %cst_602 {dimension_numbers = #tpu.dot_dimension_numbers<[1], [0], [0], [1], [0, 0, 1, 1], [], []>} : vector<24x144xf32>, vector<144x72xf32>, vector<24x72xf32> -> vector<24x72xf32>
    %c1_603 = arith.constant 1 : index
    %c0_604 = arith.constant 0 : index
    %c0_605 = arith.constant 0 : index
    %715 = vector.load %arg4[%c1_603, %c0_604, %c0_605] : memref<2x144x72xf32, #tpu.memory_space<vmem>>, vector<1x144x72xf32>
    %716 = vector.shape_cast %715 : vector<1x144x72xf32> to vector<144x72xf32>
    %cst_606 = arith.constant dense<0.000000e+00> : vector<24x72xf32>
    %717 = tpu.matmul %711, %716, %cst_606 {dimension_numbers = #tpu.dot_dimension_numbers<[1], [0], [0], [1], [0, 0, 1, 1], [], []>} : vector<24x144xf32>, vector<144x72xf32>, vector<24x72xf32> -> vector<24x72xf32>
    %718 = arith.maximumf %714, %717 : vector<24x72xf32>
    %c0_607 = arith.constant 0 : index
    %c0_608 = arith.constant 0 : index
    %c0_609 = arith.constant 0 : index
    %719 = vector.load %arg5[%c0_607, %c0_608, %c0_609] : memref<2x12x24xf32, #tpu.memory_space<vmem>>, vector<1x12x24xf32>
    %720 = vector.shape_cast %719 : vector<1x12x24xf32> to vector<12x24xf32>
    %cst_610 = arith.constant dense<0.000000e+00> : vector<12x72xf32>
    %721 = tpu.matmul %720, %718, %cst_610 {dimension_numbers = #tpu.dot_dimension_numbers<[1], [0], [0], [1], [0, 0, 1, 1], [], []>} : vector<12x24xf32>, vector<24x72xf32>, vector<12x72xf32> -> vector<12x72xf32>
    %c1_611 = arith.constant 1 : index
    %c0_612 = arith.constant 0 : index
    %c0_613 = arith.constant 0 : index
    %722 = vector.load %arg5[%c1_611, %c0_612, %c0_613] : memref<2x12x24xf32, #tpu.memory_space<vmem>>, vector<1x12x24xf32>
    %723 = vector.shape_cast %722 : vector<1x12x24xf32> to vector<12x24xf32>
    %cst_614 = arith.constant dense<0.000000e+00> : vector<12x72xf32>
    %724 = tpu.matmul %723, %718, %cst_614 {dimension_numbers = #tpu.dot_dimension_numbers<[1], [0], [0], [1], [0, 0, 1, 1], [], []>} : vector<12x24xf32>, vector<24x72xf32>, vector<12x72xf32> -> vector<12x72xf32>
    %725 = arith.maximumf %721, %724 : vector<12x72xf32>
    %cst_615 = arith.constant 0.000000e+00 : f32
    %726 = vector.broadcast %cst_615 : f32 to vector<8x128xf32>
    %727 = vector.extract_strided_slice %725 {offsets = [0, 0], sizes = [8, 72], strides = [1, 1]} : vector<12x72xf32> to vector<8x72xf32>
    %c0_616 = arith.constant 0 : index
    %c0_617 = arith.constant 0 : index
    %c0_618 = arith.constant 0 : index
    %728 = vector.load %arg6[%c0_616, %c0_617, %c0_618] : memref<5x72x128xf32, #tpu.memory_space<vmem>>, vector<1x72x128xf32>
    %729 = vector.shape_cast %728 : vector<1x72x128xf32> to vector<72x128xf32>
    %cst_619 = arith.constant dense<0.000000e+00> : vector<8x128xf32>
    %730 = tpu.matmul %727, %729, %cst_619 {dimension_numbers = #tpu.dot_dimension_numbers<[1], [0], [0], [1], [0, 0, 1, 1], [], []>} : vector<8x72xf32>, vector<72x128xf32>, vector<8x128xf32> -> vector<8x128xf32>
    %731 = arith.addf %726, %730 : vector<8x128xf32>
    %732 = vector.extract_strided_slice %725 {offsets = [1, 0], sizes = [8, 72], strides = [1, 1]} : vector<12x72xf32> to vector<8x72xf32>
    %c1_620 = arith.constant 1 : index
    %c0_621 = arith.constant 0 : index
    %c0_622 = arith.constant 0 : index
    %733 = vector.load %arg6[%c1_620, %c0_621, %c0_622] : memref<5x72x128xf32, #tpu.memory_space<vmem>>, vector<1x72x128xf32>
    %734 = vector.shape_cast %733 : vector<1x72x128xf32> to vector<72x128xf32>
    %cst_623 = arith.constant dense<0.000000e+00> : vector<8x128xf32>
    %735 = tpu.matmul %732, %734, %cst_623 {dimension_numbers = #tpu.dot_dimension_numbers<[1], [0], [0], [1], [0, 0, 1, 1], [], []>} : vector<8x72xf32>, vector<72x128xf32>, vector<8x128xf32> -> vector<8x128xf32>
    %736 = arith.addf %731, %735 : vector<8x128xf32>
    %737 = vector.extract_strided_slice %725 {offsets = [2, 0], sizes = [8, 72], strides = [1, 1]} : vector<12x72xf32> to vector<8x72xf32>
    %c2_624 = arith.constant 2 : index
    %c0_625 = arith.constant 0 : index
    %c0_626 = arith.constant 0 : index
    %738 = vector.load %arg6[%c2_624, %c0_625, %c0_626] : memref<5x72x128xf32, #tpu.memory_space<vmem>>, vector<1x72x128xf32>
    %739 = vector.shape_cast %738 : vector<1x72x128xf32> to vector<72x128xf32>
    %cst_627 = arith.constant dense<0.000000e+00> : vector<8x128xf32>
    %740 = tpu.matmul %737, %739, %cst_627 {dimension_numbers = #tpu.dot_dimension_numbers<[1], [0], [0], [1], [0, 0, 1, 1], [], []>} : vector<8x72xf32>, vector<72x128xf32>, vector<8x128xf32> -> vector<8x128xf32>
    %741 = arith.addf %736, %740 : vector<8x128xf32>
    %742 = vector.extract_strided_slice %725 {offsets = [3, 0], sizes = [8, 72], strides = [1, 1]} : vector<12x72xf32> to vector<8x72xf32>
    %c3_628 = arith.constant 3 : index
    %c0_629 = arith.constant 0 : index
    %c0_630 = arith.constant 0 : index
    %743 = vector.load %arg6[%c3_628, %c0_629, %c0_630] : memref<5x72x128xf32, #tpu.memory_space<vmem>>, vector<1x72x128xf32>
    %744 = vector.shape_cast %743 : vector<1x72x128xf32> to vector<72x128xf32>
    %cst_631 = arith.constant dense<0.000000e+00> : vector<8x128xf32>
    %745 = tpu.matmul %742, %744, %cst_631 {dimension_numbers = #tpu.dot_dimension_numbers<[1], [0], [0], [1], [0, 0, 1, 1], [], []>} : vector<8x72xf32>, vector<72x128xf32>, vector<8x128xf32> -> vector<8x128xf32>
    %746 = arith.addf %741, %745 : vector<8x128xf32>
    %747 = vector.extract_strided_slice %725 {offsets = [4, 0], sizes = [8, 72], strides = [1, 1]} : vector<12x72xf32> to vector<8x72xf32>
    %c4_632 = arith.constant 4 : index
    %c0_633 = arith.constant 0 : index
    %c0_634 = arith.constant 0 : index
    %748 = vector.load %arg6[%c4_632, %c0_633, %c0_634] : memref<5x72x128xf32, #tpu.memory_space<vmem>>, vector<1x72x128xf32>
    %749 = vector.shape_cast %748 : vector<1x72x128xf32> to vector<72x128xf32>
    %cst_635 = arith.constant dense<0.000000e+00> : vector<8x128xf32>
    %750 = tpu.matmul %747, %749, %cst_635 {dimension_numbers = #tpu.dot_dimension_numbers<[1], [0], [0], [1], [0, 0, 1, 1], [], []>} : vector<8x72xf32>, vector<72x128xf32>, vector<8x128xf32> -> vector<8x128xf32>
    %751 = arith.addf %746, %750 : vector<8x128xf32>
    %c0_636 = arith.constant 0 : index
    %c0_637 = arith.constant 0 : index
    %752 = vector.load %arg7[%c0_636, %c0_637] : memref<1x128xf32, #tpu.memory_space<vmem>>, vector<1x128xf32>
    %753 = vector.broadcast %752 : vector<1x128xf32> to vector<8x128xf32>
    %754 = arith.addf %751, %753 : vector<8x128xf32>
    %cst_638 = arith.constant 0.000000e+00 : f32
    %755 = vector.broadcast %cst_638 : f32 to vector<8x128xf32>
    %756 = arith.maximumf %754, %755 : vector<8x128xf32>
    %c0_639 = arith.constant 0 : index
    %c0_640 = arith.constant 0 : index
    %c0_641 = arith.constant 0 : index
    %757 = vector.load %arg8[%c0_639, %c0_640, %c0_641] : memref<2x128x64xf32, #tpu.memory_space<vmem>>, vector<1x128x64xf32>
    %758 = vector.shape_cast %757 : vector<1x128x64xf32> to vector<128x64xf32>
    %cst_642 = arith.constant dense<0.000000e+00> : vector<8x64xf32>
    %759 = tpu.matmul %756, %758, %cst_642 {dimension_numbers = #tpu.dot_dimension_numbers<[1], [0], [0], [1], [0, 0, 1, 1], [], []>} : vector<8x128xf32>, vector<128x64xf32>, vector<8x64xf32> -> vector<8x64xf32>
    %c1_643 = arith.constant 1 : index
    %c0_644 = arith.constant 0 : index
    %c0_645 = arith.constant 0 : index
    %760 = vector.load %arg8[%c1_643, %c0_644, %c0_645] : memref<2x128x64xf32, #tpu.memory_space<vmem>>, vector<1x128x64xf32>
    %761 = vector.shape_cast %760 : vector<1x128x64xf32> to vector<128x64xf32>
    %cst_646 = arith.constant dense<0.000000e+00> : vector<8x64xf32>
    %762 = tpu.matmul %756, %761, %cst_646 {dimension_numbers = #tpu.dot_dimension_numbers<[1], [0], [0], [1], [0, 0, 1, 1], [], []>} : vector<8x128xf32>, vector<128x64xf32>, vector<8x64xf32> -> vector<8x64xf32>
    %763 = arith.maximumf %759, %762 : vector<8x64xf32>
    %c0_647 = arith.constant 0 : index
    %c0_648 = arith.constant 0 : index
    %c0_649 = arith.constant 0 : index
    %764 = vector.load %arg9[%c0_647, %c0_648, %c0_649] : memref<2x4x8xf32, #tpu.memory_space<vmem>>, vector<1x4x8xf32>
    %765 = vector.shape_cast %764 : vector<1x4x8xf32> to vector<4x8xf32>
    %cst_650 = arith.constant dense<0.000000e+00> : vector<4x64xf32>
    %766 = tpu.matmul %765, %763, %cst_650 {dimension_numbers = #tpu.dot_dimension_numbers<[1], [0], [0], [1], [0, 0, 1, 1], [], []>} : vector<4x8xf32>, vector<8x64xf32>, vector<4x64xf32> -> vector<4x64xf32>
    %c1_651 = arith.constant 1 : index
    %c0_652 = arith.constant 0 : index
    %c0_653 = arith.constant 0 : index
    %767 = vector.load %arg9[%c1_651, %c0_652, %c0_653] : memref<2x4x8xf32, #tpu.memory_space<vmem>>, vector<1x4x8xf32>
    %768 = vector.shape_cast %767 : vector<1x4x8xf32> to vector<4x8xf32>
    %cst_654 = arith.constant dense<0.000000e+00> : vector<4x64xf32>
    %769 = tpu.matmul %768, %763, %cst_654 {dimension_numbers = #tpu.dot_dimension_numbers<[1], [0], [0], [1], [0, 0, 1, 1], [], []>} : vector<4x8xf32>, vector<8x64xf32>, vector<4x64xf32> -> vector<4x64xf32>
    %770 = arith.maximumf %766, %769 : vector<4x64xf32>
    %771 = vector.extract_strided_slice %770 {offsets = [0, 0], sizes = [1, 64], strides = [1, 1]} : vector<4x64xf32> to vector<1x64xf32>
    %772 = vector.extract_strided_slice %770 {offsets = [1, 0], sizes = [1, 64], strides = [1, 1]} : vector<4x64xf32> to vector<1x64xf32>
    %773 = vector.extract_strided_slice %770 {offsets = [2, 0], sizes = [1, 64], strides = [1, 1]} : vector<4x64xf32> to vector<1x64xf32>
    %774 = vector.extract_strided_slice %770 {offsets = [3, 0], sizes = [1, 64], strides = [1, 1]} : vector<4x64xf32> to vector<1x64xf32>
    %775 = tpu.concatenate %771, %772, %773, %774 in 1 : vector<1x64xf32>, vector<1x64xf32>, vector<1x64xf32>, vector<1x64xf32> -> vector<1x256xf32>
    %776 = tpu.concatenate %96, %193, %290, %387, %484, %581, %678, %775 in 0 : vector<1x256xf32>, vector<1x256xf32>, vector<1x256xf32>, vector<1x256xf32>, vector<1x256xf32>, vector<1x256xf32>, vector<1x256xf32>, vector<1x256xf32> -> vector<8x256xf32>
    %c0_655 = arith.constant 0 : index
    %c0_656 = arith.constant 0 : index
    %777 = vector.load %arg10[%c0_655, %c0_656] : memref<256x128xf32, #tpu.memory_space<vmem>>, vector<256x128xf32>
    %cst_657 = arith.constant dense<0.000000e+00> : vector<8x128xf32>
    %778 = tpu.matmul %776, %777, %cst_657 {dimension_numbers = #tpu.dot_dimension_numbers<[1], [0], [0], [1], [0, 0, 1, 1], [], []>} : vector<8x256xf32>, vector<256x128xf32>, vector<8x128xf32> -> vector<8x128xf32>
    %c0_658 = arith.constant 0 : index
    %c0_659 = arith.constant 0 : index
    %779 = vector.load %arg11[%c0_658, %c0_659] : memref<1x128xf32, #tpu.memory_space<vmem>>, vector<1x128xf32>
    %780 = vector.broadcast %779 : vector<1x128xf32> to vector<8x128xf32>
    %781 = arith.addf %778, %780 : vector<8x128xf32>
    %cst_660 = arith.constant 0.000000e+00 : f32
    %782 = vector.broadcast %cst_660 : f32 to vector<8x128xf32>
    %783 = arith.maximumf %781, %782 : vector<8x128xf32>
    %c0_661 = arith.constant 0 : index
    %c0_662 = arith.constant 0 : index
    %784 = vector.load %arg12[%c0_661, %c0_662] : memref<128x128xf32, #tpu.memory_space<vmem>>, vector<128x128xf32>
    %cst_663 = arith.constant dense<0.000000e+00> : vector<8x128xf32>
    %785 = tpu.matmul %783, %784, %cst_663 {dimension_numbers = #tpu.dot_dimension_numbers<[1], [0], [0], [1], [0, 0, 1, 1], [], []>} : vector<8x128xf32>, vector<128x128xf32>, vector<8x128xf32> -> vector<8x128xf32>
    %c0_664 = arith.constant 0 : index
    %c0_665 = arith.constant 0 : index
    %786 = vector.load %arg13[%c0_664, %c0_665] : memref<1x128xf32, #tpu.memory_space<vmem>>, vector<1x128xf32>
    %787 = vector.broadcast %786 : vector<1x128xf32> to vector<8x128xf32>
    %788 = arith.addf %785, %787 : vector<8x128xf32>
    %cst_666 = arith.constant 0.000000e+00 : f32
    %789 = vector.broadcast %cst_666 : f32 to vector<8x128xf32>
    %790 = arith.maximumf %788, %789 : vector<8x128xf32>
    %c0_667 = arith.constant 0 : index
    %c0_668 = arith.constant 0 : index
    %791 = vector.load %arg14[%c0_667, %c0_668] : memref<128x128xf32, #tpu.memory_space<vmem>>, vector<128x128xf32>
    %cst_669 = arith.constant dense<0.000000e+00> : vector<8x128xf32>
    %792 = tpu.matmul %790, %791, %cst_669 {dimension_numbers = #tpu.dot_dimension_numbers<[1], [0], [0], [1], [0, 0, 1, 1], [], []>} : vector<8x128xf32>, vector<128x128xf32>, vector<8x128xf32> -> vector<8x128xf32>
    %c0_670 = arith.constant 0 : index
    %c0_671 = arith.constant 0 : index
    %793 = vector.load %arg15[%c0_670, %c0_671] : memref<1x128xf32, #tpu.memory_space<vmem>>, vector<1x128xf32>
    %794 = vector.broadcast %793 : vector<1x128xf32> to vector<8x128xf32>
    %795 = arith.addf %792, %794 : vector<8x128xf32>
    %c0_672 = arith.constant 0 : index
    %c0_673 = arith.constant 0 : index
    %796 = vector.load %arg16[%c0_672, %c0_673] : memref<8x128xf32, #tpu.memory_space<vmem>>, vector<8x128xf32>
    tpu.vector_store %arg16[%c0_672, %c0_673], %795 {strides = array<i32>} : memref<8x128xf32, #tpu.memory_space<vmem>>, vector<8x128xf32>,
    return
  }
  func.func @transform_0(%arg0: i32) -> (i32, i32, i32) {
    %c0_i32 = arith.constant 0 : i32
    %c0_i32_0 = arith.constant 0 : i32
    %c0_i32_1 = arith.constant 0 : i32
    return %arg0, %c0_i32, %c0_i32_0 : i32, i32, i32
  }
  func.func @transform_1(%arg0: i32) -> (i32, i32, i32) {
    %c0_i32 = arith.constant 0 : i32
    %c0_i32_0 = arith.constant 0 : i32
    %c0_i32_1 = arith.constant 0 : i32
    %c0_i32_2 = arith.constant 0 : i32
    return %c0_i32, %c0_i32_0, %c0_i32_1 : i32, i32, i32
  }
  func.func @transform_2(%arg0: i32) -> (i32, i32) {
    %c0_i32 = arith.constant 0 : i32
    %c0_i32_0 = arith.constant 0 : i32
    %c0_i32_1 = arith.constant 0 : i32
    return %c0_i32, %c0_i32_0 : i32, i32
  }
  func.func @transform_3(%arg0: i32) -> (i32, i32, i32) {
    %c0_i32 = arith.constant 0 : i32
    %c0_i32_0 = arith.constant 0 : i32
    %c0_i32_1 = arith.constant 0 : i32
    %c0_i32_2 = arith.constant 0 : i32
    return %c0_i32, %c0_i32_0, %c0_i32_1 : i32, i32, i32
  }
  func.func @transform_4(%arg0: i32) -> (i32, i32, i32) {
    %c0_i32 = arith.constant 0 : i32
    %c0_i32_0 = arith.constant 0 : i32
    %c0_i32_1 = arith.constant 0 : i32
    %c0_i32_2 = arith.constant 0 : i32
    return %c0_i32, %c0_i32_0, %c0_i32_1 : i32, i32, i32
  }
  func.func @transform_5(%arg0: i32) -> (i32, i32, i32) {
    %c0_i32 = arith.constant 0 : i32
    %c0_i32_0 = arith.constant 0 : i32
    %c0_i32_1 = arith.constant 0 : i32
    %c0_i32_2 = arith.constant 0 : i32
    return %c0_i32, %c0_i32_0, %c0_i32_1 : i32, i32, i32
  }
  func.func @transform_6(%arg0: i32) -> (i32, i32) {
    %c0_i32 = arith.constant 0 : i32
    %c0_i32_0 = arith.constant 0 : i32
    %c0_i32_1 = arith.constant 0 : i32
    return %c0_i32, %c0_i32_0 : i32, i32
  }
  func.func @transform_7(%arg0: i32) -> (i32, i32, i32) {
    %c0_i32 = arith.constant 0 : i32
    %c0_i32_0 = arith.constant 0 : i32
    %c0_i32_1 = arith.constant 0 : i32
    %c0_i32_2 = arith.constant 0 : i32
    return %c0_i32, %c0_i32_0, %c0_i32_1 : i32, i32, i32
  }
  func.func @transform_8(%arg0: i32) -> (i32, i32, i32) {
    %c0_i32 = arith.constant 0 : i32
    %c0_i32_0 = arith.constant 0 : i32
    %c0_i32_1 = arith.constant 0 : i32
    %c0_i32_2 = arith.constant 0 : i32
    return %c0_i32, %c0_i32_0, %c0_i32_1 : i32, i32, i32
  }
  func.func @transform_9(%arg0: i32) -> (i32, i32) {
    %c0_i32 = arith.constant 0 : i32
    %c0_i32_0 = arith.constant 0 : i32
    %c0_i32_1 = arith.constant 0 : i32
    return %c0_i32, %c0_i32_0 : i32, i32
  }
  func.func @transform_10(%arg0: i32) -> (i32, i32) {
    %c0_i32 = arith.constant 0 : i32
    %c0_i32_0 = arith.constant 0 : i32
    %c0_i32_1 = arith.constant 0 : i32
    return %c0_i32, %c0_i32_0 : i32, i32
  }
  func.func @transform_11(%arg0: i32) -> (i32, i32) {
    %c0_i32 = arith.constant 0 : i32
    %c0_i32_0 = arith.constant 0 : i32
    %c0_i32_1 = arith.constant 0 : i32
    return %c0_i32, %c0_i32_0 : i32, i32
  }
  func.func @transform_12(%arg0: i32) -> (i32, i32) {
    %c0_i32 = arith.constant 0 : i32
    %c0_i32_0 = arith.constant 0 : i32
    %c0_i32_1 = arith.constant 0 : i32
    return %c0_i32, %c0_i32_0 : i32, i32
  }
  func.func @transform_13(%arg0: i32) -> (i32, i32) {
    %c0_i32 = arith.constant 0 : i32
    %c0_i32_0 = arith.constant 0 : i32
    %c0_i32_1 = arith.constant 0 : i32
    return %c0_i32, %c0_i32_0 : i32, i32
  }
  func.func @transform_14(%arg0: i32) -> (i32, i32) {
    %c0_i32 = arith.constant 0 : i32
    %c0_i32_0 = arith.constant 0 : i32
    %c0_i32_1 = arith.constant 0 : i32
    return %c0_i32, %c0_i32_0 : i32, i32
  }
  func.func @transform_15(%arg0: i32) -> (i32, i32) {
    %c0_i32 = arith.constant 0 : i32
    %c0_i32_0 = arith.constant 0 : i32
    return %arg0, %c0_i32 : i32, i32
  }
}

</mosaic_0001>

<bundles_post_ra>
// kernel: net_forward.1
= control target key start
LH: loop header
LB: loop body
LE: loop exit
PB: predicated region body
PF: predicated region fallthrough
CT: control target
= control target key end

     0   :  { %s14212_s0 = inlined_call_operand.vmem [shape: f32[16,28,28], index: 0, kind: input, shape index: {}]   ;;  %s14213_s1 = inlined_call_operand.vmem [shape: f32[5,28,144], index: 1, kind: input, shape index: {}]   ;;  %s14214_s2 = inlined_call_operand.vmem [shape: f32[1,144], index: 2, kind: input, shape index: {}]   ;;  %s14215_s3 = inlined_call_operand.vmem [shape: f32[2,144,72], index: 3, kind: input, shape index: {}]   ;;  %s14216_s4 = inlined_call_operand.vmem [shape: f32[2,12,24], index: 4, kind: input, shape index: {}]   ;;  %s14217_s5 = inlined_call_operand.vmem [shape: f32[5,72,128], index: 5, kind: input, shape index: {}]   ;;  %s14218_s6 = inlined_call_operand.vmem [shape: f32[1,128], index: 6, kind: input, shape index: {}]   ;;  %s14219_s7 = inlined_call_operand.vmem [shape: f32[2,128,64], index: 7, kind: input, shape index: {}]   ;;  %s14220_s8 = inlined_call_operand.vmem [shape: f32[2,4,8], index: 8, kind: input, shape index: {}]   ;;  %s14221_s9 = inlined_call_operand.vmem [shape: f32[256,128], index: 9, kind: input, shape index: {}]   ;;  %s14222_s10 = inlined_call_operand.vmem [shape: f32[1,128], index: 10, kind: input, shape index: {}]   ;;  %s14223_s11 = inlined_call_operand.vmem [shape: f32[128,128], index: 11, kind: input, shape index: {}]   ;;  %s14224_s12 = inlined_call_operand.vmem [shape: f32[1,128], index: 12, kind: input, shape index: {}]   ;;  %s14225_s13 = inlined_call_operand.hbm [shape: f32[128,128], index: 13, kind: input, shape index: {}]   ;;  %s14226_s14 = inlined_call_operand.vmem [shape: f32[1,128], index: 14, kind: input, shape index: {}]   ;;  %s14227_s15 = inlined_call_operand.hbm [shape: f32[16,128], index: 15, kind: output, shape index: {}]  }
   0x1   :  { %14619 = sst [smem:[#allocation117_spill]] %s14212_s0 }
   0x2   :  { %14620 = sst [smem:[#allocation118_spill]] %s14213_s1 }
   0x3   :  { %14621 = sst [smem:[#allocation119_spill]] %s14225_s13 }
   0x4   :  { %20 = vsyncpa [#allocation3], 0 }
   0x5   :  { %21 = vsyncpa [#allocation4], 0 }
   0x6   :  { %23 = vsyncpa [#allocation4 + $0x1], 0  ;;  %s8414_s18 = smov 0   ;;  %s8416_s19 = smov 0  }
   0x7   :  { %s8418_s20 = smov 0   ;;  %s8420_s21 = smov 0  }
   0x8 LB: > { %14622 = sst [smem:[#allocation8_spill]] %s8324_s20  ;;  %s8435_s22 = sadd.s32 4294967295, %s8328_s21   ;;  %s8328_s21 = sphi %s8420_s21, %s15396_s21   ;;  %s8324_s20 = sphi %s8418_s20, %s15398_s20   ;;  %s8320_s19 = sphi %s8416_s19, %s15400_s19   ;;  %s8316_s18 = sphi %s8414_s18, %s15399_s18  }
   0x9   : > { %s7018_s23 = sadd.s32 4294967294, %s8328_s21   ;;  %s8439_s24 = sadd.s32 1, %s8328_s21  }
   0xa   : > { %14623 = sst [smem:[#allocation9_spill]] %s8439_s24  ;;  %s356_s25 = sadd.s32 1, %s8324_s20 }
   0xb   : > { %s353_s26 = ssub.s32 %s8328_s21, %s8439_s24  ;;  %p366_p0 = scmp.ne.s32.totalorder %s8324_s20, %s8320_s19 }
   0xc   : > { %p354_p1 = scmp.eq.s32.totalorder %s353_s26, 0  ;;  %p367_p2 = scmp.eq.s32.totalorder %s8435_s22, 1 }
   0xd   : > { %p372_p3 = scmp.ne.s32.totalorder %s8320_s19, %s8316_s18  ;;  %p373_p4 = scmp.eq.s32.totalorder %s7018_s23, 1 }
   0xe   : > { %s8450_s27 = scalar_select %p354_p1, %s8324_s20, %s356_s25  }
   0xf   : > { %p8452_p5 = por %p367_p2, %p366_p0  ;;  %p8456_p6 = por %p373_p4, %p372_p3 }
  0x10   : > { %14624 = sst [smem:[#allocation10_spill]] %s8450_s27  ;;  %p7019_p7 = scmp.ge.s32.totalorder %s8328_s21, 1 }
  0x11   : > { %s14626_s29 = scalar_select %p8456_p6, 1, 0 }
  0x12   : > { %p380_p8 = scmp.lt.s32.totalorder %s8328_s21, 3  ;;  %p7640_p9 = scmp.eq.s32.totalorder %s8435_s22, 0 }
  0x13   : > { %14627 = sst [smem:[#allocation11_spill]] %s14626_s29  ;;  %s8330_s23 = smov [#allocation2]  }
  0x14   : > { %p381_p10 = pnand %p7019_p7, %p380_p8  ;;  %s14628_s13 = sld [smem:[#allocation119_spill]] }
  0x15   : > { %s429_s25 = sshll.u32 %s8330_s23, 4  ;;  %s8331_s26 = smov 128   ;;  %s430_s25 = int_to_ptr.vmem [resolvable:$true] %s429_s25 }
  0x16   : > { %p7632_p11 = pneg %p381_p10  ;;  %s8332_s27 = smov 8  }
  0x17   : > { %458 = sbr.rel (%p381_p10) target bundleno = 6902 (0x1af6), region = 80 }
  0x18   : > { %p7633_p12 = pnand %p7640_p9, %p7632_p11 }
  0x1a   : > { %s427_s17 = sshll.u32 %s14628_s13, 4  ;;  %s428_s17 = int_to_ptr.hbm [resolvable:$true] %s427_s17 }
  0x1b   : > { %7635 = dma.hbm_to_vmem [thread:$0]  (!%p7633_p12), %s428_s17, 2048, %s430_s25, [#allocation3], %s8331_s26, %s8331_s26, %s8332_s27  }
  0x1c   : > { %8307 = dma.done.wait (%p7640_p9), [#allocation3], 2048  }
  0x1d   : > { %8309 = vsyncadd (%p7640_p9), [#allocation3], 4294965248  ;;  %s8473_s30 = sshll.u32 %s8435_s22, 3  ;;  %vm555_vm0 = vcmask 1043456   ;;  %s14629_s1 = sld [smem:[#allocation118_spill]]  ;;  %vm540_vm1 = vcmask 1046528  }
  0x1e   : > { %p509_p13 = scmp.lt.s32.totalorder %s8473_s30, 15  ;;  %s14630_s0 = sld [smem:[#allocation117_spill]]  ;;  %vm548_vm2 = vcmask 228352   ;;  %vm687_vm3 = vcmask 1045504   ;;  %vm774_vm4 = vcmask 1044480   ;;  %vm974_vm5 = vcmask 130048  }
  0x1f   : > { %vm1112_vm6 = vcmask 195584   ;;  %vm1200_vm7 = vcmask 588800   ;;  %vm1434_vm8 = vcmask 64512   ;;  %s8333_s29 = smov 64   ;;  %vm1495_vm9 = vcmask 523264   ;;  %s505_s22 = sand.u32 1, %s8320_s19  }
  0x20   : > { %s510_s16 = scalar_select %p509_p13, %s8473_s30, 15  ;;  %vm6755_vm10 = vcmask 1040384   ;;  %vm6758_vm11 = vcmask 1041408   ;;  %vm6761_vm12 = vcmask 1042432  }
  0x21   : > { %s6932_s24 = scalar_lea.sflag [#allocation4], %s505_s22 }
  0x22   : > { %s7621_s23 = sshll.u32 %s510_s16, 5  ;;  %s7024_s16 = sshll.u32 %s505_s22, 3 }
  0x23   : > { %v7034_v0 = vld [vmem:[%s14629_s1 + $0x70] sm:$0xf]  ;;  %v7035_v1 = vld [vmem:[%s14629_s1 + $0x78] sm:$0xf]  ;;  %v7032_v3 = vld [vmem:[%s14629_s1 + $0x60] sm:$0xff]  ;;  %s507_s27 = scalar_lea.vmem [#allocation5], %s7024_s16 }
  0x24   : > { %v525_v2 = vld [vmem:[%s14629_s1 + $0x30] sm:$0xf]  ;;  %7036 = vmatpush.msk.msra.mxu0 %vm555_vm0, %v7034_v0  ;;  %7622 = vmatpush.msk.msra.mxu3 %vm555_vm0, %v7035_v1  ;;  %v7033_v4 = vld [vmem:[%s14629_s1 + $0x68] sm:$0xff]  ;;  %v523_v5 = vld [vmem:[%s14629_s1 + $0x20] sm:$0xff]  ;;  %s8500_s25 = scalar_lea.vmem %s14630_s0, %s7621_s23  ;;  %s6942_s23 = scalar_lea.hbm %s14227_s15, %s8473_s30 }
  0x25   : > { %7044 = vmatpush.msk.msra.mxu2 %vm555_vm0, %v525_v2  ;;  %v7030_v6 = vld [vmem:[%s14629_s1 + $0x50] sm:$0xff]  ;;  %v7031_v7 = vld [vmem:[%s14629_s1 + $0x58] sm:$0xff]  ;;  %7040 = vmatpush.msk.msra.mxu1 %vm555_vm0, %v7035_v1  ;;  %v7028_v9 = vld [vmem:[%s14629_s1 + $0x40] sm:$0xff]  ;;  %s6944_s17 = sshll.u32 %s507_s27, 4  ;;  %s6946_s0 = sshll.u32 %s6942_s23, 4  ;;  %s6945_s17 = int_to_ptr.vmem [resolvable:$true] %s6944_s17  ;;  %s6947_s0 = int_to_ptr.hbm [resolvable:$true] %s6946_s0 }
  0x26   : > { %575 = vmatpush.msra.mxu0 %v7032_v3  ;;  %7623 = vmatpush.msra.mxu3 %v7033_v4  ;;  %v521_v8 = vld [vmem:[%s14629_s1 + $0x10] sm:$0xff]  ;;  %v7029_v10 = vld [vmem:[%s14629_s1 + $0x48] sm:$0xff]  ;;  %v8520_v11 = vld [vmem:[%s8500_s25] sm:$0xff]  ;;  %s8276_s26 = sshra.s32 %s6947_s0, 4  ;;  %s8277_s26 = int_to_ptr.hbm [resolvable:$true] %s8276_s26 }
  0x27   : > { %639 = vmatpush.msra.mxu2 %v523_v5  ;;  %v8523_v12 = vld [vmem:[%s8500_s25 + $0x8] sm:$0xff]  ;;  %v8526_v13 = vld [vmem:[%s8500_s25 + $0x10] sm:$0xff]  ;;  %601 = vmatpush.msra.mxu1 %v7033_v4  ;;  %v8531_v14 = vld [vmem:[%s14629_s1] sm:$0xff]  ;;  %v541_v15 = vrot.slane %v8520_v11, 1  ;;  %v688_v34 = vrot.slane %v8520_v11, 2  ;;  %v775_v53 = vrot.slane %v8520_v11, 3  ;;  %p8283_p3 = scmp.lt.s32.totalorder %s8277_s26, %s14227_s15 }
  0x28   : > { %576 = vmatpush.msra.mxu0 %v7030_v6  ;;  %7624 = vmatpush.msra.mxu3 %v7031_v7  ;;  %v542_v16 = vrot.slane %v8523_v12, 1  ;;  %v544_v17 = vrot.slane %v8526_v13, 1  ;;  %v8539_v20 = vld [vmem:[%s8500_s25 + $0x18] sm:$0xf]  ;;  %v7058_v22 = vld [vmem:[%s14629_s1 + $0xb0] sm:$0xf] }
  0x29   : > { %640 = vmatpush.msra.mxu2 %v521_v8  ;;  %602 = vmatpush.msra.mxu1 %v7031_v7  ;;  %v8544_v21 = vld [vmem:[%s14629_s1 + $0x38] sm:$0xf]  ;;  %v8557_v23 = vld [vmem:[%s14629_s1 + $0x28] sm:$0xff]  ;;  %v546_v25 = vrot.slane %v8539_v20, 1  ;;  %v8568_v26 = vld [vmem:[%s14629_s1 + $0xf0] sm:$0xf] }
  0x2a   : > { %577 = vmatpush.msra.mxu0 %v7028_v9  ;;  %7625 = vmatpush.msra.mxu3 %v7029_v10  ;;  %v543_v18 = vsel %vm540_vm1, %v541_v15, %v542_v16  ;;  %v545_v19 = vsel %vm540_vm1, %v542_v16, %v544_v17  ;;  %v7059_v24 = vld [vmem:[%s14629_s1 + $0xb8] sm:$0xf]  ;;  %v7056_v27 = vld [vmem:[%s14629_s1 + $0xa0] sm:$0xff]  ;;  %v7057_v29 = vld [vmem:[%s14629_s1 + $0xa8] sm:$0xff]  ;;  %v689_v35 = vrot.slane %v8523_v12, 2  ;;  %v691_v48 = vrot.slane %v8526_v13, 2 }
  0x2b   : > { %641 = vmatpush.msra.mxu2 %v8531_v14  ;;  %7037 = vmatmul.msk.f32.vlgmr.msra.gmra.mxu0 %vm548_vm2, %v543_v18  ;;  %v8576_v28 = vld [vmem:[%s14629_s1 + $0x18] sm:$0xff]  ;;  %v8586_v30 = vld [vmem:[%s14629_s1 + $0xe0] sm:$0xff]  ;;  %v7054_v31 = vld [vmem:[%s14629_s1 + $0x90] sm:$0xff]  ;;  %v547_v33 = vsel %vm540_vm1, %v544_v17, %v546_v25  ;;  %v776_v54 = vrot.slane %v8523_v12, 3  ;;  %v693_v59 = vrot.slane %v8539_v20, 2  ;;  %v778_v60 = vrot.slane %v8526_v13, 3 }
  0x2c   : > { %7042 = vmatmul.msk.f32.vlgmr.msra.gmra.mxu3 %vm548_vm2, %v545_v19  ;;  %7045 = vmatmul.msk.f32.vlgmr.msra.gmra.mxu2 %vm548_vm2, %v8520_v11  ;;  %v8596_v32 = vld [vmem:[%s14629_s1 + $0x8] sm:$0xff]  ;;  %v7055_v36 = vld [vmem:[%s14629_s1 + $0x98] sm:$0xff]  ;;  %v8611_v37 = vld [vmem:[%s14629_s1 + $0xd0] sm:$0xff]  ;;  %v690_v42 = vsel %vm687_vm3, %v688_v34, %v689_v35  ;;  %v692_v55 = vsel %vm687_vm3, %v689_v35, %v691_v48  ;;  %v861_v63 = vrot.slane %v8520_v11, 4  ;;  %v862_v0 = vrot.slane %v8523_v12, 4 }
  0x2d   : > { %7048 = vmatpush.msk.msrb.mxu3 %vm555_vm0, %v8544_v21  ;;  %603 = vmatpush.msra.mxu1 %v7029_v10  ;;  %v7052_v38 = vld [vmem:[%s14629_s1 + $0x80] sm:$0xff]  ;;  %v8621_v39 = vld [vmem:[%s14629_s1 + $0xf8] sm:$0xf]  ;;  %v7053_v40 = vld [vmem:[%s14629_s1 + $0x88] sm:$0xff]  ;;  %v777_v58 = vsel %vm774_vm4, %v775_v53, %v776_v54  ;;  %v694_v61 = vsel %vm687_vm3, %v691_v48, %v693_v59  ;;  %v779_v62 = vsel %vm774_vm4, %v776_v54, %v778_v60  ;;  %v780_v1 = vrot.slane %v8539_v20, 3 }
  0x2e   : > { %7041 = vmatmul.msk.f32.vlgmr.msra.gmra.mxu1 %vm548_vm2, %v543_v18  ;;  %7060 = vmatpush.msk.msrb.mxu0 %vm555_vm0, %v7058_v22  ;;  %v8632_v41 = vld [vmem:[%s14629_s1 + $0xc0] sm:$0xff]  ;;  %v8639_v43 = vld [vmem:[%s14629_s1 + $0xe8] sm:$0xff]  ;;  %v7090_v44 = vld [vmem:[%s14629_s1 + $0x130] sm:$0xf]  ;;  %v863_v2 = vsel %vm555_vm0, %v861_v63, %v862_v0  ;;  %v864_v4 = vrot.slane %v8526_v13, 4  ;;  %v866_v6 = vrot.slane %v8539_v20, 4 }
  0x2f   : > { %665 = vmatpush.msrb.mxu3 %v8557_v23  ;;  %7064 = vmatpush.msk.msrb.mxu1 %vm555_vm0, %v7059_v24  ;;  %v7091_v45 = vld [vmem:[%s14629_s1 + $0x138] sm:$0xf]  ;;  %v7089_v47 = vld [vmem:[%s14629_s1 + $0x128] sm:$0xff]  ;;  %v7088_v50 = vld [vmem:[%s14629_s1 + $0x120] sm:$0xff]  ;;  %v781_v3 = vsel %vm774_vm4, %v778_v60, %v780_v1 }
  0x30   : > { %7076 = vmatpush.msk.msrb.mxu2 %vm555_vm0, %v8568_v26  ;;  %720 = vmatpush.msrb.mxu0 %v7056_v27  ;;  %v8653_v46 = vld [vmem:[%s14629_s1 + $0xd8] sm:$0xff]  ;;  %v8667_v49 = vld [vmem:[%s14629_s1 + $0xc8] sm:$0xff]  ;;  %v7086_v52 = vld [vmem:[%s14629_s1 + $0x110] sm:$0xff]  ;;  %v865_v5 = vsel %vm555_vm0, %v862_v0, %v864_v4  ;;  %v867_v7 = vsel %vm555_vm0, %v864_v4, %v866_v6 }
  0x31   : > { %666 = vmatpush.msrb.mxu3 %v8576_v28  ;;  %746 = vmatpush.msrb.mxu1 %v7057_v29  ;;  %v7087_v51 = vld [vmem:[%s14629_s1 + $0x118] sm:$0xff]  ;;  %v7084_v56 = vld [vmem:[%s14629_s1 + $0x100] sm:$0xff]  ;;  %v7085_v57 = vld [vmem:[%s14629_s1 + $0x108] sm:$0xff] }
  0x32   : > { %807 = vmatpush.msrb.mxu2 %v8586_v30  ;;  %721 = vmatpush.msrb.mxu0 %v7054_v31  ;;  %v8731_v8 = vld [vmem:[%s14215_s3 + $0x78] sm:$0xff]  ;;  %v8736_v9 = vld [vmem:[%s14215_s3 + $0x108] sm:$0xff]  ;;  %v8743_v10 = vld [vmem:[%s14215_s3 + $0x70] sm:$0xff] }
  0x33   : > { %7038 = vmatmul.msk.f32.gmra.mxu0 %vm548_vm2, %v545_v19  ;;  %667 = vmatpush.msrb.mxu3 %v8596_v32  ;;  %14631 = vst [vmem:[#allocation12_spill] sm:$0xff] %v8736_v9  ;;  %v8767_v15 = vld [vmem:[%s14215_s3 + $0x60] sm:$0xff]  ;;  %v8772_v16 = vld [vmem:[%s14215_s3 + $0xf0] sm:$0xff]  ;;  %v8781_v18 = vld [vmem:[%s14215_s3 + $0x58] sm:$0xff] }
  0x34   : > { %7043 = vmatmul.msk.f32.gmra.mxu3 %vm548_vm2, %v547_v33  ;;  %7046 = vmatmul.msk.f32.gmra.mxu2 %vm548_vm2, %v8523_v12  ;;  %14634 = vst [vmem:[#allocation15_spill] sm:$0xff] %v8772_v16  ;;  %v8786_v19 = vld [vmem:[%s14215_s3 + $0xe8] sm:$0xff]  ;;  %v8793_v20 = vld [vmem:[%s14215_s3 + $0x50] sm:$0xff]  ;;  %v8798_v22 = vld [vmem:[%s14215_s3 + $0xe0] sm:$0xff] }
  0x35   : > { %747 = vmatpush.msrb.mxu1 %v7055_v36  ;;  %808 = vmatpush.msrb.mxu2 %v8611_v37  ;;  %14635 = vst [vmem:[#allocation16_spill] sm:$0xff] %v8786_v19  ;;  %v8803_v24 = vld [vmem:[%s14215_s3 + $0x48] sm:$0xff]  ;;  %v8812_v27 = vld [vmem:[%s14215_s3 + $0xd8] sm:$0xff]  ;;  %v8819_v29 = vld [vmem:[%s14215_s3 + $0x40] sm:$0xff] }
  0x36   : > { %722 = vmatpush.msrb.mxu0 %v7052_v38  ;;  %7080 = vmatpush.msk.msra.mxu3 %vm555_vm0, %v8621_v39  ;;  %14636 = vst [vmem:[#allocation17_spill] sm:$0xff] %v8798_v22  ;;  %v8824_v31 = vld [vmem:[%s14215_s3 + $0xd0] sm:$0xff]  ;;  %v8835_v35 = vld [vmem:[%s14215_s3 + $0x38] sm:$0xff]  ;;  %v8840_v36 = vld [vmem:[%s14215_s3 + $0xc8] sm:$0xff] }
  0x37   : > { %748 = vmatpush.msrb.mxu1 %v7053_v40  ;;  %809 = vmatpush.msrb.mxu2 %v8632_v41  ;;  %14637 = vst [vmem:[#allocation18_spill] sm:$0xff] %v8812_v27  ;;  %v8847_v40 = vld [vmem:[%s14215_s3 + $0x30] sm:$0xff]  ;;  %v8871_v48 = vld [vmem:[%s14215_s3 + $0x20] sm:$0xff]  ;;  %v8887_v53 = vld [vmem:[%s14215_s3 + $0x18] sm:$0xff] }
  0x38   : > { %7065 = vmatmul.msk.f32.vlgmr.msrb.gmra.mxu1 %vm548_vm2, %v690_v42  ;;  %833 = vmatpush.msra.mxu3 %v8639_v43  ;;  %14638 = vst [vmem:[#allocation19_spill] sm:$0xff] %v8824_v31  ;;  %v8892_v54 = vld [vmem:[%s14215_s3 + $0xa8] sm:$0xff]  ;;  %v8921_v60 = vld [vmem:[%s14215_s3 + $0x98] sm:$0xff]  ;;  %v8940_v63 = vld [vmem:[%s14215_s3 + $0x80] sm:$0xff] }
  0x39   : > { %7092 = vmatpush.msk.msra.mxu0 %vm555_vm0, %v7090_v44  ;;  %7096 = vmatpush.msk.msra.mxu1 %vm555_vm0, %v7091_v45  ;;  %14639 = vst [vmem:[#allocation20_spill] sm:$0xff] %v8840_v36  ;;  %v8857_v44 = vld [vmem:[%s14215_s3 + $0x28] sm:$0xff]  ;;  %v8864_v45 = vld [vmem:[%s14215_s3 + $0xb8] sm:$0xff]  ;;  %v8945_v0 = vld [vmem:[%s14215_s3 + $0x90] sm:$0xff] }
  0x3a   : > { %834 = vmatpush.msra.mxu3 %v8653_v46  ;;  %984 = vmatpush.msra.mxu2 %v8731_v8  ;;  %14641 = vst [vmem:[#allocation22_spill] sm:$0xff] %v8864_v45  ;;  %v8916_v59 = vld [vmem:[%s14215_s3 + $0x8] sm:$0xff] }
  0x3b   : > { %7039 = vmatmul.msk.f32.gmra.mxu0 %vm548_vm2, %v547_v33  ;;  %919 = vmatpush.msra.mxu1 %v7089_v47  ;;  %14643 = vst [vmem:[#allocation24_spill] sm:$0xff] %v8892_v54 }
  0x3c   : > { %7047 = vmatmul.msk.f32.gmra.mxu2 %vm548_vm2, %v8526_v13  ;;  %7049 = vmatmul.msk.f32.vlgmr.msrb.gmra.mxu3 %vm548_vm2, %v8520_v11  ;;  %v8748_v11 = vld [vmem:[%s14215_s3 + $0x100] sm:$0xff]  ;;  %14645 = vst [vmem:[#allocation26_spill] sm:$0xff] %v8921_v60 }
  0x3d   : > { %835 = vmatpush.msra.mxu3 %v8667_v49  ;;  %893 = vmatpush.msra.mxu0 %v7088_v50  ;;  %14632 = vst [vmem:[#allocation13_spill] sm:$0xff] %v8748_v11  ;;  %v8876_v50 = vld [vmem:[%s14215_s3 + $0xb0] sm:$0xff] }
  0x3e   : > { %920 = vmatpush.msra.mxu1 %v7087_v51  ;;  %985 = vmatpush.msra.mxu2 %v8743_v10  ;;  %14642 = vst [vmem:[#allocation23_spill] sm:$0xff] %v8876_v50 }
  0x3f   : > { %894 = vmatpush.msra.mxu0 %v7086_v52  ;;  %14647 = vst [vmem:[#allocation28_spill] sm:$0xff] %v8945_v0 }
  0x40   : > { %7066 = vmatmul.msk.f32.gmra.mxu1 %vm548_vm2, %v692_v55 }
  0x41   : > { %895 = vmatpush.msra.mxu0 %v7084_v56  ;;  %921 = vmatpush.msra.mxu1 %v7085_v57  ;;  %v8904_v56 = vld [vmem:[%s14215_s3 + $0xa0] sm:$0xff] }
  0x42   : > { %14644 = vst [vmem:[#allocation25_spill] sm:$0xff] %v8904_v56 }
  0x43   : > { %7061 = vmatmul.msk.f32.vlgmr.msrb.gmra.mxu0 %vm548_vm2, %v690_v42  ;;  %v8852_v42 = vld [vmem:[%s14215_s3 + $0xc0] sm:$0xff] }
  0x44   : > { %7050 = vmatmul.msk.f32.gmra.mxu3 %vm548_vm2, %v8523_v12  ;;  %7077 = vmatmul.msk.f32.vlgmr.msrb.gmra.mxu2 %vm548_vm2, %v777_v58  ;;  %v8753_v12 = vld [vmem:[%s14215_s3 + $0x68] sm:$0xff]  ;;  %14640 = vst [vmem:[#allocation21_spill] sm:$0xff] %v8852_v42 }
  0x45   : > { %1055 = vmatpush.msrb.mxu0 %v8736_v9  ;;  %986 = vmatpush.msra.mxu2 %v8753_v12 }
  0x47   : > { %1056 = vmatpush.msrb.mxu0 %v8748_v11  ;;  %987 = vmatpush.msra.mxu2 %v8767_v15 }
  0x48   : > { %7067 = vmatmul.msk.f32.gmra.mxu1 %vm548_vm2, %v694_v61 }
  0x49   : > { %988 = vmatpush.msra.mxu2 %v8781_v18 }
  0x4b   : > { %7062 = vmatmul.msk.f32.gmra.mxu0 %vm548_vm2, %v692_v55  ;;  %989 = vmatpush.msra.mxu2 %v8793_v20  ;;  %v8899_v55 = vld [vmem:[%s14215_s3 + $0x10] sm:$0xff] }
  0x4c   : > { %7051 = vmatmul.msk.f32.gmra.mxu3 %vm548_vm2, %v8526_v13  ;;  %7078 = vmatmul.msk.f32.gmra.mxu2 %vm548_vm2, %v779_v62  ;;  %v8760_v13 = vld [vmem:[%s14215_s3 + $0xf8] sm:$0xff] }
  0x4d   : > { %14633 = vst [vmem:[#allocation14_spill] sm:$0xff] %v8760_v13  ;;  %1057 = vmatpush.msrb.mxu0 %v8760_v13  ;;  %990 = vmatpush.msra.mxu2 %v8803_v24 }
  0x4f   : > { %1058 = vmatpush.msrb.mxu0 %v8772_v16  ;;  %991 = vmatpush.msra.mxu2 %v8819_v29 }
  0x50   : > { %7097 = vmatmul.msk.f32.vlgmr.msra.gmra.mxu1 %vm548_vm2, %v863_v2 }
  0x51   : > { %1059 = vmatpush.msrb.mxu0 %v8786_v19  ;;  %992 = vmatpush.msra.mxu2 %v8835_v35 }
  0x53   : > { %7063 = vmatmul.msk.f32.gmra.mxu0 %vm548_vm2, %v694_v61  ;;  %993 = vmatpush.msra.mxu2 %v8847_v40  ;;  %v8928_v61 = vld [vmem:[%s14215_s3 + $0x118] sm:$0xff] }
  0x54   : > { %7079 = vmatmul.msk.f32.gmra.mxu2 %vm548_vm2, %v781_v3  ;;  %7081 = vmatmul.msk.f32.vlgmr.msra.gmra.mxu3 %vm548_vm2, %v777_v58  ;;  %v8911_v58 = vld [vmem:[%s14215_s3 + $0x88] sm:$0xff]  ;;  %14646 = vst [vmem:[#allocation27_spill] sm:$0xff] %v8928_v61 }
  0x55   : > { %1060 = vmatpush.msrb.mxu0 %v8798_v22  ;;  %994 = vmatpush.msra.mxu2 %v8857_v44 }
  0x56   : > { %1024 = vmatpush.msrb.mxu3 %v8911_v58  ;;  %1095 = vmatpush.msrb.mxu1 %v8928_v61 }
  0x57   : > { %1061 = vmatpush.msrb.mxu0 %v8812_v27  ;;  %995 = vmatpush.msra.mxu2 %v8871_v48 }
  0x58   : > { %7098 = vmatmul.msk.f32.gmra.mxu1 %vm548_vm2, %v865_v5  ;;  %1025 = vmatpush.msrb.mxu3 %v8940_v63 }
  0x59   : > { %1062 = vmatpush.msrb.mxu0 %v8824_v31  ;;  %996 = vmatpush.msra.mxu2 %v8887_v53  ;;  %v938_v31 = vld [vmem:[%s14214_s2] sm:$0x3] }
  0x5a   : > { %v8961_v16 = vperm.slane %v938_v31, 0  ;;  %v8963_v11 = vperm.slane %v938_v31, 1 }
  0x5b   : > { %7093 = vmatmul.msk.f32.vlgmr.msra.gmra.mxu0 %vm548_vm2, %v863_v2  ;;  %997 = vmatpush.msra.mxu2 %v8899_v55 }
  0x5c   : > { %7082 = vmatmul.msk.f32.gmra.mxu3 %vm548_vm2, %v779_v62  ;;  %1063 = vmatpush.msrb.mxu0 %v8840_v36  ;;  %v8935_v62 = vld [vmem:[%s14215_s3] sm:$0xff]  ;;  %14649 = vst [vmem:[#allocation30_spill] sm:$0xff] %v8961_v16 }
  0x5d   : > { %998 = vmatpush.msra.mxu2 %v8916_v59  ;;  %14650 = vst [vmem:[#allocation31_spill] sm:$0xff] %v8963_v11 }
  0x5e   : > { %1064 = vmatpush.msrb.mxu0 %v8852_v42 }
  0x5f   : > { %999 = vmatpush.msra.mxu2 %v8935_v62 }
  0x60   : > { %7099 = vmatmul.msk.f32.gmra.mxu1 %vm548_vm2, %v867_v7  ;;  %1065 = vmatpush.msrb.mxu0 %v8864_v45 }
  0x62   : > { %1066 = vmatpush.msrb.mxu0 %v8876_v50 }
  0x63   : > { %7094 = vmatmul.msk.f32.gmra.mxu0 %vm548_vm2, %v865_v5 }
  0x64   : > { %7083 = vmatmul.msk.f32.gmra.mxu3 %vm548_vm2, %v781_v3  ;;  %1067 = vmatpush.msrb.mxu0 %v8892_v54  ;;  %v8952_v3 = vld [vmem:[%s14215_s3 + $0x110] sm:$0xff] }
  0x65   : > { %14648 = vst [vmem:[#allocation29_spill] sm:$0xff] %v8952_v3  ;;  %1096 = vmatpush.msrb.mxu1 %v8952_v3 }
  0x66   : > { %1068 = vmatpush.msrb.mxu0 %v8904_v56 }
  0x68   : > { %1069 = vmatpush.msrb.mxu0 %v8921_v60 }
  0x6a   : > { %1070 = vmatpush.msrb.mxu0 %v8945_v0 }
  0x6b   : > { %7095 = vmatmul.msk.f32.gmra.mxu0 %vm548_vm2, %v867_v7 }
  0xa8   : > { %v8776_v17 = vpop.f32.mrf.mxu0 }
  0xab   : > { %v8805_v25 = vpop.f32.mrf.mxu1 }
  0xaf   : > { %v8826_v33 = vpop.f32.mrf.mxu3  ;;  %v643_v38 = vpop.f32.mrf.mxu2 }
  0xb0   : > { %v8830_v34 = vpop.f32.mrf.mxu0  ;;  %v644_v42 = vadd.f32 %v643_v38, %v8776_v17 }
  0xb5   : > { %v750_v47 = vpop.f32.mrf.mxu1 }
  0xb7   : > { %v8878_v51 = vpop.f32.mrf.mxu3  ;;  %v646_v57 = vpop.f32.mrf.mxu2 }
  0xb8   : > { %v8882_v52 = vpop.f32.mrf.mxu0  ;;  %v647_v38 = vadd.f32 %v646_v57, %v8830_v34 }
  0xbd   : > { %v753_v2 = vpop.f32.mrf.mxu1 }
  0xbf   : > { %v669_v1 = vpop.f32.mrf.mxu3  ;;  %v649_v5 = vpop.f32.mrf.mxu2 }
  0xc0   : > { %v724_v4 = vpop.f32.mrf.mxu0  ;;  %v670_v45 = vadd.f32 %v669_v1, %v8805_v25 }
  0xc1   : > { %v759_v27 = vadd.f32 %v724_v4, %v644_v42 }
  0xc2   : > { %v760_v0 = vadd.f32 %v750_v47, %v670_v45 }
  0xc5   : > { %v756_v60 = vpop.f32.mrf.mxu1 }
  0xc7   : > { %v672_v6 = vpop.f32.mrf.mxu3  ;;  %v811_v54 = vpop.f32.mrf.mxu2 }
  0xc8   : > { %v727_v7 = vpop.f32.mrf.mxu0  ;;  %v846_v22 = vadd.f32 %v811_v54, %v759_v27  ;;  %v673_v25 = vadd.f32 %v672_v6, %v8826_v33 }
  0xc9   : > { %v761_v45 = vadd.f32 %v727_v7, %v647_v38 }
  0xca   : > { %v762_v54 = vadd.f32 %v753_v2, %v673_v25 }
  0xcd   : > { %v923_v36 = vpop.f32.mrf.mxu1 }
  0xcf   : > { %v675_v56 = vpop.f32.mrf.mxu3  ;;  %v814_v1 = vpop.f32.mrf.mxu2 }
  0xd0   : > { %v730_v50 = vpop.f32.mrf.mxu0  ;;  %v676_v34 = vadd.f32 %v675_v56, %v8878_v51 }
  0xd2   : > { %v764_v6 = vadd.f32 %v756_v60, %v676_v34  ;;  %v7159_v34 = vld [vmem:[%s14217_s5 + $0x118] sm:$0xff] }
  0xd3   : > { %1303 = vmatpush.msra.mxu0 %v7159_v34  ;;  %v9037_v34 = vld [vmem:[%s14216_s4 + $0x10] sm:$0xff] }
  0xd4   : > { %14652 = vst [vmem:[#allocation33_spill] sm:$0xff] %v9037_v34 }
  0xd5   : > { %v926_v47 = vpop.f32.mrf.mxu1 }
  0xd7   : > { %v837_v19 = vpop.f32.mrf.mxu3 }
  0xd8   : > { %v847_v13 = vadd.f32 %v837_v19, %v760_v0  ;;  %v897_v3 = vpop.f32.mrf.mxu0  ;;  %v848_v0 = vadd.f32 %v814_v1, %v761_v45 }
  0xd9   : > { %v932_v61 = vadd.f32 %v897_v3, %v846_v22 }
  0xda   : > { %v933_v17 = vadd.f32 %v923_v36, %v847_v13 }
  0xdb   : > { %v944_v9 = vadd.f32 %v8961_v16, %v932_v61  ;;  %v817_v61 = vpop.f32.mrf.mxu2 }
  0xdc   : > { %v945_v42 = vadd.f32 %v8963_v11, %v933_v17 }
  0xdd   : > { %v950_v27 = vmax.f32 %v944_v9, 0.0  ;;  %v650_v9 = vadd.f32 %v649_v5, %v8882_v52  ;;  %v929_v17 = vpop.f32.mrf.mxu1 }
  0xde   : > { %v951_v19 = vmax.f32 %v945_v42, 0.0 }
  0xdf   : > { %v840_v31 = vpop.f32.mrf.mxu3  ;;  %1000 = vmatmul.f32.vlgmr.msra.gmra.mxu2 %v950_v27  ;;  %1071 = vmatmul.f32.vlgmr.msrb.gmra.mxu0 %v950_v27  ;;  %v763_v3 = vadd.f32 %v730_v50, %v650_v9  ;;  %v7158_v9 = vld [vmem:[%s14217_s5 + $0x110] sm:$0xff] }
  0xe0   : > { %v849_v22 = vadd.f32 %v840_v31, %v762_v54  ;;  %7100 = vmatmul.msk.f32.vlgmr.msrb.gmra.mxu3 %vm974_vm5, %v951_v19  ;;  %7121 = vmatmul.msk.f32.vlgmr.msrb.gmra.mxu1 %vm974_vm5, %v951_v19  ;;  %v900_v13 = vpop.f32.mrf.mxu0  ;;  %v8984_v19 = vld [vmem:[%s14217_s5 + $0x40] sm:$0xff] }
  0xe1   : > { %v934_v33 = vadd.f32 %v900_v13, %v848_v0  ;;  %v850_v25 = vadd.f32 %v817_v61, %v763_v3  ;;  %v8989_v0 = vld [vmem:[%s14217_s5 + $0x38] sm:$0xff]  ;;  %1232 = vmatpush.msra.mxu1 %v8984_v19  ;;  %v8995_v13 = vld [vmem:[%s14217_s5 + $0x30] sm:$0xff]  ;;  %v9013_v61 = vld [vmem:[%s14217_s5 + $0x20] sm:$0xff]  ;;  %1304 = vmatpush.msra.mxu0 %v7158_v9 }
  0xe2   : > { %v935_v36 = vadd.f32 %v926_v47, %v849_v22  ;;  %v9025_v3 = vld [vmem:[%s14217_s5 + $0x10] sm:$0xff]  ;;  %v9085_v9 = vld [vmem:[%s14216_s4 + $0x18] sm:$0xf] }
  0xe3   : > { %v946_v57 = vadd.f32 %v8961_v16, %v934_v33  ;;  %1233 = vmatpush.msra.mxu1 %v8989_v0  ;;  %v9001_v33 = vld [vmem:[%s14217_s5 + $0x28] sm:$0xff]  ;;  %14656 = vst [vmem:[#allocation37_spill] sm:$0xff] %v9085_v9 }
  0xe4   : > { %v947_v2 = vadd.f32 %v8963_v11, %v935_v36 }
  0xe5   : > { %v952_v4 = vmax.f32 %v946_v57, 0.0  ;;  %1234 = vmatpush.msra.mxu1 %v8995_v13 }
  0xe6   : > { %v953_v7 = vmax.f32 %v947_v2, 0.0  ;;  %v9019_v2 = vld [vmem:[%s14217_s5 + $0x18] sm:$0xff] }
  0xe7   : > { %v843_v1 = vpop.f32.mrf.mxu3  ;;  %1003 = vmatmul.f32.gmra.mxu2 %v952_v4  ;;  %1074 = vmatmul.f32.gmra.mxu0 %v952_v4 }
  0xe8   : > { %v851_v38 = vadd.f32 %v843_v1, %v764_v6  ;;  %7101 = vmatmul.msk.f32.gmra.mxu3 %vm974_vm5, %v953_v7  ;;  %7122 = vmatmul.msk.f32.gmra.mxu1 %vm974_vm5, %v953_v7  ;;  %v903_v51 = vpop.f32.mrf.mxu0 }
  0xe9   : > { %v936_v52 = vadd.f32 %v903_v51, %v850_v25  ;;  %1235 = vmatpush.msra.mxu1 %v9001_v33 }
  0xea   : > { %v937_v56 = vadd.f32 %v929_v17, %v851_v38 }
  0xeb   : > { %v948_v5 = vadd.f32 %v8961_v16, %v936_v52  ;;  %1236 = vmatpush.msra.mxu1 %v9013_v61 }
  0xec   : > { %v949_v50 = vadd.f32 %v8963_v11, %v937_v56 }
  0xed   : > { %v954_v42 = vmax.f32 %v948_v5, 0.0  ;;  %1237 = vmatpush.msra.mxu1 %v9019_v2 }
  0xee   : > { %v955_v60 = vmax.f32 %v949_v50, 0.0 }
  0xef   : > { %1006 = vmatmul.f32.gmra.mxu2 %v954_v42  ;;  %1077 = vmatmul.f32.gmra.mxu0 %v954_v42 }
  0xf0   : > { %7102 = vmatmul.msk.f32.gmra.mxu3 %vm974_vm5, %v955_v60  ;;  %7123 = vmatmul.msk.f32.gmra.mxu1 %vm974_vm5, %v955_v60  ;;  %v9032_v60 = vld [vmem:[%s14216_s4] sm:$0xff] }
  0xf1   : > { %1238 = vmatpush.msra.mxu1 %v9025_v3  ;;  %14651 = vst [vmem:[#allocation32_spill] sm:$0xff] %v9032_v60 }
 0x15c   : > { %v1072_v45 = vpop.f32.mrf.mxu0 }
 0x15d   : > { %v1098_v27 = vpop.f32.mrf.mxu1 }
 0x15e   : > { %v1099_v5 = vadd.f32 %v1098_v27, %v1072_v45  ;;  %v9042_v45 = vld [vmem:[%s14217_s5 + $0x88] sm:$0xff]  ;;  %v9047_v27 = vld [vmem:[%s14217_s5 + $0xd0] sm:$0xff] }
 0x15f   : > { %14653 = vst [vmem:[#allocation34_spill] sm:$0xff] %v9047_v27 }
 0x162   : > { %v1001_v47 = vpop.f32.mrf.mxu2 }
 0x163   : > { %v1027_v54 = vpop.f32.mrf.mxu3 }
 0x164   : > { %v1075_v31 = vpop.f32.mrf.mxu0  ;;  %v1028_v51 = vadd.f32 %v1027_v54, %v1001_v47  ;;  %v9056_v47 = vld [vmem:[%s14217_s5 + $0x80] sm:$0xff]  ;;  %v9061_v54 = vld [vmem:[%s14217_s5 + $0xc8] sm:$0xff] }
 0x165   : > { %v1101_v22 = vpop.f32.mrf.mxu1  ;;  %14654 = vst [vmem:[#allocation35_spill] sm:$0xff] %v9061_v54 }
 0x166   : > { %v1102_v52 = vadd.f32 %v1101_v22, %v1075_v31  ;;  %v1107_v42 = vmax.f32 %v1028_v51, %v1099_v5  ;;  %v9068_v31 = vld [vmem:[%s14217_s5 + $0x78] sm:$0xff]  ;;  %v9075_v22 = vld [vmem:[%s14217_s5 + $0x70] sm:$0xff] }
 0x167   : > { %v9144_v51 = vld [vmem:[%s14217_s5 + $0xb8] sm:$0xff]  ;;  %v9161_v5 = vld [vmem:[%s14217_s5 + $0xb0] sm:$0xff] }
 0x168   : > { %14659 = vst [vmem:[#allocation40_spill] sm:$0xff] %v9144_v51 }
 0x169   : > { %14661 = vst [vmem:[#allocation42_spill] sm:$0xff] %v9161_v5 }
 0x16a   : > { %v1004_v36 = vpop.f32.mrf.mxu2 }
 0x16b   : > { %v1030_v57 = vpop.f32.mrf.mxu3 }
 0x16c   : > { %v1078_v4 = vpop.f32.mrf.mxu0  ;;  %v1031_v1 = vadd.f32 %v1030_v57, %v1004_v36  ;;  %v9080_v36 = vld [vmem:[%s14216_s4 + $0x8] sm:$0xf] }
 0x16d   : > { %v1104_v6 = vpop.f32.mrf.mxu1  ;;  %14655 = vst [vmem:[#allocation36_spill] sm:$0xff] %v9080_v36  ;;  %v9091_v57 = vld [vmem:[%s14217_s5 + $0x68] sm:$0xff] }
 0x16e   : > { %v1105_v17 = vadd.f32 %v1104_v6, %v1078_v4  ;;  %v1108_v50 = vmax.f32 %v1031_v1, %v1102_v52  ;;  %v9101_v4 = vld [vmem:[%s14217_s5 + $0x60] sm:$0xff]  ;;  %v9108_v6 = vld [vmem:[%s14217_s5 + $0x58] sm:$0xff]  ;;  %v9125_v1 = vld [vmem:[%s14217_s5 + $0x108] sm:$0xff] }
 0x16f   : > { %14658 = vst [vmem:[#allocation39_spill] sm:$0xff] %v9125_v1  ;;  %1305 = vmatpush.msra.mxu0 %v9125_v1  ;;  %v9149_v52 = vld [vmem:[%s14217_s5 + $0x100] sm:$0xff]  ;;  %v9226_v1 = vld [vmem:[%s14217_s5 + $0x148] sm:$0xff] }
 0x170   : > { %14660 = vst [vmem:[#allocation41_spill] sm:$0xff] %v9149_v52 }
 0x171   : > { %1306 = vmatpush.msra.mxu0 %v9149_v52  ;;  %v9189_v52 = vld [vmem:[%s14217_s5 + $0x158] sm:$0xff]  ;;  %14672 = vst [vmem:[#allocation53_spill] sm:$0xff] %v9226_v1 }
 0x172   : > { %v1007_v7 = vpop.f32.mrf.mxu2  ;;  %14666 = vst [vmem:[#allocation47_spill] sm:$0xff] %v9189_v52 }
 0x173   : > { %v1033_v25 = vpop.f32.mrf.mxu3 }
 0x174   : > { %v1034_v38 = vadd.f32 %v1033_v25, %v1007_v7  ;;  %v9113_v7 = vld [vmem:[%s14217_s5 + $0x8] sm:$0xff]  ;;  %v9120_v25 = vld [vmem:[%s14217_s5 + $0xc0] sm:$0xff] }
 0x175   : > { %1239 = vmatpush.msra.mxu1 %v9113_v7  ;;  %14657 = vst [vmem:[#allocation38_spill] sm:$0xff] %v9120_v25 }
 0x176   : > { %v1109_v56 = vmax.f32 %v1034_v38, %v1105_v17  ;;  %v9132_v17 = vld [vmem:[%s14217_s5 + $0x50] sm:$0xff]  ;;  %v9137_v38 = vld [vmem:[%s14217_s5] sm:$0xff] }
 0x177   : > { %1240 = vmatpush.msra.mxu1 %v9137_v38 }
 0x178   : > { %1132 = vmatpush.msra.mxu3 %v1109_v56  ;;  %1164 = vmatpush.msrb.mxu2 %v1109_v56  ;;  %v9156_v56 = vld [vmem:[%s14217_s5 + $0x48] sm:$0xff] }
 0x17a   : > { %1133 = vmatpush.msra.mxu3 %v1108_v50  ;;  %1165 = vmatpush.msrb.mxu2 %v1108_v50  ;;  %v9166_v50 = vld [vmem:[%s14217_s5 + $0xf8] sm:$0xff] }
 0x17b   : > { %14662 = vst [vmem:[#allocation43_spill] sm:$0xff] %v9166_v50  ;;  %1307 = vmatpush.msra.mxu0 %v9166_v50  ;;  %v9203_v50 = vld [vmem:[%s14217_s5 + $0xe8] sm:$0xff] }
 0x17c   : > { %1134 = vmatpush.msra.mxu3 %v1107_v42  ;;  %1166 = vmatpush.msrb.mxu2 %v1107_v42  ;;  %v9172_v42 = vld [vmem:[%s14217_s5 + $0x160] sm:$0xff]  ;;  %14668 = vst [vmem:[#allocation49_spill] sm:$0xff] %v9203_v50 }
 0x17d   : > { %7124 = vmatmul.msk.f32.vlgmr.msra.gmra.mxu3 %vm1112_vm6, %v9032_v60  ;;  %7128 = vmatmul.msk.f32.vlgmr.msrb.gmra.mxu2 %vm1112_vm6, %v9037_v34  ;;  %14663 = vst [vmem:[#allocation44_spill] sm:$0xff] %v9172_v42 }
 0x17e   : > { %1210 = vmatpush.msrb.mxu3 %v9042_v45  ;;  %1267 = vmatpush.msra.mxu2 %v9047_v27 }
 0x180   : > { %1211 = vmatpush.msrb.mxu3 %v9056_v47  ;;  %1268 = vmatpush.msra.mxu2 %v9061_v54 }
 0x182   : > { %1212 = vmatpush.msrb.mxu3 %v9068_v31  ;;  %1269 = vmatpush.msra.mxu2 %v9120_v25  ;;  %v9243_v25 = vld [vmem:[%s14217_s5 + $0x140] sm:$0xff] }
 0x183   : > { %14675 = vst [vmem:[#allocation56_spill] sm:$0xff] %v9243_v25 }
 0x184   : > { %1213 = vmatpush.msrb.mxu3 %v9075_v22  ;;  %1270 = vmatpush.msra.mxu2 %v9144_v51  ;;  %v9198_v51 = vld [vmem:[%s14217_s5 + $0xa0] sm:$0xff] }
 0x185   : > { %7125 = vmatmul.msk.f32.gmra.mxu3 %vm1112_vm6, %v9080_v36  ;;  %7129 = vmatmul.msk.f32.gmra.mxu2 %vm1112_vm6, %v9085_v9  ;;  %v9177_v9 = vld [vmem:[%s14217_s5 + $0xa8] sm:$0xff]  ;;  %v9182_v36 = vld [vmem:[%s14217_s5 + $0xf0] sm:$0xff]  ;;  %14667 = vst [vmem:[#allocation48_spill] sm:$0xff] %v9198_v51 }
 0x186   : > { %1214 = vmatpush.msrb.mxu3 %v9091_v57  ;;  %14664 = vst [vmem:[#allocation45_spill] sm:$0xff] %v9177_v9  ;;  %1271 = vmatpush.msra.mxu2 %v9161_v5  ;;  %v9208_v5 = vld [vmem:[%s14217_s5 + $0x150] sm:$0xff] }
 0x187   : > { %14665 = vst [vmem:[#allocation46_spill] sm:$0xff] %v9182_v36  ;;  %1308 = vmatpush.msra.mxu0 %v9182_v36  ;;  %v9216_v36 = vld [vmem:[%s14217_s5 + $0x98] sm:$0xff] }
 0x188   : > { %1215 = vmatpush.msrb.mxu3 %v9101_v4  ;;  %1272 = vmatpush.msra.mxu2 %v9177_v9  ;;  %14669 = vst [vmem:[#allocation50_spill] sm:$0xff] %v9208_v5  ;;  %v9221_v9 = vld [vmem:[%s14217_s5 + $0xe0] sm:$0xff] }
 0x189   : > { %1309 = vmatpush.msra.mxu0 %v9203_v50  ;;  %14670 = vst [vmem:[#allocation51_spill] sm:$0xff] %v9216_v36  ;;  %v9233_v50 = vld [vmem:[%s14217_s5 + $0x90] sm:$0xff] }
 0x18a   : > { %1216 = vmatpush.msrb.mxu3 %v9108_v6  ;;  %1273 = vmatpush.msra.mxu2 %v9198_v51  ;;  %14671 = vst [vmem:[#allocation52_spill] sm:$0xff] %v9221_v9  ;;  %v9238_v51 = vld [vmem:[%s14217_s5 + $0xd8] sm:$0xff] }
 0x18b   : > { %1310 = vmatpush.msra.mxu0 %v9221_v9  ;;  %14673 = vst [vmem:[#allocation54_spill] sm:$0xff] %v9233_v50  ;;  %v9252_v9 = vld [vmem:[%s14217_s5 + $0x138] sm:$0xff] }
 0x18c   : > { %1217 = vmatpush.msrb.mxu3 %v9132_v17  ;;  %1274 = vmatpush.msra.mxu2 %v9216_v36  ;;  %14674 = vst [vmem:[#allocation55_spill] sm:$0xff] %v9238_v51  ;;  %v9257_v36 = vld [vmem:[%s14217_s5 + $0x130] sm:$0xff] }
 0x18d   : > { %1311 = vmatpush.msra.mxu0 %v9238_v51  ;;  %14676 = vst [vmem:[#allocation57_spill] sm:$0xff] %v9252_v9  ;;  %v9269_v51 = vld [vmem:[%s14217_s5 + $0x120] sm:$0xff] }
 0x18e   : > { %1218 = vmatpush.msrb.mxu3 %v9156_v56  ;;  %1275 = vmatpush.msra.mxu2 %v9233_v50  ;;  %14677 = vst [vmem:[#allocation58_spill] sm:$0xff] %v9257_v36  ;;  %v9263_v50 = vld [vmem:[%s14217_s5 + $0x128] sm:$0xff] }
 0x18f   : > { %14678 = vst [vmem:[#allocation59_spill] sm:$0xff] %v9263_v50 }
 0x190   : > { %1339 = vmatpush.msra.mxu3 %v9172_v42  ;;  %14679 = vst [vmem:[#allocation60_spill] sm:$0xff] %v9269_v51 }
 0x192   : > { %1340 = vmatpush.msra.mxu3 %v9189_v52 }
 0x194   : > { %1341 = vmatpush.msra.mxu3 %v9208_v5 }
 0x196   : > { %1342 = vmatpush.msra.mxu3 %v9226_v1 }
 0x198   : > { %1343 = vmatpush.msra.mxu3 %v9243_v25 }
 0x19a   : > { %1344 = vmatpush.msra.mxu3 %v9252_v9 }
 0x19c   : > { %1345 = vmatpush.msra.mxu3 %v9257_v36 }
 0x19e   : > { %1346 = vmatpush.msra.mxu3 %v9263_v50 }
 0x1a0   : > { %1347 = vmatpush.msra.mxu3 %v9269_v51 }
 0x200   : > { %v1136_v54 = vpop.f32.mrf.mxu3  ;;  %v1168_v27 = vpop.f32.mrf.mxu2 }
 0x201   : > { %v1174_v34 = vmax.f32 %v1136_v54, %v1168_v27 }
 0x203   : > { %7140 = vmatmul.msk.f32.vlgmr.msra.gmra.mxu1 %vm1200_vm7, %v1174_v34  ;;  %v1197_v1 = vrot.slane %v1174_v34, 1  ;;  %v1255_v36 = vrot.slane %v1174_v34, 2  ;;  %v1291_v11 = vrot.slane %v1174_v34, 3 }
 0x208   : > { %v1139_v60 = vpop.f32.mrf.mxu3  ;;  %v1171_v9 = vpop.f32.mrf.mxu2 }
 0x209   : > { %v1175_v25 = vmax.f32 %v1139_v60, %v1171_v9  ;;  %v1327_v60 = vrot.slane %v1174_v34, 4  ;;  %v9285_v9 = vld [vmem:[%s14219_s7 + $0x78] sm:$0xff]  ;;  %v9302_v34 = vld [vmem:[%s14219_s7 + $0xf0] sm:$0xff] }
 0x20a   : > { %1375 = vmatpush.msrb.mxu1 %v9285_v9  ;;  %14681 = vst [vmem:[#allocation62_spill] sm:$0xff] %v9302_v34 }
 0x20b   : > { %v1198_v5 = vrot.slane %v1175_v25, 1  ;;  %v1256_v52 = vrot.slane %v1175_v25, 2  ;;  %v1292_v42 = vrot.slane %v1175_v25, 3  ;;  %v1328_v27 = vrot.slane %v1175_v25, 4  ;;  %v9312_v25 = vld [vmem:[%s14219_s7 + $0xe8] sm:$0xff] }
 0x20c   : > { %14682 = vst [vmem:[#allocation63_spill] sm:$0xff] %v9312_v25 }
 0x20d   : > { %v1199_v16 = vsel %vm540_vm1, %v1197_v1, %v1198_v5  ;;  %v1257_v50 = vsel %vm687_vm3, %v1255_v36, %v1256_v52  ;;  %v1293_v51 = vsel %vm774_vm4, %v1291_v11, %v1292_v42  ;;  %v1329_v54 = vsel %vm555_vm0, %v1327_v60, %v1328_v27  ;;  %v9290_v11 = vld [vmem:[%s14219_s7 + $0xf8] sm:$0xff]  ;;  %v9307_v36 = vld [vmem:[%s14219_s7 + $0x68] sm:$0xff]  ;;  %v9319_v1 = vld [vmem:[%s14219_s7 + $0x60] sm:$0xff] }
 0x20e   : > { %7139 = vmatmul.msk.f32.vlgmr.msrb.gmra.mxu3 %vm1200_vm7, %v1199_v16  ;;  %7150 = vmatmul.msk.f32.vlgmr.msra.gmra.mxu2 %vm1200_vm7, %v1257_v50  ;;  %14680 = vst [vmem:[#allocation61_spill] sm:$0xff] %v9290_v11  ;;  %v9295_v16 = vld [vmem:[%s14219_s7 + $0x70] sm:$0xff]  ;;  %v9331_v52 = vld [vmem:[%s14219_s7 + $0x58] sm:$0xff]  ;;  %v9357_v27 = vld [vmem:[%s14219_s7 + $0x48] sm:$0xff] }
 0x20f   : > { %7160 = vmatmul.msk.f32.vlgmr.msra.gmra.mxu0 %vm1200_vm7, %v1293_v51  ;;  %1412 = vmatpush.msrb.mxu2 %v9290_v11  ;;  %v9324_v51 = vld [vmem:[%s14219_s7 + $0xe0] sm:$0xff]  ;;  %v9336_v5 = vld [vmem:[%s14219_s7 + $0xd8] sm:$0xff]  ;;  %v9345_v50 = vld [vmem:[%s14219_s7 + $0x50] sm:$0xff] }
 0x210   : > { %1376 = vmatpush.msrb.mxu1 %v9295_v16  ;;  %14683 = vst [vmem:[#allocation64_spill] sm:$0xff] %v9324_v51  ;;  %v9350_v42 = vld [vmem:[%s14219_s7 + $0xd0] sm:$0xff]  ;;  %v9362_v60 = vld [vmem:[%s14219_s7 + $0xc8] sm:$0xff]  ;;  %v9420_v11 = vld [vmem:[%s14219_s7 + $0xa0] sm:$0xff] }
 0x211   : > { %1413 = vmatpush.msrb.mxu2 %v9302_v34  ;;  %14684 = vst [vmem:[#allocation65_spill] sm:$0xff] %v9336_v5  ;;  %v9415_v34 = vld [vmem:[%s14219_s7 + $0x20] sm:$0xff] }
 0x212   : > { %1377 = vmatpush.msrb.mxu1 %v9307_v36  ;;  %14685 = vst [vmem:[#allocation66_spill] sm:$0xff] %v9350_v42 }
 0x213   : > { %1414 = vmatpush.msrb.mxu2 %v9312_v25  ;;  %14686 = vst [vmem:[#allocation67_spill] sm:$0xff] %v9362_v60  ;;  %v9405_v25 = vld [vmem:[%s14219_s7 + $0x28] sm:$0xff] }
 0x214   : > { %1378 = vmatpush.msrb.mxu1 %v9319_v1  ;;  %14693 = vst [vmem:[#allocation74_spill] sm:$0xff] %v9405_v25 }
 0x215   : > { %1415 = vmatpush.msrb.mxu2 %v9324_v51  ;;  %v9386_v51 = vld [vmem:[%s14219_s7 + $0xb8] sm:$0xff]  ;;  %14695 = vst [vmem:[#allocation76_spill] sm:$0xff] %v9415_v34 }
 0x216   : > { %7170 = vmatmul.msk.f32.vlgmr.msra.gmra.mxu3 %vm1200_vm7, %v1329_v54  ;;  %1379 = vmatpush.msrb.mxu1 %v9331_v52  ;;  %v9367_v54 = vld [vmem:[%s14219_s7 + $0x40] sm:$0xff]  ;;  %14690 = vst [vmem:[#allocation71_spill] sm:$0xff] %v9386_v51 }
 0x217   : > { %1416 = vmatpush.msrb.mxu2 %v9336_v5  ;;  %14687 = vst [vmem:[#allocation68_spill] sm:$0xff] %v9367_v54  ;;  %v9372_v5 = vld [vmem:[%s14219_s7 + $0xc0] sm:$0xff] }
 0x218   : > { %1380 = vmatpush.msrb.mxu1 %v9345_v50  ;;  %14688 = vst [vmem:[#allocation69_spill] sm:$0xff] %v9372_v5 }
 0x219   : > { %1417 = vmatpush.msrb.mxu2 %v9350_v42  ;;  %v9381_v42 = vld [vmem:[%s14219_s7 + $0x38] sm:$0xff]  ;;  %14696 = vst [vmem:[#allocation77_spill] sm:$0xff] %v9420_v11 }
 0x21a   : > { %1381 = vmatpush.msrb.mxu1 %v9357_v27  ;;  %14689 = vst [vmem:[#allocation70_spill] sm:$0xff] %v9381_v42 }
 0x21b   : > { %1418 = vmatpush.msrb.mxu2 %v9362_v60  ;;  %v9393_v60 = vld [vmem:[%s14219_s7 + $0x30] sm:$0xff] }
 0x21c   : > { %1382 = vmatpush.msrb.mxu1 %v9367_v54  ;;  %14691 = vst [vmem:[#allocation72_spill] sm:$0xff] %v9393_v60 }
 0x21d   : > { %1419 = vmatpush.msrb.mxu2 %v9372_v5  ;;  %v9398_v5 = vld [vmem:[%s14219_s7 + $0xb0] sm:$0xff] }
 0x21e   : > { %1383 = vmatpush.msrb.mxu1 %v9381_v42  ;;  %14692 = vst [vmem:[#allocation73_spill] sm:$0xff] %v9398_v5 }
 0x21f   : > { %1420 = vmatpush.msrb.mxu2 %v9386_v51  ;;  %v9410_v51 = vld [vmem:[%s14219_s7 + $0xa8] sm:$0xff] }
 0x220   : > { %1384 = vmatpush.msrb.mxu1 %v9393_v60  ;;  %14694 = vst [vmem:[#allocation75_spill] sm:$0xff] %v9410_v51  ;;  %v9434_v60 = vld [vmem:[%s14219_s7 + $0x98] sm:$0xff] }
 0x221   : > { %1421 = vmatpush.msrb.mxu2 %v9398_v5  ;;  %v9429_v5 = vld [vmem:[%s14219_s7 + $0x18] sm:$0xff]  ;;  %14698 = vst [vmem:[#allocation79_spill] sm:$0xff] %v9434_v60 }
 0x222   : > { %1385 = vmatpush.msrb.mxu1 %v9405_v25  ;;  %14697 = vst [vmem:[#allocation78_spill] sm:$0xff] %v9429_v5 }
 0x223   : > { %1422 = vmatpush.msrb.mxu2 %v9410_v51  ;;  %v9441_v51 = vld [vmem:[%s14219_s7 + $0x10] sm:$0xff] }
 0x224   : > { %1386 = vmatpush.msrb.mxu1 %v9415_v34  ;;  %14699 = vst [vmem:[#allocation80_spill] sm:$0xff] %v9441_v51 }
 0x225   : > { %1423 = vmatpush.msrb.mxu2 %v9420_v11  ;;  %v9446_v11 = vld [vmem:[%s14219_s7 + $0x90] sm:$0xff] }
 0x226   : > { %1387 = vmatpush.msrb.mxu1 %v9429_v5  ;;  %14700 = vst [vmem:[#allocation81_spill] sm:$0xff] %v9446_v11  ;;  %v9453_v5 = vld [vmem:[%s14219_s7 + $0x8] sm:$0xff] }
 0x227   : > { %1424 = vmatpush.msrb.mxu2 %v9434_v60  ;;  %14701 = vst [vmem:[#allocation82_spill] sm:$0xff] %v9453_v5  ;;  %v9458_v60 = vld [vmem:[%s14219_s7 + $0x88] sm:$0xff] }
 0x228   : > { %1388 = vmatpush.msrb.mxu1 %v9441_v51  ;;  %14702 = vst [vmem:[#allocation83_spill] sm:$0xff] %v9458_v60  ;;  %v9465_v51 = vld [vmem:[%s14219_s7] sm:$0xff] }
 0x229   : > { %1425 = vmatpush.msrb.mxu2 %v9446_v11  ;;  %14703 = vst [vmem:[#allocation84_spill] sm:$0xff] %v9465_v51  ;;  %v9470_v11 = vld [vmem:[%s14219_s7 + $0x80] sm:$0xff] }
 0x22a   : > { %1389 = vmatpush.msrb.mxu1 %v9453_v5  ;;  %14704 = vst [vmem:[#allocation85_spill] sm:$0xff] %v9470_v11  ;;  %v9487_v5 = vld [vmem:[%s14629_s1 + $0x20] sm:$0xff] }
 0x22b   : > { %1426 = vmatpush.msrb.mxu2 %v9458_v60  ;;  %v9479_v60 = vld [vmem:[%s14629_s1 + $0x30] sm:$0xf]  ;;  %14706 = vst [vmem:[#allocation87_spill] sm:$0xff] %v9487_v5 }
 0x22c   : > { %1390 = vmatpush.msrb.mxu1 %v9465_v51  ;;  %14705 = vst [vmem:[#allocation86_spill] sm:$0xff] %v9479_v60 }
 0x22d   : > { %1427 = vmatpush.msrb.mxu2 %v9470_v11 }
 0x22e   : > { %7202 = vmatpush.msk.msra.mxu1 %vm555_vm0, %v9479_v60 }
 0x22f   : > { %7206 = vmatpush.msk.msra.mxu2 %vm555_vm0, %v8544_v21  ;;  %v9494_v21 = vld [vmem:[%s14629_s1 + $0x10] sm:$0xff] }
 0x230   : > { %1591 = vmatpush.msra.mxu1 %v9487_v5  ;;  %14707 = vst [vmem:[#allocation88_spill] sm:$0xff] %v9494_v21 }
 0x231   : > { %1617 = vmatpush.msra.mxu2 %v8557_v23 }
 0x232   : > { %1592 = vmatpush.msra.mxu1 %v9494_v21 }
 0x233   : > { %1618 = vmatpush.msra.mxu2 %v8576_v28  ;;  %v9502_v28 = vld [vmem:[%s14218_s6] ss:$0 sm:$0xff] }
 0x234   : > { %1593 = vmatpush.msra.mxu1 %v8531_v14  ;;  %v9516_v14 = vld [vmem:[%s8500_s25 + $0x20] sm:$0xff] }
 0x235   : > { %1619 = vmatpush.msra.mxu2 %v8596_v32 }
 0x280   : > { %v1242_v23 = vpop.f32.mrf.mxu1 }
 0x28c   : > { %v1313_v25 = vpop.f32.mrf.mxu0 }
 0x291   : > { %v1220_v60 = vpop.f32.mrf.mxu3  ;;  %v1277_v51 = vpop.f32.mrf.mxu2 }
 0x292   : > { %v1243_v11 = vadd.f32 %v1242_v23, %v1220_v60  ;;  %v9672_v60 = vld [vmem:[%s8500_s25 + $0x38] sm:$0xf]  ;;  %v1772_v23 = vrot.slane %v9516_v14, 4 }
 0x294   : > { %v1280_v34 = vadd.f32 %v1277_v51, %v1243_v11  ;;  %v9638_v11 = vld [vmem:[%s14629_s1 + $0xb8] sm:$0xf]  ;;  %v9653_v51 = vld [vmem:[%s14629_s1 + $0xa8] sm:$0xff] }
 0x296   : > { %v1316_v5 = vadd.f32 %v1313_v25, %v1280_v34  ;;  %v9647_v25 = vld [vmem:[%s14629_s1 + $0xa0] sm:$0xff] }
 0x299   : > { %v1349_v42 = vpop.f32.mrf.mxu3 }
 0x29a   : > { %v1352_v54 = vadd.f32 %v1349_v42, %v1316_v5  ;;  %v9662_v5 = vld [vmem:[%s14629_s1 + $0x90] sm:$0xff]  ;;  %v9668_v42 = vld [vmem:[%s14629_s1 + $0x98] sm:$0xff] }
 0x29c   : > { %v1357_v21 = vadd.f32 %v9502_v28, %v1352_v54  ;;  %v9678_v54 = vld [vmem:[%s14629_s1 + $0x80] sm:$0xff] }
 0x29e   : > { %v1358_v32 = vmax.f32 %v1357_v21, 0.0  ;;  %v9684_v21 = vld [vmem:[%s14629_s1 + $0x88] sm:$0xff] }
 0x2a0   : > { %1391 = vmatmul.f32.vlgmr.msrb.gmra.mxu1 %v1358_v32  ;;  %1428 = vmatmul.f32.vlgmr.msrb.gmra.mxu2 %v1358_v32 }
 0x2a1   : > { %7218 = vmatpush.msk.msrb.mxu1 %vm555_vm0, %v8568_v26  ;;  %7222 = vmatpush.msk.msrb.mxu2 %vm555_vm0, %v8621_v39  ;;  %v9528_v26 = vld [vmem:[%s8500_s25 + $0x28] sm:$0xff] }
 0x2a2   : > { %v1773_v32 = vrot.slane %v9528_v26, 4 }
 0x2a3   : > { %1727 = vmatpush.msrb.mxu1 %v8586_v30  ;;  %1753 = vmatpush.msrb.mxu2 %v8639_v43  ;;  %v9539_v30 = vld [vmem:[%s8500_s25 + $0x30] sm:$0xff]  ;;  %v9552_v43 = vld [vmem:[%s14220_s8] sm:$0xf] }
 0x2a5   : > { %1728 = vmatpush.msrb.mxu1 %v8611_v37  ;;  %1754 = vmatpush.msrb.mxu2 %v8653_v46  ;;  %v9557_v46 = vld [vmem:[%s14220_s8 + $0x4] sm:$0xf] }
 0x2a7   : > { %1729 = vmatpush.msrb.mxu1 %v8632_v41  ;;  %1755 = vmatpush.msrb.mxu2 %v8667_v49  ;;  %v1701_v49 = vrot.slane %v9516_v14, 3 }
 0x2a8   : > { %7207 = vmatmul.msk.f32.vlgmr.msra.gmra.mxu2 %vm548_vm2, %v9516_v14  ;;  %7203 = vmatmul.msk.f32.vlgmr.msra.gmra.mxu1 %vm548_vm2, %v9516_v14 }
 0x2a9   : > { %1864 = vmatpush.msra.mxu1 %v8731_v8  ;;  %1904 = vmatpush.msra.mxu2 %v8911_v58  ;;  %v1702_v8 = vrot.slane %v9528_v26, 3  ;;  %v1510_v58 = vrot.slane %v9539_v30, 1 }
 0x2ab   : > { %1865 = vmatpush.msra.mxu1 %v8743_v10  ;;  %1905 = vmatpush.msra.mxu2 %v8940_v63  ;;  %v9569_v10 = vld [vmem:[%s14629_s1 + $0x70] sm:$0xf] }
 0x2ac   : > { %v9631_v63 = vld [vmem:[%s14629_s1 + $0xb0] sm:$0xf] }
 0x2ad   : > { %1866 = vmatpush.msra.mxu1 %v8753_v12  ;;  %v9576_v12 = vld [vmem:[%s14629_s1 + $0x78] sm:$0xf] }
 0x2af   : > { %1867 = vmatpush.msra.mxu1 %v8767_v15  ;;  %v1507_v15 = vrot.slane %v9516_v14, 1 }
 0x2b0   : > { %7208 = vmatmul.msk.f32.gmra.mxu2 %vm548_vm2, %v9528_v26  ;;  %7204 = vmatmul.msk.f32.gmra.mxu1 %vm548_vm2, %v9528_v26 }
 0x2b1   : > { %1868 = vmatpush.msra.mxu1 %v8781_v18  ;;  %v1508_v18 = vrot.slane %v9528_v26, 1 }
 0x2b3   : > { %1869 = vmatpush.msra.mxu1 %v8793_v20  ;;  %v1703_v20 = vsel %vm774_vm4, %v1701_v49, %v1702_v8 }
 0x2b5   : > { %1870 = vmatpush.msra.mxu1 %v8803_v24  ;;  %v9587_v24 = vld [vmem:[%s14629_s1 + $0x60] sm:$0xff] }
 0x2b7   : > { %1871 = vmatpush.msra.mxu1 %v8819_v29  ;;  %v9593_v29 = vld [vmem:[%s14629_s1 + $0x68] sm:$0xff] }
 0x2b8   : > { %7209 = vmatmul.msk.f32.gmra.mxu2 %vm548_vm2, %v9539_v30  ;;  %7205 = vmatmul.msk.f32.gmra.mxu1 %vm548_vm2, %v9539_v30 }
 0x2b9   : > { %1872 = vmatpush.msra.mxu1 %v8835_v35  ;;  %v9601_v35 = vld [vmem:[%s14629_s1 + $0x50] sm:$0xff] }
 0x2bb   : > { %1873 = vmatpush.msra.mxu1 %v8847_v40  ;;  %v9607_v40 = vld [vmem:[%s14629_s1 + $0x58] sm:$0xff] }
 0x2bd   : > { %1874 = vmatpush.msra.mxu1 %v8857_v44  ;;  %v1509_v44 = vsel %vm540_vm1, %v1507_v15, %v1508_v18  ;;  %v9712_v15 = vld [vmem:[%s14629_s1 + $0x120] sm:$0xff] }
 0x2be   : > { %14710 = vst [vmem:[#allocation91_spill] sm:$0xff] %v9712_v15 }
 0x2bf   : > { %1875 = vmatpush.msra.mxu1 %v8871_v48  ;;  %v9615_v48 = vld [vmem:[%s14629_s1 + $0x40] sm:$0xff] }
 0x2c0   : > { %7219 = vmatmul.msk.f32.vlgmr.msrb.gmra.mxu1 %vm548_vm2, %v1703_v20  ;;  %7223 = vmatmul.msk.f32.vlgmr.msrb.gmra.mxu2 %vm548_vm2, %v1703_v20 }
 0x2c1   : > { %1876 = vmatpush.msra.mxu1 %v8887_v53  ;;  %v9621_v53 = vld [vmem:[%s14629_s1 + $0x48] sm:$0xff] }
 0x2c3   : > { %1877 = vmatpush.msra.mxu1 %v8899_v55  ;;  %v1704_v55 = vrot.slane %v9539_v30, 3 }
 0x2c5   : > { %v1705_v34 = vsel %vm774_vm4, %v1702_v8, %v1704_v55  ;;  %1878 = vmatpush.msra.mxu1 %v8916_v59  ;;  %v1511_v59 = vsel %vm540_vm1, %v1508_v18, %v1510_v58  ;;  %v1774_v8 = vsel %vm555_vm0, %v1772_v23, %v1773_v32  ;;  %v9718_v18 = vld [vmem:[%s14629_s1 + $0x128] sm:$0xff]  ;;  %v1631_v23 = vrot.slane %v9528_v26, 2  ;;  %v14720_v26 = vld [vmem:[#allocation14_spill] sm:$0xff] }
 0x2c6   : > { %14711 = vst [vmem:[#allocation92_spill] sm:$0xff] %v9718_v18 }
 0x2c7   : > { %1879 = vmatpush.msra.mxu1 %v8935_v62  ;;  %v1706_v62 = vrot.slane %v9672_v60, 3 }
 0x2c8   : > { %7220 = vmatmul.msk.f32.gmra.mxu1 %vm548_vm2, %v1705_v34  ;;  %7224 = vmatmul.msk.f32.gmra.mxu2 %vm548_vm2, %v1705_v34  ;;  %v9739_v34 = vld [vmem:[%s14629_s1 + $0x100] sm:$0xff] }
 0x2c9   : > { %v1707_v49 = vsel %vm774_vm4, %v1704_v55, %v1706_v62  ;;  %v9733_v55 = vld [vmem:[%s14629_s1 + $0x118] sm:$0xff]  ;;  %14714 = vst [vmem:[#allocation95_spill] sm:$0xff] %v9739_v34  ;;  %v1630_v62 = vrot.slane %v9516_v14, 2 }
 0x2ca   : > { %14713 = vst [vmem:[#allocation94_spill] sm:$0xff] %v9733_v55 }
 0x2d0   : > { %7221 = vmatmul.msk.f32.gmra.mxu1 %vm548_vm2, %v1707_v49  ;;  %7225 = vmatmul.msk.f32.gmra.mxu2 %vm548_vm2, %v1707_v49  ;;  %v1632_v49 = vsel %vm687_vm3, %v1630_v62, %v1631_v23  ;;  %v14722_v62 = vld [vmem:[#allocation16_spill] sm:$0xff] }
 0x31d   : > { %v1392_v37 = vpop.f32.mrf.mxu1 }
 0x323   : > { %v1429_v39 = vpop.f32.mrf.mxu2 }
 0x324   : > { %v1432_v41 = vmax.f32 %v1392_v37, %v1429_v39  ;;  %v1512_v37 = vrot.slane %v9672_v60, 1  ;;  %v9696_v39 = vld [vmem:[%s14629_s1 + $0x130] sm:$0xf] }
 0x325   : > { %14708 = vst [vmem:[#allocation89_spill] sm:$0xff] %v9696_v39 }
 0x326   : > { %1453 = vmatpush.msrb.mxu0 %v1432_v41  ;;  %1478 = vmatpush.msrb.mxu3 %v1432_v41  ;;  %v9703_v41 = vld [vmem:[%s14629_s1 + $0x138] sm:$0xf]  ;;  %v1513_v20 = vsel %vm540_vm1, %v1510_v58, %v1512_v37  ;;  %v9745_v58 = vld [vmem:[%s14629_s1 + $0x108] sm:$0xff] }
 0x327   : > { %7187 = vmatmul.msk.f32.vlgmr.msrb.gmra.mxu0 %vm1434_vm8, %v9552_v43  ;;  %7189 = vmatmul.msk.f32.vlgmr.msrb.gmra.mxu3 %vm1434_vm8, %v9557_v46  ;;  %14709 = vst [vmem:[#allocation90_spill] sm:$0xff] %v9703_v41 }
 0x328   : > { %7194 = vmatpush.msk.msra.mxu0 %vm555_vm0, %v9569_v10  ;;  %7198 = vmatpush.msk.msra.mxu3 %vm555_vm0, %v9576_v12  ;;  %14715 = vst [vmem:[#allocation96_spill] sm:$0xff] %v9745_v58 }
 0x32a   : > { %1533 = vmatpush.msra.mxu0 %v9587_v24  ;;  %1559 = vmatpush.msra.mxu3 %v9593_v29 }
 0x32c   : > { %1534 = vmatpush.msra.mxu0 %v9601_v35  ;;  %1560 = vmatpush.msra.mxu3 %v9607_v40 }
 0x32e   : > { %1535 = vmatpush.msra.mxu0 %v9615_v48  ;;  %1561 = vmatpush.msra.mxu3 %v9621_v53 }
 0x32f   : > { %7195 = vmatmul.msk.f32.vlgmr.msra.gmra.mxu0 %vm548_vm2, %v1509_v44  ;;  %7199 = vmatmul.msk.f32.vlgmr.msra.gmra.mxu3 %vm548_vm2, %v1509_v44  ;;  %v9727_v44 = vld [vmem:[%s14629_s1 + $0x110] sm:$0xff] }
 0x330   : > { %7210 = vmatpush.msk.msrb.mxu0 %vm555_vm0, %v9631_v63  ;;  %7214 = vmatpush.msk.msrb.mxu3 %vm555_vm0, %v9638_v11  ;;  %14712 = vst [vmem:[#allocation93_spill] sm:$0xff] %v9727_v44 }
 0x332   : > { %1656 = vmatpush.msrb.mxu0 %v9647_v25  ;;  %1682 = vmatpush.msrb.mxu3 %v9653_v51 }
 0x334   : > { %1657 = vmatpush.msrb.mxu0 %v9662_v5  ;;  %1683 = vmatpush.msrb.mxu3 %v9668_v42 }
 0x336   : > { %1658 = vmatpush.msrb.mxu0 %v9678_v54  ;;  %1684 = vmatpush.msrb.mxu3 %v9684_v21 }
 0x337   : > { %7196 = vmatmul.msk.f32.gmra.mxu0 %vm548_vm2, %v1511_v59  ;;  %7200 = vmatmul.msk.f32.gmra.mxu3 %vm548_vm2, %v1511_v59  ;;  %v1775_v59 = vrot.slane %v9539_v30, 4 }
 0x338   : > { %7226 = vmatpush.msk.msra.mxu0 %vm555_vm0, %v9696_v39  ;;  %7230 = vmatpush.msk.msra.mxu3 %vm555_vm0, %v9703_v41 }
 0x339   : > { %v1776_v37 = vsel %vm555_vm0, %v1773_v32, %v1775_v59  ;;  %v14721_v32 = vld [vmem:[#allocation15_spill] sm:$0xff] }
 0x33a   : > { %1798 = vmatpush.msra.mxu0 %v9712_v15  ;;  %1824 = vmatpush.msra.mxu3 %v9718_v18 }
 0x33c   : > { %1799 = vmatpush.msra.mxu0 %v9727_v44  ;;  %1825 = vmatpush.msra.mxu3 %v9733_v55  ;;  %v14717_v55 = vld [vmem:[#allocation27_spill] sm:$0xff]  ;;  %v14719_v44 = vld [vmem:[#allocation29_spill] sm:$0xff] }
 0x33e   : > { %1800 = vmatpush.msra.mxu0 %v9739_v34  ;;  %1826 = vmatpush.msra.mxu3 %v9745_v58  ;;  %v1633_v58 = vrot.slane %v9539_v30, 2  ;;  %v14716_v34 = vld [vmem:[#allocation12_spill] sm:$0xff]  ;;  %v1635_v30 = vrot.slane %v9672_v60, 2 }
 0x33f   : > { %7197 = vmatmul.msk.f32.gmra.mxu0 %vm548_vm2, %v1513_v20  ;;  %7201 = vmatmul.msk.f32.gmra.mxu3 %vm548_vm2, %v1513_v20  ;;  %v14718_v20 = vld [vmem:[#allocation13_spill] sm:$0xff] }
 0x340   : > { %v1634_v14 = vsel %vm687_vm3, %v1631_v23, %v1633_v58  ;;  %v14726_v23 = vld [vmem:[#allocation20_spill] sm:$0xff] }
 0x347   : > { %7211 = vmatmul.msk.f32.vlgmr.msrb.gmra.mxu0 %vm548_vm2, %v1632_v49  ;;  %7215 = vmatmul.msk.f32.vlgmr.msrb.gmra.mxu3 %vm548_vm2, %v1632_v49  ;;  %v14724_v49 = vld [vmem:[#allocation18_spill] sm:$0xff] }
 0x348   : > { %1916 = vmatpush.msrb.mxu0 %v14716_v34  ;;  %1956 = vmatpush.msrb.mxu3 %v14717_v55  ;;  %v14723_v34 = vld [vmem:[#allocation17_spill] sm:$0xff]  ;;  %v1636_v55 = vsel %vm687_vm3, %v1633_v58, %v1635_v30  ;;  %v14730_v58 = vld [vmem:[#allocation24_spill] sm:$0xff]  ;;  %v14732_v30 = vld [vmem:[#allocation26_spill] sm:$0xff] }
 0x34a   : > { %1917 = vmatpush.msrb.mxu0 %v14718_v20  ;;  %1957 = vmatpush.msrb.mxu3 %v14719_v44  ;;  %v14725_v44 = vld [vmem:[#allocation19_spill] sm:$0xff]  ;;  %v14727_v20 = vld [vmem:[#allocation21_spill] sm:$0xff] }
 0x34c   : > { %1918 = vmatpush.msrb.mxu0 %v14720_v26  ;;  %v14729_v26 = vld [vmem:[#allocation23_spill] sm:$0xff] }
 0x34e   : > { %1919 = vmatpush.msrb.mxu0 %v14721_v32  ;;  %v14731_v32 = vld [vmem:[#allocation25_spill] sm:$0xff] }
 0x34f   : > { %7212 = vmatmul.msk.f32.gmra.mxu0 %vm548_vm2, %v1634_v14  ;;  %7216 = vmatmul.msk.f32.gmra.mxu3 %vm548_vm2, %v1634_v14  ;;  %v14728_v14 = vld [vmem:[#allocation22_spill] sm:$0xff] }
 0x350   : > { %1920 = vmatpush.msrb.mxu0 %v14722_v62  ;;  %v14733_v62 = vld [vmem:[#allocation28_spill] sm:$0xff] }
 0x352   : > { %1921 = vmatpush.msrb.mxu0 %v14723_v34 }
 0x354   : > { %1922 = vmatpush.msrb.mxu0 %v14724_v49 }
 0x356   : > { %1923 = vmatpush.msrb.mxu0 %v14725_v44 }
 0x357   : > { %7213 = vmatmul.msk.f32.gmra.mxu0 %vm548_vm2, %v1636_v55  ;;  %7217 = vmatmul.msk.f32.gmra.mxu3 %vm548_vm2, %v1636_v55 }
 0x358   : > { %1924 = vmatpush.msrb.mxu0 %v14726_v23 }
 0x35a   : > { %1925 = vmatpush.msrb.mxu0 %v14727_v20 }
 0x35c   : > { %1926 = vmatpush.msrb.mxu0 %v14728_v14 }
 0x35e   : > { %1927 = vmatpush.msrb.mxu0 %v14729_v26 }
 0x35f   : > { %7227 = vmatmul.msk.f32.vlgmr.msra.gmra.mxu0 %vm548_vm2, %v1774_v8  ;;  %7231 = vmatmul.msk.f32.vlgmr.msra.gmra.mxu3 %vm548_vm2, %v1774_v8  ;;  %v1777_v8 = vrot.slane %v9672_v60, 4 }
 0x360   : > { %1928 = vmatpush.msrb.mxu0 %v14730_v58  ;;  %2033 = vmatpush.msra.mxu3 %v9042_v45 }
 0x361   : > { %v1778_v45 = vsel %vm555_vm0, %v1775_v59, %v1777_v8  ;;  %v14736_v8 = vld [vmem:[#allocation30_spill] sm:$0xff] }
 0x362   : > { %1929 = vmatpush.msrb.mxu0 %v14731_v32  ;;  %2034 = vmatpush.msra.mxu3 %v9056_v47 }
 0x364   : > { %1930 = vmatpush.msrb.mxu0 %v14732_v30  ;;  %2035 = vmatpush.msra.mxu3 %v9068_v31  ;;  %v1595_v31 = vpop.f32.mrf.mxu1 }
 0x366   : > { %1931 = vmatpush.msrb.mxu0 %v14733_v62  ;;  %2036 = vmatpush.msra.mxu3 %v9075_v22 }
 0x367   : > { %7228 = vmatmul.msk.f32.gmra.mxu0 %vm548_vm2, %v1776_v37  ;;  %7232 = vmatmul.msk.f32.gmra.mxu3 %vm548_vm2, %v1776_v37 }
 0x368   : > { %2055 = vmatpush.msra.mxu0 %v8984_v19  ;;  %2037 = vmatpush.msra.mxu3 %v9091_v57  ;;  %v1621_v57 = vpop.f32.mrf.mxu2 }
 0x36a   : > { %2056 = vmatpush.msra.mxu0 %v8989_v0  ;;  %2038 = vmatpush.msra.mxu3 %v9101_v4 }
 0x36c   : > { %2057 = vmatpush.msra.mxu0 %v8995_v13  ;;  %2039 = vmatpush.msra.mxu3 %v9108_v6  ;;  %v1598_v4 = vpop.f32.mrf.mxu1 }
 0x36e   : > { %2058 = vmatpush.msra.mxu0 %v9001_v33  ;;  %2040 = vmatpush.msra.mxu3 %v9132_v17 }
 0x36f   : > { %7229 = vmatmul.msk.f32.gmra.mxu0 %vm548_vm2, %v1778_v45  ;;  %7233 = vmatmul.msk.f32.gmra.mxu3 %vm548_vm2, %v1778_v45 }
 0x370   : > { %2059 = vmatpush.msra.mxu0 %v9013_v61  ;;  %2041 = vmatpush.msra.mxu3 %v9156_v56  ;;  %v1624_v17 = vpop.f32.mrf.mxu2 }
 0x372   : > { %2060 = vmatpush.msra.mxu0 %v9019_v2 }
 0x374   : > { %2061 = vmatpush.msra.mxu0 %v9025_v3  ;;  %v1601_v3 = vpop.f32.mrf.mxu1 }
 0x376   : > { %2062 = vmatpush.msra.mxu0 %v9113_v7 }
 0x378   : > { %2063 = vmatpush.msra.mxu0 %v9137_v38  ;;  %v1627_v60 = vpop.f32.mrf.mxu2 }
 0x37c   : > { %v1731_v59 = vpop.f32.mrf.mxu1 }
 0x380   : > { %v1757_v49 = vpop.f32.mrf.mxu2 }
 0x384   : > { %v1734_v30 = vpop.f32.mrf.mxu1 }
 0x3a4   : > { %v9809_v19 = vpop.f32.mrf.mxu0 }
 0x3a5   : > { %14734 = vst [vmem:[#allocation12_spill] sm:$0xff] %v9809_v19 }
 0x3aa   : > { %v9811_v0 = vpop.f32.mrf.mxu3 }
 0x3ab   : > { %14735 = vst [vmem:[#allocation27_spill] sm:$0xff] %v9811_v0 }
 0x3ac   : > { %v1537_v13 = vpop.f32.mrf.mxu0 }
 0x3ad   : > { %v1596_v34 = vadd.f32 %v1595_v31, %v1537_v13  ;;  %v1760_v13 = vpop.f32.mrf.mxu2 }
 0x3b2   : > { %v1563_v33 = vpop.f32.mrf.mxu3 }
 0x3b3   : > { %v1622_v23 = vadd.f32 %v1621_v57, %v1563_v33  ;;  %v14737_v57 = vld [vmem:[#allocation31_spill] sm:$0xff] }
 0x3b4   : > { %v1540_v47 = vpop.f32.mrf.mxu0 }
 0x3b5   : > { %v1599_v26 = vadd.f32 %v1598_v4, %v1540_v47 }
 0x3ba   : > { %v1566_v22 = vpop.f32.mrf.mxu3 }
 0x3bb   : > { %v1625_v15 = vadd.f32 %v1624_v17, %v1566_v22  ;;  %v1737_v22 = vpop.f32.mrf.mxu1 }
 0x3bc   : > { %v1543_v61 = vpop.f32.mrf.mxu0 }
 0x3bd   : > { %v1602_v33 = vadd.f32 %v1601_v3, %v1543_v61  ;;  %v14739_v61 = vld [vmem:[#allocation47_spill] sm:$0xff] }
 0x3c2   : > { %v1569_v6 = vpop.f32.mrf.mxu3 }
 0x3c4   : > { %v1660_v2 = vpop.f32.mrf.mxu0 }
 0x3c5   : > { %v1695_v55 = vadd.f32 %v1660_v2, %v1596_v34 }
 0x3c7   : > { %v1766_v20 = vadd.f32 %v1731_v59, %v1695_v55 }
 0x3ca   : > { %v1686_v56 = vpop.f32.mrf.mxu3 }
 0x3cb   : > { %v1696_v58 = vadd.f32 %v1686_v56, %v1622_v23 }
 0x3cc   : > { %v1663_v7 = vpop.f32.mrf.mxu0 }
 0x3cd   : > { %v1697_v62 = vadd.f32 %v1663_v7, %v1599_v26  ;;  %v1767_v19 = vadd.f32 %v1757_v49, %v1696_v58  ;;  %v14742_v49 = vld [vmem:[#allocation56_spill] sm:$0xff] }
 0x3ce   : > { %v14747_v26 = vld [vmem:[#allocation72_spill] sm:$0xff] }
 0x3cf   : > { %v1768_v41 = vadd.f32 %v1734_v30, %v1697_v62  ;;  %v14749_v30 = vld [vmem:[#allocation74_spill] sm:$0xff]  ;;  %v14750_v62 = vld [vmem:[#allocation60_spill] sm:$0xff] }
 0x3d2   : > { %v1689_v38 = vpop.f32.mrf.mxu3 }
 0x3d3   : > { %v1698_v47 = vadd.f32 %v1689_v38, %v1625_v15  ;;  %v14738_v15 = vld [vmem:[#allocation44_spill] sm:$0xff]  ;;  %v1763_v38 = vpop.f32.mrf.mxu2 }
 0x3d4   : > { %v1666_v37 = vpop.f32.mrf.mxu0 }
 0x3d5   : > { %v1699_v56 = vadd.f32 %v1666_v37, %v1602_v33  ;;  %v14740_v37 = vld [vmem:[#allocation50_spill] sm:$0xff] }
 0x3d6   : > { %v14754_v33 = vld [vmem:[#allocation82_spill] sm:$0xff] }
 0x3da   : > { %v1692_v44 = vpop.f32.mrf.mxu3 }
 0x3dc   : > { %v1802_v14 = vpop.f32.mrf.mxu0 }
 0x3dd   : > { %v1837_v32 = vadd.f32 %v1802_v14, %v1766_v20  ;;  %v14745_v20 = vld [vmem:[#allocation70_spill] sm:$0xff] }
 0x3de   : > { %v14746_v14 = vld [vmem:[#allocation58_spill] sm:$0xff] }
 0x3df   : > { %v1843_v45 = vadd.f32 %v1837_v32, %v14736_v8  ;;  %v14748_v32 = vld [vmem:[#allocation59_spill] sm:$0xff] }
 0x3e1   : > { %v1849_v0 = vmax.f32 %v1843_v45, 0.0  ;;  %v14751_v45 = vld [vmem:[#allocation76_spill] sm:$0xff] }
 0x3e2   : > { %v1828_v18 = vpop.f32.mrf.mxu3 }
 0x3e3   : > { %v1838_v39 = vadd.f32 %v1828_v18, %v1767_v19  ;;  %1880 = vmatmul.f32.vlgmr.msra.gmra.mxu1 %v1849_v0  ;;  %1932 = vmatmul.f32.vlgmr.msrb.gmra.mxu0 %v1849_v0  ;;  %v1769_v18 = vadd.f32 %v1760_v13, %v1698_v47  ;;  %v14752_v13 = vld [vmem:[#allocation78_spill] sm:$0xff]  ;;  %v14755_v47 = vld [vmem:[#allocation84_spill] sm:$0xff] }
 0x3e4   : > { %v1805_v31 = vpop.f32.mrf.mxu0  ;;  %2148 = vmatpush.msrb.mxu0 %v9285_v9 }
 0x3e5   : > { %v1844_v4 = vadd.f32 %v1838_v39, %v14737_v57  ;;  %v1839_v2 = vadd.f32 %v1805_v31, %v1768_v41  ;;  %v1628_v39 = vadd.f32 %v1627_v60, %v1569_v6  ;;  %v14741_v60 = vld [vmem:[#allocation53_spill] sm:$0xff]  ;;  %v14753_v31 = vld [vmem:[#allocation80_spill] sm:$0xff] }
 0x3e6   : > { %2149 = vmatpush.msrb.mxu0 %v9295_v16  ;;  %v1770_v16 = vadd.f32 %v1737_v22, %v1699_v56 }
 0x3e7   : > { %v1850_v7 = vmax.f32 %v1844_v4, 0.0  ;;  %v1845_v59 = vadd.f32 %v1839_v2, %v14736_v8 }
 0x3e8   : > { %2150 = vmatpush.msrb.mxu0 %v9307_v36  ;;  %v1700_v36 = vadd.f32 %v1692_v44, %v1628_v39  ;;  %v14743_v44 = vld [vmem:[#allocation68_spill] sm:$0xff] }
 0x3e9   : > { %7234 = vmatmul.msk.f32.vlgmr.msra.gmra.mxu2 %vm974_vm5, %v1850_v7  ;;  %7237 = vmatmul.msk.f32.vlgmr.msrb.gmra.mxu3 %vm974_vm5, %v1850_v7  ;;  %v1851_v9 = vmax.f32 %v1845_v59, 0.0 }
 0x3ea   : > { %v1831_v19 = vpop.f32.mrf.mxu3  ;;  %2132 = vmatpush.msrb.mxu3 %v14738_v15  ;;  %2151 = vmatpush.msrb.mxu0 %v9319_v1  ;;  %v1771_v34 = vadd.f32 %v1763_v38, %v1700_v36 }
 0x3eb   : > { %v1840_v41 = vadd.f32 %v1831_v19, %v1769_v18  ;;  %1883 = vmatmul.f32.gmra.mxu1 %v1851_v9  ;;  %1935 = vmatmul.f32.gmra.mxu0 %v1851_v9 }
 0x3ec   : > { %v1808_v0 = vpop.f32.mrf.mxu0  ;;  %2133 = vmatpush.msrb.mxu3 %v14739_v61  ;;  %2152 = vmatpush.msrb.mxu0 %v9331_v52 }
 0x3ed   : > { %v1846_v17 = vadd.f32 %v1840_v41, %v14737_v57  ;;  %v1841_v3 = vadd.f32 %v1808_v0, %v1770_v16 }
 0x3ee   : > { %2134 = vmatpush.msrb.mxu3 %v14740_v37  ;;  %2153 = vmatpush.msrb.mxu0 %v9345_v50  ;;  %v14744_v50 = vld [vmem:[#allocation57_spill] sm:$0xff] }
 0x3ef   : > { %v1852_v1 = vmax.f32 %v1846_v17, 0.0  ;;  %v1847_v6 = vadd.f32 %v1841_v3, %v14736_v8 }
 0x3f0   : > { %2135 = vmatpush.msrb.mxu3 %v14741_v60  ;;  %2154 = vmatpush.msrb.mxu0 %v9357_v27  ;;  %v14757_v60 = vld [vmem:[#allocation33_spill] sm:$0xff] }
 0x3f1   : > { %7235 = vmatmul.msk.f32.gmra.mxu2 %vm974_vm5, %v1852_v1  ;;  %7238 = vmatmul.msk.f32.gmra.mxu3 %vm974_vm5, %v1852_v1  ;;  %v1853_v52 = vmax.f32 %v1847_v6, 0.0  ;;  %v14756_v6 = vld [vmem:[#allocation32_spill] sm:$0xff] }
 0x3f2   : > { %v1834_v55 = vpop.f32.mrf.mxu3  ;;  %2136 = vmatpush.msrb.mxu3 %v14742_v49  ;;  %2155 = vmatpush.msrb.mxu0 %v14743_v44  ;;  %v9865_v49 = vld [vmem:[%s14217_s5 + $0x110] sm:$0xff]  ;;  %v14760_v44 = vld [vmem:[#allocation38_spill] sm:$0xff] }
 0x3f3   : > { %v1842_v23 = vadd.f32 %v1834_v55, %v1771_v34  ;;  %1886 = vmatmul.f32.gmra.mxu1 %v1853_v52  ;;  %1938 = vmatmul.f32.gmra.mxu0 %v1853_v52  ;;  %v14758_v34 = vld [vmem:[#allocation34_spill] sm:$0xff]  ;;  %v9858_v52 = vld [vmem:[%s14217_s5 + $0x118] sm:$0xff]  ;;  %v14759_v55 = vld [vmem:[#allocation35_spill] sm:$0xff] }
 0x3f4   : > { %2137 = vmatpush.msrb.mxu3 %v14744_v50  ;;  %2156 = vmatpush.msrb.mxu0 %v14745_v20  ;;  %v14762_v50 = vld [vmem:[#allocation40_spill] sm:$0xff]  ;;  %v14763_v20 = vld [vmem:[#allocation41_spill] sm:$0xff] }
 0x3f5   : > { %v1848_v27 = vadd.f32 %v1842_v23, %v14737_v57  ;;  %v14761_v23 = vld [vmem:[#allocation39_spill] sm:$0xff] }
 0x3f6   : > { %2138 = vmatpush.msrb.mxu3 %v14746_v14  ;;  %2157 = vmatpush.msrb.mxu0 %v14747_v26  ;;  %v14765_v14 = vld [vmem:[#allocation37_spill] sm:$0xff]  ;;  %v14766_v26 = vld [vmem:[#allocation42_spill] sm:$0xff] }
 0x3f7   : > { %v1854_v58 = vmax.f32 %v1848_v27, 0.0  ;;  %v14764_v27 = vld [vmem:[#allocation36_spill] sm:$0xff] }
 0x3f8   : > { %2139 = vmatpush.msrb.mxu3 %v14748_v32  ;;  %2158 = vmatpush.msrb.mxu0 %v14749_v30  ;;  %v14768_v32 = vld [vmem:[#allocation45_spill] sm:$0xff]  ;;  %v14769_v30 = vld [vmem:[#allocation46_spill] sm:$0xff] }
 0x3f9   : > { %7236 = vmatmul.msk.f32.gmra.mxu2 %vm974_vm5, %v1854_v58  ;;  %7239 = vmatmul.msk.f32.gmra.mxu3 %vm974_vm5, %v1854_v58  ;;  %v14767_v58 = vld [vmem:[#allocation43_spill] sm:$0xff] }
 0x3fa   : > { %2140 = vmatpush.msrb.mxu3 %v14750_v62  ;;  %2159 = vmatpush.msrb.mxu0 %v14751_v45  ;;  %v14770_v62 = vld [vmem:[#allocation48_spill] sm:$0xff]  ;;  %v14771_v45 = vld [vmem:[#allocation49_spill] sm:$0xff] }
 0x3fc   : > { %2160 = vmatpush.msrb.mxu0 %v14752_v13  ;;  %v14772_v13 = vld [vmem:[#allocation51_spill] sm:$0xff] }
 0x3fe   : > { %2161 = vmatpush.msrb.mxu0 %v14753_v31  ;;  %v14773_v31 = vld [vmem:[#allocation52_spill] sm:$0xff] }
 0x400   : > { %2162 = vmatpush.msrb.mxu0 %v14754_v33  ;;  %v14774_v33 = vld [vmem:[#allocation54_spill] sm:$0xff] }
 0x402   : > { %2163 = vmatpush.msrb.mxu0 %v14755_v47  ;;  %v14775_v47 = vld [vmem:[#allocation55_spill] sm:$0xff] }
 0x460   : > { %v1881_v4 = vpop.f32.mrf.mxu1  ;;  %v1933_v2 = vpop.f32.mrf.mxu0 }
 0x468   : > { %v1884_v59 = vpop.f32.mrf.mxu1  ;;  %v1936_v22 = vpop.f32.mrf.mxu0 }
 0x46c   : > { %v1907_v56 = vpop.f32.mrf.mxu2  ;;  %v1959_v7 = vpop.f32.mrf.mxu3 }
 0x46d   : > { %v1908_v17 = vadd.f32 %v1907_v56, %v1881_v4  ;;  %v1960_v3 = vadd.f32 %v1959_v7, %v1933_v2  ;;  %v14776_v4 = vld [vmem:[#allocation61_spill] sm:$0xff]  ;;  %v14777_v2 = vld [vmem:[#allocation62_spill] sm:$0xff]  ;;  %v14778_v56 = vld [vmem:[#allocation63_spill] sm:$0xff] }
 0x46e   : > { %v14779_v7 = vld [vmem:[#allocation64_spill] sm:$0xff] }
 0x46f   : > { %v1968_v1 = vmax.f32 %v1908_v17, %v1960_v3 }
 0x470   : > { %v1887_v19 = vpop.f32.mrf.mxu1  ;;  %v1939_v15 = vpop.f32.mrf.mxu0 }
 0x474   : > { %v1910_v18 = vpop.f32.mrf.mxu2  ;;  %v1962_v9 = vpop.f32.mrf.mxu3 }
 0x475   : > { %v1911_v41 = vadd.f32 %v1910_v18, %v1884_v59  ;;  %v1963_v0 = vadd.f32 %v1962_v9, %v1936_v22  ;;  %v14780_v59 = vld [vmem:[#allocation65_spill] sm:$0xff]  ;;  %v14781_v22 = vld [vmem:[#allocation66_spill] sm:$0xff]  ;;  %v14782_v18 = vld [vmem:[#allocation67_spill] sm:$0xff] }
 0x476   : > { %v14783_v9 = vld [vmem:[#allocation69_spill] sm:$0xff] }
 0x477   : > { %v1969_v37 = vmax.f32 %v1911_v41, %v1963_v0  ;;  %v14788_v41 = vld [vmem:[#allocation79_spill] sm:$0xff]  ;;  %v14789_v0 = vld [vmem:[#allocation81_spill] sm:$0xff] }
 0x47c   : > { %v1913_v39 = vpop.f32.mrf.mxu2  ;;  %v1965_v16 = vpop.f32.mrf.mxu3 }
 0x47d   : > { %v1914_v61 = vadd.f32 %v1913_v39, %v1887_v19  ;;  %v1966_v36 = vadd.f32 %v1965_v16, %v1939_v15  ;;  %v14784_v19 = vld [vmem:[#allocation71_spill] sm:$0xff]  ;;  %v14785_v15 = vld [vmem:[#allocation73_spill] sm:$0xff] }
 0x47e   : > { %v14786_v39 = vld [vmem:[#allocation75_spill] sm:$0xff]  ;;  %v14787_v16 = vld [vmem:[#allocation77_spill] sm:$0xff] }
 0x47f   : > { %v1970_v38 = vmax.f32 %v1914_v61, %v1966_v36  ;;  %v14790_v61 = vld [vmem:[#allocation83_spill] sm:$0xff]  ;;  %v14791_v36 = vld [vmem:[#allocation85_spill] sm:$0xff] }
 0x481   : > { %1984 = vmatpush.msrb.mxu2 %v1970_v38  ;;  %2007 = vmatpush.msrb.mxu1 %v1970_v38 }
 0x483   : > { %1985 = vmatpush.msrb.mxu2 %v1969_v37  ;;  %2008 = vmatpush.msrb.mxu1 %v1969_v37  ;;  %v14792_v37 = vld [vmem:[#allocation86_spill] sm:$0xff] }
 0x485   : > { %1986 = vmatpush.msrb.mxu2 %v1968_v1  ;;  %2009 = vmatpush.msrb.mxu1 %v1968_v1 }
 0x486   : > { %7240 = vmatmul.msk.f32.vlgmr.msrb.gmra.mxu2 %vm1112_vm6, %v14756_v6  ;;  %7242 = vmatmul.msk.f32.vlgmr.msrb.gmra.mxu1 %vm1112_vm6, %v14757_v60  ;;  %v14793_v6 = vld [vmem:[#allocation87_spill] sm:$0xff] }
 0x487   : > { %2080 = vmatpush.msra.mxu2 %v14758_v34  ;;  %2106 = vmatpush.msra.mxu1 %v9858_v52  ;;  %v14794_v34 = vld [vmem:[#allocation88_spill] sm:$0xff] }
 0x489   : > { %2081 = vmatpush.msra.mxu2 %v14759_v55  ;;  %2107 = vmatpush.msra.mxu1 %v9865_v49 }
 0x48b   : > { %2082 = vmatpush.msra.mxu2 %v14760_v44  ;;  %2108 = vmatpush.msra.mxu1 %v14761_v23 }
 0x48d   : > { %2083 = vmatpush.msra.mxu2 %v14762_v50  ;;  %2109 = vmatpush.msra.mxu1 %v14763_v20  ;;  %v9910_v50 = vld [vmem:[%s14629_s1] sm:$0xff] }
 0x48e   : > { %7241 = vmatmul.msk.f32.gmra.mxu2 %vm1112_vm6, %v14764_v27  ;;  %7243 = vmatmul.msk.f32.gmra.mxu1 %vm1112_vm6, %v14765_v14 }
 0x48f   : > { %2084 = vmatpush.msra.mxu2 %v14766_v26  ;;  %2110 = vmatpush.msra.mxu1 %v14767_v58 }
 0x491   : > { %2085 = vmatpush.msra.mxu2 %v14768_v32  ;;  %2111 = vmatpush.msra.mxu1 %v14769_v30 }
 0x493   : > { %2086 = vmatpush.msra.mxu2 %v14770_v62  ;;  %2112 = vmatpush.msra.mxu1 %v14771_v45  ;;  %v9922_v62 = vld [vmem:[%s14629_s1 + $0x38] sm:$0xf] }
 0x495   : > { %2087 = vmatpush.msra.mxu2 %v14772_v13  ;;  %2113 = vmatpush.msra.mxu1 %v14773_v31  ;;  %v9929_v13 = vld [vmem:[%s14629_s1 + $0x28] sm:$0xff] }
 0x497   : > { %2088 = vmatpush.msra.mxu2 %v14774_v33  ;;  %2114 = vmatpush.msra.mxu1 %v14775_v47  ;;  %v9935_v33 = vld [vmem:[%s14629_s1 + $0x18] sm:$0xff] }
 0x499   : > { %2168 = vmatpush.msrb.mxu2 %v14776_v4  ;;  %v9942_v4 = vld [vmem:[%s14629_s1 + $0x8] sm:$0xff] }
 0x49b   : > { %2169 = vmatpush.msrb.mxu2 %v14777_v2 }
 0x49d   : > { %2170 = vmatpush.msrb.mxu2 %v14778_v56 }
 0x49f   : > { %2171 = vmatpush.msrb.mxu2 %v14779_v7 }
 0x4a1   : > { %2172 = vmatpush.msrb.mxu2 %v14780_v59 }
 0x4a3   : > { %2173 = vmatpush.msrb.mxu2 %v14781_v22 }
 0x4a5   : > { %2174 = vmatpush.msrb.mxu2 %v14782_v18 }
 0x4a7   : > { %2175 = vmatpush.msrb.mxu2 %v14783_v9 }
 0x4a9   : > { %2176 = vmatpush.msrb.mxu2 %v14784_v19 }
 0x4ab   : > { %2177 = vmatpush.msrb.mxu2 %v14785_v15 }
 0x4ad   : > { %2178 = vmatpush.msrb.mxu2 %v14786_v39 }
 0x4af   : > { %2179 = vmatpush.msrb.mxu2 %v14787_v16 }
 0x4b1   : > { %2180 = vmatpush.msrb.mxu2 %v14788_v41  ;;  %v9950_v41 = vld [vmem:[%s14629_s1 + $0xf0] sm:$0xf] }
 0x4b3   : > { %2181 = vmatpush.msrb.mxu2 %v14789_v0  ;;  %v9957_v0 = vld [vmem:[%s14629_s1 + $0xf8] sm:$0xf] }
 0x4b5   : > { %2182 = vmatpush.msrb.mxu2 %v14790_v61  ;;  %v9970_v61 = vld [vmem:[%s14629_s1 + $0xe8] sm:$0xff] }
 0x4b7   : > { %2183 = vmatpush.msrb.mxu2 %v14791_v36  ;;  %v9976_v36 = vld [vmem:[%s14629_s1 + $0xd0] sm:$0xff] }
 0x503   : > { %v2011_v17 = vpop.f32.mrf.mxu1 }
 0x509   : > { %v1988_v3 = vpop.f32.mrf.mxu2 }
 0x50a   : > { %v2017_v38 = vmax.f32 %v1988_v3, %v2011_v17  ;;  %v9982_v17 = vld [vmem:[%s14629_s1 + $0xd8] sm:$0xff]  ;;  %v9988_v3 = vld [vmem:[%s14629_s1 + $0xc0] sm:$0xff] }
 0x50b   : > { %v2014_v1 = vpop.f32.mrf.mxu1 }
 0x50c   : > { %7245 = vmatmul.msk.f32.vlgmr.msra.gmra.mxu0 %vm1200_vm7, %v2017_v38  ;;  %v2021_v44 = vrot.slane %v2017_v38, 1  ;;  %v2068_v23 = vrot.slane %v2017_v38, 2  ;;  %v2094_v26 = vrot.slane %v2017_v38, 3  ;;  %v2120_v31 = vrot.slane %v2017_v38, 4  ;;  %v9994_v38 = vld [vmem:[%s14629_s1 + $0xc8] sm:$0xff] }
 0x50d   : > { %7263 = vmatpush.msk.msra.mxu0 %vm555_vm0, %v14792_v37  ;;  %v9998_v37 = vld [vmem:[%s8500_s25 + $0x40] sm:$0xff] }
 0x50f   : > { %2336 = vmatpush.msra.mxu0 %v14793_v6  ;;  %v10013_v6 = vld [vmem:[%s14215_s3 + $0x88] sm:$0xff] }
 0x511   : > { %v1991_v60 = vpop.f32.mrf.mxu2  ;;  %2337 = vmatpush.msra.mxu0 %v14794_v34  ;;  %v10025_v34 = vld [vmem:[%s14215_s3 + $0x80] sm:$0xff] }
 0x512   : > { %v2018_v55 = vmax.f32 %v1991_v60, %v2014_v1  ;;  %v10007_v1 = vld [vmem:[%s14215_s3 + $0x78] sm:$0xff]  ;;  %v10019_v60 = vld [vmem:[%s14215_s3 + $0x70] sm:$0xff] }
 0x513   : > { %2338 = vmatpush.msra.mxu0 %v9910_v50 }
 0x514   : > { %v2022_v20 = vrot.slane %v2018_v55, 1  ;;  %v2069_v27 = vrot.slane %v2018_v55, 2  ;;  %v2095_v14 = vrot.slane %v2018_v55, 3  ;;  %v2121_v45 = vrot.slane %v2018_v55, 4  ;;  %v10031_v55 = vld [vmem:[%s14215_s3 + $0x68] sm:$0xff] }
 0x516   : > { %v2023_v58 = vsel %vm540_vm1, %v2021_v44, %v2022_v20  ;;  %v2070_v32 = vsel %vm687_vm3, %v2068_v23, %v2069_v27  ;;  %v2096_v30 = vsel %vm774_vm4, %v2094_v26, %v2095_v14  ;;  %v2122_v47 = vsel %vm555_vm0, %v2120_v31, %v2121_v45  ;;  %v10035_v44 = vld [vmem:[%s8500_s25 + $0x48] sm:$0xff]  ;;  %v10040_v23 = vld [vmem:[%s14215_s3 + $0x60] sm:$0xff]  ;;  %v10050_v20 = vld [vmem:[%s14215_s3 + $0x58] sm:$0xff] }
 0x517   : > { %7244 = vmatmul.msk.f32.vlgmr.msra.gmra.mxu3 %vm1200_vm7, %v2023_v58  ;;  %7246 = vmatmul.msk.f32.vlgmr.msra.gmra.mxu2 %vm1200_vm7, %v2070_v32  ;;  %v10056_v27 = vld [vmem:[%s14215_s3 + $0x50] sm:$0xff]  ;;  %v10062_v14 = vld [vmem:[%s14215_s3 + $0x48] sm:$0xff]  ;;  %v10071_v58 = vld [vmem:[%s14215_s3 + $0x40] sm:$0xff] }
 0x518   : > { %7247 = vmatmul.msk.f32.vlgmr.msra.gmra.mxu1 %vm1200_vm7, %v2096_v30  ;;  %7267 = vmatpush.msk.msra.mxu2 %vm555_vm0, %v9922_v62  ;;  %v10066_v26 = vld [vmem:[%s8500_s25 + $0x50] sm:$0xff]  ;;  %v10081_v32 = vld [vmem:[%s14215_s3 + $0x38] sm:$0xff]  ;;  %v10093_v45 = vld [vmem:[%s14215_s3 + $0x28] sm:$0xff] }
 0x519   : > { %14795 = vst [vmem:[#allocation13_spill] sm:$0xff] %v10081_v32  ;;  %v10087_v30 = vld [vmem:[%s14215_s3 + $0x30] sm:$0xff] }
 0x51a   : > { %2362 = vmatpush.msra.mxu2 %v9929_v13  ;;  %14796 = vst [vmem:[#allocation29_spill] sm:$0xff] %v10087_v30 }
 0x51b   : > { %14797 = vst [vmem:[#allocation14_spill] sm:$0xff] %v10093_v45 }
 0x51c   : > { %2363 = vmatpush.msra.mxu2 %v9935_v33 }
 0x51e   : > { %2364 = vmatpush.msra.mxu2 %v9942_v4 }
 0x51f   : > { %7248 = vmatmul.msk.f32.vlgmr.msrb.gmra.mxu3 %vm1200_vm7, %v2122_v47 }
 0x589   : > { %v2065_v2 = vpop.f32.mrf.mxu0 }
 0x595   : > { %v2116_v18 = vpop.f32.mrf.mxu1 }
 0x59a   : > { %v2043_v56 = vpop.f32.mrf.mxu3  ;;  %v2090_v59 = vpop.f32.mrf.mxu2 }
 0x59b   : > { %v2066_v7 = vadd.f32 %v2065_v2, %v2043_v56  ;;  %v10099_v56 = vld [vmem:[%s14215_s3 + $0x20] sm:$0xff] }
 0x59c   : > { %14798 = vst [vmem:[#allocation15_spill] sm:$0xff] %v10099_v56 }
 0x59d   : > { %v2093_v22 = vadd.f32 %v2090_v59, %v2066_v7  ;;  %v2446_v7 = vrot.slane %v9998_v37, 3  ;;  %v2447_v59 = vrot.slane %v10035_v44, 3 }
 0x59f   : > { %v2119_v9 = vadd.f32 %v2116_v18, %v2093_v22  ;;  %v2252_v22 = vrot.slane %v9998_v37, 1  ;;  %v2253_v18 = vrot.slane %v10035_v44, 1 }
 0x5a2   : > { %v2142_v19 = vpop.f32.mrf.mxu3 }
 0x5a3   : > { %v2145_v15 = vadd.f32 %v2142_v19, %v2119_v9  ;;  %v2448_v9 = vsel %vm774_vm4, %v2446_v7, %v2447_v59  ;;  %v14805_v19 = vld [vmem:[#allocation91_spill] sm:$0xff]  ;;  %v2520_v7 = vrot.slane %v10066_v26, 4 }
 0x5a5   : > { %v2146_v39 = vadd.f32 %v9502_v28, %v2145_v15  ;;  %v9964_v28 = vld [vmem:[%s14629_s1 + $0xe0] sm:$0xff]  ;;  %v14806_v15 = vld [vmem:[#allocation92_spill] sm:$0xff] }
 0x5a7   : > { %v2147_v16 = vmax.f32 %v2146_v39, 0.0 }
 0x5a9   : > { %2164 = vmatmul.f32.vlgmr.msrb.gmra.mxu0 %v2147_v16  ;;  %2184 = vmatmul.f32.vlgmr.msrb.gmra.mxu2 %v2147_v16  ;;  %v14807_v16 = vld [vmem:[#allocation93_spill] sm:$0xff] }
 0x5aa   : > { %7279 = vmatpush.msk.msrb.mxu0 %vm555_vm0, %v9950_v41  ;;  %7283 = vmatpush.msk.msrb.mxu2 %vm555_vm0, %v9957_v0 }
 0x5ac   : > { %2472 = vmatpush.msrb.mxu0 %v9964_v28  ;;  %2498 = vmatpush.msrb.mxu2 %v9970_v61 }
 0x5ae   : > { %2473 = vmatpush.msrb.mxu0 %v9976_v36  ;;  %2499 = vmatpush.msrb.mxu2 %v9982_v17 }
 0x5b0   : > { %2474 = vmatpush.msrb.mxu0 %v9988_v3  ;;  %2500 = vmatpush.msrb.mxu2 %v9994_v38 }
 0x5b1   : > { %7268 = vmatmul.msk.f32.vlgmr.msra.gmra.mxu2 %vm548_vm2, %v9998_v37  ;;  %7264 = vmatmul.msk.f32.vlgmr.msra.gmra.mxu0 %vm548_vm2, %v9998_v37 }
 0x5b2   : > { %2609 = vmatpush.msra.mxu0 %v10007_v1  ;;  %2649 = vmatpush.msra.mxu2 %v10013_v6 }
 0x5b4   : > { %2610 = vmatpush.msra.mxu0 %v10019_v60  ;;  %2650 = vmatpush.msra.mxu2 %v10025_v34 }
 0x5b6   : > { %2611 = vmatpush.msra.mxu0 %v10031_v55 }
 0x5b8   : > { %2612 = vmatpush.msra.mxu0 %v10040_v23 }
 0x5b9   : > { %7269 = vmatmul.msk.f32.gmra.mxu2 %vm548_vm2, %v10035_v44  ;;  %7265 = vmatmul.msk.f32.gmra.mxu0 %vm548_vm2, %v10035_v44 }
 0x5ba   : > { %2613 = vmatpush.msra.mxu0 %v10050_v20 }
 0x5bc   : > { %2614 = vmatpush.msra.mxu0 %v10056_v27 }
 0x5be   : > { %2615 = vmatpush.msra.mxu0 %v10062_v14 }
 0x5c0   : > { %2616 = vmatpush.msra.mxu0 %v10071_v58 }
 0x5c1   : > { %7270 = vmatmul.msk.f32.gmra.mxu2 %vm548_vm2, %v10066_v26  ;;  %7266 = vmatmul.msk.f32.gmra.mxu0 %vm548_vm2, %v10066_v26 }
 0x5c2   : > { %2617 = vmatpush.msra.mxu0 %v10081_v32 }
 0x5c4   : > { %2618 = vmatpush.msra.mxu0 %v10087_v30 }
 0x5c6   : > { %2619 = vmatpush.msra.mxu0 %v10093_v45 }
 0x5c8   : > { %2620 = vmatpush.msra.mxu0 %v10099_v56 }
 0x5c9   : > { %7280 = vmatmul.msk.f32.vlgmr.msrb.gmra.mxu0 %vm548_vm2, %v2448_v9  ;;  %7284 = vmatmul.msk.f32.vlgmr.msrb.gmra.mxu2 %vm548_vm2, %v2448_v9 }
 0x626   : > { %v2165_v31 = vpop.f32.mrf.mxu0 }
 0x62c   : > { %v2185_v47 = vpop.f32.mrf.mxu2 }
 0x62d   : > { %v2188_v2 = vmax.f32 %v2165_v31, %v2185_v47  ;;  %v14808_v31 = vld [vmem:[#allocation94_spill] sm:$0xff]  ;;  %v14809_v47 = vld [vmem:[#allocation95_spill] sm:$0xff] }
 0x62f   : > { %2204 = vmatpush.msrb.mxu1 %v2188_v2  ;;  %2224 = vmatpush.msra.mxu3 %v2188_v2  ;;  %v14810_v2 = vld [vmem:[#allocation96_spill] sm:$0xff] }
 0x630   : > { %7249 = vmatmul.msk.f32.vlgmr.msrb.gmra.mxu1 %vm1434_vm8, %v9552_v43  ;;  %7250 = vmatmul.msk.f32.vlgmr.msra.gmra.mxu3 %vm1434_vm8, %v9557_v46  ;;  %v10118_v43 = vld [vmem:[%s14215_s3 + $0x18] sm:$0xff]  ;;  %v2254_v46 = vsel %vm540_vm1, %v2252_v22, %v2253_v18  ;;  %v2376_v22 = vrot.slane %v10035_v44, 2 }
 0x631   : > { %7255 = vmatpush.msk.msra.mxu1 %vm555_vm0, %v9569_v10  ;;  %7259 = vmatpush.msk.msrb.mxu3 %vm555_vm0, %v9576_v12  ;;  %14799 = vst [vmem:[#allocation16_spill] sm:$0xff] %v10118_v43  ;;  %v10131_v10 = vld [vmem:[%s14215_s3 + $0x10] sm:$0xff]  ;;  %v2449_v12 = vrot.slane %v10066_v26, 3 }
 0x632   : > { %2621 = vmatpush.msra.mxu0 %v10118_v43  ;;  %14800 = vst [vmem:[#allocation17_spill] sm:$0xff] %v10131_v10 }
 0x633   : > { %2278 = vmatpush.msra.mxu1 %v9587_v24  ;;  %2304 = vmatpush.msrb.mxu3 %v9593_v29  ;;  %v2255_v24 = vrot.slane %v10066_v26, 1  ;;  %v2450_v29 = vsel %vm774_vm4, %v2447_v59, %v2449_v12  ;;  %v2375_v59 = vrot.slane %v9998_v37, 2 }
 0x634   : > { %2622 = vmatpush.msra.mxu0 %v10131_v10  ;;  %7285 = vmatmul.msk.f32.gmra.mxu2 %vm548_vm2, %v2450_v29 }
 0x635   : > { %2279 = vmatpush.msra.mxu1 %v9601_v35  ;;  %2305 = vmatpush.msrb.mxu3 %v9607_v40  ;;  %v10148_v35 = vld [vmem:[%s14215_s3 + $0x8] sm:$0xff]  ;;  %v2256_v40 = vsel %vm540_vm1, %v2253_v18, %v2255_v24  ;;  %v2377_v9 = vsel %vm687_vm3, %v2375_v59, %v2376_v22  ;;  %v10322_v59 = vld [vmem:[%s14215_s3 + $0x98] sm:$0xff] }
 0x636   : > { %14801 = vst [vmem:[#allocation18_spill] sm:$0xff] %v10148_v35  ;;  %2623 = vmatpush.msra.mxu0 %v10148_v35 }
 0x637   : > { %2280 = vmatpush.msra.mxu1 %v9615_v48  ;;  %2306 = vmatpush.msrb.mxu3 %v9621_v53  ;;  %v10159_v48 = vld [vmem:[%s8500_s25 + $0x58] sm:$0xf]  ;;  %v10164_v53 = vld [vmem:[%s14215_s3] sm:$0xff]  ;;  %14829 = vst [vmem:[#allocation72_spill] sm:$0xff] %v10322_v59 }
 0x638   : > { %7256 = vmatmul.msk.f32.vlgmr.msra.gmra.mxu1 %vm548_vm2, %v2254_v46  ;;  %7260 = vmatmul.msk.f32.vlgmr.msrb.gmra.mxu3 %vm548_vm2, %v2254_v46  ;;  %14802 = vst [vmem:[#allocation19_spill] sm:$0xff] %v10164_v53  ;;  %v2378_v46 = vrot.slane %v10066_v26, 2  ;;  %v10388_v26 = vld [vmem:[%s14217_s5 + $0x28] sm:$0xff] }
 0x639   : > { %7271 = vmatpush.msk.msrb.mxu1 %vm555_vm0, %v9631_v63  ;;  %7275 = vmatpush.msk.msra.mxu3 %vm555_vm0, %v9638_v11  ;;  %v2451_v63 = vrot.slane %v10159_v48, 3  ;;  %v2517_v11 = vrot.slane %v9998_v37, 4  ;;  %v10211_v37 = vld [vmem:[%s14215_s3 + $0x118] sm:$0xff]  ;;  %14839 = vst [vmem:[#allocation33_spill] sm:$0xff] %v10388_v26 }
 0x63a   : > { %7281 = vmatmul.msk.f32.gmra.mxu0 %vm548_vm2, %v2450_v29  ;;  %14812 = vst [vmem:[#allocation21_spill] sm:$0xff] %v10211_v37  ;;  %v2379_v29 = vsel %vm687_vm3, %v2376_v22, %v2378_v46  ;;  %v10328_v22 = vld [vmem:[%s14217_s5 + $0x78] sm:$0xff] }
 0x63b   : > { %2401 = vmatpush.msrb.mxu1 %v9647_v25  ;;  %2427 = vmatpush.msra.mxu3 %v9653_v51  ;;  %v2518_v25 = vrot.slane %v10035_v44, 4  ;;  %v2257_v51 = vrot.slane %v10159_v48, 1  ;;  %v10217_v44 = vld [vmem:[%s14215_s3 + $0x100] sm:$0xff]  ;;  %14830 = vst [vmem:[#allocation59_spill] sm:$0xff] %v10328_v22 }
 0x63c   : > { %2624 = vmatpush.msra.mxu0 %v10164_v53  ;;  %14813 = vst [vmem:[#allocation22_spill] sm:$0xff] %v10217_v44 }
 0x63d   : > { %2402 = vmatpush.msrb.mxu1 %v9662_v5  ;;  %2428 = vmatpush.msra.mxu3 %v9668_v42  ;;  %v14803_v5 = vld [vmem:[#allocation89_spill] sm:$0xff]  ;;  %v14804_v42 = vld [vmem:[#allocation90_spill] sm:$0xff]  ;;  %v2258_v39 = vsel %vm540_vm1, %v2255_v24, %v2257_v51  ;;  %v2521_v18 = vsel %vm555_vm0, %v2518_v25, %v2520_v7  ;;  %v10223_v24 = vld [vmem:[%s14215_s3 + $0x110] sm:$0xff] }
 0x63e   : > { %14814 = vst [vmem:[#allocation23_spill] sm:$0xff] %v10223_v24  ;;  %v10251_v51 = vld [vmem:[%s14215_s3 + $0xe0] sm:$0xff] }
 0x63f   : > { %2403 = vmatpush.msrb.mxu1 %v9678_v54  ;;  %2429 = vmatpush.msra.mxu3 %v9684_v21  ;;  %v2452_v54 = vsel %vm774_vm4, %v2449_v12, %v2451_v63  ;;  %v2519_v21 = vsel %vm555_vm0, %v2517_v11, %v2518_v25  ;;  %v10205_v12 = vld [vmem:[%s14215_s3 + $0x108] sm:$0xff]  ;;  %v10236_v63 = vld [vmem:[%s14215_s3 + $0xf0] sm:$0xff]  ;;  %v2380_v11 = vrot.slane %v10159_v48, 2  ;;  %14818 = vst [vmem:[#allocation28_spill] sm:$0xff] %v10251_v51 }
 0x640   : > { %7257 = vmatmul.msk.f32.gmra.mxu1 %vm548_vm2, %v2256_v40  ;;  %7261 = vmatmul.msk.f32.gmra.mxu3 %vm548_vm2, %v2256_v40  ;;  %14811 = vst [vmem:[#allocation20_spill] sm:$0xff] %v10205_v12  ;;  %v10230_v40 = vld [vmem:[%s14215_s3 + $0xf8] sm:$0xff]  ;;  %v10245_v25 = vld [vmem:[%s14215_s3 + $0xe8] sm:$0xff] }
 0x641   : > { %7287 = vmatpush.msk.msra.mxu1 %vm555_vm0, %v14803_v5  ;;  %7291 = vmatpush.msk.msrb.mxu3 %vm555_vm0, %v14804_v42  ;;  %14815 = vst [vmem:[#allocation24_spill] sm:$0xff] %v10230_v40  ;;  %v2381_v5 = vsel %vm687_vm3, %v2378_v46, %v2380_v11  ;;  %v10258_v42 = vld [vmem:[%s14215_s3 + $0xd8] sm:$0xff]  ;;  %v10340_v46 = vld [vmem:[%s14217_s5 + $0x70] sm:$0xff]  ;;  %v10349_v11 = vld [vmem:[%s14217_s5 + $0x40] sm:$0xff] }
 0x642   : > { %7282 = vmatmul.msk.f32.gmra.mxu0 %vm548_vm2, %v2452_v54  ;;  %7286 = vmatmul.msk.f32.gmra.mxu2 %vm548_vm2, %v2452_v54  ;;  %14816 = vst [vmem:[#allocation25_spill] sm:$0xff] %v10236_v63  ;;  %v10264_v54 = vld [vmem:[%s14215_s3 + $0xd0] sm:$0xff] }
 0x643   : > { %2543 = vmatpush.msra.mxu1 %v14805_v19  ;;  %2569 = vmatpush.msrb.mxu3 %v14806_v15  ;;  %14817 = vst [vmem:[#allocation26_spill] sm:$0xff] %v10245_v25  ;;  %v10272_v19 = vld [vmem:[%s14215_s3 + $0xc8] sm:$0xff]  ;;  %v10278_v15 = vld [vmem:[%s14215_s3 + $0xc0] sm:$0xff] }
 0x644   : > { %14819 = vst [vmem:[#allocation30_spill] sm:$0xff] %v10258_v42 }
 0x645   : > { %2544 = vmatpush.msra.mxu1 %v14807_v16  ;;  %2570 = vmatpush.msrb.mxu3 %v14808_v31  ;;  %14820 = vst [vmem:[#allocation44_spill] sm:$0xff] %v10264_v54  ;;  %v10290_v16 = vld [vmem:[%s14215_s3 + $0xb0] sm:$0xff]  ;;  %v10298_v31 = vld [vmem:[%s14215_s3 + $0xa8] sm:$0xff] }
 0x646   : > { %14821 = vst [vmem:[#allocation47_spill] sm:$0xff] %v10272_v19 }
 0x647   : > { %2545 = vmatpush.msra.mxu1 %v14809_v47  ;;  %2571 = vmatpush.msrb.mxu3 %v14810_v2  ;;  %14822 = vst [vmem:[#allocation50_spill] sm:$0xff] %v10278_v15  ;;  %v10304_v47 = vld [vmem:[%s14217_s5 + $0x88] sm:$0xff]  ;;  %v10310_v2 = vld [vmem:[%s14215_s3 + $0xa0] sm:$0xff] }
 0x648   : > { %7258 = vmatmul.msk.f32.gmra.mxu1 %vm548_vm2, %v2258_v39  ;;  %7262 = vmatmul.msk.f32.gmra.mxu3 %vm548_vm2, %v2258_v39  ;;  %v10284_v39 = vld [vmem:[%s14215_s3 + $0xb8] sm:$0xff]  ;;  %14824 = vst [vmem:[#allocation56_spill] sm:$0xff] %v10290_v16 }
 0x649   : > { %14823 = vst [vmem:[#allocation53_spill] sm:$0xff] %v10284_v39 }
 0x64a   : > { %14825 = vst [vmem:[#allocation68_spill] sm:$0xff] %v10298_v31 }
 0x64b   : > { %14826 = vst [vmem:[#allocation57_spill] sm:$0xff] %v10304_v47 }
 0x64c   : > { %14827 = vst [vmem:[#allocation70_spill] sm:$0xff] %v10310_v2 }
 0x64d   : > { %14832 = vst [vmem:[#allocation60_spill] sm:$0xff] %v10340_v46 }
 0x64e   : > { %14833 = vst [vmem:[#allocation76_spill] sm:$0xff] %v10349_v11 }
 0x650   : > { %7272 = vmatmul.msk.f32.vlgmr.msrb.gmra.mxu1 %vm548_vm2, %v2377_v9  ;;  %7276 = vmatmul.msk.f32.vlgmr.msra.gmra.mxu3 %vm548_vm2, %v2377_v9  ;;  %v10334_v9 = vld [vmem:[%s14215_s3 + $0x90] sm:$0xff] }
 0x651   : > { %2661 = vmatpush.msrb.mxu1 %v10205_v12  ;;  %2701 = vmatpush.msra.mxu3 %v10211_v37  ;;  %14831 = vst [vmem:[#allocation74_spill] sm:$0xff] %v10334_v9 }
 0x653   : > { %2662 = vmatpush.msrb.mxu1 %v10217_v44  ;;  %2702 = vmatpush.msra.mxu3 %v10223_v24 }
 0x655   : > { %2663 = vmatpush.msrb.mxu1 %v10230_v40 }
 0x657   : > { %2664 = vmatpush.msrb.mxu1 %v10236_v63 }
 0x658   : > { %7273 = vmatmul.msk.f32.gmra.mxu1 %vm548_vm2, %v2379_v29  ;;  %7277 = vmatmul.msk.f32.gmra.mxu3 %vm548_vm2, %v2379_v29  ;;  %v2522_v29 = vrot.slane %v10159_v48, 4  ;;  %v10367_v48 = vld [vmem:[%s14217_s5 + $0x60] sm:$0xff] }
 0x659   : > { %2665 = vmatpush.msrb.mxu1 %v10245_v25  ;;  %14836 = vst [vmem:[#allocation82_spill] sm:$0xff] %v10367_v48 }
 0x65b   : > { %2666 = vmatpush.msrb.mxu1 %v10251_v51 }
 0x65d   : > { %2667 = vmatpush.msrb.mxu1 %v10258_v42 }
 0x65f   : > { %2668 = vmatpush.msrb.mxu1 %v10264_v54 }
 0x660   : > { %7274 = vmatmul.msk.f32.gmra.mxu1 %vm548_vm2, %v2381_v5  ;;  %7278 = vmatmul.msk.f32.gmra.mxu3 %vm548_vm2, %v2381_v5  ;;  %v10355_v5 = vld [vmem:[%s14217_s5 + $0x68] sm:$0xff] }
 0x661   : > { %2669 = vmatpush.msrb.mxu1 %v10272_v19  ;;  %14834 = vst [vmem:[#allocation78_spill] sm:$0xff] %v10355_v5 }
 0x663   : > { %2670 = vmatpush.msrb.mxu1 %v10278_v15 }
 0x665   : > { %2671 = vmatpush.msrb.mxu1 %v10284_v39 }
 0x667   : > { %2672 = vmatpush.msrb.mxu1 %v10290_v16  ;;  %v2366_v16 = vpop.f32.mrf.mxu2 }
 0x668   : > { %7288 = vmatmul.msk.f32.vlgmr.msra.gmra.mxu1 %vm548_vm2, %v2519_v21  ;;  %7292 = vmatmul.msk.f32.vlgmr.msrb.gmra.mxu3 %vm548_vm2, %v2519_v21  ;;  %v10316_v21 = vld [vmem:[%s14217_s5 + $0x80] sm:$0xff] }
 0x669   : > { %2673 = vmatpush.msrb.mxu1 %v10298_v31  ;;  %2778 = vmatpush.msrb.mxu3 %v10304_v47  ;;  %14828 = vst [vmem:[#allocation58_spill] sm:$0xff] %v10316_v21 }
 0x66b   : > { %2674 = vmatpush.msrb.mxu1 %v10310_v2  ;;  %2779 = vmatpush.msrb.mxu3 %v10316_v21 }
 0x66d   : > { %2675 = vmatpush.msrb.mxu1 %v10322_v59  ;;  %2780 = vmatpush.msrb.mxu3 %v10328_v22 }
 0x66f   : > { %2676 = vmatpush.msrb.mxu1 %v10334_v9  ;;  %2781 = vmatpush.msrb.mxu3 %v10340_v46 }
 0x670   : > { %7289 = vmatmul.msk.f32.gmra.mxu1 %vm548_vm2, %v2521_v18  ;;  %7293 = vmatmul.msk.f32.gmra.mxu3 %vm548_vm2, %v2521_v18  ;;  %v10361_v18 = vld [vmem:[%s14217_s5 + $0x38] sm:$0xff] }
 0x671   : > { %2800 = vmatpush.msra.mxu1 %v10349_v11  ;;  %2782 = vmatpush.msrb.mxu3 %v10355_v5  ;;  %14835 = vst [vmem:[#allocation80_spill] sm:$0xff] %v10361_v18  ;;  %v2523_v11 = vsel %vm555_vm0, %v2520_v7, %v2522_v29  ;;  %v10376_v5 = vld [vmem:[%s14217_s5 + $0x30] sm:$0xff]  ;;  %v10402_v29 = vld [vmem:[%s14217_s5 + $0x20] sm:$0xff] }
 0x672   : > { %14837 = vst [vmem:[#allocation84_spill] sm:$0xff] %v10376_v5  ;;  %v10394_v7 = vld [vmem:[%s14217_s5 + $0x50] sm:$0xff] }
 0x673   : > { %2801 = vmatpush.msra.mxu1 %v10361_v18  ;;  %2783 = vmatpush.msrb.mxu3 %v10367_v48  ;;  %v10382_v18 = vld [vmem:[%s14217_s5 + $0x58] sm:$0xff]  ;;  %14840 = vst [vmem:[#allocation34_spill] sm:$0xff] %v10394_v7 }
 0x674   : > { %14838 = vst [vmem:[#allocation32_spill] sm:$0xff] %v10382_v18 }
 0x675   : > { %2802 = vmatpush.msra.mxu1 %v10376_v5  ;;  %2784 = vmatpush.msrb.mxu3 %v10382_v18  ;;  %14841 = vst [vmem:[#allocation35_spill] sm:$0xff] %v10402_v29  ;;  %v14847_v18 = vld [vmem:[#allocation27_spill] sm:$0xff]  ;;  %v14848_v5 = vld [vmem:[#allocation12_spill] sm:$0xff] }
 0x676   : > { %v10437_v48 = vmax.f32 %v14848_v5, %v14847_v18 }
 0x677   : > { %2803 = vmatpush.msra.mxu1 %v10388_v26  ;;  %2785 = vmatpush.msrb.mxu3 %v10394_v7  ;;  %v10408_v26 = vld [vmem:[%s14217_s5 + $0x48] sm:$0xff]  ;;  %v10414_v7 = vld [vmem:[%s14217_s5 + $0x18] sm:$0xff] }
 0x678   : > { %7290 = vmatmul.msk.f32.gmra.mxu1 %vm548_vm2, %v2523_v11  ;;  %7294 = vmatmul.msk.f32.gmra.mxu3 %vm548_vm2, %v2523_v11  ;;  %14842 = vst [vmem:[#allocation38_spill] sm:$0xff] %v10408_v26  ;;  %v10420_v11 = vld [vmem:[%s14217_s5 + $0x10] sm:$0xff]  ;;  %v1485_v22 = vrot.slane %v10437_v48, 1 }
 0x679   : > { %2804 = vmatpush.msra.mxu1 %v10402_v29  ;;  %2786 = vmatpush.msrb.mxu3 %v10408_v26  ;;  %14843 = vst [vmem:[#allocation39_spill] sm:$0xff] %v10414_v7  ;;  %v10426_v29 = vld [vmem:[%s14217_s5 + $0x8] sm:$0xff]  ;;  %v10432_v26 = vld [vmem:[%s14217_s5] sm:$0xff] }
 0x67a   : > { %14844 = vst [vmem:[#allocation40_spill] sm:$0xff] %v10420_v11 }
 0x67b   : > { %2805 = vmatpush.msra.mxu1 %v10414_v7  ;;  %14845 = vst [vmem:[#allocation41_spill] sm:$0xff] %v10426_v29 }
 0x67c   : > { %14846 = vst [vmem:[#allocation36_spill] sm:$0xff] %v10432_v26 }
 0x67d   : > { %2806 = vmatpush.msra.mxu1 %v10420_v11  ;;  %14849 = vst [vmem:[#allocation37_spill] sm:$0xff] %v10437_v48 }
 0x67f   : > { %2807 = vmatpush.msra.mxu1 %v10426_v29 }
 0x681   : > { %2808 = vmatpush.msra.mxu1 %v10432_v26  ;;  %v2340_v26 = vpop.f32.mrf.mxu0 }
 0x689   : > { %v2343_v5 = vpop.f32.mrf.mxu0 }
 0x6ad   : > { %v2206_v7 = vpop.f32.mrf.mxu1 }
 0x6b3   : > { %v2226_v11 = vpop.f32.mrf.mxu3 }
 0x6b4   : > { %v10439_v46 = vmax.f32 %v2206_v7, %v2226_v11  ;;  %v2369_v7 = vpop.f32.mrf.mxu2  ;;  %v2346_v11 = vpop.f32.mrf.mxu0 }
 0x6b5   : > { %v2282_v9 = vpop.f32.mrf.mxu1 }
 0x6b6   : > { %14850 = vst [vmem:[#allocation42_spill] sm:$0xff] %v10439_v46  ;;  %v2237_v29 = vrot.slane %v10439_v46, 3 }
 0x6b8   : > { %v7679_v59 = vpack.i.bf16 %v2237_v29, %v1485_v22  ;;  %v2341_v29 = vadd.f32 %v2340_v26, %v2282_v9  ;;  %v10495_v26 = vld [vmem:[%s14217_s5 + $0x150] sm:$0xff] }
 0x6ba   : > { %7680 = vrot.lane.b32.xlu0 %v7679_v59, %s8333_s29 }
 0x6bb   : > { %v2308_v21 = vpop.f32.mrf.mxu3 }
 0x6bc   : > { %v2372_v48 = vpop.f32.mrf.mxu2  ;;  %v2476_v46 = vpop.f32.mrf.mxu0  ;;  %v2367_v25 = vadd.f32 %v2366_v16, %v2308_v21 }
 0x6bd   : > { %v2285_v2 = vpop.f32.mrf.mxu1 }
 0x6be   : > { %v2344_v24 = vadd.f32 %v2343_v5, %v2285_v2  ;;  %v10501_v5 = vld [vmem:[%s14219_s7 + $0x50] sm:$0xff] }
 0x6c3   : > { %v2311_v47 = vpop.f32.mrf.mxu3 }
 0x6c4   : > { %v2502_v59 = vpop.f32.mrf.mxu2  ;;  %v2479_v12 = vpop.f32.mrf.mxu0  ;;  %v2370_v45 = vadd.f32 %v2369_v7, %v2311_v47  ;;  %v10488_v47 = vld [vmem:[%s14219_s7 + $0x58] sm:$0xff]  ;;  %v10508_v7 = vld [vmem:[%s14217_s5 + $0x148] sm:$0xff] }
 0x6c5   : > { %v2288_v31 = vpop.f32.mrf.mxu1 }
 0x6cb   : > { %v2314_v18 = vpop.f32.mrf.mxu3 }
 0x6cd   : > { %v2405_v39 = vpop.f32.mrf.mxu1 }
 0x6ce   : > { %v2440_v42 = vadd.f32 %v2405_v39, %v2341_v29  ;;  %v2505_v39 = vpop.f32.mrf.mxu2 }
 0x6d0   : > { %v2511_v63 = vadd.f32 %v2476_v46, %v2440_v42  ;;  %v10448_v42 = vld [vmem:[%s14219_s7 + $0x78] sm:$0xff] }
 0x6d3   : > { %v2431_v15 = vpop.f32.mrf.mxu3 }
 0x6d4   : > { %v2441_v44 = vadd.f32 %v2431_v15, %v2367_v25  ;;  %v10476_v25 = vld [vmem:[%s14219_s7 + $0x60] sm:$0xff] }
 0x6d5   : > { %v2408_v19 = vpop.f32.mrf.mxu1 }
 0x6d6   : > { %v2442_v53 = vadd.f32 %v2408_v19, %v2344_v24  ;;  %v2512_v10 = vadd.f32 %v2502_v59, %v2441_v44  ;;  %v2347_v24 = vadd.f32 %v2346_v11, %v2288_v31  ;;  %v10462_v44 = vld [vmem:[%s14219_s7 + $0x68] sm:$0xff]  ;;  %v10482_v31 = vld [vmem:[%s14217_s5 + $0x158] sm:$0xff] }
 0x6d7   : > { %v10514_v11 = vld [vmem:[%s14219_s7 + $0x48] sm:$0xff] }
 0x6d8   : > { %v2513_v30 = vadd.f32 %v2479_v12, %v2442_v53  ;;  %v2482_v12 = vpop.f32.mrf.mxu0 }
 0x6db   : > { %v2434_v54 = vpop.f32.mrf.mxu3 }
 0x6dd   : > { %v2411_v22 = vpop.f32.mrf.mxu1 }
 0x6e3   : > { %v2437_v51 = vpop.f32.mrf.mxu3 }
 0x6e5   : > { %v2547_v40 = vpop.f32.mrf.mxu1 }
 0x6e6   : > { %v2582_v37 = vadd.f32 %v2547_v40, %v2511_v63  ;;  %v2443_v40 = vadd.f32 %v2434_v54, %v2370_v45  ;;  %v10470_v63 = vld [vmem:[%s14217_s5 + $0x160] sm:$0xff]  ;;  %v2373_v54 = vadd.f32 %v2372_v48, %v2314_v18  ;;  %v2508_v48 = vpop.f32.mrf.mxu2 }
 0x6e8   : > { %v2588_v35 = vadd.f32 %v2582_v37, %v14736_v8  ;;  %v2445_v2 = vadd.f32 %v2437_v51, %v2373_v54  ;;  %v10585_v54 = vld [vmem:[%s14219_s7 + $0x18] sm:$0xff] }
 0x6e9   : > { %14857 = vst [vmem:[#allocation52_spill] sm:$0xff] %v10585_v54 }
 0x6ea   : > { %v2594_v43 = vmax.f32 %v2588_v35, 0.0 }
 0x6eb   : > { %v2573_v56 = vpop.f32.mrf.mxu3 }
 0x6ec   : > { %v2583_v32 = vadd.f32 %v2573_v56, %v2512_v10  ;;  %2625 = vmatmul.f32.vlgmr.msra.gmra.mxu0 %v2594_v43  ;;  %2677 = vmatmul.f32.vlgmr.msrb.gmra.mxu1 %v2594_v43  ;;  %v10455_v56 = vld [vmem:[%s14219_s7 + $0x70] sm:$0xff]  ;;  %v2444_v43 = vadd.f32 %v2411_v22, %v2347_v24  ;;  %v2516_v22 = vadd.f32 %v2508_v48, %v2445_v2 }
 0x6ed   : > { %v2550_v9 = vpop.f32.mrf.mxu1  ;;  %2893 = vmatpush.msrb.mxu1 %v10448_v42 }
 0x6ee   : > { %v2589_v37 = vadd.f32 %v2583_v32, %v14737_v57  ;;  %v2584_v35 = vadd.f32 %v2550_v9, %v2513_v30  ;;  %v2514_v32 = vadd.f32 %v2505_v39, %v2443_v40  ;;  %v2515_v19 = vadd.f32 %v2482_v12, %v2444_v43  ;;  %v10522_v39 = vld [vmem:[%s14217_s5 + $0x140] sm:$0xff]  ;;  %v10534_v40 = vld [vmem:[%s14217_s5 + $0x138] sm:$0xff]  ;;  %v10547_v43 = vld [vmem:[%s14217_s5 + $0x130] sm:$0xff] }
 0x6ef   : > { %2894 = vmatpush.msrb.mxu1 %v10455_v56  ;;  %v10528_v9 = vld [vmem:[%s14219_s7 + $0x40] sm:$0xff]  ;;  %14851 = vst [vmem:[#allocation43_spill] sm:$0xff] %v10547_v43  ;;  %v10559_v12 = vld [vmem:[%s14217_s5 + $0x128] sm:$0xff] }
 0x6f0   : > { %v2595_v10 = vmax.f32 %v2589_v37, 0.0  ;;  %v2590_v53 = vadd.f32 %v2584_v35, %v14736_v8  ;;  %v10540_v37 = vld [vmem:[%s14219_s7 + $0x38] sm:$0xff]  ;;  %14853 = vst [vmem:[#allocation46_spill] sm:$0xff] %v10559_v12 }
 0x6f1   : > { %2895 = vmatpush.msrb.mxu1 %v10462_v44 }
 0x6f2   : > { %7295 = vmatmul.msk.f32.vlgmr.msra.gmra.mxu2 %vm974_vm5, %v2595_v10  ;;  %7298 = vmatmul.msk.f32.vlgmr.msra.gmra.mxu3 %vm974_vm5, %v2595_v10  ;;  %v2596_v30 = vmax.f32 %v2590_v53, 0.0  ;;  %v10553_v10 = vld [vmem:[%s14219_s7 + $0x30] sm:$0xff] }
 0x6f3   : > { %v2576_v45 = vpop.f32.mrf.mxu3  ;;  %2877 = vmatpush.msra.mxu3 %v10470_v63  ;;  %2896 = vmatpush.msrb.mxu1 %v10476_v25  ;;  %14852 = vst [vmem:[#allocation45_spill] sm:$0xff] %v10553_v10 }
 0x6f4   : > { %v2585_v15 = vadd.f32 %v2576_v45, %v2514_v32  ;;  %2628 = vmatmul.f32.gmra.mxu0 %v2596_v30  ;;  %2680 = vmatmul.f32.gmra.mxu1 %v2596_v30  ;;  %v10565_v32 = vld [vmem:[%s14219_s7 + $0x28] sm:$0xff]  ;;  %v10573_v30 = vld [vmem:[%s14217_s5 + $0x120] sm:$0xff] }
 0x6f5   : > { %v2553_v16 = vpop.f32.mrf.mxu1  ;;  %2878 = vmatpush.msra.mxu3 %v10482_v31  ;;  %2897 = vmatpush.msrb.mxu1 %v10488_v47  ;;  %14854 = vst [vmem:[#allocation48_spill] sm:$0xff] %v10565_v32  ;;  %v10579_v45 = vld [vmem:[%s14219_s7 + $0x20] sm:$0xff] }
 0x6f6   : > { %v2591_v21 = vadd.f32 %v2585_v15, %v14737_v57  ;;  %v2586_v46 = vadd.f32 %v2553_v16, %v2515_v19  ;;  %14855 = vst [vmem:[#allocation49_spill] sm:$0xff] %v10573_v30  ;;  %v10591_v19 = vld [vmem:[%s14219_s7 + $0x10] sm:$0xff]  ;;  %v10597_v15 = vld [vmem:[%s14219_s7 + $0x8] sm:$0xff]  ;;  %v10603_v16 = vld [vmem:[%s14219_s7] sm:$0xff] }
 0x6f7   : > { %2879 = vmatpush.msra.mxu3 %v10495_v26  ;;  %2898 = vmatpush.msrb.mxu1 %v10501_v5  ;;  %14856 = vst [vmem:[#allocation51_spill] sm:$0xff] %v10579_v45 }
 0x6f8   : > { %v2597_v18 = vmax.f32 %v2591_v21, 0.0  ;;  %v2592_v51 = vadd.f32 %v2586_v46, %v14736_v8  ;;  %14858 = vst [vmem:[#allocation54_spill] sm:$0xff] %v10591_v19 }
 0x6f9   : > { %2880 = vmatpush.msra.mxu3 %v10508_v7  ;;  %2899 = vmatpush.msrb.mxu1 %v10514_v11  ;;  %14859 = vst [vmem:[#allocation55_spill] sm:$0xff] %v10597_v15 }
 0x6fa   : > { %7296 = vmatmul.msk.f32.gmra.mxu2 %vm974_vm5, %v2597_v18  ;;  %7299 = vmatmul.msk.f32.gmra.mxu3 %vm974_vm5, %v2597_v18  ;;  %v2598_v29 = vmax.f32 %v2592_v51, 0.0  ;;  %14860 = vst [vmem:[#allocation61_spill] sm:$0xff] %v10603_v16 }
 0x6fb   : > { %v2579_v59 = vpop.f32.mrf.mxu3  ;;  %2881 = vmatpush.msra.mxu3 %v10522_v39  ;;  %2900 = vmatpush.msrb.mxu1 %v10528_v9 }
 0x6fc   : > { %v2587_v24 = vadd.f32 %v2579_v59, %v2516_v22  ;;  %2631 = vmatmul.f32.gmra.mxu0 %v2598_v29  ;;  %2683 = vmatmul.f32.gmra.mxu1 %v2598_v29 }
 0x6fd   : > { %2882 = vmatpush.msra.mxu3 %v10534_v40  ;;  %2901 = vmatpush.msrb.mxu1 %v10540_v37 }
 0x6fe   : > { %v2593_v35 = vadd.f32 %v2587_v24, %v14737_v57 }
 0x6ff   : > { %2883 = vmatpush.msra.mxu3 %v10547_v43  ;;  %2902 = vmatpush.msrb.mxu1 %v10553_v10  ;;  %v10609_v43 = vld [vmem:[%s14216_s4] sm:$0xff] }
 0x700   : > { %v2599_v53 = vmax.f32 %v2593_v35, 0.0 }
 0x701   : > { %2884 = vmatpush.msra.mxu3 %v10559_v12  ;;  %2903 = vmatpush.msrb.mxu1 %v10565_v32 }
 0x702   : > { %7297 = vmatmul.msk.f32.gmra.mxu2 %vm974_vm5, %v2599_v53  ;;  %7300 = vmatmul.msk.f32.gmra.mxu3 %vm974_vm5, %v2599_v53 }
 0x703   : > { %2885 = vmatpush.msra.mxu3 %v10573_v30  ;;  %2904 = vmatpush.msrb.mxu1 %v10579_v45 }
 0x705   : > { %2905 = vmatpush.msrb.mxu1 %v10585_v54 }
 0x707   : > { %2906 = vmatpush.msrb.mxu1 %v10591_v19 }
 0x709   : > { %2907 = vmatpush.msrb.mxu1 %v10597_v15 }
 0x70b   : > { %2908 = vmatpush.msrb.mxu1 %v10603_v16 }
 0x769   : > { %v2626_v2 = vpop.f32.mrf.mxu0  ;;  %v2678_v21 = vpop.f32.mrf.mxu1 }
 0x771   : > { %v2629_v18 = vpop.f32.mrf.mxu0  ;;  %v2681_v51 = vpop.f32.mrf.mxu1 }
 0x775   : > { %v2652_v46 = vpop.f32.mrf.mxu2  ;;  %v2704_v48 = vpop.f32.mrf.mxu3 }
 0x776   : > { %v2653_v30 = vadd.f32 %v2652_v46, %v2626_v2  ;;  %v2705_v32 = vadd.f32 %v2704_v48, %v2678_v21  ;;  %v10687_v2 = vld [vmem:[%s14217_s5 + $0xa8] sm:$0xff]  ;;  %v10693_v21 = vld [vmem:[%s14217_s5 + $0xf0] sm:$0xff]  ;;  %v10699_v46 = vld [vmem:[%s14217_s5 + $0xa0] sm:$0xff] }
 0x777   : > { %14863 = vst [vmem:[#allocation64_spill] sm:$0xff] %v10687_v2  ;;  %v10705_v48 = vld [vmem:[%s14217_s5 + $0xe8] sm:$0xff] }
 0x778   : > { %v2713_v10 = vmax.f32 %v2653_v30, %v2705_v32  ;;  %v10637_v32 = vld [vmem:[%s14217_s5 + $0xc0] sm:$0xff]  ;;  %v10649_v30 = vld [vmem:[%s14217_s5 + $0xb8] sm:$0xff]  ;;  %14864 = vst [vmem:[#allocation65_spill] sm:$0xff] %v10693_v21 }
 0x779   : > { %v2632_v59 = vpop.f32.mrf.mxu0  ;;  %v2684_v24 = vpop.f32.mrf.mxu1  ;;  %14865 = vst [vmem:[#allocation66_spill] sm:$0xff] %v10699_v46 }
 0x77a   : > { %14866 = vst [vmem:[#allocation67_spill] sm:$0xff] %v10705_v48 }
 0x77d   : > { %v2655_v22 = vpop.f32.mrf.mxu2  ;;  %v2707_v29 = vpop.f32.mrf.mxu3 }
 0x77e   : > { %v2656_v15 = vadd.f32 %v2655_v22, %v2629_v18  ;;  %v2708_v19 = vadd.f32 %v2707_v29, %v2681_v51  ;;  %v10711_v18 = vld [vmem:[%s14217_s5 + $0x98] sm:$0xff]  ;;  %v10717_v51 = vld [vmem:[%s14217_s5 + $0xe0] sm:$0xff]  ;;  %v10723_v22 = vld [vmem:[%s14217_s5 + $0x90] sm:$0xff] }
 0x77f   : > { %14867 = vst [vmem:[#allocation69_spill] sm:$0xff] %v10711_v18  ;;  %v10729_v29 = vld [vmem:[%s14217_s5 + $0xd8] sm:$0xff] }
 0x780   : > { %v2714_v16 = vmax.f32 %v2656_v15, %v2708_v19  ;;  %v10668_v19 = vld [vmem:[%s14216_s4 + $0x18] sm:$0xf]  ;;  %v10675_v15 = vld [vmem:[%s14217_s5 + $0xb0] sm:$0xff]  ;;  %14868 = vst [vmem:[#allocation71_spill] sm:$0xff] %v10717_v51 }
 0x781   : > { %14861 = vst [vmem:[#allocation62_spill] sm:$0xff] %v10675_v15 }
 0x782   : > { %14869 = vst [vmem:[#allocation73_spill] sm:$0xff] %v10723_v22 }
 0x783   : > { %14870 = vst [vmem:[#allocation75_spill] sm:$0xff] %v10729_v29 }
 0x785   : > { %v2658_v35 = vpop.f32.mrf.mxu2  ;;  %v2710_v53 = vpop.f32.mrf.mxu3 }
 0x786   : > { %v2659_v54 = vadd.f32 %v2658_v35, %v2632_v59  ;;  %v2711_v45 = vadd.f32 %v2710_v53, %v2684_v24  ;;  %v10735_v59 = vld [vmem:[%s14219_s7 + $0xf8] sm:$0xff]  ;;  %v10741_v24 = vld [vmem:[%s14219_s7 + $0xf0] sm:$0xff]  ;;  %v10747_v35 = vld [vmem:[%s14219_s7 + $0xe8] sm:$0xff] }
 0x787   : > { %14871 = vst [vmem:[#allocation77_spill] sm:$0xff] %v10735_v59  ;;  %v10753_v53 = vld [vmem:[%s14219_s7 + $0xe0] sm:$0xff] }
 0x788   : > { %v2715_v12 = vmax.f32 %v2659_v54, %v2711_v45  ;;  %v10616_v45 = vld [vmem:[%s14216_s4 + $0x10] sm:$0xff]  ;;  %v10661_v54 = vld [vmem:[%s14216_s4 + $0x8] sm:$0xf]  ;;  %14872 = vst [vmem:[#allocation79_spill] sm:$0xff] %v10741_v24 }
 0x789   : > { %14873 = vst [vmem:[#allocation81_spill] sm:$0xff] %v10747_v35 }
 0x78a   : > { %2729 = vmatpush.msrb.mxu2 %v2715_v12  ;;  %2752 = vmatpush.msrb.mxu0 %v2715_v12  ;;  %v10630_v12 = vld [vmem:[%s14217_s5 + $0xc8] sm:$0xff]  ;;  %14874 = vst [vmem:[#allocation83_spill] sm:$0xff] %v10753_v53 }
 0x78c   : > { %2730 = vmatpush.msrb.mxu2 %v2714_v16  ;;  %2753 = vmatpush.msrb.mxu0 %v2714_v16  ;;  %v10681_v16 = vld [vmem:[%s14217_s5 + $0xf8] sm:$0xff] }
 0x78d   : > { %14862 = vst [vmem:[#allocation63_spill] sm:$0xff] %v10681_v16 }
 0x78e   : > { %2731 = vmatpush.msrb.mxu2 %v2713_v10  ;;  %2754 = vmatpush.msrb.mxu0 %v2713_v10  ;;  %v10623_v10 = vld [vmem:[%s14217_s5 + $0xd0] sm:$0xff] }
 0x78f   : > { %7301 = vmatmul.msk.f32.vlgmr.msrb.gmra.mxu2 %vm1112_vm6, %v10609_v43  ;;  %7303 = vmatmul.msk.f32.vlgmr.msrb.gmra.mxu0 %vm1112_vm6, %v10616_v45 }
 0x790   : > { %2825 = vmatpush.msra.mxu2 %v10623_v10  ;;  %2851 = vmatpush.msra.mxu0 %v9858_v52  ;;  %v10643_v52 = vld [vmem:[%s14217_s5 + $0x108] sm:$0xff] }
 0x792   : > { %2826 = vmatpush.msra.mxu2 %v10630_v12  ;;  %2852 = vmatpush.msra.mxu0 %v9865_v49  ;;  %v10655_v49 = vld [vmem:[%s14217_s5 + $0x100] sm:$0xff] }
 0x794   : > { %2827 = vmatpush.msra.mxu2 %v10637_v32  ;;  %2853 = vmatpush.msra.mxu0 %v10643_v52 }
 0x796   : > { %2828 = vmatpush.msra.mxu2 %v10649_v30  ;;  %2854 = vmatpush.msra.mxu0 %v10655_v49 }
 0x797   : > { %7302 = vmatmul.msk.f32.gmra.mxu2 %vm1112_vm6, %v10661_v54  ;;  %7304 = vmatmul.msk.f32.gmra.mxu0 %vm1112_vm6, %v10668_v19 }
 0x798   : > { %2829 = vmatpush.msra.mxu2 %v10675_v15  ;;  %2855 = vmatpush.msra.mxu0 %v10681_v16 }
 0x79a   : > { %2830 = vmatpush.msra.mxu2 %v10687_v2  ;;  %2856 = vmatpush.msra.mxu0 %v10693_v21 }
 0x79c   : > { %2831 = vmatpush.msra.mxu2 %v10699_v46  ;;  %2857 = vmatpush.msra.mxu0 %v10705_v48 }
 0x79e   : > { %2832 = vmatpush.msra.mxu2 %v10711_v18  ;;  %2858 = vmatpush.msra.mxu0 %v10717_v51  ;;  %v10839_v51 = vld [vmem:[%s14629_s1 + $0x20] sm:$0xff] }
 0x79f   : > { %14888 = vst [vmem:[#allocation12_spill] sm:$0xff] %v10839_v51 }
 0x7a0   : > { %2833 = vmatpush.msra.mxu2 %v10723_v22  ;;  %2859 = vmatpush.msra.mxu0 %v10729_v29 }
 0x7a2   : > { %2913 = vmatpush.msrb.mxu2 %v10735_v59  ;;  %v10759_v59 = vld [vmem:[%s14219_s7 + $0xd8] sm:$0xff] }
 0x7a3   : > { %14875 = vst [vmem:[#allocation85_spill] sm:$0xff] %v10759_v59 }
 0x7a4   : > { %2914 = vmatpush.msrb.mxu2 %v10741_v24  ;;  %v10765_v24 = vld [vmem:[%s14219_s7 + $0xd0] sm:$0xff] }
 0x7a5   : > { %14876 = vst [vmem:[#allocation86_spill] sm:$0xff] %v10765_v24 }
 0x7a6   : > { %2915 = vmatpush.msrb.mxu2 %v10747_v35  ;;  %v10771_v35 = vld [vmem:[%s14219_s7 + $0xc8] sm:$0xff] }
 0x7a7   : > { %14877 = vst [vmem:[#allocation87_spill] sm:$0xff] %v10771_v35 }
 0x7a8   : > { %2916 = vmatpush.msrb.mxu2 %v10753_v53  ;;  %v10777_v53 = vld [vmem:[%s14219_s7 + $0xc0] sm:$0xff] }
 0x7a9   : > { %14878 = vst [vmem:[#allocation88_spill] sm:$0xff] %v10777_v53 }
 0x7aa   : > { %2917 = vmatpush.msrb.mxu2 %v10759_v59  ;;  %v10783_v59 = vld [vmem:[%s14219_s7 + $0xb8] sm:$0xff] }
 0x7ab   : > { %14879 = vst [vmem:[#allocation89_spill] sm:$0xff] %v10783_v59 }
 0x7ac   : > { %2918 = vmatpush.msrb.mxu2 %v10765_v24  ;;  %v10789_v24 = vld [vmem:[%s14219_s7 + $0xb0] sm:$0xff] }
 0x7ad   : > { %14880 = vst [vmem:[#allocation90_spill] sm:$0xff] %v10789_v24 }
 0x7ae   : > { %2919 = vmatpush.msrb.mxu2 %v10771_v35  ;;  %v10795_v35 = vld [vmem:[%s14219_s7 + $0xa8] sm:$0xff] }
 0x7af   : > { %14881 = vst [vmem:[#allocation91_spill] sm:$0xff] %v10795_v35 }
 0x7b0   : > { %2920 = vmatpush.msrb.mxu2 %v10777_v53  ;;  %v10801_v53 = vld [vmem:[%s14219_s7 + $0xa0] sm:$0xff] }
 0x7b1   : > { %14882 = vst [vmem:[#allocation92_spill] sm:$0xff] %v10801_v53 }
 0x7b2   : > { %2921 = vmatpush.msrb.mxu2 %v10783_v59  ;;  %v10807_v59 = vld [vmem:[%s14219_s7 + $0x98] sm:$0xff] }
 0x7b3   : > { %14883 = vst [vmem:[#allocation93_spill] sm:$0xff] %v10807_v59 }
 0x7b4   : > { %2922 = vmatpush.msrb.mxu2 %v10789_v24  ;;  %v10813_v24 = vld [vmem:[%s14219_s7 + $0x90] sm:$0xff] }
 0x7b5   : > { %14884 = vst [vmem:[#allocation94_spill] sm:$0xff] %v10813_v24 }
 0x7b6   : > { %2923 = vmatpush.msrb.mxu2 %v10795_v35  ;;  %v10819_v35 = vld [vmem:[%s14219_s7 + $0x88] sm:$0xff] }
 0x7b7   : > { %14885 = vst [vmem:[#allocation95_spill] sm:$0xff] %v10819_v35 }
 0x7b8   : > { %2924 = vmatpush.msrb.mxu2 %v10801_v53  ;;  %v10825_v53 = vld [vmem:[%s14219_s7 + $0x80] sm:$0xff] }
 0x7b9   : > { %14886 = vst [vmem:[#allocation96_spill] sm:$0xff] %v10825_v53 }
 0x7ba   : > { %2925 = vmatpush.msrb.mxu2 %v10807_v59 }
 0x7bc   : > { %2926 = vmatpush.msrb.mxu2 %v10813_v24  ;;  %v10832_v24 = vld [vmem:[%s14629_s1 + $0x30] sm:$0xf] }
 0x7bd   : > { %14887 = vst [vmem:[#allocation27_spill] sm:$0xff] %v10832_v24 }
 0x7be   : > { %2927 = vmatpush.msrb.mxu2 %v10819_v35 }
 0x7c0   : > { %2928 = vmatpush.msrb.mxu2 %v10825_v53 }
 0x80c   : > { %v2756_v59 = vpop.f32.mrf.mxu0 }
 0x812   : > { %v2733_v29 = vpop.f32.mrf.mxu2 }
 0x813   : > { %v2762_v22 = vmax.f32 %v2733_v29, %v2756_v59  ;;  %v10845_v29 = vld [vmem:[%s14629_s1 + $0x10] sm:$0xff] }
 0x814   : > { %v2759_v35 = vpop.f32.mrf.mxu0  ;;  %14889 = vst [vmem:[#allocation97_spill] sm:$0xff] %v10845_v29 }
 0x815   : > { %7306 = vmatmul.msk.f32.vlgmr.msra.gmra.mxu1 %vm1200_vm7, %v2762_v22  ;;  %v2766_v18 = vrot.slane %v2762_v22, 1  ;;  %v2813_v48 = vrot.slane %v2762_v22, 2  ;;  %v2839_v2 = vrot.slane %v2762_v22, 3 }
 0x816   : > { %7324 = vmatpush.msk.msra.mxu1 %vm555_vm0, %v10832_v24 }
 0x818   : > { %3081 = vmatpush.msra.mxu1 %v10839_v51 }
 0x81a   : > { %v2736_v53 = vpop.f32.mrf.mxu2  ;;  %3082 = vmatpush.msra.mxu1 %v10845_v29 }
 0x81b   : > { %v2763_v59 = vmax.f32 %v2736_v53, %v2759_v35  ;;  %v2865_v35 = vrot.slane %v2762_v22, 4  ;;  %v10879_v22 = vld [vmem:[%s8500_s25 + $0x60] sm:$0xff]  ;;  %v14899_v53 = vld [vmem:[#allocation16_spill] sm:$0xff] }
 0x81c   : > { %3083 = vmatpush.msra.mxu1 %v9910_v50 }
 0x81d   : > { %v2767_v24 = vrot.slane %v2763_v59, 1  ;;  %v2814_v46 = vrot.slane %v2763_v59, 2  ;;  %v2840_v21 = vrot.slane %v2763_v59, 3  ;;  %v2866_v50 = vrot.slane %v2763_v59, 4  ;;  %v10950_v59 = vld [vmem:[%s14629_s1 + $0x60] sm:$0xff] }
 0x81e   : > { %14900 = vst [vmem:[#allocation16_spill] sm:$0xff] %v10950_v59 }
 0x81f   : > { %v2768_v16 = vsel %vm540_vm1, %v2766_v18, %v2767_v24  ;;  %v2815_v51 = vsel %vm687_vm3, %v2813_v48, %v2814_v46  ;;  %v2841_v15 = vsel %vm774_vm4, %v2839_v2, %v2840_v21  ;;  %v2867_v18 = vsel %vm555_vm0, %v2865_v35, %v2866_v50  ;;  %v10956_v50 = vld [vmem:[%s14629_s1 + $0x68] sm:$0xff]  ;;  %v10964_v35 = vld [vmem:[%s14629_s1 + $0x50] sm:$0xff] }
 0x820   : > { %7305 = vmatmul.msk.f32.vlgmr.msrb.gmra.mxu3 %vm1200_vm7, %v2768_v16  ;;  %7307 = vmatmul.msk.f32.vlgmr.msra.gmra.mxu2 %vm1200_vm7, %v2815_v51  ;;  %14901 = vst [vmem:[#allocation99_spill] sm:$0xff] %v10956_v50 }
 0x821   : > { %7308 = vmatmul.msk.f32.vlgmr.msra.gmra.mxu0 %vm1200_vm7, %v2841_v15  ;;  %7328 = vmatpush.msk.msra.mxu2 %vm555_vm0, %v9922_v62  ;;  %14902 = vst [vmem:[#allocation100_spill] sm:$0xff] %v10964_v35 }
 0x823   : > { %3107 = vmatpush.msra.mxu2 %v9929_v13  ;;  %v10865_v13 = vld [vmem:[%s14218_s6] ss:$0 sm:$0xff] }
 0x824   : > { %14890 = vst [vmem:[#allocation98_spill] sm:$0xff] %v10865_v13 }
 0x825   : > { %3108 = vmatpush.msra.mxu2 %v9935_v33 }
 0x827   : > { %3109 = vmatpush.msra.mxu2 %v9942_v4 }
 0x828   : > { %7309 = vmatmul.msk.f32.vlgmr.msra.gmra.mxu3 %vm1200_vm7, %v2867_v18  ;;  %v10970_v18 = vld [vmem:[%s14629_s1 + $0x58] sm:$0xff] }
 0x829   : > { %14903 = vst [vmem:[#allocation101_spill] sm:$0xff] %v10970_v18 }
 0x892   : > { %v2810_v16 = vpop.f32.mrf.mxu1 }
 0x89e   : > { %v2861_v48 = vpop.f32.mrf.mxu0 }
 0x8a3   : > { %v2788_v2 = vpop.f32.mrf.mxu3  ;;  %v2835_v46 = vpop.f32.mrf.mxu2 }
 0x8a4   : > { %v2811_v21 = vadd.f32 %v2810_v16, %v2788_v2  ;;  %v14904_v2 = vld [vmem:[#allocation17_spill] sm:$0xff] }
 0x8a6   : > { %v2838_v15 = vadd.f32 %v2835_v46, %v2811_v21  ;;  %v10978_v21 = vld [vmem:[%s14629_s1 + $0x40] sm:$0xff]  ;;  %v10984_v46 = vld [vmem:[%s14629_s1 + $0x48] sm:$0xff] }
 0x8a7   : > { %14905 = vst [vmem:[#allocation17_spill] sm:$0xff] %v10978_v21 }
 0x8a8   : > { %v2864_v51 = vadd.f32 %v2861_v48, %v2838_v15  ;;  %14906 = vst [vmem:[#allocation102_spill] sm:$0xff] %v10984_v46 }
 0x8ab   : > { %v2887_v62 = vpop.f32.mrf.mxu3 }
 0x8ac   : > { %v2890_v24 = vadd.f32 %v2887_v62, %v2864_v51  ;;  %v10994_v51 = vld [vmem:[%s14629_s1 + $0xb0] sm:$0xf]  ;;  %v11001_v62 = vld [vmem:[%s14629_s1 + $0xb8] sm:$0xf] }
 0x8ad   : > { %14907 = vst [vmem:[#allocation103_spill] sm:$0xff] %v10994_v51 }
 0x8ae   : > { %v2891_v33 = vadd.f32 %v10865_v13, %v2890_v24  ;;  %14908 = vst [vmem:[#allocation104_spill] sm:$0xff] %v11001_v62 }
 0x8b0   : > { %v2892_v4 = vmax.f32 %v2891_v33, 0.0  ;;  %v14909_v33 = vld [vmem:[#allocation18_spill] sm:$0xff] }
 0x8b2   : > { %2909 = vmatmul.f32.vlgmr.msrb.gmra.mxu1 %v2892_v4  ;;  %2929 = vmatmul.f32.vlgmr.msrb.gmra.mxu2 %v2892_v4  ;;  %v11010_v4 = vld [vmem:[%s14629_s1 + $0xa0] sm:$0xff] }
 0x8b3   : > { %7340 = vmatpush.msk.msrb.mxu1 %vm555_vm0, %v9950_v41  ;;  %7344 = vmatpush.msk.msrb.mxu2 %vm555_vm0, %v9957_v0  ;;  %v10891_v41 = vld [vmem:[%s8500_s25 + $0x68] sm:$0xff]  ;;  %v10902_v0 = vld [vmem:[%s8500_s25 + $0x70] sm:$0xff]  ;;  %14910 = vst [vmem:[#allocation18_spill] sm:$0xff] %v11010_v4 }
 0x8b4   : > { %v3194_v15 = vrot.slane %v10902_v0, 3  ;;  %v3000_v48 = vrot.slane %v10902_v0, 1 }
 0x8b5   : > { %3217 = vmatpush.msrb.mxu1 %v9964_v28  ;;  %3243 = vmatpush.msrb.mxu2 %v9970_v61  ;;  %v14891_v28 = vld [vmem:[#allocation13_spill] sm:$0xff] }
 0x8b6   : > { %v14892_v61 = vld [vmem:[#allocation29_spill] sm:$0xff] }
 0x8b7   : > { %3218 = vmatpush.msrb.mxu1 %v9976_v36  ;;  %3244 = vmatpush.msrb.mxu2 %v9982_v17  ;;  %v14893_v36 = vld [vmem:[#allocation14_spill] sm:$0xff] }
 0x8b9   : > { %3219 = vmatpush.msrb.mxu1 %v9988_v3  ;;  %3245 = vmatpush.msrb.mxu2 %v9994_v38 }
 0x8ba   : > { %7329 = vmatmul.msk.f32.vlgmr.msra.gmra.mxu2 %vm548_vm2, %v10879_v22  ;;  %7325 = vmatmul.msk.f32.vlgmr.msra.gmra.mxu1 %vm548_vm2, %v10879_v22 }
 0x8bb   : > { %3354 = vmatpush.msra.mxu1 %v10007_v1  ;;  %3394 = vmatpush.msra.mxu2 %v10013_v6  ;;  %v14894_v1 = vld [vmem:[#allocation15_spill] sm:$0xff]  ;;  %v10916_v6 = vld [vmem:[%s14220_s8] sm:$0xf] }
 0x8bc   : > { %14895 = vst [vmem:[#allocation13_spill] sm:$0xff] %v10916_v6 }
 0x8bd   : > { %3355 = vmatpush.msra.mxu1 %v10019_v60  ;;  %3395 = vmatpush.msra.mxu2 %v10025_v34  ;;  %v10923_v60 = vld [vmem:[%s14220_s8 + $0x4] sm:$0xf]  ;;  %v3191_v34 = vrot.slane %v10879_v22, 3 }
 0x8be   : > { %14896 = vst [vmem:[#allocation29_spill] sm:$0xff] %v10923_v60 }
 0x8bf   : > { %3356 = vmatpush.msra.mxu1 %v10031_v55  ;;  %v3192_v55 = vrot.slane %v10891_v41, 3 }
 0x8c1   : > { %3357 = vmatpush.msra.mxu1 %v10040_v23  ;;  %v10932_v23 = vld [vmem:[%s14629_s1 + $0x70] sm:$0xf]  ;;  %v3195_v24 = vsel %vm774_vm4, %v3192_v55, %v3194_v15 }
 0x8c2   : > { %7330 = vmatmul.msk.f32.gmra.mxu2 %vm548_vm2, %v10891_v41  ;;  %7326 = vmatmul.msk.f32.gmra.mxu1 %vm548_vm2, %v10891_v41  ;;  %14897 = vst [vmem:[#allocation14_spill] sm:$0xff] %v10932_v23 }
 0x8c3   : > { %3358 = vmatpush.msra.mxu1 %v10050_v20  ;;  %v10939_v20 = vld [vmem:[%s14629_s1 + $0x78] sm:$0xf] }
 0x8c4   : > { %14898 = vst [vmem:[#allocation15_spill] sm:$0xff] %v10939_v20 }
 0x8c5   : > { %3359 = vmatpush.msra.mxu1 %v10056_v27  ;;  %v2997_v27 = vrot.slane %v10879_v22, 1 }
 0x8c7   : > { %3360 = vmatpush.msra.mxu1 %v10062_v14  ;;  %v2998_v14 = vrot.slane %v10891_v41, 1 }
 0x8c9   : > { %3361 = vmatpush.msra.mxu1 %v10071_v58  ;;  %v3193_v58 = vsel %vm774_vm4, %v3191_v34, %v3192_v55  ;;  %v2999_v16 = vsel %vm540_vm1, %v2997_v27, %v2998_v14  ;;  %v11047_v34 = vld [vmem:[%s14629_s1 + $0x88] sm:$0xff]  ;;  %v3262_v27 = vrot.slane %v10879_v22, 4 }
 0x8ca   : > { %7331 = vmatmul.msk.f32.gmra.mxu2 %vm548_vm2, %v10902_v0  ;;  %7327 = vmatmul.msk.f32.gmra.mxu1 %vm548_vm2, %v10902_v0  ;;  %14916 = vst [vmem:[#allocation108_spill] sm:$0xff] %v11047_v34 }
 0x8cb   : > { %3362 = vmatpush.msra.mxu1 %v14891_v28  ;;  %v11016_v28 = vld [vmem:[%s14629_s1 + $0xa8] sm:$0xff] }
 0x8cc   : > { %14911 = vst [vmem:[#allocation105_spill] sm:$0xff] %v11016_v28 }
 0x8cd   : > { %3363 = vmatpush.msra.mxu1 %v14892_v61  ;;  %v3001_v61 = vsel %vm540_vm1, %v2998_v14, %v3000_v48  ;;  %v3263_v14 = vrot.slane %v10891_v41, 4 }
 0x8cf   : > { %3364 = vmatpush.msra.mxu1 %v14893_v36  ;;  %v11025_v36 = vld [vmem:[%s14629_s1 + $0x90] sm:$0xff] }
 0x8d0   : > { %14912 = vst [vmem:[#allocation106_spill] sm:$0xff] %v11025_v36 }
 0x8d1   : > { %3365 = vmatpush.msra.mxu1 %v14894_v1  ;;  %v11041_v1 = vld [vmem:[%s14629_s1 + $0x80] sm:$0xff] }
 0x8d2   : > { %7341 = vmatmul.msk.f32.vlgmr.msrb.gmra.mxu1 %vm548_vm2, %v3193_v58  ;;  %7345 = vmatmul.msk.f32.vlgmr.msrb.gmra.mxu2 %vm548_vm2, %v3193_v58 }
 0x8d3   : > { %3366 = vmatpush.msra.mxu1 %v14899_v53  ;;  %v11059_v53 = vld [vmem:[%s14629_s1 + $0x130] sm:$0xf] }
 0x8d4   : > { %14917 = vst [vmem:[#allocation109_spill] sm:$0xff] %v11059_v53 }
 0x8d5   : > { %3367 = vmatpush.msra.mxu1 %v14904_v2 }
 0x8d7   : > { %3368 = vmatpush.msra.mxu1 %v14909_v33  ;;  %v11075_v33 = vld [vmem:[%s14629_s1 + $0x120] sm:$0xff] }
 0x8d8   : > { %14919 = vst [vmem:[#allocation111_spill] sm:$0xff] %v11075_v33 }
 0x8da   : > { %7342 = vmatmul.msk.f32.gmra.mxu1 %vm548_vm2, %v3195_v24  ;;  %7346 = vmatmul.msk.f32.gmra.mxu2 %vm548_vm2, %v3195_v24  ;;  %v3264_v24 = vsel %vm555_vm0, %v3262_v27, %v3263_v14  ;;  %v11102_v27 = vld [vmem:[%s14629_s1 + $0x100] sm:$0xff] }
 0x8db   : > { %14923 = vst [vmem:[#allocation115_spill] sm:$0xff] %v11102_v27 }
 0x92f   : > { %v2910_v17 = vpop.f32.mrf.mxu1 }
 0x935   : > { %v2930_v3 = vpop.f32.mrf.mxu2 }
 0x936   : > { %v2933_v38 = vmax.f32 %v2910_v17, %v2930_v3  ;;  %v11031_v17 = vld [vmem:[%s14629_s1 + $0x98] sm:$0xff] }
 0x937   : > { %14913 = vst [vmem:[#allocation107_spill] sm:$0xff] %v11031_v17  ;;  %v11035_v3 = vld [vmem:[%s8500_s25 + $0x78] sm:$0xf] }
 0x938   : > { %2949 = vmatpush.msrb.mxu0 %v2933_v38  ;;  %2969 = vmatpush.msrb.mxu3 %v2933_v38  ;;  %v14914_v38 = vld [vmem:[#allocation19_spill] sm:$0xff]  ;;  %v3196_v55 = vrot.slane %v11035_v3, 3  ;;  %v3002_v58 = vrot.slane %v11035_v3, 1 }
 0x939   : > { %7310 = vmatmul.msk.f32.vlgmr.msrb.gmra.mxu0 %vm1434_vm8, %v10916_v6  ;;  %7311 = vmatmul.msk.f32.vlgmr.msrb.gmra.mxu3 %vm1434_vm8, %v10923_v60  ;;  %14915 = vst [vmem:[#allocation19_spill] sm:$0xff] %v11041_v1 }
 0x93a   : > { %7316 = vmatpush.msk.msra.mxu0 %vm555_vm0, %v10932_v23  ;;  %7320 = vmatpush.msk.msra.mxu3 %vm555_vm0, %v10939_v20  ;;  %v3197_v2 = vsel %vm774_vm4, %v3194_v15, %v3196_v55  ;;  %v3003_v15 = vsel %vm540_vm1, %v3000_v48, %v3002_v58  ;;  %v11096_v55 = vld [vmem:[%s14629_s1 + $0x118] sm:$0xff]  ;;  %v11108_v48 = vld [vmem:[%s14629_s1 + $0x108] sm:$0xff]  ;;  %v3265_v58 = vrot.slane %v10902_v0, 4 }
 0x93b   : > { %3369 = vmatpush.msra.mxu1 %v14914_v38  ;;  %7347 = vmatmul.msk.f32.gmra.mxu2 %vm548_vm2, %v3197_v2  ;;  %v11090_v38 = vld [vmem:[%s14629_s1 + $0x110] sm:$0xff]  ;;  %14922 = vst [vmem:[#allocation114_spill] sm:$0xff] %v11096_v55 }
 0x93c   : > { %3023 = vmatpush.msra.mxu0 %v10950_v59  ;;  %3049 = vmatpush.msra.mxu3 %v10956_v50  ;;  %14921 = vst [vmem:[#allocation113_spill] sm:$0xff] %v11090_v38 }
 0x93d   : > { %7343 = vmatmul.msk.f32.gmra.mxu1 %vm548_vm2, %v3197_v2  ;;  %14924 = vst [vmem:[#allocation116_spill] sm:$0xff] %v11108_v48  ;;  %v3120_v2 = vrot.slane %v10879_v22, 2 }
 0x93e   : > { %3024 = vmatpush.msra.mxu0 %v10964_v35  ;;  %3050 = vmatpush.msra.mxu3 %v10970_v18 }
 0x940   : > { %3025 = vmatpush.msra.mxu0 %v10978_v21  ;;  %3051 = vmatpush.msra.mxu3 %v10984_v46 }
 0x941   : > { %7317 = vmatmul.msk.f32.vlgmr.msra.gmra.mxu0 %vm548_vm2, %v2999_v16  ;;  %7321 = vmatmul.msk.f32.vlgmr.msra.gmra.mxu3 %vm548_vm2, %v2999_v16  ;;  %v11066_v16 = vld [vmem:[%s14629_s1 + $0x138] sm:$0xf] }
 0x942   : > { %7332 = vmatpush.msk.msrb.mxu0 %vm555_vm0, %v10994_v51  ;;  %7336 = vmatpush.msk.msrb.mxu3 %vm555_vm0, %v11001_v62  ;;  %14918 = vst [vmem:[#allocation110_spill] sm:$0xff] %v11066_v16 }
 0x944   : > { %3146 = vmatpush.msrb.mxu0 %v11010_v4  ;;  %3172 = vmatpush.msrb.mxu3 %v11016_v28 }
 0x946   : > { %3147 = vmatpush.msrb.mxu0 %v11025_v36  ;;  %3173 = vmatpush.msrb.mxu3 %v11031_v17 }
 0x948   : > { %3148 = vmatpush.msrb.mxu0 %v11041_v1  ;;  %3174 = vmatpush.msrb.mxu3 %v11047_v34 }
 0x949   : > { %7318 = vmatmul.msk.f32.gmra.mxu0 %vm548_vm2, %v3001_v61  ;;  %7322 = vmatmul.msk.f32.gmra.mxu3 %vm548_vm2, %v3001_v61  ;;  %v11081_v61 = vld [vmem:[%s14629_s1 + $0x128] sm:$0xff] }
 0x94a   : > { %7348 = vmatpush.msk.msra.mxu0 %vm555_vm0, %v11059_v53  ;;  %7352 = vmatpush.msk.msra.mxu3 %vm555_vm0, %v11066_v16  ;;  %14920 = vst [vmem:[#allocation112_spill] sm:$0xff] %v11081_v61  ;;  %v14928_v16 = vld [vmem:[#allocation23_spill] sm:$0xff] }
 0x94c   : > { %3288 = vmatpush.msra.mxu0 %v11075_v33  ;;  %3314 = vmatpush.msra.mxu3 %v11081_v61  ;;  %v14925_v61 = vld [vmem:[#allocation20_spill] sm:$0xff]  ;;  %v14926_v33 = vld [vmem:[#allocation21_spill] sm:$0xff] }
 0x94e   : > { %3289 = vmatpush.msra.mxu0 %v11090_v38  ;;  %3315 = vmatpush.msra.mxu3 %v11096_v55  ;;  %v3121_v55 = vrot.slane %v10891_v41, 2  ;;  %v3266_v38 = vsel %vm555_vm0, %v3263_v14, %v3265_v58  ;;  %v14929_v41 = vld [vmem:[#allocation24_spill] sm:$0xff]  ;;  %v14930_v14 = vld [vmem:[#allocation25_spill] sm:$0xff] }
 0x950   : > { %3290 = vmatpush.msra.mxu0 %v11102_v27  ;;  %3316 = vmatpush.msra.mxu3 %v11108_v48  ;;  %v3122_v27 = vsel %vm687_vm3, %v3120_v2, %v3121_v55  ;;  %v3123_v48 = vrot.slane %v10902_v0, 2  ;;  %v3125_v0 = vrot.slane %v11035_v3, 2  ;;  %v14933_v2 = vld [vmem:[#allocation30_spill] sm:$0xff] }
 0x951   : > { %7319 = vmatmul.msk.f32.gmra.mxu0 %vm548_vm2, %v3003_v15  ;;  %7323 = vmatmul.msk.f32.gmra.mxu3 %vm548_vm2, %v3003_v15  ;;  %v14927_v15 = vld [vmem:[#allocation22_spill] sm:$0xff] }
 0x952   : > { %v3124_v22 = vsel %vm687_vm3, %v3121_v55, %v3123_v48  ;;  %v14935_v55 = vld [vmem:[#allocation47_spill] sm:$0xff] }
 0x959   : > { %7333 = vmatmul.msk.f32.vlgmr.msrb.gmra.mxu0 %vm548_vm2, %v3122_v27  ;;  %7337 = vmatmul.msk.f32.vlgmr.msrb.gmra.mxu3 %vm548_vm2, %v3122_v27  ;;  %v14931_v27 = vld [vmem:[#allocation26_spill] sm:$0xff] }
 0x95a   : > { %3406 = vmatpush.msrb.mxu0 %v14925_v61  ;;  %3446 = vmatpush.msrb.mxu3 %v14926_v33  ;;  %v14932_v61 = vld [vmem:[#allocation28_spill] sm:$0xff]  ;;  %v3126_v33 = vsel %vm687_vm3, %v3123_v48, %v3125_v0  ;;  %v14941_v0 = vld [vmem:[#allocation70_spill] sm:$0xff] }
 0x95b   : > { %v14939_v48 = vld [vmem:[#allocation68_spill] sm:$0xff] }
 0x95c   : > { %3407 = vmatpush.msrb.mxu0 %v14927_v15  ;;  %3447 = vmatpush.msrb.mxu3 %v14928_v16  ;;  %v14934_v16 = vld [vmem:[#allocation44_spill] sm:$0xff]  ;;  %v14936_v15 = vld [vmem:[#allocation50_spill] sm:$0xff] }
 0x95e   : > { %3408 = vmatpush.msrb.mxu0 %v14929_v41  ;;  %v14938_v41 = vld [vmem:[#allocation56_spill] sm:$0xff] }
 0x960   : > { %3409 = vmatpush.msrb.mxu0 %v14930_v14  ;;  %v14940_v14 = vld [vmem:[#allocation57_spill] sm:$0xff] }
 0x961   : > { %7334 = vmatmul.msk.f32.gmra.mxu0 %vm548_vm2, %v3124_v22  ;;  %7338 = vmatmul.msk.f32.gmra.mxu3 %vm548_vm2, %v3124_v22  ;;  %v14937_v22 = vld [vmem:[#allocation53_spill] sm:$0xff] }
 0x962   : > { %3410 = vmatpush.msrb.mxu0 %v14931_v27  ;;  %v14942_v27 = vld [vmem:[#allocation58_spill] sm:$0xff] }
 0x964   : > { %3411 = vmatpush.msrb.mxu0 %v14932_v61  ;;  %v14943_v61 = vld [vmem:[#allocation72_spill] sm:$0xff] }
 0x966   : > { %3412 = vmatpush.msrb.mxu0 %v14933_v2  ;;  %v14945_v2 = vld [vmem:[#allocation74_spill] sm:$0xff] }
 0x968   : > { %3413 = vmatpush.msrb.mxu0 %v14934_v16  ;;  %v14946_v16 = vld [vmem:[#allocation60_spill] sm:$0xff] }
 0x969   : > { %7335 = vmatmul.msk.f32.gmra.mxu0 %vm548_vm2, %v3126_v33  ;;  %7339 = vmatmul.msk.f32.gmra.mxu3 %vm548_vm2, %v3126_v33  ;;  %v14944_v33 = vld [vmem:[#allocation59_spill] sm:$0xff] }
 0x96a   : > { %3414 = vmatpush.msrb.mxu0 %v14935_v55  ;;  %v14947_v55 = vld [vmem:[#allocation76_spill] sm:$0xff] }
 0x96c   : > { %3415 = vmatpush.msrb.mxu0 %v14936_v15  ;;  %v14948_v15 = vld [vmem:[#allocation78_spill] sm:$0xff] }
 0x96e   : > { %3416 = vmatpush.msrb.mxu0 %v14937_v22  ;;  %v14949_v22 = vld [vmem:[#allocation80_spill] sm:$0xff] }
 0x970   : > { %3417 = vmatpush.msrb.mxu0 %v14938_v41  ;;  %v14950_v41 = vld [vmem:[#allocation82_spill] sm:$0xff] }
 0x971   : > { %7349 = vmatmul.msk.f32.vlgmr.msra.gmra.mxu0 %vm548_vm2, %v3264_v24  ;;  %7353 = vmatmul.msk.f32.vlgmr.msra.gmra.mxu3 %vm548_vm2, %v3264_v24  ;;  %v3267_v24 = vrot.slane %v11035_v3, 4  ;;  %v14955_v3 = vld [vmem:[#allocation35_spill] sm:$0xff] }
 0x972   : > { %3418 = vmatpush.msrb.mxu0 %v14939_v48  ;;  %3523 = vmatpush.msra.mxu3 %v14940_v14  ;;  %v14951_v14 = vld [vmem:[#allocation84_spill] sm:$0xff] }
 0x973   : > { %v3268_v48 = vsel %vm555_vm0, %v3265_v58, %v3267_v24  ;;  %v14959_v58 = vld [vmem:[#allocation41_spill] sm:$0xff] }
 0x974   : > { %3419 = vmatpush.msrb.mxu0 %v14941_v0  ;;  %3524 = vmatpush.msra.mxu3 %v14942_v27  ;;  %v14952_v0 = vld [vmem:[#allocation32_spill] sm:$0xff]  ;;  %v14953_v27 = vld [vmem:[#allocation33_spill] sm:$0xff] }
 0x976   : > { %3420 = vmatpush.msrb.mxu0 %v14943_v61  ;;  %3525 = vmatpush.msra.mxu3 %v14944_v33  ;;  %v14954_v61 = vld [vmem:[#allocation34_spill] sm:$0xff]  ;;  %v14957_v33 = vld [vmem:[#allocation39_spill] sm:$0xff] }
 0x978   : > { %3421 = vmatpush.msrb.mxu0 %v14945_v2  ;;  %3526 = vmatpush.msra.mxu3 %v14946_v16  ;;  %v14958_v2 = vld [vmem:[#allocation40_spill] sm:$0xff] }
 0x979   : > { %7350 = vmatmul.msk.f32.gmra.mxu0 %vm548_vm2, %v3266_v38  ;;  %7354 = vmatmul.msk.f32.gmra.mxu3 %vm548_vm2, %v3266_v38  ;;  %v14956_v38 = vld [vmem:[#allocation38_spill] sm:$0xff]  ;;  %v14960_v16 = vld [vmem:[#allocation36_spill] sm:$0xff] }
 0x97a   : > { %3545 = vmatpush.msra.mxu0 %v14947_v55  ;;  %3527 = vmatpush.msra.mxu3 %v14948_v15 }
 0x97c   : > { %3546 = vmatpush.msra.mxu0 %v14949_v22  ;;  %3528 = vmatpush.msra.mxu3 %v14950_v41  ;;  %v14962_v41 = vld [vmem:[#allocation42_spill] sm:$0xff] }
 0x97e   : > { %3547 = vmatpush.msra.mxu0 %v14951_v14  ;;  %3529 = vmatpush.msra.mxu3 %v14952_v0  ;;  %v2231_v14 = vrot.slane %v14962_v41, 1 }
 0x980   : > { %3548 = vmatpush.msra.mxu0 %v14953_v27  ;;  %3530 = vmatpush.msra.mxu3 %v14954_v61 }
 0x981   : > { %7351 = vmatmul.msk.f32.gmra.mxu0 %vm548_vm2, %v3268_v48  ;;  %7355 = vmatmul.msk.f32.gmra.mxu3 %vm548_vm2, %v3268_v48 }
 0x982   : > { %3549 = vmatpush.msra.mxu0 %v14955_v3  ;;  %3531 = vmatpush.msra.mxu3 %v14956_v38  ;;  %v3085_v3 = vpop.f32.mrf.mxu1 }
 0x984   : > { %3550 = vmatpush.msra.mxu0 %v14957_v33 }
 0x986   : > { %3551 = vmatpush.msra.mxu0 %v14958_v2  ;;  %v3111_v2 = vpop.f32.mrf.mxu2 }
 0x988   : > { %3552 = vmatpush.msra.mxu0 %v14959_v58 }
 0x98a   : > { %3553 = vmatpush.msra.mxu0 %v14960_v16  ;;  %v3088_v58 = vpop.f32.mrf.mxu1 }
 0x98e   : > { %v3114_v34 = vpop.f32.mrf.mxu2 }
 0x996   : > { %v3117_v17 = vpop.f32.mrf.mxu2 }
 0x9b6   : > { %v2951_v24 = vpop.f32.mrf.mxu0 }
 0x9bc   : > { %v2971_v55 = vpop.f32.mrf.mxu3 }
 0x9bd   : > { %v11172_v15 = vmax.f32 %v2951_v24, %v2971_v55  ;;  %v3091_v24 = vpop.f32.mrf.mxu1 }
 0x9be   : > { %v3027_v22 = vpop.f32.mrf.mxu0 }
 0x9bf   : > { %14961 = vst [vmem:[#allocation20_spill] sm:$0xff] %v11172_v15  ;;  %v2976_v48 = vrot.slane %v11172_v15, 1 }
 0x9c1   : > { %v7684_v0 = vpack.i.bf16 %v2976_v48, %v2231_v14  ;;  %v3086_v14 = vadd.f32 %v3085_v3, %v3027_v22 }
 0x9c3   : > { %7685 = vrot.lane.b32.xlu0 %v7684_v0, %s8333_s29  ;;  %v3247_v0 = vpop.f32.mrf.mxu2 }
 0x9c4   : > { %v3053_v27 = vpop.f32.mrf.mxu3 }
 0x9c5   : > { %v3221_v36 = vpop.f32.mrf.mxu1  ;;  %v3112_v4 = vadd.f32 %v3111_v2, %v3053_v27 }
 0x9c6   : > { %v3030_v61 = vpop.f32.mrf.mxu0 }
 0x9c7   : > { %v3089_v46 = vadd.f32 %v3088_v58, %v3030_v61 }
 0x9cc   : > { %v3056_v38 = vpop.f32.mrf.mxu3 }
 0x9cd   : > { %v3224_v35 = vpop.f32.mrf.mxu1  ;;  %v3115_v6 = vadd.f32 %v3114_v34, %v3056_v38  ;;  %v14971_v34 = vld [vmem:[#allocation55_spill] sm:$0xff] }
 0x9ce   : > { %v3033_v33 = vpop.f32.mrf.mxu0 }
 0x9d4   : > { %v3059_v16 = vpop.f32.mrf.mxu3 }
 0x9d6   : > { %v3150_v53 = vpop.f32.mrf.mxu0 }
 0x9d7   : > { %v3185_v48 = vadd.f32 %v3150_v53, %v3086_v14  ;;  %v3250_v53 = vpop.f32.mrf.mxu2 }
 0x9d9   : > { %v3256_v62 = vadd.f32 %v3221_v36, %v3185_v48  ;;  %v3092_v36 = vadd.f32 %v3091_v24, %v3033_v33 }
 0x9dc   : > { %v3176_v55 = vpop.f32.mrf.mxu3 }
 0x9dd   : > { %v3186_v21 = vadd.f32 %v3176_v55, %v3112_v4 }
 0x9de   : > { %v3153_v1 = vpop.f32.mrf.mxu0 }
 0x9df   : > { %v3187_v50 = vadd.f32 %v3153_v1, %v3089_v46  ;;  %v3257_v20 = vadd.f32 %v3247_v0, %v3186_v21  ;;  %v3227_v46 = vpop.f32.mrf.mxu1  ;;  %v14966_v1 = vld [vmem:[#allocation48_spill] sm:$0xff] }
 0x9e1   : > { %v3258_v13 = vadd.f32 %v3224_v35, %v3187_v50  ;;  %v3253_v35 = vpop.f32.mrf.mxu2 }
 0x9e4   : > { %v3179_v41 = vpop.f32.mrf.mxu3 }
 0x9e5   : > { %v3188_v27 = vadd.f32 %v3179_v41, %v3115_v6 }
 0x9e6   : > { %v3156_v15 = vpop.f32.mrf.mxu0 }
 0x9ec   : > { %v3182_v28 = vpop.f32.mrf.mxu3 }
 0x9ee   : > { %v3292_v51 = vpop.f32.mrf.mxu0 }
 0x9ef   : > { %v3327_v18 = vadd.f32 %v3292_v51, %v3256_v62 }
 0x9f1   : > { %v3333_v59 = vadd.f32 %v3327_v18, %v14736_v8  ;;  %v3189_v18 = vadd.f32 %v3156_v15, %v3092_v36  ;;  %v14972_v15 = vld [vmem:[#allocation61_spill] sm:$0xff] }
 0x9f3   : > { %v3339_v23 = vmax.f32 %v3333_v59, 0.0 }
 0x9f4   : > { %v3318_v60 = vpop.f32.mrf.mxu3 }
 0x9f5   : > { %v3328_v29 = vadd.f32 %v3318_v60, %v3257_v20  ;;  %3370 = vmatmul.f32.vlgmr.msra.gmra.mxu1 %v3339_v23  ;;  %3422 = vmatmul.f32.vlgmr.msrb.gmra.mxu0 %v3339_v23  ;;  %v3259_v60 = vadd.f32 %v3250_v53, %v3188_v27 }
 0x9f6   : > { %v3295_v22 = vpop.f32.mrf.mxu0  ;;  %3638 = vmatpush.msrb.mxu0 %v10448_v42 }
 0x9f7   : > { %v3334_v51 = vadd.f32 %v3328_v29, %v14737_v57  ;;  %v3329_v62 = vadd.f32 %v3295_v22, %v3258_v13  ;;  %v3118_v29 = vadd.f32 %v3117_v17, %v3059_v16  ;;  %v14965_v17 = vld [vmem:[#allocation46_spill] sm:$0xff] }
 0x9f8   : > { %3639 = vmatpush.msrb.mxu0 %v10455_v56  ;;  %v3260_v56 = vadd.f32 %v3227_v46, %v3189_v18  ;;  %v11229_v46 = vld [vmem:[%s14217_s5 + $0x110] sm:$0xff] }
 0x9f9   : > { %v3340_v21 = vmax.f32 %v3334_v51, 0.0  ;;  %v3335_v59 = vadd.f32 %v3329_v62, %v14736_v8 }
 0x9fa   : > { %3640 = vmatpush.msrb.mxu0 %v10462_v44  ;;  %v3190_v44 = vadd.f32 %v3182_v28, %v3118_v29  ;;  %v14986_v29 = vld [vmem:[#allocation83_spill] sm:$0xff] }
 0x9fb   : > { %7356 = vmatmul.msk.f32.vlgmr.msra.gmra.mxu2 %vm974_vm5, %v3340_v21  ;;  %7359 = vmatmul.msk.f32.vlgmr.msrb.gmra.mxu3 %vm974_vm5, %v3340_v21  ;;  %v3341_v42 = vmax.f32 %v3335_v59, 0.0  ;;  %v11222_v59 = vld [vmem:[%s14217_s5 + $0x118] sm:$0xff] }
 0x9fc   : > { %v3321_v23 = vpop.f32.mrf.mxu3  ;;  %3622 = vmatpush.msrb.mxu3 %v10470_v63  ;;  %3641 = vmatpush.msrb.mxu0 %v10476_v25  ;;  %v3261_v4 = vadd.f32 %v3253_v35, %v3190_v44  ;;  %v14990_v44 = vld [vmem:[#allocation88_spill] sm:$0xff]  ;;  %v14993_v35 = vld [vmem:[#allocation91_spill] sm:$0xff] }
 0x9fd   : > { %v3330_v13 = vadd.f32 %v3321_v23, %v3259_v60  ;;  %3373 = vmatmul.f32.gmra.mxu1 %v3341_v42  ;;  %3425 = vmatmul.f32.gmra.mxu0 %v3341_v42  ;;  %v14982_v60 = vld [vmem:[#allocation75_spill] sm:$0xff]  ;;  %v14985_v23 = vld [vmem:[#allocation81_spill] sm:$0xff] }
 0x9fe   : > { %v3298_v6 = vpop.f32.mrf.mxu0  ;;  %3623 = vmatpush.msrb.mxu3 %v10482_v31  ;;  %3642 = vmatpush.msrb.mxu0 %v10488_v47  ;;  %v14984_v42 = vld [vmem:[#allocation79_spill] sm:$0xff] }
 0x9ff   : > { %v3336_v20 = vadd.f32 %v3330_v13, %v14737_v57  ;;  %v3331_v50 = vadd.f32 %v3298_v6, %v3260_v56  ;;  %v14987_v56 = vld [vmem:[#allocation85_spill] sm:$0xff]  ;;  %v14988_v13 = vld [vmem:[#allocation86_spill] sm:$0xff]  ;;  %v14989_v6 = vld [vmem:[#allocation87_spill] sm:$0xff] }
 0xa00   : > { %3624 = vmatpush.msrb.mxu3 %v10495_v26  ;;  %3643 = vmatpush.msrb.mxu0 %v10501_v5 }
 0xa01   : > { %v3342_v63 = vmax.f32 %v3336_v20, 0.0  ;;  %v3337_v25 = vadd.f32 %v3331_v50, %v14736_v8  ;;  %v14991_v20 = vld [vmem:[#allocation89_spill] sm:$0xff]  ;;  %v14992_v50 = vld [vmem:[#allocation90_spill] sm:$0xff] }
 0xa02   : > { %3625 = vmatpush.msrb.mxu3 %v10508_v7  ;;  %3644 = vmatpush.msrb.mxu0 %v10514_v11  ;;  %v14963_v7 = vld [vmem:[#allocation43_spill] sm:$0xff]  ;;  %v14964_v11 = vld [vmem:[#allocation45_spill] sm:$0xff] }
 0xa03   : > { %7357 = vmatmul.msk.f32.gmra.mxu2 %vm974_vm5, %v3342_v63  ;;  %7360 = vmatmul.msk.f32.gmra.mxu3 %vm974_vm5, %v3342_v63  ;;  %v3343_v31 = vmax.f32 %v3337_v25, 0.0  ;;  %v14994_v63 = vld [vmem:[#allocation92_spill] sm:$0xff]  ;;  %v14995_v25 = vld [vmem:[#allocation93_spill] sm:$0xff] }
 0xa04   : > { %v3324_v47 = vpop.f32.mrf.mxu3  ;;  %3626 = vmatpush.msrb.mxu3 %v10522_v39  ;;  %3645 = vmatpush.msrb.mxu0 %v10528_v9  ;;  %v14967_v39 = vld [vmem:[#allocation49_spill] sm:$0xff]  ;;  %v14968_v9 = vld [vmem:[#allocation51_spill] sm:$0xff] }
 0xa05   : > { %v3332_v26 = vadd.f32 %v3324_v47, %v3261_v4  ;;  %3376 = vmatmul.f32.gmra.mxu1 %v3343_v31  ;;  %3428 = vmatmul.f32.gmra.mxu0 %v3343_v31  ;;  %v14996_v4 = vld [vmem:[#allocation94_spill] sm:$0xff]  ;;  %v14997_v31 = vld [vmem:[#allocation95_spill] sm:$0xff]  ;;  %v14998_v47 = vld [vmem:[#allocation96_spill] sm:$0xff] }
 0xa06   : > { %3627 = vmatpush.msrb.mxu3 %v10534_v40  ;;  %3646 = vmatpush.msrb.mxu0 %v10540_v37  ;;  %v14969_v40 = vld [vmem:[#allocation52_spill] sm:$0xff]  ;;  %v14970_v37 = vld [vmem:[#allocation54_spill] sm:$0xff] }
 0xa07   : > { %v3338_v5 = vadd.f32 %v3332_v26, %v14737_v57 }
 0xa08   : > { %3628 = vmatpush.msrb.mxu3 %v14963_v7  ;;  %3647 = vmatpush.msrb.mxu0 %v14964_v11  ;;  %v14999_v11 = vld [vmem:[#allocation27_spill] sm:$0xff] }
 0xa09   : > { %v3344_v28 = vmax.f32 %v3338_v5, 0.0 }
 0xa0a   : > { %3629 = vmatpush.msrb.mxu3 %v14965_v17  ;;  %3648 = vmatpush.msrb.mxu0 %v14966_v1  ;;  %v15000_v17 = vld [vmem:[#allocation12_spill] sm:$0xff] }
 0xa0b   : > { %7358 = vmatmul.msk.f32.gmra.mxu2 %vm974_vm5, %v3344_v28  ;;  %7361 = vmatmul.msk.f32.gmra.mxu3 %vm974_vm5, %v3344_v28 }
 0xa0c   : > { %3630 = vmatpush.msrb.mxu3 %v14967_v39  ;;  %3649 = vmatpush.msrb.mxu0 %v14968_v9  ;;  %v15001_v39 = vld [vmem:[#allocation97_spill] sm:$0xff] }
 0xa0e   : > { %3650 = vmatpush.msrb.mxu0 %v14969_v40 }
 0xa10   : > { %3651 = vmatpush.msrb.mxu0 %v14970_v37 }
 0xa12   : > { %3652 = vmatpush.msrb.mxu0 %v14971_v34  ;;  %v11274_v34 = vld [vmem:[%s14629_s1] sm:$0xff] }
 0xa14   : > { %3653 = vmatpush.msrb.mxu0 %v14972_v15 }
 0xa72   : > { %v3371_v41 = vpop.f32.mrf.mxu1  ;;  %v3423_v61 = vpop.f32.mrf.mxu0 }
 0xa7a   : > { %v3374_v33 = vpop.f32.mrf.mxu1  ;;  %v3426_v2 = vpop.f32.mrf.mxu0 }
 0xa7e   : > { %v3397_v3 = vpop.f32.mrf.mxu2  ;;  %v3449_v38 = vpop.f32.mrf.mxu3 }
 0xa7f   : > { %v3398_v27 = vadd.f32 %v3397_v3, %v3371_v41  ;;  %v3450_v51 = vadd.f32 %v3449_v38, %v3423_v61 }
 0xa81   : > { %v3458_v21 = vmax.f32 %v3398_v27, %v3450_v51 }
 0xa82   : > { %v3377_v24 = vpop.f32.mrf.mxu1  ;;  %v3429_v55 = vpop.f32.mrf.mxu0 }
 0xa86   : > { %v3400_v58 = vpop.f32.mrf.mxu2  ;;  %v3452_v16 = vpop.f32.mrf.mxu3 }
 0xa87   : > { %v3401_v0 = vadd.f32 %v3400_v58, %v3374_v33  ;;  %v3453_v53 = vadd.f32 %v3452_v16, %v3426_v2  ;;  %v11286_v58 = vld [vmem:[%s14629_s1 + $0x38] sm:$0xf] }
 0xa89   : > { %v3459_v18 = vmax.f32 %v3401_v0, %v3453_v53  ;;  %v11306_v0 = vld [vmem:[%s14629_s1 + $0x8] sm:$0xff] }
 0xa8e   : > { %v3403_v14 = vpop.f32.mrf.mxu2  ;;  %v3455_v48 = vpop.f32.mrf.mxu3 }
 0xa8f   : > { %v3404_v22 = vadd.f32 %v3403_v14, %v3377_v24  ;;  %v3456_v36 = vadd.f32 %v3455_v48, %v3429_v55  ;;  %v11293_v24 = vld [vmem:[%s14629_s1 + $0x28] sm:$0xff]  ;;  %v11299_v14 = vld [vmem:[%s14629_s1 + $0x18] sm:$0xff] }
 0xa91   : > { %v3460_v62 = vmax.f32 %v3404_v22, %v3456_v36 }
 0xa93   : > { %3474 = vmatpush.msrb.mxu2 %v3460_v62  ;;  %3497 = vmatpush.msrb.mxu1 %v3460_v62 }
 0xa95   : > { %3475 = vmatpush.msrb.mxu2 %v3459_v18  ;;  %3498 = vmatpush.msrb.mxu1 %v3459_v18 }
 0xa97   : > { %3476 = vmatpush.msrb.mxu2 %v3458_v21  ;;  %3499 = vmatpush.msrb.mxu1 %v3458_v21 }
 0xa98   : > { %7362 = vmatmul.msk.f32.vlgmr.msrb.gmra.mxu2 %vm1112_vm6, %v10609_v43  ;;  %7364 = vmatmul.msk.f32.vlgmr.msrb.gmra.mxu1 %vm1112_vm6, %v10616_v45  ;;  %v14973_v43 = vld [vmem:[#allocation62_spill] sm:$0xff]  ;;  %v14974_v45 = vld [vmem:[#allocation63_spill] sm:$0xff] }
 0xa99   : > { %3570 = vmatpush.msra.mxu2 %v10623_v10  ;;  %3596 = vmatpush.msra.mxu1 %v11222_v59  ;;  %v14975_v10 = vld [vmem:[#allocation64_spill] sm:$0xff] }
 0xa9b   : > { %3571 = vmatpush.msra.mxu2 %v10630_v12  ;;  %3597 = vmatpush.msra.mxu1 %v11229_v46  ;;  %v14976_v12 = vld [vmem:[#allocation65_spill] sm:$0xff] }
 0xa9d   : > { %3572 = vmatpush.msra.mxu2 %v10637_v32  ;;  %3598 = vmatpush.msra.mxu1 %v10643_v52  ;;  %v14977_v32 = vld [vmem:[#allocation66_spill] sm:$0xff]  ;;  %v14978_v52 = vld [vmem:[#allocation67_spill] sm:$0xff] }
 0xa9f   : > { %3573 = vmatpush.msra.mxu2 %v10649_v30  ;;  %3599 = vmatpush.msra.mxu1 %v10655_v49  ;;  %v14979_v30 = vld [vmem:[#allocation69_spill] sm:$0xff]  ;;  %v14980_v49 = vld [vmem:[#allocation71_spill] sm:$0xff] }
 0xaa0   : > { %7363 = vmatmul.msk.f32.gmra.mxu2 %vm1112_vm6, %v10661_v54  ;;  %7365 = vmatmul.msk.f32.gmra.mxu1 %vm1112_vm6, %v10668_v19  ;;  %v14981_v54 = vld [vmem:[#allocation73_spill] sm:$0xff] }
 0xaa1   : > { %3574 = vmatpush.msra.mxu2 %v14973_v43  ;;  %3600 = vmatpush.msra.mxu1 %v14974_v45  ;;  %v14983_v19 = vld [vmem:[#allocation77_spill] sm:$0xff]  ;;  %v15002_v45 = vld [vmem:[#allocation98_spill] sm:$0xff] }
 0xaa3   : > { %3575 = vmatpush.msra.mxu2 %v14975_v10  ;;  %3601 = vmatpush.msra.mxu1 %v14976_v12 }
 0xaa5   : > { %3576 = vmatpush.msra.mxu2 %v14977_v32  ;;  %3602 = vmatpush.msra.mxu1 %v14978_v52  ;;  %v11314_v32 = vld [vmem:[%s14629_s1 + $0xf0] sm:$0xf]  ;;  %v11321_v52 = vld [vmem:[%s14629_s1 + $0xf8] sm:$0xf] }
 0xaa7   : > { %3577 = vmatpush.msra.mxu2 %v14979_v30  ;;  %3603 = vmatpush.msra.mxu1 %v14980_v49  ;;  %v11328_v30 = vld [vmem:[%s14629_s1 + $0xe0] sm:$0xff]  ;;  %v11334_v49 = vld [vmem:[%s14629_s1 + $0xe8] sm:$0xff] }
 0xaa9   : > { %3578 = vmatpush.msra.mxu2 %v14981_v54  ;;  %3604 = vmatpush.msra.mxu1 %v14982_v60  ;;  %v11340_v54 = vld [vmem:[%s14629_s1 + $0xd0] sm:$0xff]  ;;  %v11346_v60 = vld [vmem:[%s14629_s1 + $0xd8] sm:$0xff] }
 0xaab   : > { %3658 = vmatpush.msrb.mxu2 %v14983_v19  ;;  %v11352_v19 = vld [vmem:[%s14629_s1 + $0xc0] sm:$0xff] }
 0xaad   : > { %3659 = vmatpush.msrb.mxu2 %v14984_v42  ;;  %v11358_v42 = vld [vmem:[%s14629_s1 + $0xc8] sm:$0xff] }
 0xaaf   : > { %3660 = vmatpush.msrb.mxu2 %v14985_v23  ;;  %v11362_v23 = vld [vmem:[%s8500_s25 + $0x80] sm:$0xff] }
 0xab1   : > { %3661 = vmatpush.msrb.mxu2 %v14986_v29  ;;  %v11371_v29 = vld [vmem:[%s14215_s3 + $0x78] sm:$0xff] }
 0xab3   : > { %3662 = vmatpush.msrb.mxu2 %v14987_v56  ;;  %v11377_v56 = vld [vmem:[%s14215_s3 + $0x88] sm:$0xff] }
 0xab5   : > { %3663 = vmatpush.msrb.mxu2 %v14988_v13  ;;  %v11383_v13 = vld [vmem:[%s14215_s3 + $0x70] sm:$0xff] }
 0xab7   : > { %3664 = vmatpush.msrb.mxu2 %v14989_v6  ;;  %v11389_v6 = vld [vmem:[%s14215_s3 + $0x80] sm:$0xff] }
 0xab9   : > { %3665 = vmatpush.msrb.mxu2 %v14990_v44  ;;  %v11395_v44 = vld [vmem:[%s14215_s3 + $0x68] sm:$0xff] }
 0xabb   : > { %3666 = vmatpush.msrb.mxu2 %v14991_v20  ;;  %v11399_v20 = vld [vmem:[%s8500_s25 + $0x88] sm:$0xff] }
 0xabd   : > { %3667 = vmatpush.msrb.mxu2 %v14992_v50  ;;  %v11404_v50 = vld [vmem:[%s14215_s3 + $0x60] sm:$0xff] }
 0xabf   : > { %3668 = vmatpush.msrb.mxu2 %v14993_v35  ;;  %v11414_v35 = vld [vmem:[%s14215_s3 + $0x58] sm:$0xff] }
 0xac1   : > { %3669 = vmatpush.msrb.mxu2 %v14994_v63  ;;  %v11420_v63 = vld [vmem:[%s14215_s3 + $0x50] sm:$0xff] }
 0xac3   : > { %3670 = vmatpush.msrb.mxu2 %v14995_v25  ;;  %v11426_v25 = vld [vmem:[%s14215_s3 + $0x48] sm:$0xff] }
 0xac5   : > { %3671 = vmatpush.msrb.mxu2 %v14996_v4  ;;  %v11430_v4 = vld [vmem:[%s8500_s25 + $0x90] sm:$0xff] }
 0xac7   : > { %3672 = vmatpush.msrb.mxu2 %v14997_v31  ;;  %v11435_v31 = vld [vmem:[%s14215_s3 + $0x40] sm:$0xff] }
 0xac9   : > { %3673 = vmatpush.msrb.mxu2 %v14998_v47  ;;  %v11445_v47 = vld [vmem:[%s14215_s3 + $0x38] sm:$0xff] }
 0xaca   : > { %15003 = vst [vmem:[#allocation21_spill] sm:$0xff] %v11445_v47 }
 0xb15   : > { %v3501_v26 = vpop.f32.mrf.mxu1 }
 0xb1b   : > { %v3478_v5 = vpop.f32.mrf.mxu2 }
 0xb1c   : > { %v3507_v7 = vmax.f32 %v3478_v5, %v3501_v26  ;;  %v11451_v26 = vld [vmem:[%s14215_s3 + $0x30] sm:$0xff]  ;;  %v11457_v5 = vld [vmem:[%s14215_s3 + $0x28] sm:$0xff] }
 0xb1d   : > { %v3504_v28 = vpop.f32.mrf.mxu1  ;;  %15004 = vst [vmem:[#allocation22_spill] sm:$0xff] %v11451_v26 }
 0xb1e   : > { %7367 = vmatmul.msk.f32.vlgmr.msra.gmra.mxu0 %vm1200_vm7, %v3507_v7  ;;  %v3511_v40 = vrot.slane %v3507_v7, 1  ;;  %v3558_v37 = vrot.slane %v3507_v7, 2  ;;  %v3584_v3 = vrot.slane %v3507_v7, 3  ;;  %v3610_v55 = vrot.slane %v3507_v7, 4  ;;  %15005 = vst [vmem:[#allocation23_spill] sm:$0xff] %v11457_v5 }
 0xb1f   : > { %7385 = vmatpush.msk.msra.mxu0 %vm555_vm0, %v14999_v11 }
 0xb21   : > { %3826 = vmatpush.msra.mxu0 %v15000_v17  ;;  %v11463_v17 = vld [vmem:[%s14215_s3 + $0x20] sm:$0xff] }
 0xb22   : > { %15006 = vst [vmem:[#allocation24_spill] sm:$0xff] %v11463_v17 }
 0xb23   : > { %v3481_v1 = vpop.f32.mrf.mxu2  ;;  %3827 = vmatpush.msra.mxu0 %v15001_v39  ;;  %v15008_v39 = vld [vmem:[#allocation29_spill] sm:$0xff] }
 0xb24   : > { %v3508_v9 = vmax.f32 %v3481_v1, %v3504_v28  ;;  %v15007_v1 = vld [vmem:[#allocation13_spill] sm:$0xff] }
 0xb25   : > { %3828 = vmatpush.msra.mxu0 %v11274_v34 }
 0xb26   : > { %v3512_v15 = vrot.slane %v3508_v9, 1  ;;  %v3559_v41 = vrot.slane %v3508_v9, 2  ;;  %v3585_v61 = vrot.slane %v3508_v9, 3  ;;  %v3611_v16 = vrot.slane %v3508_v9, 4 }
 0xb27   : > { %v3936_v9 = vrot.slane %v11362_v23, 3 }
 0xb28   : > { %v3513_v38 = vsel %vm540_vm1, %v3511_v40, %v3512_v15  ;;  %v3560_v33 = vsel %vm687_vm3, %v3558_v37, %v3559_v41  ;;  %v3586_v2 = vsel %vm774_vm4, %v3584_v3, %v3585_v61  ;;  %v3612_v48 = vsel %vm555_vm0, %v3610_v55, %v3611_v16  ;;  %v15009_v37 = vld [vmem:[#allocation14_spill] sm:$0xff]  ;;  %v15010_v15 = vld [vmem:[#allocation15_spill] sm:$0xff]  ;;  %v15014_v16 = vld [vmem:[#allocation100_spill] sm:$0xff] }
 0xb29   : > { %7366 = vmatmul.msk.f32.vlgmr.msra.gmra.mxu3 %vm1200_vm7, %v3513_v38  ;;  %7368 = vmatmul.msk.f32.vlgmr.msra.gmra.mxu2 %vm1200_vm7, %v3560_v33  ;;  %v3937_v40 = vrot.slane %v11399_v20, 3  ;;  %v3742_v41 = vrot.slane %v11362_v23, 1  ;;  %v3743_v61 = vrot.slane %v11399_v20, 1  ;;  %v11482_v38 = vld [vmem:[%s14215_s3 + $0x18] sm:$0xff]  ;;  %v15012_v33 = vld [vmem:[#allocation16_spill] sm:$0xff] }
 0xb2a   : > { %7369 = vmatmul.msk.f32.vlgmr.msra.gmra.mxu1 %vm1200_vm7, %v3586_v2  ;;  %7389 = vmatpush.msk.msra.mxu2 %vm555_vm0, %v11286_v58  ;;  %15011 = vst [vmem:[#allocation25_spill] sm:$0xff] %v11482_v38  ;;  %v15013_v2 = vld [vmem:[#allocation99_spill] sm:$0xff]  ;;  %v15015_v55 = vld [vmem:[#allocation101_spill] sm:$0xff] }
 0xb2b   : > { %v3938_v3 = vsel %vm774_vm4, %v3936_v9, %v3937_v40  ;;  %v15028_v9 = vld [vmem:[#allocation108_spill] sm:$0xff] }
 0xb2c   : > { %3852 = vmatpush.msra.mxu2 %v11293_v24 }
 0xb2e   : > { %3853 = vmatpush.msra.mxu2 %v11299_v14 }
 0xb30   : > { %3854 = vmatpush.msra.mxu2 %v11306_v0 }
 0xb31   : > { %7370 = vmatmul.msk.f32.vlgmr.msrb.gmra.mxu3 %vm1200_vm7, %v3612_v48  ;;  %v3744_v48 = vsel %vm540_vm1, %v3742_v41, %v3743_v61 }
 0xb9b   : > { %v3555_v53 = vpop.f32.mrf.mxu0 }
 0xba7   : > { %v3606_v62 = vpop.f32.mrf.mxu1 }
 0xbac   : > { %v3533_v22 = vpop.f32.mrf.mxu3  ;;  %v3580_v27 = vpop.f32.mrf.mxu2 }
 0xbad   : > { %v3556_v36 = vadd.f32 %v3555_v53, %v3533_v22  ;;  %v11495_v53 = vld [vmem:[%s14215_s3 + $0x10] sm:$0xff]  ;;  %v15017_v22 = vld [vmem:[#allocation17_spill] sm:$0xff] }
 0xbae   : > { %15016 = vst [vmem:[#allocation26_spill] sm:$0xff] %v11495_v53 }
 0xbaf   : > { %v3583_v51 = vadd.f32 %v3580_v27, %v3556_v36  ;;  %v15018_v36 = vld [vmem:[#allocation102_spill] sm:$0xff]  ;;  %v3939_v27 = vrot.slane %v11430_v4, 3 }
 0xbb1   : > { %v3609_v18 = vadd.f32 %v3606_v62, %v3583_v51  ;;  %v3745_v51 = vrot.slane %v11430_v4, 1  ;;  %v15019_v62 = vld [vmem:[#allocation103_spill] sm:$0xff] }
 0xbb4   : > { %v3632_v21 = vpop.f32.mrf.mxu3 }
 0xbb5   : > { %v3635_v43 = vadd.f32 %v3632_v21, %v3609_v18  ;;  %v15020_v18 = vld [vmem:[#allocation104_spill] sm:$0xff]  ;;  %v3940_v21 = vsel %vm774_vm4, %v3937_v40, %v3939_v27 }
 0xbb7   : > { %v3636_v10 = vadd.f32 %v15002_v45, %v3635_v43  ;;  %v11512_v43 = vld [vmem:[%s14215_s3 + $0x8] sm:$0xff]  ;;  %v15022_v45 = vld [vmem:[#allocation18_spill] sm:$0xff] }
 0xbb8   : > { %15021 = vst [vmem:[#allocation28_spill] sm:$0xff] %v11512_v43 }
 0xbb9   : > { %v3637_v12 = vmax.f32 %v3636_v10, 0.0  ;;  %v15023_v10 = vld [vmem:[#allocation105_spill] sm:$0xff] }
 0xbbb   : > { %3654 = vmatmul.f32.vlgmr.msrb.gmra.mxu0 %v3637_v12  ;;  %3674 = vmatmul.f32.vlgmr.msrb.gmra.mxu2 %v3637_v12  ;;  %v3746_v12 = vsel %vm540_vm1, %v3743_v61, %v3745_v51  ;;  %v15029_v61 = vld [vmem:[#allocation109_spill] sm:$0xff] }
 0xbbc   : > { %7401 = vmatpush.msk.msrb.mxu0 %vm555_vm0, %v11314_v32  ;;  %7405 = vmatpush.msk.msrb.mxu2 %vm555_vm0, %v11321_v52 }
 0xbbe   : > { %3962 = vmatpush.msrb.mxu0 %v11328_v30  ;;  %3988 = vmatpush.msrb.mxu2 %v11334_v49 }
 0xbc0   : > { %3963 = vmatpush.msrb.mxu0 %v11340_v54  ;;  %3989 = vmatpush.msrb.mxu2 %v11346_v60 }
 0xbc2   : > { %3964 = vmatpush.msrb.mxu0 %v11352_v19  ;;  %3990 = vmatpush.msrb.mxu2 %v11358_v42 }
 0xbc3   : > { %7390 = vmatmul.msk.f32.vlgmr.msra.gmra.mxu2 %vm548_vm2, %v11362_v23  ;;  %7386 = vmatmul.msk.f32.vlgmr.msra.gmra.mxu0 %vm548_vm2, %v11362_v23 }
 0xbc4   : > { %4099 = vmatpush.msra.mxu0 %v11371_v29  ;;  %4139 = vmatpush.msra.mxu2 %v11377_v56 }
 0xbc6   : > { %4100 = vmatpush.msra.mxu0 %v11383_v13  ;;  %4140 = vmatpush.msra.mxu2 %v11389_v6 }
 0xbc8   : > { %4101 = vmatpush.msra.mxu0 %v11395_v44 }
 0xbca   : > { %4102 = vmatpush.msra.mxu0 %v11404_v50 }
 0xbcb   : > { %7391 = vmatmul.msk.f32.gmra.mxu2 %vm548_vm2, %v11399_v20  ;;  %7387 = vmatmul.msk.f32.gmra.mxu0 %vm548_vm2, %v11399_v20 }
 0xbcc   : > { %4103 = vmatpush.msra.mxu0 %v11414_v35 }
 0xbce   : > { %4104 = vmatpush.msra.mxu0 %v11420_v63 }
 0xbd0   : > { %4105 = vmatpush.msra.mxu0 %v11426_v25 }
 0xbd2   : > { %4106 = vmatpush.msra.mxu0 %v11435_v31 }
 0xbd3   : > { %7392 = vmatmul.msk.f32.gmra.mxu2 %vm548_vm2, %v11430_v4  ;;  %7388 = vmatmul.msk.f32.gmra.mxu0 %vm548_vm2, %v11430_v4 }
 0xbd4   : > { %4107 = vmatpush.msra.mxu0 %v11445_v47 }
 0xbd6   : > { %4108 = vmatpush.msra.mxu0 %v11451_v26 }
 0xbd8   : > { %4109 = vmatpush.msra.mxu0 %v11457_v5 }
 0xbda   : > { %4110 = vmatpush.msra.mxu0 %v11463_v17 }
 0xbdb   : > { %7402 = vmatmul.msk.f32.vlgmr.msrb.gmra.mxu0 %vm548_vm2, %v3938_v3  ;;  %7406 = vmatmul.msk.f32.vlgmr.msrb.gmra.mxu2 %vm548_vm2, %v3938_v3  ;;  %v15030_v3 = vld [vmem:[#allocation110_spill] sm:$0xff] }
 0xbdc   : > { %4111 = vmatpush.msra.mxu0 %v11482_v38 }
 0xbde   : > { %4112 = vmatpush.msra.mxu0 %v11495_v53 }
 0xbe0   : > { %4113 = vmatpush.msra.mxu0 %v11512_v43 }
 0xbe3   : > { %7403 = vmatmul.msk.f32.gmra.mxu0 %vm548_vm2, %v3940_v21  ;;  %7407 = vmatmul.msk.f32.gmra.mxu2 %vm548_vm2, %v3940_v21  ;;  %v3865_v21 = vrot.slane %v11362_v23, 2 }
 0xc38   : > { %v3655_v7 = vpop.f32.mrf.mxu0 }
 0xc3e   : > { %v3675_v11 = vpop.f32.mrf.mxu2 }
 0xc3f   : > { %v3678_v28 = vmax.f32 %v3655_v7, %v3675_v11  ;;  %v15024_v7 = vld [vmem:[#allocation106_spill] sm:$0xff]  ;;  %v15025_v11 = vld [vmem:[#allocation107_spill] sm:$0xff] }
 0xc41   : > { %3694 = vmatpush.msrb.mxu1 %v3678_v28  ;;  %3714 = vmatpush.msra.mxu3 %v3678_v28  ;;  %v11523_v28 = vld [vmem:[%s8500_s25 + $0x98] sm:$0xf] }
 0xc42   : > { %7371 = vmatmul.msk.f32.vlgmr.msrb.gmra.mxu1 %vm1434_vm8, %v15007_v1  ;;  %7372 = vmatmul.msk.f32.vlgmr.msra.gmra.mxu3 %vm1434_vm8, %v15008_v39  ;;  %v11528_v1 = vld [vmem:[%s14215_s3] sm:$0xff]  ;;  %v15027_v39 = vld [vmem:[#allocation19_spill] sm:$0xff]  ;;  %v3941_v40 = vrot.slane %v11523_v28, 3  ;;  %v3747_v41 = vrot.slane %v11523_v28, 1 }
 0xc43   : > { %7377 = vmatpush.msk.msra.mxu1 %vm555_vm0, %v15009_v37  ;;  %7381 = vmatpush.msk.msrb.mxu3 %vm555_vm0, %v15010_v15  ;;  %15026 = vst [vmem:[#allocation30_spill] sm:$0xff] %v11528_v1  ;;  %v4007_v37 = vrot.slane %v11362_v23, 4  ;;  %v4008_v15 = vrot.slane %v11399_v20, 4  ;;  %v11575_v23 = vld [vmem:[%s14215_s3 + $0x118] sm:$0xff] }
 0xc44   : > { %4114 = vmatpush.msra.mxu0 %v11528_v1  ;;  %15038 = vst [vmem:[#allocation47_spill] sm:$0xff] %v11575_v23 }
 0xc45   : > { %3768 = vmatpush.msra.mxu1 %v15012_v33  ;;  %3794 = vmatpush.msrb.mxu3 %v15013_v2  ;;  %v3942_v33 = vsel %vm774_vm4, %v3939_v27, %v3941_v40  ;;  %v4009_v2 = vsel %vm555_vm0, %v4007_v37, %v4008_v15  ;;  %v4010_v27 = vrot.slane %v11430_v4, 4  ;;  %v11600_v40 = vld [vmem:[%s14215_s3 + $0xf0] sm:$0xff]  ;;  %v3870_v37 = vrot.slane %v11523_v28, 2 }
 0xc46   : > { %7404 = vmatmul.msk.f32.gmra.mxu0 %vm548_vm2, %v3942_v33  ;;  %7408 = vmatmul.msk.f32.gmra.mxu2 %vm548_vm2, %v3942_v33  ;;  %15042 = vst [vmem:[#allocation68_spill] sm:$0xff] %v11600_v40  ;;  %v11628_v33 = vld [vmem:[%s14215_s3 + $0xd0] sm:$0xff] }
 0xc47   : > { %3769 = vmatpush.msra.mxu1 %v15014_v16  ;;  %3795 = vmatpush.msrb.mxu3 %v15015_v55  ;;  %v15031_v16 = vld [vmem:[#allocation111_spill] sm:$0xff]  ;;  %v15032_v55 = vld [vmem:[#allocation112_spill] sm:$0xff]  ;;  %15046 = vst [vmem:[#allocation72_spill] sm:$0xff] %v11628_v33 }
 0xc49   : > { %3770 = vmatpush.msra.mxu1 %v15017_v22  ;;  %3796 = vmatpush.msrb.mxu3 %v15018_v36  ;;  %v15033_v22 = vld [vmem:[#allocation113_spill] sm:$0xff]  ;;  %v15034_v36 = vld [vmem:[#allocation114_spill] sm:$0xff] }
 0xc4a   : > { %7378 = vmatmul.msk.f32.vlgmr.msra.gmra.mxu1 %vm548_vm2, %v3744_v48  ;;  %7382 = vmatmul.msk.f32.vlgmr.msrb.gmra.mxu3 %vm548_vm2, %v3744_v48  ;;  %v3748_v48 = vsel %vm540_vm1, %v3745_v51, %v3747_v41  ;;  %v4011_v51 = vsel %vm555_vm0, %v4008_v15, %v4010_v27  ;;  %v11609_v15 = vld [vmem:[%s14215_s3 + $0xe8] sm:$0xff]  ;;  %v11615_v41 = vld [vmem:[%s14215_s3 + $0xe0] sm:$0xff] }
 0xc4b   : > { %7393 = vmatpush.msk.msrb.mxu1 %vm555_vm0, %v15019_v62  ;;  %7397 = vmatpush.msk.msra.mxu3 %vm555_vm0, %v15020_v18  ;;  %v15035_v62 = vld [vmem:[#allocation115_spill] sm:$0xff]  ;;  %v15036_v18 = vld [vmem:[#allocation116_spill] sm:$0xff]  ;;  %15043 = vst [vmem:[#allocation57_spill] sm:$0xff] %v11609_v15 }
 0xc4c   : > { %15044 = vst [vmem:[#allocation70_spill] sm:$0xff] %v11615_v41 }
 0xc4d   : > { %3891 = vmatpush.msrb.mxu1 %v15022_v45  ;;  %3917 = vmatpush.msra.mxu3 %v15023_v10  ;;  %v3866_v45 = vrot.slane %v11399_v20, 2  ;;  %v11581_v20 = vld [vmem:[%s14215_s3 + $0x100] sm:$0xff] }
 0xc4e   : > { %15039 = vst [vmem:[#allocation50_spill] sm:$0xff] %v11581_v20 }
 0xc4f   : > { %3892 = vmatpush.msrb.mxu1 %v15024_v7  ;;  %3918 = vmatpush.msra.mxu3 %v15025_v11  ;;  %v3867_v10 = vsel %vm687_vm3, %v3865_v21, %v3866_v45  ;;  %v11569_v7 = vld [vmem:[%s14215_s3 + $0x108] sm:$0xff]  ;;  %v11587_v11 = vld [vmem:[%s14215_s3 + $0x110] sm:$0xff]  ;;  %v11686_v21 = vld [vmem:[%s14215_s3 + $0x98] sm:$0xff] }
 0xc50   : > { %15037 = vst [vmem:[#allocation44_spill] sm:$0xff] %v11569_v7 }
 0xc51   : > { %3893 = vmatpush.msrb.mxu1 %v15027_v39  ;;  %3919 = vmatpush.msra.mxu3 %v15028_v9  ;;  %15040 = vst [vmem:[#allocation53_spill] sm:$0xff] %v11587_v11  ;;  %v11594_v9 = vld [vmem:[%s14215_s3 + $0xf8] sm:$0xff] }
 0xc52   : > { %7379 = vmatmul.msk.f32.gmra.mxu1 %vm548_vm2, %v3746_v12  ;;  %7383 = vmatmul.msk.f32.gmra.mxu3 %vm548_vm2, %v3746_v12  ;;  %v3868_v12 = vrot.slane %v11430_v4, 2  ;;  %15041 = vst [vmem:[#allocation56_spill] sm:$0xff] %v11594_v9  ;;  %v11752_v4 = vld [vmem:[%s14217_s5 + $0x28] sm:$0xff] }
 0xc53   : > { %7409 = vmatpush.msk.msra.mxu1 %vm555_vm0, %v15029_v61  ;;  %7413 = vmatpush.msk.msrb.mxu3 %vm555_vm0, %v15030_v3  ;;  %v11622_v3 = vld [vmem:[%s14215_s3 + $0xd8] sm:$0xff]  ;;  %15055 = vst [vmem:[#allocation32_spill] sm:$0xff] %v11686_v21 }
 0xc54   : > { %v3869_v39 = vsel %vm687_vm3, %v3866_v45, %v3868_v12  ;;  %v3871_v61 = vsel %vm687_vm3, %v3868_v12, %v3870_v37  ;;  %15045 = vst [vmem:[#allocation58_spill] sm:$0xff] %v11622_v3  ;;  %v11692_v45 = vld [vmem:[%s14217_s5 + $0x78] sm:$0xff]  ;;  %v11704_v12 = vld [vmem:[%s14217_s5 + $0x70] sm:$0xff]  ;;  %v11713_v37 = vld [vmem:[%s14217_s5 + $0x40] sm:$0xff] }
 0xc55   : > { %4033 = vmatpush.msra.mxu1 %v15031_v16  ;;  %4059 = vmatpush.msrb.mxu3 %v15032_v55  ;;  %v11636_v16 = vld [vmem:[%s14215_s3 + $0xc8] sm:$0xff]  ;;  %v11642_v55 = vld [vmem:[%s14215_s3 + $0xc0] sm:$0xff]  ;;  %15056 = vst [vmem:[#allocation33_spill] sm:$0xff] %v11692_v45 }
 0xc56   : > { %15047 = vst [vmem:[#allocation59_spill] sm:$0xff] %v11636_v16 }
 0xc57   : > { %4034 = vmatpush.msra.mxu1 %v15033_v22  ;;  %4060 = vmatpush.msrb.mxu3 %v15034_v36  ;;  %15048 = vst [vmem:[#allocation74_spill] sm:$0xff] %v11642_v55  ;;  %v11654_v22 = vld [vmem:[%s14215_s3 + $0xb0] sm:$0xff]  ;;  %v11662_v36 = vld [vmem:[%s14215_s3 + $0xa8] sm:$0xff] }
 0xc58   : > { %15050 = vst [vmem:[#allocation76_spill] sm:$0xff] %v11654_v22 }
 0xc59   : > { %4035 = vmatpush.msra.mxu1 %v15035_v62  ;;  %4061 = vmatpush.msrb.mxu3 %v15036_v18  ;;  %15051 = vst [vmem:[#allocation78_spill] sm:$0xff] %v11662_v36  ;;  %v11668_v62 = vld [vmem:[%s14217_s5 + $0x88] sm:$0xff]  ;;  %v11674_v18 = vld [vmem:[%s14215_s3 + $0xa0] sm:$0xff] }
 0xc5a   : > { %7380 = vmatmul.msk.f32.gmra.mxu1 %vm548_vm2, %v3748_v48  ;;  %7384 = vmatmul.msk.f32.gmra.mxu3 %vm548_vm2, %v3748_v48  ;;  %v11648_v48 = vld [vmem:[%s14215_s3 + $0xb8] sm:$0xff]  ;;  %15052 = vst [vmem:[#allocation80_spill] sm:$0xff] %v11668_v62 }
 0xc5b   : > { %15049 = vst [vmem:[#allocation60_spill] sm:$0xff] %v11648_v48 }
 0xc5c   : > { %15053 = vst [vmem:[#allocation82_spill] sm:$0xff] %v11674_v18 }
 0xc5d   : > { %15058 = vst [vmem:[#allocation35_spill] sm:$0xff] %v11704_v12 }
 0xc5e   : > { %15059 = vst [vmem:[#allocation38_spill] sm:$0xff] %v11713_v37 }
 0xc5f   : > { %15065 = vst [vmem:[#allocation45_spill] sm:$0xff] %v11752_v4 }
 0xc62   : > { %7394 = vmatmul.msk.f32.vlgmr.msrb.gmra.mxu1 %vm548_vm2, %v3867_v10  ;;  %7398 = vmatmul.msk.f32.vlgmr.msra.gmra.mxu3 %vm548_vm2, %v3867_v10  ;;  %v11698_v10 = vld [vmem:[%s14215_s3 + $0x90] sm:$0xff] }
 0xc63   : > { %4151 = vmatpush.msrb.mxu1 %v11569_v7  ;;  %4191 = vmatpush.msra.mxu3 %v11575_v23  ;;  %15057 = vst [vmem:[#allocation34_spill] sm:$0xff] %v11698_v10 }
 0xc65   : > { %4152 = vmatpush.msrb.mxu1 %v11581_v20  ;;  %4192 = vmatpush.msra.mxu3 %v11587_v11 }
 0xc67   : > { %4153 = vmatpush.msrb.mxu1 %v11594_v9 }
 0xc69   : > { %4154 = vmatpush.msrb.mxu1 %v11600_v40 }
 0xc6a   : > { %7395 = vmatmul.msk.f32.gmra.mxu1 %vm548_vm2, %v3869_v39  ;;  %7399 = vmatmul.msk.f32.gmra.mxu3 %vm548_vm2, %v3869_v39  ;;  %v4012_v39 = vrot.slane %v11523_v28, 4  ;;  %v11731_v28 = vld [vmem:[%s14217_s5 + $0x60] sm:$0xff] }
 0xc6b   : > { %4155 = vmatpush.msrb.mxu1 %v11609_v15  ;;  %15062 = vst [vmem:[#allocation41_spill] sm:$0xff] %v11731_v28 }
 0xc6d   : > { %4156 = vmatpush.msrb.mxu1 %v11615_v41 }
 0xc6f   : > { %4157 = vmatpush.msrb.mxu1 %v11622_v3 }
 0xc71   : > { %4158 = vmatpush.msrb.mxu1 %v11628_v33 }
 0xc72   : > { %7396 = vmatmul.msk.f32.gmra.mxu1 %vm548_vm2, %v3871_v61  ;;  %7400 = vmatmul.msk.f32.gmra.mxu3 %vm548_vm2, %v3871_v61  ;;  %v11719_v61 = vld [vmem:[%s14217_s5 + $0x68] sm:$0xff] }
 0xc73   : > { %4159 = vmatpush.msrb.mxu1 %v11636_v16  ;;  %15060 = vst [vmem:[#allocation39_spill] sm:$0xff] %v11719_v61 }
 0xc75   : > { %4160 = vmatpush.msrb.mxu1 %v11642_v55 }
 0xc77   : > { %4161 = vmatpush.msrb.mxu1 %v11648_v48 }
 0xc79   : > { %4162 = vmatpush.msrb.mxu1 %v11654_v22 }
 0xc7a   : > { %7410 = vmatmul.msk.f32.vlgmr.msra.gmra.mxu1 %vm548_vm2, %v4009_v2  ;;  %7414 = vmatmul.msk.f32.vlgmr.msrb.gmra.mxu3 %vm548_vm2, %v4009_v2  ;;  %v11680_v2 = vld [vmem:[%s14217_s5 + $0x80] sm:$0xff] }
 0xc7b   : > { %4163 = vmatpush.msrb.mxu1 %v11662_v36  ;;  %4268 = vmatpush.msrb.mxu3 %v11668_v62  ;;  %15054 = vst [vmem:[#allocation84_spill] sm:$0xff] %v11680_v2 }
 0xc7d   : > { %4164 = vmatpush.msrb.mxu1 %v11674_v18  ;;  %4269 = vmatpush.msrb.mxu3 %v11680_v2 }
 0xc7f   : > { %4165 = vmatpush.msrb.mxu1 %v11686_v21  ;;  %4270 = vmatpush.msrb.mxu3 %v11692_v45  ;;  %v11746_v45 = vld [vmem:[%s14217_s5 + $0x58] sm:$0xff]  ;;  %v3856_v21 = vpop.f32.mrf.mxu2 }
 0xc80   : > { %15064 = vst [vmem:[#allocation43_spill] sm:$0xff] %v11746_v45 }
 0xc81   : > { %4166 = vmatpush.msrb.mxu1 %v11698_v10  ;;  %4271 = vmatpush.msrb.mxu3 %v11704_v12  ;;  %v4013_v12 = vsel %vm555_vm0, %v4010_v27, %v4012_v39  ;;  %v11758_v27 = vld [vmem:[%s14217_s5 + $0x50] sm:$0xff]  ;;  %v11766_v39 = vld [vmem:[%s14217_s5 + $0x20] sm:$0xff] }
 0xc82   : > { %7411 = vmatmul.msk.f32.gmra.mxu1 %vm548_vm2, %v4011_v51  ;;  %7415 = vmatmul.msk.f32.gmra.mxu3 %vm548_vm2, %v4011_v51  ;;  %v11725_v51 = vld [vmem:[%s14217_s5 + $0x38] sm:$0xff]  ;;  %15066 = vst [vmem:[#allocation46_spill] sm:$0xff] %v11758_v27 }
 0xc83   : > { %4290 = vmatpush.msra.mxu1 %v11713_v37  ;;  %4272 = vmatpush.msrb.mxu3 %v11719_v61  ;;  %15061 = vst [vmem:[#allocation40_spill] sm:$0xff] %v11725_v51  ;;  %v11740_v61 = vld [vmem:[%s14217_s5 + $0x30] sm:$0xff] }
 0xc84   : > { %15063 = vst [vmem:[#allocation36_spill] sm:$0xff] %v11740_v61 }
 0xc85   : > { %4291 = vmatpush.msra.mxu1 %v11725_v51  ;;  %4273 = vmatpush.msrb.mxu3 %v11731_v28  ;;  %15067 = vst [vmem:[#allocation48_spill] sm:$0xff] %v11766_v39  ;;  %v11790_v28 = vld [vmem:[%s14217_s5 + $0x8] sm:$0xff]  ;;  %v3830_v51 = vpop.f32.mrf.mxu0 }
 0xc86   : > { %15071 = vst [vmem:[#allocation54_spill] sm:$0xff] %v11790_v28 }
 0xc87   : > { %4292 = vmatpush.msra.mxu1 %v11740_v61  ;;  %4274 = vmatpush.msrb.mxu3 %v11746_v45  ;;  %v11772_v45 = vld [vmem:[%s14217_s5 + $0x48] sm:$0xff]  ;;  %v3859_v22 = vpop.f32.mrf.mxu2 }
 0xc88   : > { %15068 = vst [vmem:[#allocation49_spill] sm:$0xff] %v11772_v45 }
 0xc89   : > { %4293 = vmatpush.msra.mxu1 %v11752_v4  ;;  %4275 = vmatpush.msrb.mxu3 %v11758_v27  ;;  %v11778_v27 = vld [vmem:[%s14217_s5 + $0x18] sm:$0xff] }
 0xc8a   : > { %7412 = vmatmul.msk.f32.gmra.mxu1 %vm548_vm2, %v4013_v12  ;;  %7416 = vmatmul.msk.f32.gmra.mxu3 %vm548_vm2, %v4013_v12  ;;  %15069 = vst [vmem:[#allocation51_spill] sm:$0xff] %v11778_v27  ;;  %v11784_v12 = vld [vmem:[%s14217_s5 + $0x10] sm:$0xff] }
 0xc8b   : > { %4294 = vmatpush.msra.mxu1 %v11766_v39  ;;  %4276 = vmatpush.msrb.mxu3 %v11772_v45  ;;  %15070 = vst [vmem:[#allocation52_spill] sm:$0xff] %v11784_v12  ;;  %v11796_v45 = vld [vmem:[%s14217_s5] sm:$0xff] }
 0xc8c   : > { %15072 = vst [vmem:[#allocation55_spill] sm:$0xff] %v11796_v45 }
 0xc8d   : > { %4295 = vmatpush.msra.mxu1 %v11778_v27  ;;  %v3833_v18 = vpop.f32.mrf.mxu0 }
 0xc8f   : > { %4296 = vmatpush.msra.mxu1 %v11784_v12  ;;  %v15074_v12 = vld [vmem:[#allocation20_spill] sm:$0xff]  ;;  %v3862_v55 = vpop.f32.mrf.mxu2 }
 0xc90   : > { %v2982_v27 = vrot.slane %v15074_v12, 3 }
 0xc91   : > { %4297 = vmatpush.msra.mxu1 %v11790_v28 }
 0xc93   : > { %4298 = vmatpush.msra.mxu1 %v11796_v45 }
 0xcbf   : > { %v3696_v2 = vpop.f32.mrf.mxu1 }
 0xcc5   : > { %v3716_v62 = vpop.f32.mrf.mxu3 }
 0xcc6   : > { %v11799_v11 = vmax.f32 %v3696_v2, %v3716_v62  ;;  %v3836_v62 = vpop.f32.mrf.mxu0 }
 0xcc7   : > { %v3772_v23 = vpop.f32.mrf.mxu1 }
 0xcc8   : > { %15073 = vst [vmem:[#allocation61_spill] sm:$0xff] %v11799_v11  ;;  %v3721_v39 = vrot.slane %v11799_v11, 1 }
 0xcca   : > { %v7689_v4 = vpack.i.bf16 %v2982_v27, %v3721_v39  ;;  %v3831_v27 = vadd.f32 %v3830_v51, %v3772_v23  ;;  %v11855_v51 = vld [vmem:[%s14217_s5 + $0x150] sm:$0xff] }
 0xccb   : > { %15077 = vst [vmem:[#allocation64_spill] sm:$0xff] %v11855_v51 }
 0xccc   : > { %7690 = vrot.lane.b32.xlu1 %v7689_v4, %s8333_s29  ;;  %v3992_v4 = vpop.f32.mrf.mxu2 }
 0xccd   : > { %v3798_v28 = vpop.f32.mrf.mxu3 }
 0xcce   : > { %v3966_v16 = vpop.f32.mrf.mxu0  ;;  %v3857_v3 = vadd.f32 %v3856_v21, %v3798_v28  ;;  %v11842_v21 = vld [vmem:[%s14217_s5 + $0x158] sm:$0xff]  ;;  %v11861_v28 = vld [vmem:[%s14219_s7 + $0x50] sm:$0xff] }
 0xccf   : > { %v3775_v61 = vpop.f32.mrf.mxu1  ;;  %15076 = vst [vmem:[#allocation63_spill] sm:$0xff] %v11842_v21 }
 0xcd0   : > { %v3834_v40 = vadd.f32 %v3833_v18, %v3775_v61 }
 0xcd4   : > { %v3995_v23 = vpop.f32.mrf.mxu2 }
 0xcd5   : > { %v3801_v37 = vpop.f32.mrf.mxu3 }
 0xcd6   : > { %v3969_v7 = vpop.f32.mrf.mxu0  ;;  %v3860_v5 = vadd.f32 %v3859_v22, %v3801_v37 }
 0xcd7   : > { %v3778_v10 = vpop.f32.mrf.mxu1 }
 0xcdc   : > { %v3998_v61 = vpop.f32.mrf.mxu2 }
 0xcdd   : > { %v3804_v45 = vpop.f32.mrf.mxu3 }
 0xcdf   : > { %v3895_v36 = vpop.f32.mrf.mxu1 }
 0xce0   : > { %v3930_v39 = vadd.f32 %v3895_v36, %v3831_v27 }
 0xce2   : > { %v4001_v41 = vadd.f32 %v3966_v16, %v3930_v39  ;;  %v11808_v16 = vld [vmem:[%s14219_s7 + $0x78] sm:$0xff] }
 0xce5   : > { %v3921_v2 = vpop.f32.mrf.mxu3 }
 0xce6   : > { %v3931_v9 = vadd.f32 %v3921_v2, %v3857_v3  ;;  %v3863_v3 = vadd.f32 %v3862_v55, %v3804_v45  ;;  %v11874_v2 = vld [vmem:[%s14219_s7 + $0x48] sm:$0xff] }
 0xce7   : > { %v3898_v48 = vpop.f32.mrf.mxu1 }
 0xce8   : > { %v3932_v1 = vadd.f32 %v3898_v48, %v3834_v40  ;;  %v4002_v53 = vadd.f32 %v3992_v4, %v3931_v9  ;;  %v3837_v40 = vadd.f32 %v3836_v62, %v3778_v10  ;;  %v11822_v9 = vld [vmem:[%s14219_s7 + $0x68] sm:$0xff]  ;;  %v11848_v10 = vld [vmem:[%s14219_s7 + $0x58] sm:$0xff] }
 0xce9   : > { %v11868_v62 = vld [vmem:[%s14217_s5 + $0x148] sm:$0xff] }
 0xcea   : > { %v4003_v26 = vadd.f32 %v3969_v7, %v3932_v1  ;;  %v3972_v7 = vpop.f32.mrf.mxu0  ;;  %15078 = vst [vmem:[#allocation65_spill] sm:$0xff] %v11868_v62 }
 0xced   : > { %v3924_v12 = vpop.f32.mrf.mxu3 }
 0xcef   : > { %v3901_v11 = vpop.f32.mrf.mxu1 }
 0xcf5   : > { %v3927_v33 = vpop.f32.mrf.mxu3 }
 0xcf6   : > { %v3935_v55 = vadd.f32 %v3927_v33, %v3863_v3  ;;  %v11945_v3 = vld [vmem:[%s14219_s7 + $0x18] sm:$0xff] }
 0xcf7   : > { %v4037_v15 = vpop.f32.mrf.mxu1 }
 0xcf8   : > { %v4072_v20 = vadd.f32 %v4037_v15, %v4001_v41  ;;  %v3933_v15 = vadd.f32 %v3924_v12, %v3860_v5  ;;  %v11836_v41 = vld [vmem:[%s14219_s7 + $0x60] sm:$0xff]  ;;  %v4006_v27 = vadd.f32 %v3998_v61, %v3935_v55 }
 0xcfa   : > { %v4078_v43 = vadd.f32 %v4072_v20, %v14736_v8 }
 0xcfc   : > { %v4084_v38 = vmax.f32 %v4078_v43, 0.0 }
 0xcfd   : > { %v4063_v17 = vpop.f32.mrf.mxu3 }
 0xcfe   : > { %v4073_v47 = vadd.f32 %v4063_v17, %v4002_v53  ;;  %4115 = vmatmul.f32.vlgmr.msra.gmra.mxu0 %v4084_v38  ;;  %4167 = vmatmul.f32.vlgmr.msrb.gmra.mxu1 %v4084_v38  ;;  %v11815_v17 = vld [vmem:[%s14219_s7 + $0x70] sm:$0xff]  ;;  %v3934_v38 = vadd.f32 %v3901_v11, %v3837_v40  ;;  %v11830_v11 = vld [vmem:[%s14217_s5 + $0x160] sm:$0xff] }
 0xcff   : > { %v4040_v36 = vpop.f32.mrf.mxu1  ;;  %4383 = vmatpush.msrb.mxu1 %v11808_v16  ;;  %15075 = vst [vmem:[#allocation62_spill] sm:$0xff] %v11830_v11 }
 0xd00   : > { %v4079_v20 = vadd.f32 %v4073_v47, %v14737_v57  ;;  %v4074_v43 = vadd.f32 %v4040_v36, %v4003_v26  ;;  %v4004_v47 = vadd.f32 %v3995_v23, %v3933_v15  ;;  %v4005_v48 = vadd.f32 %v3972_v7, %v3934_v38  ;;  %v11882_v23 = vld [vmem:[%s14217_s5 + $0x140] sm:$0xff]  ;;  %v11894_v15 = vld [vmem:[%s14217_s5 + $0x138] sm:$0xff]  ;;  %v11907_v38 = vld [vmem:[%s14217_s5 + $0x130] sm:$0xff] }
 0xd01   : > { %4384 = vmatpush.msrb.mxu1 %v11815_v17  ;;  %15079 = vst [vmem:[#allocation66_spill] sm:$0xff] %v11882_v23  ;;  %v11888_v36 = vld [vmem:[%s14219_s7 + $0x40] sm:$0xff]  ;;  %v11919_v7 = vld [vmem:[%s14217_s5 + $0x128] sm:$0xff] }
 0xd02   : > { %v4085_v53 = vmax.f32 %v4079_v20, 0.0  ;;  %v4080_v1 = vadd.f32 %v4074_v43, %v14736_v8  ;;  %15080 = vst [vmem:[#allocation67_spill] sm:$0xff] %v11894_v15  ;;  %v11900_v20 = vld [vmem:[%s14219_s7 + $0x38] sm:$0xff] }
 0xd03   : > { %4385 = vmatpush.msrb.mxu1 %v11822_v9  ;;  %15081 = vst [vmem:[#allocation69_spill] sm:$0xff] %v11907_v38 }
 0xd04   : > { %7417 = vmatmul.msk.f32.vlgmr.msra.gmra.mxu2 %vm974_vm5, %v4085_v53  ;;  %7420 = vmatmul.msk.f32.vlgmr.msra.gmra.mxu3 %vm974_vm5, %v4085_v53  ;;  %v4086_v26 = vmax.f32 %v4080_v1, 0.0  ;;  %v11913_v53 = vld [vmem:[%s14219_s7 + $0x30] sm:$0xff]  ;;  %15082 = vst [vmem:[#allocation71_spill] sm:$0xff] %v11919_v7 }
 0xd05   : > { %v4066_v5 = vpop.f32.mrf.mxu3  ;;  %4367 = vmatpush.msra.mxu3 %v11830_v11  ;;  %4386 = vmatpush.msrb.mxu1 %v11836_v41 }
 0xd06   : > { %v4075_v22 = vadd.f32 %v4066_v5, %v4004_v47  ;;  %4118 = vmatmul.f32.gmra.mxu0 %v4086_v26  ;;  %4170 = vmatmul.f32.gmra.mxu1 %v4086_v26  ;;  %v11925_v47 = vld [vmem:[%s14219_s7 + $0x28] sm:$0xff]  ;;  %v11933_v26 = vld [vmem:[%s14217_s5 + $0x120] sm:$0xff] }
 0xd07   : > { %v4043_v18 = vpop.f32.mrf.mxu1  ;;  %4368 = vmatpush.msra.mxu3 %v11842_v21  ;;  %4387 = vmatpush.msrb.mxu1 %v11848_v10  ;;  %15083 = vst [vmem:[#allocation73_spill] sm:$0xff] %v11933_v26  ;;  %v11939_v5 = vld [vmem:[%s14219_s7 + $0x20] sm:$0xff] }
 0xd08   : > { %v4081_v45 = vadd.f32 %v4075_v22, %v14737_v57  ;;  %v4076_v37 = vadd.f32 %v4043_v18, %v4005_v48  ;;  %v11951_v48 = vld [vmem:[%s14219_s7 + $0x10] sm:$0xff]  ;;  %v11957_v22 = vld [vmem:[%s14219_s7 + $0x8] sm:$0xff]  ;;  %v11963_v18 = vld [vmem:[%s14219_s7] sm:$0xff] }
 0xd09   : > { %4369 = vmatpush.msra.mxu3 %v11855_v51  ;;  %4388 = vmatpush.msrb.mxu1 %v11861_v28 }
 0xd0a   : > { %v4087_v12 = vmax.f32 %v4081_v45, 0.0  ;;  %v4082_v33 = vadd.f32 %v4076_v37, %v14736_v8 }
 0xd0b   : > { %4370 = vmatpush.msra.mxu3 %v11868_v62  ;;  %4389 = vmatpush.msrb.mxu1 %v11874_v2 }
 0xd0c   : > { %7418 = vmatmul.msk.f32.gmra.mxu2 %vm974_vm5, %v4087_v12  ;;  %7421 = vmatmul.msk.f32.gmra.mxu3 %vm974_vm5, %v4087_v12  ;;  %v4088_v39 = vmax.f32 %v4082_v33, 0.0 }
 0xd0d   : > { %v4069_v4 = vpop.f32.mrf.mxu3  ;;  %4371 = vmatpush.msra.mxu3 %v11882_v23  ;;  %4390 = vmatpush.msrb.mxu1 %v11888_v36 }
 0xd0e   : > { %v4077_v40 = vadd.f32 %v4069_v4, %v4006_v27  ;;  %4121 = vmatmul.f32.gmra.mxu0 %v4088_v39  ;;  %4173 = vmatmul.f32.gmra.mxu1 %v4088_v39 }
 0xd0f   : > { %4372 = vmatpush.msra.mxu3 %v11894_v15  ;;  %4391 = vmatpush.msrb.mxu1 %v11900_v20 }
 0xd10   : > { %v4083_v43 = vadd.f32 %v4077_v40, %v14737_v57  ;;  %v11969_v57 = vld [vmem:[%s14216_s4] sm:$0xff] }
 0xd11   : > { %4373 = vmatpush.msra.mxu3 %v11907_v38  ;;  %4392 = vmatpush.msrb.mxu1 %v11913_v53 }
 0xd12   : > { %v4089_v1 = vmax.f32 %v4083_v43, 0.0 }
 0xd13   : > { %4374 = vmatpush.msra.mxu3 %v11919_v7  ;;  %4393 = vmatpush.msrb.mxu1 %v11925_v47 }
 0xd14   : > { %7419 = vmatmul.msk.f32.gmra.mxu2 %vm974_vm5, %v4089_v1  ;;  %7422 = vmatmul.msk.f32.gmra.mxu3 %vm974_vm5, %v4089_v1 }
 0xd15   : > { %4375 = vmatpush.msra.mxu3 %v11933_v26  ;;  %4394 = vmatpush.msrb.mxu1 %v11939_v5 }
 0xd17   : > { %4395 = vmatpush.msrb.mxu1 %v11945_v3 }
 0xd19   : > { %4396 = vmatpush.msrb.mxu1 %v11951_v48 }
 0xd1b   : > { %4397 = vmatpush.msrb.mxu1 %v11957_v22 }
 0xd1d   : > { %4398 = vmatpush.msrb.mxu1 %v11963_v18 }
 0xd7b   : > { %v4116_v55 = vpop.f32.mrf.mxu0  ;;  %v4168_v45 = vpop.f32.mrf.mxu1 }
 0xd83   : > { %v4119_v12 = vpop.f32.mrf.mxu0  ;;  %v4171_v33 = vpop.f32.mrf.mxu1 }
 0xd87   : > { %v4142_v37 = vpop.f32.mrf.mxu2  ;;  %v4194_v61 = vpop.f32.mrf.mxu3 }
 0xd88   : > { %v4143_v23 = vadd.f32 %v4142_v37, %v4116_v55  ;;  %v4195_v62 = vadd.f32 %v4194_v61, %v4168_v45  ;;  %v12047_v55 = vld [vmem:[%s14217_s5 + $0xa8] sm:$0xff]  ;;  %v12053_v45 = vld [vmem:[%s14217_s5 + $0xf0] sm:$0xff]  ;;  %v12059_v37 = vld [vmem:[%s14217_s5 + $0xa0] sm:$0xff] }
 0xd89   : > { %15088 = vst [vmem:[#allocation83_spill] sm:$0xff] %v12047_v55  ;;  %v12065_v61 = vld [vmem:[%s14217_s5 + $0xe8] sm:$0xff] }
 0xd8a   : > { %v4203_v11 = vmax.f32 %v4143_v23, %v4195_v62  ;;  %v12009_v62 = vld [vmem:[%s14217_s5 + $0xb8] sm:$0xff]  ;;  %v12021_v23 = vld [vmem:[%s14216_s4 + $0x8] sm:$0xf]  ;;  %15089 = vst [vmem:[#allocation85_spill] sm:$0xff] %v12053_v45 }
 0xd8b   : > { %v4122_v4 = vpop.f32.mrf.mxu0  ;;  %v4174_v40 = vpop.f32.mrf.mxu1  ;;  %15084 = vst [vmem:[#allocation75_spill] sm:$0xff] %v12021_v23 }
 0xd8c   : > { %15090 = vst [vmem:[#allocation86_spill] sm:$0xff] %v12059_v37 }
 0xd8d   : > { %15091 = vst [vmem:[#allocation87_spill] sm:$0xff] %v12065_v61 }
 0xd8f   : > { %v4145_v27 = vpop.f32.mrf.mxu2  ;;  %v4197_v39 = vpop.f32.mrf.mxu3 }
 0xd90   : > { %v4146_v26 = vadd.f32 %v4145_v27, %v4119_v12  ;;  %v4198_v7 = vadd.f32 %v4197_v39, %v4171_v33  ;;  %v12071_v12 = vld [vmem:[%s14217_s5 + $0x98] sm:$0xff]  ;;  %v12077_v33 = vld [vmem:[%s14217_s5 + $0xe0] sm:$0xff]  ;;  %v12083_v27 = vld [vmem:[%s14217_s5 + $0x90] sm:$0xff] }
 0xd91   : > { %15092 = vst [vmem:[#allocation88_spill] sm:$0xff] %v12071_v12  ;;  %v12089_v39 = vld [vmem:[%s14217_s5 + $0xd8] sm:$0xff] }
 0xd92   : > { %v4204_v21 = vmax.f32 %v4146_v26, %v4198_v7  ;;  %v12035_v7 = vld [vmem:[%s14217_s5 + $0xb0] sm:$0xff]  ;;  %v12041_v26 = vld [vmem:[%s14217_s5 + $0xf8] sm:$0xff]  ;;  %15093 = vst [vmem:[#allocation89_spill] sm:$0xff] %v12077_v33 }
 0xd93   : > { %15086 = vst [vmem:[#allocation79_spill] sm:$0xff] %v12035_v7 }
 0xd94   : > { %15087 = vst [vmem:[#allocation81_spill] sm:$0xff] %v12041_v26 }
 0xd95   : > { %15094 = vst [vmem:[#allocation90_spill] sm:$0xff] %v12083_v27 }
 0xd96   : > { %15095 = vst [vmem:[#allocation91_spill] sm:$0xff] %v12089_v39 }
 0xd97   : > { %v4148_v43 = vpop.f32.mrf.mxu2  ;;  %v4200_v1 = vpop.f32.mrf.mxu3 }
 0xd98   : > { %v4149_v38 = vadd.f32 %v4148_v43, %v4122_v4  ;;  %v4201_v15 = vadd.f32 %v4200_v1, %v4174_v40  ;;  %v12095_v4 = vld [vmem:[%s14219_s7 + $0xf8] sm:$0xff]  ;;  %v12101_v40 = vld [vmem:[%s14219_s7 + $0xf0] sm:$0xff]  ;;  %v12107_v43 = vld [vmem:[%s14219_s7 + $0xe8] sm:$0xff] }
 0xd99   : > { %15096 = vst [vmem:[#allocation92_spill] sm:$0xff] %v12095_v4  ;;  %v12113_v1 = vld [vmem:[%s14219_s7 + $0xe0] sm:$0xff] }
 0xd9a   : > { %v4205_v51 = vmax.f32 %v4149_v38, %v4201_v15  ;;  %v11976_v15 = vld [vmem:[%s14216_s4 + $0x10] sm:$0xff]  ;;  %v12028_v38 = vld [vmem:[%s14216_s4 + $0x18] sm:$0xf]  ;;  %15097 = vst [vmem:[#allocation93_spill] sm:$0xff] %v12101_v40 }
 0xd9b   : > { %15085 = vst [vmem:[#allocation77_spill] sm:$0xff] %v12028_v38 }
 0xd9c   : > { %4219 = vmatpush.msrb.mxu2 %v4205_v51  ;;  %4242 = vmatpush.msrb.mxu0 %v4205_v51  ;;  %v11997_v51 = vld [vmem:[%s14217_s5 + $0xc0] sm:$0xff]  ;;  %15098 = vst [vmem:[#allocation94_spill] sm:$0xff] %v12107_v43 }
 0xd9d   : > { %15099 = vst [vmem:[#allocation95_spill] sm:$0xff] %v12113_v1 }
 0xd9e   : > { %4220 = vmatpush.msrb.mxu2 %v4204_v21  ;;  %4243 = vmatpush.msrb.mxu0 %v4204_v21  ;;  %v11990_v21 = vld [vmem:[%s14217_s5 + $0xc8] sm:$0xff] }
 0xda0   : > { %4221 = vmatpush.msrb.mxu2 %v4203_v11  ;;  %4244 = vmatpush.msrb.mxu0 %v4203_v11  ;;  %v11983_v11 = vld [vmem:[%s14217_s5 + $0xd0] sm:$0xff] }
 0xda1   : > { %7423 = vmatmul.msk.f32.vlgmr.msrb.gmra.mxu2 %vm1112_vm6, %v11969_v57  ;;  %7425 = vmatmul.msk.f32.vlgmr.msrb.gmra.mxu0 %vm1112_vm6, %v11976_v15 }
 0xda2   : > { %4315 = vmatpush.msra.mxu2 %v11983_v11  ;;  %4341 = vmatpush.msra.mxu0 %v11222_v59  ;;  %v12003_v59 = vld [vmem:[%s14217_s5 + $0x108] sm:$0xff] }
 0xda4   : > { %4316 = vmatpush.msra.mxu2 %v11990_v21  ;;  %4342 = vmatpush.msra.mxu0 %v11229_v46  ;;  %v12015_v46 = vld [vmem:[%s14217_s5 + $0x100] sm:$0xff] }
 0xda6   : > { %4317 = vmatpush.msra.mxu2 %v11997_v51  ;;  %4343 = vmatpush.msra.mxu0 %v12003_v59 }
 0xda8   : > { %4318 = vmatpush.msra.mxu2 %v12009_v62  ;;  %4344 = vmatpush.msra.mxu0 %v12015_v46 }
 0xda9   : > { %7424 = vmatmul.msk.f32.gmra.mxu2 %vm1112_vm6, %v12021_v23  ;;  %7426 = vmatmul.msk.f32.gmra.mxu0 %vm1112_vm6, %v12028_v38 }
 0xdaa   : > { %4319 = vmatpush.msra.mxu2 %v12035_v7  ;;  %4345 = vmatpush.msra.mxu0 %v12041_v26 }
 0xdac   : > { %4320 = vmatpush.msra.mxu2 %v12047_v55  ;;  %4346 = vmatpush.msra.mxu0 %v12053_v45 }
 0xdae   : > { %4321 = vmatpush.msra.mxu2 %v12059_v37  ;;  %4347 = vmatpush.msra.mxu0 %v12065_v61 }
 0xdb0   : > { %4322 = vmatpush.msra.mxu2 %v12071_v12  ;;  %4348 = vmatpush.msra.mxu0 %v12077_v33  ;;  %v12199_v33 = vld [vmem:[%s14629_s1 + $0x20] sm:$0xff] }
 0xdb1   : > { %15113 = vst [vmem:[#allocation17_spill] sm:$0xff] %v12199_v33 }
 0xdb2   : > { %4323 = vmatpush.msra.mxu2 %v12083_v27  ;;  %4349 = vmatpush.msra.mxu0 %v12089_v39 }
 0xdb4   : > { %4403 = vmatpush.msrb.mxu2 %v12095_v4  ;;  %v12119_v4 = vld [vmem:[%s14219_s7 + $0xd8] sm:$0xff] }
 0xdb5   : > { %15100 = vst [vmem:[#allocation96_spill] sm:$0xff] %v12119_v4 }
 0xdb6   : > { %4404 = vmatpush.msrb.mxu2 %v12101_v40  ;;  %v12125_v40 = vld [vmem:[%s14219_s7 + $0xd0] sm:$0xff] }
 0xdb7   : > { %15101 = vst [vmem:[#allocation27_spill] sm:$0xff] %v12125_v40 }
 0xdb8   : > { %4405 = vmatpush.msrb.mxu2 %v12107_v43  ;;  %v12131_v43 = vld [vmem:[%s14219_s7 + $0xc8] sm:$0xff] }
 0xdb9   : > { %15102 = vst [vmem:[#allocation12_spill] sm:$0xff] %v12131_v43 }
 0xdba   : > { %4406 = vmatpush.msrb.mxu2 %v12113_v1  ;;  %v12137_v1 = vld [vmem:[%s14219_s7 + $0xc0] sm:$0xff] }
 0xdbb   : > { %15103 = vst [vmem:[#allocation97_spill] sm:$0xff] %v12137_v1 }
 0xdbc   : > { %4407 = vmatpush.msrb.mxu2 %v12119_v4  ;;  %v12143_v4 = vld [vmem:[%s14219_s7 + $0xb8] sm:$0xff] }
 0xdbd   : > { %15104 = vst [vmem:[#allocation98_spill] sm:$0xff] %v12143_v4 }
 0xdbe   : > { %4408 = vmatpush.msrb.mxu2 %v12125_v40  ;;  %v12149_v40 = vld [vmem:[%s14219_s7 + $0xb0] sm:$0xff] }
 0xdbf   : > { %15105 = vst [vmem:[#allocation13_spill] sm:$0xff] %v12149_v40 }
 0xdc0   : > { %4409 = vmatpush.msrb.mxu2 %v12131_v43  ;;  %v12155_v43 = vld [vmem:[%s14219_s7 + $0xa8] sm:$0xff] }
 0xdc1   : > { %15106 = vst [vmem:[#allocation29_spill] sm:$0xff] %v12155_v43 }
 0xdc2   : > { %4410 = vmatpush.msrb.mxu2 %v12137_v1  ;;  %v12161_v1 = vld [vmem:[%s14219_s7 + $0xa0] sm:$0xff] }
 0xdc3   : > { %15107 = vst [vmem:[#allocation14_spill] sm:$0xff] %v12161_v1 }
 0xdc4   : > { %4411 = vmatpush.msrb.mxu2 %v12143_v4  ;;  %v12167_v4 = vld [vmem:[%s14219_s7 + $0x98] sm:$0xff] }
 0xdc5   : > { %15108 = vst [vmem:[#allocation15_spill] sm:$0xff] %v12167_v4 }
 0xdc6   : > { %4412 = vmatpush.msrb.mxu2 %v12149_v40  ;;  %v12173_v40 = vld [vmem:[%s14219_s7 + $0x90] sm:$0xff] }
 0xdc7   : > { %15109 = vst [vmem:[#allocation16_spill] sm:$0xff] %v12173_v40 }
 0xdc8   : > { %4413 = vmatpush.msrb.mxu2 %v12155_v43  ;;  %v12179_v43 = vld [vmem:[%s14219_s7 + $0x88] sm:$0xff] }
 0xdc9   : > { %15110 = vst [vmem:[#allocation99_spill] sm:$0xff] %v12179_v43 }
 0xdca   : > { %4414 = vmatpush.msrb.mxu2 %v12161_v1  ;;  %v12185_v1 = vld [vmem:[%s14219_s7 + $0x80] sm:$0xff] }
 0xdcb   : > { %15111 = vst [vmem:[#allocation100_spill] sm:$0xff] %v12185_v1 }
 0xdcc   : > { %4415 = vmatpush.msrb.mxu2 %v12167_v4 }
 0xdce   : > { %4416 = vmatpush.msrb.mxu2 %v12173_v40  ;;  %v12192_v40 = vld [vmem:[%s14629_s1 + $0x30] sm:$0xf] }
 0xdcf   : > { %15112 = vst [vmem:[#allocation101_spill] sm:$0xff] %v12192_v40 }
 0xdd0   : > { %4417 = vmatpush.msrb.mxu2 %v12179_v43 }
 0xdd2   : > { %4418 = vmatpush.msrb.mxu2 %v12185_v1 }
 0xe1e   : > { %v4246_v4 = vpop.f32.mrf.mxu0 }
 0xe24   : > { %v4223_v39 = vpop.f32.mrf.mxu2 }
 0xe25   : > { %v4252_v27 = vmax.f32 %v4223_v39, %v4246_v4  ;;  %v12205_v39 = vld [vmem:[%s14629_s1 + $0x10] sm:$0xff] }
 0xe26   : > { %v4249_v43 = vpop.f32.mrf.mxu0  ;;  %15114 = vst [vmem:[#allocation102_spill] sm:$0xff] %v12205_v39 }
 0xe27   : > { %7428 = vmatmul.msk.f32.vlgmr.msra.gmra.mxu1 %vm1200_vm7, %v4252_v27  ;;  %v4256_v12 = vrot.slane %v4252_v27, 1  ;;  %v4303_v61 = vrot.slane %v4252_v27, 2  ;;  %v4329_v55 = vrot.slane %v4252_v27, 3 }
 0xe28   : > { %7446 = vmatpush.msk.msra.mxu1 %vm555_vm0, %v12192_v40 }
 0xe2a   : > { %4571 = vmatpush.msra.mxu1 %v12199_v33 }
 0xe2c   : > { %v4226_v1 = vpop.f32.mrf.mxu2  ;;  %4572 = vmatpush.msra.mxu1 %v12205_v39  ;;  %v12331_v39 = vld [vmem:[%s14218_s6] ss:$0 sm:$0xff] }
 0xe2d   : > { %v4253_v4 = vmax.f32 %v4226_v1, %v4249_v43  ;;  %v12281_v43 = vld [vmem:[%s8500_s25 + $0xb0] sm:$0xff] }
 0xe2e   : > { %4573 = vmatpush.msra.mxu1 %v11274_v34  ;;  %v12218_v34 = vld [vmem:[%s14629_s1 + $0x70] sm:$0xf] }
 0xe2f   : > { %v4257_v40 = vrot.slane %v4253_v4, 1  ;;  %v4304_v37 = vrot.slane %v4253_v4, 2  ;;  %v4330_v45 = vrot.slane %v4253_v4, 3  ;;  %15115 = vst [vmem:[#allocation103_spill] sm:$0xff] %v12218_v34 }
 0xe31   : > { %v4258_v26 = vsel %vm540_vm1, %v4256_v12, %v4257_v40  ;;  %v4305_v33 = vsel %vm687_vm3, %v4303_v61, %v4304_v37  ;;  %v4331_v7 = vsel %vm774_vm4, %v4329_v55, %v4330_v45  ;;  %v4356_v37 = vrot.slane %v4253_v4, 4  ;;  %v12234_v55 = vld [vmem:[%s14629_s1 + $0x50] sm:$0xff]  ;;  %v12242_v45 = vld [vmem:[%s14629_s1 + $0x40] sm:$0xff] }
 0xe32   : > { %7427 = vmatmul.msk.f32.vlgmr.msrb.gmra.mxu3 %vm1200_vm7, %v4258_v26  ;;  %7429 = vmatmul.msk.f32.vlgmr.msra.gmra.mxu2 %vm1200_vm7, %v4305_v33  ;;  %v12227_v26 = vld [vmem:[%s14629_s1 + $0x60] sm:$0xff]  ;;  %15117 = vst [vmem:[#allocation18_spill] sm:$0xff] %v12234_v55  ;;  %v12263_v61 = vld [vmem:[%s14629_s1 + $0x90] sm:$0xff]  ;;  %v12276_v33 = vld [vmem:[%s8500_s25 + $0xa8] sm:$0xff]  ;;  %v4490_v4 = vrot.slane %v12281_v43, 1 }
 0xe33   : > { %7430 = vmatmul.msk.f32.vlgmr.msra.gmra.mxu0 %vm1200_vm7, %v4331_v7  ;;  %7438 = vmatpush.msk.msrb.mxu3 %vm555_vm0, %v12218_v34  ;;  %15116 = vst [vmem:[#allocation104_spill] sm:$0xff] %v12227_v26  ;;  %v4355_v7 = vrot.slane %v4252_v27, 4  ;;  %v12273_v12 = vld [vmem:[%s8500_s25 + $0xa0] sm:$0xff]  ;;  %v4488_v40 = vrot.slane %v12276_v33, 1 }
 0xe34   : > { %7450 = vmatpush.msk.msra.mxu2 %vm555_vm0, %v11286_v58  ;;  %15118 = vst [vmem:[#allocation105_spill] sm:$0xff] %v12242_v45  ;;  %v4487_v27 = vrot.slane %v12273_v12, 1 }
 0xe35   : > { %4513 = vmatpush.msrb.mxu3 %v12227_v26  ;;  %v4357_v58 = vsel %vm555_vm0, %v4355_v7, %v4356_v37  ;;  %15121 = vst [vmem:[#allocation19_spill] sm:$0xff] %v12263_v61  ;;  %v12292_v37 = vld [vmem:[%s14629_s1 + $0x130] sm:$0xf]  ;;  %v12299_v7 = vld [vmem:[%s14629_s1 + $0x120] sm:$0xff] }
 0xe36   : > { %4597 = vmatpush.msra.mxu2 %v11293_v24  ;;  %v12250_v24 = vld [vmem:[%s14629_s1 + $0xb0] sm:$0xf]  ;;  %v12284_v1 = vsel %vm540_vm1, %v4487_v27, %v4488_v40  ;;  %15123 = vst [vmem:[#allocation109_spill] sm:$0xff] %v12292_v37 }
 0xe37   : > { %4514 = vmatpush.msrb.mxu3 %v12234_v55  ;;  %15119 = vst [vmem:[#allocation106_spill] sm:$0xff] %v12250_v24  ;;  %v12308_v27 = vld [vmem:[%s14629_s1 + $0x110] sm:$0xff] }
 0xe38   : > { %4598 = vmatpush.msra.mxu2 %v11299_v14  ;;  %v12257_v14 = vld [vmem:[%s14629_s1 + $0xa0] sm:$0xff]  ;;  %15124 = vst [vmem:[#allocation110_spill] sm:$0xff] %v12299_v7 }
 0xe39   : > { %4515 = vmatpush.msrb.mxu3 %v12242_v45  ;;  %15120 = vst [vmem:[#allocation107_spill] sm:$0xff] %v12257_v14 }
 0xe3a   : > { %7431 = vmatmul.msk.f32.vlgmr.msra.gmra.mxu3 %vm1200_vm7, %v4357_v58  ;;  %4599 = vmatpush.msra.mxu2 %v11306_v0  ;;  %v12269_v0 = vld [vmem:[%s14629_s1 + $0x80] sm:$0xff]  ;;  %v12303_v58 = vsel %vm540_vm1, %v4488_v40, %v4490_v4  ;;  %15125 = vst [vmem:[#allocation111_spill] sm:$0xff] %v12308_v27 }
 0xe3b   : > { %7454 = vmatpush.msk.msra.mxu3 %vm555_vm0, %v12250_v24  ;;  %15122 = vst [vmem:[#allocation108_spill] sm:$0xff] %v12269_v0 }
 0xe3d   : > { %4636 = vmatpush.msra.mxu3 %v12257_v14 }
 0xe3f   : > { %4637 = vmatpush.msra.mxu3 %v12263_v61 }
 0xe41   : > { %4638 = vmatpush.msra.mxu3 %v12269_v0  ;;  %v12312_v0 = vld [vmem:[%s8500_s25 + $0xb8] sm:$0xf] }
 0xe42   : > { %7439 = vmatmul.msk.f32.vlgmr.msrb.gmra.mxu3 %vm548_vm2, %v12284_v1  ;;  %v4492_v40 = vrot.slane %v12312_v0, 1 }
 0xe43   : > { %7470 = vmatpush.msk.msrb.mxu3 %vm555_vm0, %v12292_v37  ;;  %v12317_v37 = vld [vmem:[%s14629_s1 + $0x100] sm:$0xff] }
 0xe44   : > { %15126 = vst [vmem:[#allocation112_spill] sm:$0xff] %v12317_v37  ;;  %v12324_v14 = vsel %vm540_vm1, %v4490_v4, %v4492_v40  ;;  %v4753_v4 = vrot.slane %v12276_v33, 4  ;;  %v4682_v40 = vrot.slane %v12276_v33, 3 }
 0xe45   : > { %4778 = vmatpush.msrb.mxu3 %v12299_v7 }
 0xe47   : > { %4779 = vmatpush.msrb.mxu3 %v12308_v27 }
 0xe49   : > { %4780 = vmatpush.msrb.mxu3 %v12317_v37 }
 0xe4a   : > { %7440 = vmatmul.msk.f32.gmra.mxu3 %vm548_vm2, %v12303_v58 }
 0xe52   : > { %7441 = vmatmul.msk.f32.gmra.mxu3 %vm548_vm2, %v12324_v14 }
 0xea4   : > { %v4300_v7 = vpop.f32.mrf.mxu1 }
 0xeb0   : > { %v4351_v55 = vpop.f32.mrf.mxu0 }
 0xeb5   : > { %v4278_v61 = vpop.f32.mrf.mxu3  ;;  %v4325_v24 = vpop.f32.mrf.mxu2 }
 0xeb6   : > { %v4301_v27 = vadd.f32 %v4300_v7, %v4278_v61  ;;  %v4752_v61 = vrot.slane %v12273_v12, 4 }
 0xeb8   : > { %v4328_v45 = vadd.f32 %v4325_v24, %v4301_v27  ;;  %v15144_v24 = vld [vmem:[#allocation74_spill] sm:$0xff]  ;;  %v12407_v7 = vsel %vm555_vm0, %v4752_v61, %v4753_v4  ;;  %v4681_v27 = vrot.slane %v12273_v12, 3  ;;  %v12467_v61 = vld [vmem:[%s14629_s1 + $0x58] sm:$0xff] }
 0xeba   : > { %v4354_v26 = vadd.f32 %v4351_v55, %v4328_v45  ;;  %v15142_v55 = vld [vmem:[#allocation72_spill] sm:$0xff]  ;;  %v15143_v45 = vld [vmem:[#allocation59_spill] sm:$0xff] }
 0xebd   : > { %v4377_v34 = vpop.f32.mrf.mxu3 }
 0xebe   : > { %v4380_v37 = vadd.f32 %v4377_v34, %v4354_v26  ;;  %v15141_v34 = vld [vmem:[#allocation58_spill] sm:$0xff] }
 0xec0   : > { %v4381_v38 = vadd.f32 %v12331_v39, %v4380_v37  ;;  %v15145_v37 = vld [vmem:[#allocation60_spill] sm:$0xff] }
 0xec2   : > { %v4382_v23 = vmax.f32 %v4381_v38, 0.0  ;;  %v4615_v38 = vrot.slane %v12312_v0, 2 }
 0xec4   : > { %4399 = vmatmul.f32.vlgmr.msrb.gmra.mxu1 %v4382_v23  ;;  %4419 = vmatmul.f32.vlgmr.msrb.gmra.mxu2 %v4382_v23  ;;  %v15140_v23 = vld [vmem:[#allocation70_spill] sm:$0xff] }
 0xec5   : > { %7462 = vmatpush.msk.msrb.mxu1 %vm555_vm0, %v11314_v32  ;;  %7466 = vmatpush.msk.msrb.mxu2 %vm555_vm0, %v11321_v52  ;;  %v15127_v32 = vld [vmem:[#allocation21_spill] sm:$0xff]  ;;  %v15128_v52 = vld [vmem:[#allocation22_spill] sm:$0xff] }
 0xec7   : > { %4707 = vmatpush.msrb.mxu1 %v11328_v30  ;;  %4733 = vmatpush.msrb.mxu2 %v11334_v49  ;;  %v15129_v30 = vld [vmem:[#allocation23_spill] sm:$0xff]  ;;  %v15130_v49 = vld [vmem:[#allocation24_spill] sm:$0xff] }
 0xec9   : > { %4708 = vmatpush.msrb.mxu1 %v11340_v54  ;;  %4734 = vmatpush.msrb.mxu2 %v11346_v60  ;;  %v15131_v54 = vld [vmem:[#allocation25_spill] sm:$0xff]  ;;  %v15132_v60 = vld [vmem:[#allocation26_spill] sm:$0xff] }
 0xecb   : > { %4709 = vmatpush.msrb.mxu1 %v11352_v19  ;;  %4735 = vmatpush.msrb.mxu2 %v11358_v42  ;;  %v15133_v19 = vld [vmem:[#allocation28_spill] sm:$0xff]  ;;  %v15134_v42 = vld [vmem:[#allocation30_spill] sm:$0xff] }
 0xecc   : > { %7447 = vmatmul.msk.f32.vlgmr.msra.gmra.mxu1 %vm548_vm2, %v12273_v12  ;;  %7451 = vmatmul.msk.f32.vlgmr.msra.gmra.mxu2 %vm548_vm2, %v12273_v12 }
 0xecd   : > { %4844 = vmatpush.msra.mxu1 %v11371_v29  ;;  %4884 = vmatpush.msra.mxu2 %v11377_v56  ;;  %v4610_v29 = vrot.slane %v12273_v12, 2  ;;  %v4611_v56 = vrot.slane %v12276_v33, 2  ;;  %v15149_v12 = vld [vmem:[#allocation32_spill] sm:$0xff] }
 0xecf   : > { %4845 = vmatpush.msra.mxu1 %v11383_v13  ;;  %4885 = vmatpush.msra.mxu2 %v11389_v6  ;;  %v12377_v13 = vsel %vm687_vm3, %v4610_v29, %v4611_v56  ;;  %v15135_v6 = vld [vmem:[#allocation44_spill] sm:$0xff]  ;;  %v15151_v29 = vld [vmem:[#allocation38_spill] sm:$0xff] }
 0xed0   : > { %7455 = vmatmul.msk.f32.vlgmr.msra.gmra.mxu3 %vm548_vm2, %v12377_v13 }
 0xed1   : > { %4846 = vmatpush.msra.mxu1 %v11395_v44  ;;  %4896 = vmatpush.msra.mxu3 %v15135_v6  ;;  %v15136_v44 = vld [vmem:[#allocation50_spill] sm:$0xff] }
 0xed3   : > { %4847 = vmatpush.msra.mxu1 %v11404_v50  ;;  %4897 = vmatpush.msra.mxu3 %v15136_v44  ;;  %v4613_v50 = vrot.slane %v12281_v43, 2  ;;  %v15152_v44 = vld [vmem:[#allocation40_spill] sm:$0xff] }
 0xed4   : > { %7448 = vmatmul.msk.f32.gmra.mxu1 %vm548_vm2, %v12276_v33  ;;  %7452 = vmatmul.msk.f32.gmra.mxu2 %vm548_vm2, %v12276_v33 }
 0xed5   : > { %4848 = vmatpush.msra.mxu1 %v11414_v35  ;;  %v15137_v35 = vld [vmem:[#allocation56_spill] sm:$0xff]  ;;  %v12396_v26 = vsel %vm687_vm3, %v4613_v50, %v4615_v38  ;;  %v15154_v38 = vld [vmem:[#allocation45_spill] sm:$0xff] }
 0xed6   : > { %4898 = vmatpush.msra.mxu3 %v15137_v35  ;;  %v15153_v35 = vld [vmem:[#allocation36_spill] sm:$0xff] }
 0xed7   : > { %4849 = vmatpush.msra.mxu1 %v11420_v63  ;;  %v12386_v63 = vsel %vm687_vm3, %v4611_v56, %v4613_v50 }
 0xed8   : > { %7456 = vmatmul.msk.f32.gmra.mxu3 %vm548_vm2, %v12386_v63 }
 0xed9   : > { %4850 = vmatpush.msra.mxu1 %v11426_v25  ;;  %v15138_v25 = vld [vmem:[#allocation68_spill] sm:$0xff] }
 0xeda   : > { %4899 = vmatpush.msra.mxu3 %v15138_v25  ;;  %v12438_v25 = vld [vmem:[%s14220_s8] sm:$0xf] }
 0xedb   : > { %4851 = vmatpush.msra.mxu1 %v11435_v31  ;;  %v15139_v31 = vld [vmem:[#allocation57_spill] sm:$0xff] }
 0xedc   : > { %7449 = vmatmul.msk.f32.gmra.mxu1 %vm548_vm2, %v12281_v43  ;;  %7453 = vmatmul.msk.f32.gmra.mxu2 %vm548_vm2, %v12281_v43 }
 0xedd   : > { %4852 = vmatpush.msra.mxu1 %v15127_v32  ;;  %4900 = vmatpush.msra.mxu3 %v15139_v31  ;;  %v15146_v32 = vld [vmem:[#allocation76_spill] sm:$0xff] }
 0xedf   : > { %4853 = vmatpush.msra.mxu1 %v15128_v52  ;;  %4901 = vmatpush.msra.mxu3 %v15140_v23  ;;  %v4683_v52 = vsel %vm774_vm4, %v4681_v27, %v4682_v40  ;;  %v4686_v23 = vrot.slane %v12312_v0, 3  ;;  %v15158_v27 = vld [vmem:[#allocation54_spill] sm:$0xff] }
 0xee0   : > { %7457 = vmatmul.msk.f32.gmra.mxu3 %vm548_vm2, %v12396_v26 }
 0xee1   : > { %4854 = vmatpush.msra.mxu1 %v15129_v30  ;;  %4902 = vmatpush.msra.mxu3 %v15141_v34  ;;  %v15147_v30 = vld [vmem:[#allocation78_spill] sm:$0xff]  ;;  %v12449_v34 = vld [vmem:[%s14629_s1 + $0x78] sm:$0xf] }
 0xee3   : > { %4855 = vmatpush.msra.mxu1 %v15130_v49  ;;  %4903 = vmatpush.msra.mxu3 %v15142_v55  ;;  %v15148_v49 = vld [vmem:[#allocation82_spill] sm:$0xff] }
 0xee4   : > { %7463 = vmatmul.msk.f32.vlgmr.msrb.gmra.mxu1 %vm548_vm2, %v4683_v52  ;;  %7467 = vmatmul.msk.f32.vlgmr.msrb.gmra.mxu2 %vm548_vm2, %v4683_v52  ;;  %v15159_v52 = vld [vmem:[#allocation55_spill] sm:$0xff] }
 0xee5   : > { %4856 = vmatpush.msra.mxu1 %v15131_v54  ;;  %4904 = vmatpush.msra.mxu3 %v15143_v45  ;;  %v4755_v54 = vrot.slane %v12281_v43, 4  ;;  %v15155_v45 = vld [vmem:[#allocation48_spill] sm:$0xff] }
 0xee7   : > { %4857 = vmatpush.msra.mxu1 %v15132_v60  ;;  %4905 = vmatpush.msra.mxu3 %v15144_v24  ;;  %v12422_v33 = vsel %vm555_vm0, %v4753_v4, %v4755_v54  ;;  %v4684_v60 = vrot.slane %v12281_v43, 3  ;;  %v4757_v43 = vrot.slane %v12312_v0, 4  ;;  %v12460_v0 = vld [vmem:[%s14629_s1 + $0x68] sm:$0xff]  ;;  %v15157_v4 = vld [vmem:[#allocation52_spill] sm:$0xff] }
 0xee8   : > { %7471 = vmatmul.msk.f32.vlgmr.msrb.gmra.mxu3 %vm548_vm2, %v12407_v7  ;;  %v15156_v24 = vld [vmem:[#allocation51_spill] sm:$0xff] }
 0xee9   : > { %4858 = vmatpush.msra.mxu1 %v15133_v19  ;;  %4906 = vmatpush.msra.mxu3 %v15145_v37  ;;  %v15150_v19 = vld [vmem:[#allocation34_spill] sm:$0xff]  ;;  %v4758_v31 = vsel %vm555_vm0, %v4755_v54, %v4757_v43  ;;  %v4687_v55 = vsel %vm774_vm4, %v4684_v60, %v4686_v23  ;;  %v12510_v54 = vld [vmem:[%s14629_s1 + $0x88] sm:$0xff] }
 0xeea   : > { %v12474_v37 = vld [vmem:[%s14220_s8 + $0x4] sm:$0xf] }
 0xeeb   : > { %4859 = vmatpush.msra.mxu1 %v15134_v42  ;;  %4907 = vmatpush.msra.mxu3 %v15146_v32  ;;  %v4685_v42 = vsel %vm774_vm4, %v4682_v40, %v4684_v60  ;;  %v12482_v40 = vld [vmem:[%s14629_s1 + $0x48] sm:$0xff]  ;;  %v12488_v32 = vld [vmem:[%s14629_s1 + $0xb8] sm:$0xf]  ;;  %v15169_v43 = vld [vmem:[#allocation46_spill] sm:$0xff] }
 0xeec   : > { %7464 = vmatmul.msk.f32.gmra.mxu1 %vm548_vm2, %v4685_v42  ;;  %7468 = vmatmul.msk.f32.gmra.mxu2 %vm548_vm2, %v4685_v42  ;;  %v12523_v60 = vld [vmem:[%s14629_s1 + $0x128] sm:$0xff] }
 0xeed   : > { %4908 = vmatpush.msra.mxu3 %v15147_v30  ;;  %v12496_v30 = vld [vmem:[%s14629_s1 + $0xa8] sm:$0xff] }
 0xeee   : > { %v15160_v42 = vld [vmem:[#allocation47_spill] sm:$0xff] }
 0xeef   : > { %4909 = vmatpush.msra.mxu3 %v15148_v49  ;;  %v12502_v49 = vld [vmem:[%s14629_s1 + $0x98] sm:$0xff] }
 0xef0   : > { %7472 = vmatmul.msk.f32.gmra.mxu3 %vm548_vm2, %v12422_v33 }
 0xef1   : > { %4910 = vmatpush.msra.mxu3 %v15149_v12  ;;  %v12516_v12 = vld [vmem:[%s14629_s1 + $0x138] sm:$0xf] }
 0xef3   : > { %4911 = vmatpush.msra.mxu3 %v15150_v19  ;;  %v12537_v19 = vld [vmem:[%s14629_s1 + $0x108] sm:$0xff] }
 0xef4   : > { %7465 = vmatmul.msk.f32.gmra.mxu1 %vm548_vm2, %v4687_v55  ;;  %7469 = vmatmul.msk.f32.gmra.mxu2 %vm548_vm2, %v4687_v55 }
 0xef5   : > { %5035 = vmatpush.msrb.mxu3 %v15151_v29  ;;  %v15161_v29 = vld [vmem:[#allocation53_spill] sm:$0xff] }
 0xef7   : > { %5036 = vmatpush.msrb.mxu3 %v15152_v44 }
 0xef8   : > { %7473 = vmatmul.msk.f32.gmra.mxu3 %vm548_vm2, %v4758_v31 }
 0xef9   : > { %5037 = vmatpush.msrb.mxu3 %v15153_v35 }
 0xefb   : > { %5038 = vmatpush.msrb.mxu3 %v15154_v38 }
 0xefd   : > { %5039 = vmatpush.msrb.mxu3 %v15155_v45 }
 0xeff   : > { %5040 = vmatpush.msrb.mxu3 %v15156_v24 }
 0xf01   : > { %5041 = vmatpush.msrb.mxu3 %v15157_v4 }
 0xf03   : > { %5042 = vmatpush.msrb.mxu3 %v15158_v27 }
 0xf05   : > { %5043 = vmatpush.msrb.mxu3 %v15159_v52 }
 0xf41   : > { %v4400_v56 = vpop.f32.mrf.mxu1 }
 0xf47   : > { %v4420_v6 = vpop.f32.mrf.mxu2 }
 0xf48   : > { %v4423_v50 = vmax.f32 %v4400_v56, %v4420_v6  ;;  %v15162_v56 = vld [vmem:[#allocation80_spill] sm:$0xff]  ;;  %v15164_v6 = vld [vmem:[#allocation33_spill] sm:$0xff] }
 0xf49   : > { %v4575_v23 = vpop.f32.mrf.mxu1 }
 0xf4a   : > { %4439 = vmatpush.msrb.mxu0 %v4423_v50 }
 0xf4b   : > { %7432 = vmatmul.msk.f32.vlgmr.msrb.gmra.mxu0 %vm1434_vm8, %v12438_v25 }
 0xf4c   : > { %4459 = vmatpush.msra.mxu0 %v4423_v50  ;;  %v15167_v50 = vld [vmem:[#allocation41_spill] sm:$0xff] }
 0xf4e   : > { %7442 = vmatpush.msk.msrb.mxu0 %vm555_vm0, %v12449_v34 }
 0xf50   : > { %4539 = vmatpush.msrb.mxu0 %v12460_v0 }
 0xf51   : > { %v4578_v55 = vpop.f32.mrf.mxu1 }
 0xf52   : > { %4540 = vmatpush.msrb.mxu0 %v12467_v61 }
 0xf53   : > { %7433 = vmatmul.msk.f32.vlgmr.msra.gmra.mxu0 %vm1434_vm8, %v12474_v37 }
 0xf54   : > { %4541 = vmatpush.msrb.mxu0 %v12482_v40 }
 0xf56   : > { %7458 = vmatpush.msk.msra.mxu0 %vm555_vm0, %v12488_v32 }
 0xf58   : > { %4662 = vmatpush.msra.mxu0 %v12496_v30 }
 0xf59   : > { %v4581_v24 = vpop.f32.mrf.mxu1 }
 0xf5a   : > { %4663 = vmatpush.msra.mxu0 %v12502_v49 }
 0xf5b   : > { %7443 = vmatmul.msk.f32.vlgmr.msrb.gmra.mxu0 %vm548_vm2, %v12284_v1  ;;  %v12529_v1 = vld [vmem:[%s14629_s1 + $0x118] sm:$0xff] }
 0xf5c   : > { %4664 = vmatpush.msra.mxu0 %v12510_v54 }
 0xf5e   : > { %7474 = vmatpush.msk.msrb.mxu0 %vm555_vm0, %v12516_v12 }
 0xf60   : > { %4804 = vmatpush.msrb.mxu0 %v12523_v60 }
 0xf61   : > { %v4711_v52 = vpop.f32.mrf.mxu1 }
 0xf62   : > { %4805 = vmatpush.msrb.mxu0 %v12529_v1 }
 0xf63   : > { %7444 = vmatmul.msk.f32.gmra.mxu0 %vm548_vm2, %v12303_v58  ;;  %v4517_v58 = vpop.f32.mrf.mxu3 }
 0xf64   : > { %4806 = vmatpush.msrb.mxu0 %v12537_v19 }
 0xf6b   : > { %7445 = vmatmul.msk.f32.gmra.mxu0 %vm548_vm2, %v12324_v14  ;;  %v15163_v14 = vld [vmem:[#allocation84_spill] sm:$0xff]  ;;  %v4520_v44 = vpop.f32.mrf.mxu3 }
 0xf73   : > { %7459 = vmatmul.msk.f32.vlgmr.msra.gmra.mxu0 %vm548_vm2, %v12377_v13  ;;  %v15165_v13 = vld [vmem:[#allocation35_spill] sm:$0xff]  ;;  %v4523_v35 = vpop.f32.mrf.mxu3 }
 0xf74   : > { %4936 = vmatpush.msra.mxu0 %v15160_v42  ;;  %v4579_v42 = vadd.f32 %v4578_v55, %v4520_v44 }
 0xf76   : > { %4937 = vmatpush.msra.mxu0 %v15161_v29 }
 0xf7b   : > { %7460 = vmatmul.msk.f32.gmra.mxu0 %vm548_vm2, %v12386_v63  ;;  %v15166_v63 = vld [vmem:[#allocation39_spill] sm:$0xff]  ;;  %v4640_v38 = vpop.f32.mrf.mxu3 }
 0xf83   : > { %7461 = vmatmul.msk.f32.gmra.mxu0 %vm548_vm2, %v12396_v26  ;;  %v15168_v26 = vld [vmem:[#allocation43_spill] sm:$0xff]  ;;  %v4643_v45 = vpop.f32.mrf.mxu3 }
 0xf8b   : > { %7475 = vmatmul.msk.f32.vlgmr.msrb.gmra.mxu0 %vm548_vm2, %v12407_v7  ;;  %v15170_v7 = vld [vmem:[#allocation49_spill] sm:$0xff]  ;;  %v4646_v4 = vpop.f32.mrf.mxu3 }
 0xf8c   : > { %5013 = vmatpush.msrb.mxu0 %v15162_v56 }
 0xf8e   : > { %5014 = vmatpush.msrb.mxu0 %v15163_v14  ;;  %v4677_v14 = vadd.f32 %v4643_v45, %v4579_v42 }
 0xf90   : > { %5015 = vmatpush.msrb.mxu0 %v15164_v6 }
 0xf92   : > { %5016 = vmatpush.msrb.mxu0 %v15165_v13 }
 0xf93   : > { %7476 = vmatmul.msk.f32.gmra.mxu0 %vm548_vm2, %v12422_v33  ;;  %v4576_v33 = vadd.f32 %v4575_v23, %v4517_v58  ;;  %v4782_v56 = vpop.f32.mrf.mxu3 }
 0xf94   : > { %5017 = vmatpush.msrb.mxu0 %v15166_v63  ;;  %v4582_v63 = vadd.f32 %v4581_v24, %v4523_v35 }
 0xf95   : > { %v4675_v27 = vadd.f32 %v4640_v38, %v4576_v33 }
 0xf96   : > { %5018 = vmatpush.msrb.mxu0 %v15167_v50 }
 0xf97   : > { %v4746_v29 = vadd.f32 %v4711_v52, %v4675_v27 }
 0xf98   : > { %5019 = vmatpush.msrb.mxu0 %v15168_v26 }
 0xf99   : > { %v4817_v6 = vadd.f32 %v4782_v56, %v4746_v29 }
 0xf9a   : > { %5020 = vmatpush.msrb.mxu0 %v15169_v43 }
 0xf9b   : > { %7477 = vmatmul.msk.f32.gmra.mxu0 %vm548_vm2, %v4758_v31  ;;  %v4823_v13 = vadd.f32 %v4817_v6, %v14736_v8  ;;  %v4714_v31 = vpop.f32.mrf.mxu1  ;;  %v4785_v43 = vpop.f32.mrf.mxu3 }
 0xf9c   : > { %5021 = vmatpush.msrb.mxu0 %v15170_v7  ;;  %v4748_v26 = vadd.f32 %v4714_v31, %v4677_v14  ;;  %v4679_v7 = vadd.f32 %v4646_v4, %v4582_v63  ;;  %v15172_v4 = vld [vmem:[#allocation37_spill] sm:$0xff] }
 0xf9d   : > { %v4829_v50 = vmax.f32 %v4823_v13, 0.0  ;;  %v1491_v27 = vrot.slane %v15172_v4, 3  ;;  %v13111_v4 = vld [vmem:[%s14217_s5 + $0x68] sm:$0xff] }
 0xf9e   : > { %v4819_v23 = vadd.f32 %v4785_v43, %v4748_v26  ;;  %15258 = vst [vmem:[#allocation51_spill] sm:$0xff] %v13111_v4 }
 0xf9f   : > { %4860 = vmatmul.f32.vlgmr.msra.gmra.mxu1 %v4829_v50  ;;  %4912 = vmatmul.f32.vlgmr.msra.gmra.mxu3 %v4829_v50  ;;  %v15173_v50 = vld [vmem:[#allocation31_spill] sm:$0xff] }
 0xfa0   : > { %5128 = vmatpush.msra.mxu3 %v11808_v16  ;;  %v4825_v44 = vadd.f32 %v4819_v23, %v14736_v8 }
 0xfa2   : > { %5129 = vmatpush.msra.mxu3 %v11815_v17  ;;  %v4831_v45 = vmax.f32 %v4825_v44, 0.0  ;;  %v15175_v44 = vld [vmem:[#allocation63_spill] sm:$0xff] }
 0xfa3   : > { %v4717_v38 = vpop.f32.mrf.mxu1  ;;  %v4788_v35 = vpop.f32.mrf.mxu3 }
 0xfa4   : > { %5130 = vmatpush.msra.mxu3 %v11822_v9  ;;  %v4750_v55 = vadd.f32 %v4717_v38, %v4679_v7 }
 0xfa6   : > { %5131 = vmatpush.msra.mxu3 %v11836_v41  ;;  %v4821_v24 = vadd.f32 %v4788_v35, %v4750_v55  ;;  %v15176_v35 = vld [vmem:[#allocation64_spill] sm:$0xff] }
 0xfa7   : > { %4863 = vmatmul.f32.gmra.mxu1 %v4831_v45  ;;  %4915 = vmatmul.f32.gmra.mxu3 %v4831_v45 }
 0xfa8   : > { %5132 = vmatpush.msra.mxu3 %v11848_v10  ;;  %v4827_v17 = vadd.f32 %v4821_v24, %v14736_v8  ;;  %v15177_v24 = vld [vmem:[#allocation65_spill] sm:$0xff] }
 0xfaa   : > { %5133 = vmatpush.msra.mxu3 %v11861_v28  ;;  %v4833_v41 = vmax.f32 %v4827_v17, 0.0 }
 0xfac   : > { %5134 = vmatpush.msra.mxu3 %v11874_v2  ;;  %v4601_v2 = vpop.f32.mrf.mxu2 }
 0xfae   : > { %5135 = vmatpush.msra.mxu3 %v11888_v36 }
 0xfaf   : > { %4866 = vmatmul.f32.gmra.mxu1 %v4833_v41  ;;  %4918 = vmatmul.f32.gmra.mxu3 %v4833_v41 }
 0xfb0   : > { %5136 = vmatpush.msra.mxu3 %v11900_v20 }
 0xfb2   : > { %5137 = vmatpush.msra.mxu3 %v11913_v53 }
 0xfb4   : > { %5138 = vmatpush.msra.mxu3 %v11925_v47  ;;  %v4604_v42 = vpop.f32.mrf.mxu2 }
 0xfb6   : > { %5139 = vmatpush.msra.mxu3 %v11939_v5 }
 0xfb8   : > { %5140 = vmatpush.msra.mxu3 %v11945_v3 }
 0xfba   : > { %5141 = vmatpush.msra.mxu3 %v11951_v48 }
 0xfbc   : > { %5142 = vmatpush.msra.mxu3 %v11957_v22  ;;  %v4607_v29 = vpop.f32.mrf.mxu2 }
 0xfbe   : > { %5143 = vmatpush.msra.mxu3 %v11963_v18 }
 0xfc4   : > { %v4737_v53 = vpop.f32.mrf.mxu2 }
 0xfc8   : > { %v4441_v58 = vpop.f32.mrf.mxu0 }
 0xfcc   : > { %v4740_v63 = vpop.f32.mrf.mxu2 }
 0xfd0   : > { %v4461_v16 = vpop.f32.mrf.mxu0 }
 0xfd1   : > { %v12571_v33 = vmax.f32 %v4441_v58, %v4461_v16  ;;  %v15174_v58 = vld [vmem:[#allocation62_spill] sm:$0xff] }
 0xfd3   : > { %15171 = vst [vmem:[#allocation113_spill] sm:$0xff] %v12571_v33  ;;  %v4466_v9 = vrot.slane %v12571_v33, 1 }
 0xfd4   : > { %v4743_v45 = vpop.f32.mrf.mxu2 }
 0xfd5   : > { %v7694_v52 = vpack.i.bf16 %v1491_v27, %v4466_v9  ;;  %v15178_v9 = vld [vmem:[#allocation66_spill] sm:$0xff] }
 0xfd7   : > { %7695 = vrot.lane.b32.xlu1 %v7694_v52, %s8333_s29  ;;  %v15179_v52 = vld [vmem:[#allocation67_spill] sm:$0xff] }
 0xfd8   : > { %v4543_v10 = vpop.f32.mrf.mxu0 }
 0xfd9   : > { %v4602_v47 = vadd.f32 %v4601_v2, %v4543_v10 }
 0xfe0   : > { %v4546_v28 = vpop.f32.mrf.mxu0 }
 0xfe1   : > { %v4605_v3 = vadd.f32 %v4604_v42, %v4546_v28  ;;  %v15180_v28 = vld [vmem:[#allocation69_spill] sm:$0xff] }
 0xfe2   : > { %v15182_v42 = vld [vmem:[#allocation73_spill] sm:$0xff] }
 0xfe8   : > { %v4549_v36 = vpop.f32.mrf.mxu0 }
 0xfe9   : > { %v4608_v7 = vadd.f32 %v4607_v29, %v4549_v36  ;;  %v15181_v36 = vld [vmem:[#allocation71_spill] sm:$0xff] }
 0xff0   : > { %v4666_v20 = vpop.f32.mrf.mxu0 }
 0xff1   : > { %v4676_v6 = vadd.f32 %v4666_v20, %v4602_v47 }
 0xff3   : > { %v4747_v5 = vadd.f32 %v4737_v53, %v4676_v6 }
 0xff8   : > { %v4669_v56 = vpop.f32.mrf.mxu0 }
 0xff9   : > { %v4678_v48 = vadd.f32 %v4669_v56, %v4605_v3 }
 0xffb   : > { %v4749_v43 = vadd.f32 %v4740_v63, %v4678_v48 }
0x1000   : > { %v4672_v14 = vpop.f32.mrf.mxu0 }
0x1001   : > { %v4680_v38 = vadd.f32 %v4672_v14, %v4608_v7 }
0x1003   : > { %v4751_v17 = vadd.f32 %v4743_v45, %v4680_v38  ;;  %v12614_v38 = vld [vmem:[%s14217_s5 + $0x118] sm:$0xff]  ;;  %v15187_v45 = vld [vmem:[#allocation83_spill] sm:$0xff] }
0x1008   : > { %v4808_v13 = vpop.f32.mrf.mxu0 }
0x1009   : > { %v4818_v31 = vadd.f32 %v4808_v13, %v4747_v5 }
0x100b   : > { %v4824_v22 = vadd.f32 %v4818_v31, %v15173_v50 }
0x100d   : > { %v4830_v26 = vmax.f32 %v4824_v22, 0.0 }
0x100f   : > { %7478 = vmatmul.msk.f32.vlgmr.msra.gmra.mxu2 %vm974_vm5, %v4830_v26  ;;  %7481 = vmatmul.msk.f32.vlgmr.msra.gmra.mxu0 %vm974_vm5, %v4830_v26 }
0x1010   : > { %v4811_v18 = vpop.f32.mrf.mxu0  ;;  %5112 = vmatpush.msra.mxu0 %v15174_v58 }
0x1011   : > { %v4820_v23 = vadd.f32 %v4811_v18, %v4749_v43 }
0x1012   : > { %5113 = vmatpush.msra.mxu0 %v15175_v44 }
0x1013   : > { %v4826_v55 = vadd.f32 %v4820_v23, %v15173_v50 }
0x1014   : > { %5114 = vmatpush.msra.mxu0 %v15176_v35  ;;  %v15188_v35 = vld [vmem:[#allocation85_spill] sm:$0xff] }
0x1015   : > { %v4832_v16 = vmax.f32 %v4826_v55, 0.0  ;;  %v12621_v55 = vld [vmem:[%s14217_s5 + $0x110] sm:$0xff] }
0x1016   : > { %5115 = vmatpush.msra.mxu0 %v15177_v24  ;;  %v15194_v24 = vld [vmem:[#allocation91_spill] sm:$0xff] }
0x1017   : > { %7479 = vmatmul.msk.f32.gmra.mxu2 %vm974_vm5, %v4832_v16  ;;  %7482 = vmatmul.msk.f32.gmra.mxu0 %vm974_vm5, %v4832_v16  ;;  %v15193_v16 = vld [vmem:[#allocation90_spill] sm:$0xff] }
0x1018   : > { %v4814_v27 = vpop.f32.mrf.mxu0  ;;  %5116 = vmatpush.msra.mxu0 %v15178_v9  ;;  %v15197_v9 = vld [vmem:[#allocation94_spill] sm:$0xff] }
0x1019   : > { %v4822_v41 = vadd.f32 %v4814_v27, %v4751_v17  ;;  %v15195_v17 = vld [vmem:[#allocation92_spill] sm:$0xff]  ;;  %v15196_v27 = vld [vmem:[#allocation93_spill] sm:$0xff] }
0x101a   : > { %5117 = vmatpush.msra.mxu0 %v15179_v52  ;;  %v15199_v52 = vld [vmem:[#allocation96_spill] sm:$0xff] }
0x101b   : > { %v4828_v10 = vadd.f32 %v4822_v41, %v15173_v50  ;;  %v15198_v41 = vld [vmem:[#allocation95_spill] sm:$0xff] }
0x101c   : > { %5118 = vmatpush.msra.mxu0 %v15180_v28  ;;  %v4861_v29 = vpop.f32.mrf.mxu1  ;;  %v15201_v28 = vld [vmem:[#allocation12_spill] sm:$0xff] }
0x101d   : > { %v4834_v2 = vmax.f32 %v4828_v10, 0.0  ;;  %v15200_v10 = vld [vmem:[#allocation27_spill] sm:$0xff] }
0x101e   : > { %5119 = vmatpush.msra.mxu0 %v15181_v36  ;;  %v15203_v36 = vld [vmem:[#allocation98_spill] sm:$0xff] }
0x101f   : > { %7480 = vmatmul.msk.f32.gmra.mxu2 %vm974_vm5, %v4834_v2  ;;  %7483 = vmatmul.msk.f32.gmra.mxu0 %vm974_vm5, %v4834_v2  ;;  %v15202_v2 = vld [vmem:[#allocation97_spill] sm:$0xff] }
0x1020   : > { %5120 = vmatpush.msra.mxu0 %v15182_v42  ;;  %v15204_v42 = vld [vmem:[#allocation13_spill] sm:$0xff] }
0x1022   : > { %v4913_v56 = vpop.f32.mrf.mxu3 }
0x1024   : > { %v4864_v47 = vpop.f32.mrf.mxu1 }
0x102a   : > { %v4916_v6 = vpop.f32.mrf.mxu3 }
0x102c   : > { %v4867_v3 = vpop.f32.mrf.mxu1 }
0x1032   : > { %v4919_v31 = vpop.f32.mrf.mxu3 }
0x108c   : > { %v4939_v20 = vpop.f32.mrf.mxu0 }
0x108d   : > { %v4940_v7 = vadd.f32 %v4939_v20, %v4913_v56  ;;  %v15205_v20 = vld [vmem:[#allocation29_spill] sm:$0xff]  ;;  %v15207_v56 = vld [vmem:[#allocation15_spill] sm:$0xff] }
0x1092   : > { %v4887_v53 = vpop.f32.mrf.mxu2 }
0x1093   : > { %v4888_v43 = vadd.f32 %v4887_v53, %v4861_v29  ;;  %v15206_v29 = vld [vmem:[#allocation14_spill] sm:$0xff]  ;;  %v15208_v53 = vld [vmem:[#allocation16_spill] sm:$0xff] }
0x1094   : > { %v4942_v14 = vpop.f32.mrf.mxu0 }
0x1095   : > { %v4943_v18 = vadd.f32 %v4942_v14, %v4916_v6  ;;  %v4948_v44 = vmax.f32 %v4888_v43, %v4940_v7  ;;  %v15209_v14 = vld [vmem:[#allocation99_spill] sm:$0xff] }
0x109a   : > { %v4890_v5 = vpop.f32.mrf.mxu2 }
0x109b   : > { %v4891_v48 = vadd.f32 %v4890_v5, %v4864_v47  ;;  %v15210_v47 = vld [vmem:[#allocation100_spill] sm:$0xff] }
0x109c   : > { %v4945_v13 = vpop.f32.mrf.mxu0 }
0x109d   : > { %v4946_v22 = vadd.f32 %v4945_v13, %v4919_v31  ;;  %v4949_v23 = vmax.f32 %v4891_v48, %v4943_v18 }
0x10a2   : > { %v4893_v63 = vpop.f32.mrf.mxu2 }
0x10a3   : > { %v4894_v26 = vadd.f32 %v4893_v63, %v4867_v3  ;;  %v15211_v3 = vld [vmem:[#allocation101_spill] sm:$0xff] }
0x10a4   : > { %v15212_v63 = vld [vmem:[#allocation17_spill] sm:$0xff] }
0x10a5   : > { %v4950_v58 = vmax.f32 %v4894_v26, %v4946_v22  ;;  %v15213_v22 = vld [vmem:[#allocation102_spill] sm:$0xff] }
0x10a7   : > { %4964 = vmatpush.msrb.mxu2 %v4950_v58  ;;  %4987 = vmatpush.msrb.mxu1 %v4950_v58  ;;  %v12666_v58 = vld [vmem:[%s14629_s1] sm:$0xff] }
0x10a9   : > { %4965 = vmatpush.msrb.mxu2 %v4949_v23  ;;  %4988 = vmatpush.msrb.mxu1 %v4949_v23 }
0x10ab   : > { %4966 = vmatpush.msrb.mxu2 %v4948_v44  ;;  %4989 = vmatpush.msrb.mxu1 %v4948_v44 }
0x10ac   : > { %7484 = vmatmul.msk.f32.vlgmr.msrb.gmra.mxu2 %vm1112_vm6, %v11969_v57  ;;  %7486 = vmatmul.msk.f32.vlgmr.msrb.gmra.mxu1 %vm1112_vm6, %v11976_v15  ;;  %v15183_v57 = vld [vmem:[#allocation75_spill] sm:$0xff]  ;;  %v15184_v15 = vld [vmem:[#allocation77_spill] sm:$0xff] }
0x10ad   : > { %5060 = vmatpush.msra.mxu2 %v11983_v11  ;;  %5086 = vmatpush.msra.mxu1 %v12614_v38  ;;  %v15185_v11 = vld [vmem:[#allocation79_spill] sm:$0xff] }
0x10af   : > { %5061 = vmatpush.msra.mxu2 %v11990_v21  ;;  %5087 = vmatpush.msra.mxu1 %v12621_v55  ;;  %v15186_v21 = vld [vmem:[#allocation81_spill] sm:$0xff] }
0x10b1   : > { %5062 = vmatpush.msra.mxu2 %v11997_v51  ;;  %5088 = vmatpush.msra.mxu1 %v12003_v59  ;;  %v15189_v51 = vld [vmem:[#allocation86_spill] sm:$0xff]  ;;  %v15190_v59 = vld [vmem:[#allocation87_spill] sm:$0xff] }
0x10b3   : > { %5063 = vmatpush.msra.mxu2 %v12009_v62  ;;  %5089 = vmatpush.msra.mxu1 %v12015_v46  ;;  %v15191_v62 = vld [vmem:[#allocation88_spill] sm:$0xff]  ;;  %v15192_v46 = vld [vmem:[#allocation89_spill] sm:$0xff] }
0x10b4   : > { %7485 = vmatmul.msk.f32.gmra.mxu2 %vm1112_vm6, %v15183_v57  ;;  %7487 = vmatmul.msk.f32.gmra.mxu1 %vm1112_vm6, %v15184_v15 }
0x10b5   : > { %5064 = vmatpush.msra.mxu2 %v15185_v11  ;;  %5090 = vmatpush.msra.mxu1 %v15186_v21 }
0x10b7   : > { %5065 = vmatpush.msra.mxu2 %v15187_v45  ;;  %5091 = vmatpush.msra.mxu1 %v15188_v35  ;;  %v12678_v45 = vld [vmem:[%s14629_s1 + $0x38] sm:$0xf] }
0x10b9   : > { %5066 = vmatpush.msra.mxu2 %v15189_v51  ;;  %5092 = vmatpush.msra.mxu1 %v15190_v59  ;;  %v12685_v51 = vld [vmem:[%s14629_s1 + $0x28] sm:$0xff] }
0x10bb   : > { %5067 = vmatpush.msra.mxu2 %v15191_v62  ;;  %5093 = vmatpush.msra.mxu1 %v15192_v46  ;;  %v12691_v62 = vld [vmem:[%s14629_s1 + $0x18] sm:$0xff] }
0x10bd   : > { %5068 = vmatpush.msra.mxu2 %v15193_v16  ;;  %5094 = vmatpush.msra.mxu1 %v15194_v24  ;;  %v12698_v16 = vld [vmem:[%s14629_s1 + $0x8] sm:$0xff] }
0x10bf   : > { %5148 = vmatpush.msrb.mxu2 %v15195_v17 }
0x10c1   : > { %5149 = vmatpush.msrb.mxu2 %v15196_v27 }
0x10c3   : > { %5150 = vmatpush.msrb.mxu2 %v15197_v9 }
0x10c5   : > { %5151 = vmatpush.msrb.mxu2 %v15198_v41 }
0x10c7   : > { %5152 = vmatpush.msrb.mxu2 %v15199_v52 }
0x10c9   : > { %5153 = vmatpush.msrb.mxu2 %v15200_v10 }
0x10cb   : > { %5154 = vmatpush.msrb.mxu2 %v15201_v28 }
0x10cd   : > { %5155 = vmatpush.msrb.mxu2 %v15202_v2 }
0x10cf   : > { %5156 = vmatpush.msrb.mxu2 %v15203_v36 }
0x10d1   : > { %5157 = vmatpush.msrb.mxu2 %v15204_v42 }
0x10d3   : > { %5158 = vmatpush.msrb.mxu2 %v15205_v20  ;;  %v12706_v20 = vld [vmem:[%s14629_s1 + $0xf0] sm:$0xf] }
0x10d5   : > { %5159 = vmatpush.msrb.mxu2 %v15206_v29  ;;  %v12713_v29 = vld [vmem:[%s14629_s1 + $0xf8] sm:$0xf] }
0x10d7   : > { %5160 = vmatpush.msrb.mxu2 %v15207_v56  ;;  %v12726_v56 = vld [vmem:[%s14629_s1 + $0xe8] sm:$0xff] }
0x10d9   : > { %5161 = vmatpush.msrb.mxu2 %v15208_v53  ;;  %v12732_v53 = vld [vmem:[%s14629_s1 + $0xd0] sm:$0xff] }
0x10db   : > { %5162 = vmatpush.msrb.mxu2 %v15209_v14  ;;  %v12738_v14 = vld [vmem:[%s14629_s1 + $0xd8] sm:$0xff] }
0x10dd   : > { %5163 = vmatpush.msrb.mxu2 %v15210_v47  ;;  %v12744_v47 = vld [vmem:[%s14629_s1 + $0xc0] sm:$0xff] }
0x1129   : > { %v4991_v6 = vpop.f32.mrf.mxu1 }
0x112f   : > { %v4968_v5 = vpop.f32.mrf.mxu2 }
0x1130   : > { %v4997_v13 = vmax.f32 %v4968_v5, %v4991_v6  ;;  %v12750_v6 = vld [vmem:[%s14629_s1 + $0xc8] sm:$0xff]  ;;  %v12754_v5 = vld [vmem:[%s8500_s25 + $0xc0] sm:$0xff] }
0x1131   : > { %v4994_v31 = vpop.f32.mrf.mxu1 }
0x1132   : > { %7489 = vmatmul.msk.f32.vlgmr.msrb.gmra.mxu3 %vm1200_vm7, %v4997_v13  ;;  %v5001_v43 = vrot.slane %v4997_v13, 1  ;;  %v5048_v18 = vrot.slane %v4997_v13, 2  ;;  %v5074_v57 = vrot.slane %v4997_v13, 3  ;;  %v5100_v59 = vrot.slane %v4997_v13, 4  ;;  %v12763_v13 = vld [vmem:[%s14215_s3 + $0x78] sm:$0xff] }
0x1133   : > { %7507 = vmatpush.msk.msrb.mxu3 %vm555_vm0, %v15211_v3  ;;  %v12769_v3 = vld [vmem:[%s14215_s3 + $0x88] sm:$0xff] }
0x1135   : > { %5316 = vmatpush.msrb.mxu3 %v15212_v63  ;;  %v12781_v63 = vld [vmem:[%s14215_s3 + $0x80] sm:$0xff] }
0x1137   : > { %v4971_v48 = vpop.f32.mrf.mxu2  ;;  %5317 = vmatpush.msrb.mxu3 %v15213_v22  ;;  %v12791_v22 = vld [vmem:[%s8500_s25 + $0xc8] sm:$0xff] }
0x1138   : > { %v4998_v26 = vmax.f32 %v4971_v48, %v4994_v31  ;;  %v12775_v31 = vld [vmem:[%s14215_s3 + $0x70] sm:$0xff]  ;;  %v12787_v48 = vld [vmem:[%s14215_s3 + $0x68] sm:$0xff] }
0x1139   : > { %5318 = vmatpush.msrb.mxu3 %v12666_v58 }
0x113a   : > { %v5002_v7 = vrot.slane %v4998_v26, 1  ;;  %v5049_v23 = vrot.slane %v4998_v26, 2  ;;  %v5075_v44 = vrot.slane %v4998_v26, 3  ;;  %v5101_v35 = vrot.slane %v4998_v26, 4  ;;  %v12796_v26 = vld [vmem:[%s14215_s3 + $0x60] sm:$0xff] }
0x113c   : > { %v5003_v15 = vsel %vm540_vm1, %v5001_v43, %v5002_v7  ;;  %v5050_v11 = vsel %vm687_vm3, %v5048_v18, %v5049_v23  ;;  %v5076_v21 = vsel %vm774_vm4, %v5074_v57, %v5075_v44  ;;  %v5102_v46 = vsel %vm555_vm0, %v5100_v59, %v5101_v35  ;;  %v12806_v43 = vld [vmem:[%s14215_s3 + $0x58] sm:$0xff]  ;;  %v12812_v18 = vld [vmem:[%s14215_s3 + $0x50] sm:$0xff]  ;;  %v12818_v7 = vld [vmem:[%s14215_s3 + $0x48] sm:$0xff] }
0x113d   : > { %7488 = vmatmul.msk.f32.vlgmr.msrb.gmra.mxu0 %vm1200_vm7, %v5003_v15  ;;  %7490 = vmatmul.msk.f32.vlgmr.msra.gmra.mxu2 %vm1200_vm7, %v5050_v11  ;;  %v12822_v23 = vld [vmem:[%s8500_s25 + $0xd0] sm:$0xff]  ;;  %v12827_v44 = vld [vmem:[%s14215_s3 + $0x40] sm:$0xff]  ;;  %v12837_v57 = vld [vmem:[%s14215_s3 + $0x38] sm:$0xff]  ;;  %v5427_v35 = vrot.slane %v12791_v22, 3 }
0x113e   : > { %7491 = vmatmul.msk.f32.vlgmr.msra.gmra.mxu1 %vm1200_vm7, %v5076_v21  ;;  %7511 = vmatpush.msk.msra.mxu2 %vm555_vm0, %v12678_v45  ;;  %15214 = vst [vmem:[#allocation114_spill] sm:$0xff] %v12827_v44  ;;  %v12843_v15 = vld [vmem:[%s14215_s3 + $0x30] sm:$0xff]  ;;  %v12849_v11 = vld [vmem:[%s14215_s3 + $0x28] sm:$0xff]  ;;  %v5426_v21 = vrot.slane %v12754_v5, 3  ;;  %v12857_v59 = vld [vmem:[%s14215_s3 + $0x20] sm:$0xff]  ;;  %v15261_v33 = vrot.slane %v12822_v23, 4 }
0x113f   : > { %15215 = vst [vmem:[#allocation115_spill] sm:$0xff] %v12837_v57 }
0x1140   : > { %5342 = vmatpush.msra.mxu2 %v12685_v51  ;;  %15216 = vst [vmem:[#allocation116_spill] sm:$0xff] %v12843_v15 }
0x1141   : > { %15217 = vst [vmem:[#allocation21_spill] sm:$0xff] %v12849_v11 }
0x1142   : > { %5343 = vmatpush.msra.mxu2 %v12691_v62  ;;  %15218 = vst [vmem:[#allocation22_spill] sm:$0xff] %v12857_v59 }
0x1144   : > { %5344 = vmatpush.msra.mxu2 %v12698_v16 }
0x1145   : > { %7492 = vmatmul.msk.f32.vlgmr.msra.gmra.mxu0 %vm1200_vm7, %v5102_v46  ;;  %v5428_v46 = vsel %vm774_vm4, %v5426_v21, %v5427_v35  ;;  %v12903_v21 = vld [vmem:[%s14215_s3] sm:$0xff] }
0x1146   : > { %15225 = vst [vmem:[#allocation26_spill] sm:$0xff] %v12903_v21 }
0x11b5   : > { %v5045_v17 = vpop.f32.mrf.mxu3 }
0x11ba   : > { %v5023_v24 = vpop.f32.mrf.mxu0 }
0x11bb   : > { %v5046_v27 = vadd.f32 %v5045_v17, %v5023_v24  ;;  %v5096_v52 = vpop.f32.mrf.mxu1 }
0x11c0   : > { %v5070_v9 = vpop.f32.mrf.mxu2 }
0x11c1   : > { %v5073_v41 = vadd.f32 %v5070_v9, %v5046_v27  ;;  %v12866_v27 = vld [vmem:[%s14215_s3 + $0x18] sm:$0xff] }
0x11c2   : > { %v5122_v28 = vpop.f32.mrf.mxu0  ;;  %15219 = vst [vmem:[#allocation23_spill] sm:$0xff] %v12866_v27 }
0x11c3   : > { %v5099_v10 = vadd.f32 %v5096_v52, %v5073_v41  ;;  %v12872_v41 = vld [vmem:[%s14215_s3 + $0x10] sm:$0xff]  ;;  %v5429_v52 = vrot.slane %v12822_v23, 3 }
0x11c4   : > { %15220 = vst [vmem:[#allocation24_spill] sm:$0xff] %v12872_v41 }
0x11c5   : > { %v5125_v2 = vadd.f32 %v5122_v28, %v5099_v10  ;;  %v15221_v10 = vld [vmem:[#allocation103_spill] sm:$0xff]  ;;  %v5232_v28 = vrot.slane %v12754_v5, 1 }
0x11c7   : > { %v5126_v36 = vadd.f32 %v12331_v39, %v5125_v2  ;;  %v12720_v39 = vld [vmem:[%s14629_s1 + $0xe0] sm:$0xff]  ;;  %v5233_v2 = vrot.slane %v12791_v22, 1 }
0x11c9   : > { %v5127_v42 = vmax.f32 %v5126_v36, 0.0  ;;  %v5430_v36 = vsel %vm774_vm4, %v5427_v35, %v5429_v52  ;;  %v15226_v35 = vld [vmem:[#allocation105_spill] sm:$0xff] }
0x11cb   : > { %5144 = vmatmul.f32.vlgmr.msra.gmra.mxu3 %v5127_v42  ;;  %5164 = vmatmul.f32.vlgmr.msrb.gmra.mxu2 %v5127_v42  ;;  %v5234_v42 = vsel %vm540_vm1, %v5232_v28, %v5233_v2  ;;  %v15230_v28 = vld [vmem:[#allocation108_spill] sm:$0xff] }
0x11cc   : > { %7523 = vmatpush.msk.msra.mxu3 %vm555_vm0, %v12706_v20  ;;  %7527 = vmatpush.msk.msrb.mxu2 %vm555_vm0, %v12713_v29 }
0x11ce   : > { %5452 = vmatpush.msra.mxu3 %v12720_v39  ;;  %5478 = vmatpush.msrb.mxu2 %v12726_v56 }
0x11d0   : > { %5453 = vmatpush.msra.mxu3 %v12732_v53  ;;  %5479 = vmatpush.msrb.mxu2 %v12738_v14 }
0x11d2   : > { %5454 = vmatpush.msra.mxu3 %v12744_v47  ;;  %5480 = vmatpush.msrb.mxu2 %v12750_v6 }
0x11d3   : > { %7508 = vmatmul.msk.f32.vlgmr.msrb.gmra.mxu3 %vm548_vm2, %v12754_v5  ;;  %7512 = vmatmul.msk.f32.vlgmr.msra.gmra.mxu2 %vm548_vm2, %v12754_v5 }
0x11d4   : > { %5589 = vmatpush.msrb.mxu3 %v12763_v13  ;;  %5629 = vmatpush.msra.mxu2 %v12769_v3 }
0x11d6   : > { %5590 = vmatpush.msrb.mxu3 %v12775_v31  ;;  %5630 = vmatpush.msra.mxu2 %v12781_v63 }
0x11d8   : > { %5591 = vmatpush.msrb.mxu3 %v12787_v48 }
0x11da   : > { %5592 = vmatpush.msrb.mxu3 %v12796_v26 }
0x11db   : > { %7509 = vmatmul.msk.f32.gmra.mxu3 %vm548_vm2, %v12791_v22  ;;  %7513 = vmatmul.msk.f32.gmra.mxu2 %vm548_vm2, %v12791_v22 }
0x11dc   : > { %5593 = vmatpush.msrb.mxu3 %v12806_v43 }
0x11de   : > { %5594 = vmatpush.msrb.mxu3 %v12812_v18 }
0x11e0   : > { %5595 = vmatpush.msrb.mxu3 %v12818_v7 }
0x11e2   : > { %5596 = vmatpush.msrb.mxu3 %v12827_v44 }
0x11e3   : > { %7510 = vmatmul.msk.f32.gmra.mxu3 %vm548_vm2, %v12822_v23  ;;  %7514 = vmatmul.msk.f32.gmra.mxu2 %vm548_vm2, %v12822_v23 }
0x11e4   : > { %5597 = vmatpush.msrb.mxu3 %v12837_v57 }
0x11e6   : > { %5598 = vmatpush.msrb.mxu3 %v12843_v15 }
0x11e8   : > { %5599 = vmatpush.msrb.mxu3 %v12849_v11 }
0x11ea   : > { %5600 = vmatpush.msrb.mxu3 %v12857_v59 }
0x11eb   : > { %7524 = vmatmul.msk.f32.vlgmr.msra.gmra.mxu3 %vm548_vm2, %v5428_v46  ;;  %7528 = vmatmul.msk.f32.vlgmr.msrb.gmra.mxu2 %vm548_vm2, %v5428_v46  ;;  %v5235_v46 = vrot.slane %v12822_v23, 1 }
0x11ec   : > { %5601 = vmatpush.msrb.mxu3 %v12866_v27 }
0x11ee   : > { %5602 = vmatpush.msrb.mxu3 %v12872_v41 }
0x11f3   : > { %7525 = vmatmul.msk.f32.gmra.mxu3 %vm548_vm2, %v5430_v36  ;;  %7529 = vmatmul.msk.f32.gmra.mxu2 %vm548_vm2, %v5430_v36  ;;  %v15231_v36 = vld [vmem:[#allocation109_spill] sm:$0xff] }
0x124e   : > { %v5145_v24 = vpop.f32.mrf.mxu3  ;;  %v5165_v17 = vpop.f32.mrf.mxu2 }
0x124f   : > { %v5168_v9 = vmax.f32 %v5145_v24, %v5165_v17  ;;  %v15227_v24 = vld [vmem:[#allocation106_spill] sm:$0xff] }
0x1251   : > { %5184 = vmatpush.msrb.mxu1 %v5168_v9  ;;  %5204 = vmatpush.msrb.mxu0 %v5168_v9  ;;  %v15228_v9 = vld [vmem:[#allocation107_spill] sm:$0xff] }
0x1252   : > { %7493 = vmatmul.msk.f32.vlgmr.msrb.gmra.mxu1 %vm1434_vm8, %v12438_v25  ;;  %7494 = vmatmul.msk.f32.vlgmr.msrb.gmra.mxu0 %vm1434_vm8, %v12474_v37  ;;  %v12890_v25 = vld [vmem:[%s14215_s3 + $0x8] sm:$0xff]  ;;  %v15223_v37 = vld [vmem:[#allocation104_spill] sm:$0xff] }
0x1253   : > { %7499 = vmatpush.msk.msra.mxu1 %vm555_vm0, %v15221_v10  ;;  %7503 = vmatpush.msk.msra.mxu0 %vm555_vm0, %v12449_v34  ;;  %15222 = vst [vmem:[#allocation25_spill] sm:$0xff] %v12890_v25  ;;  %v15224_v34 = vld [vmem:[#allocation18_spill] sm:$0xff]  ;;  %v15229_v10 = vld [vmem:[#allocation19_spill] sm:$0xff] }
0x1254   : > { %5603 = vmatpush.msrb.mxu3 %v12890_v25 }
0x1255   : > { %5258 = vmatpush.msra.mxu1 %v15223_v37  ;;  %5284 = vmatpush.msra.mxu0 %v12460_v0  ;;  %v12909_v0 = vld [vmem:[%s8500_s25 + $0xd8] sm:$0xf]  ;;  %v15233_v37 = vld [vmem:[#allocation111_spill] sm:$0xff] }
0x1256   : > { %5604 = vmatpush.msrb.mxu3 %v12903_v21 }
0x1257   : > { %5259 = vmatpush.msra.mxu1 %v15224_v34  ;;  %5285 = vmatpush.msra.mxu0 %v12467_v61  ;;  %v5431_v61 = vrot.slane %v12909_v0, 3  ;;  %v15234_v34 = vld [vmem:[#allocation112_spill] sm:$0xff] }
0x1259   : > { %5260 = vmatpush.msra.mxu1 %v15226_v35  ;;  %5286 = vmatpush.msra.mxu0 %v12482_v40  ;;  %v5432_v17 = vsel %vm774_vm4, %v5429_v52, %v5431_v61  ;;  %v5236_v40 = vsel %vm540_vm1, %v5233_v2, %v5235_v46  ;;  %v5237_v52 = vrot.slane %v12909_v0, 1  ;;  %v15232_v2 = vld [vmem:[#allocation110_spill] sm:$0xff]  ;;  %v12961_v61 = vld [vmem:[%s14215_s3 + $0x108] sm:$0xff] }
0x125a   : > { %7500 = vmatmul.msk.f32.vlgmr.msra.gmra.mxu1 %vm548_vm2, %v5234_v42  ;;  %7504 = vmatmul.msk.f32.vlgmr.msra.gmra.mxu0 %vm548_vm2, %v5234_v42  ;;  %v5355_v42 = vrot.slane %v12754_v5, 2  ;;  %15235 = vst [vmem:[#allocation28_spill] sm:$0xff] %v12961_v61 }
0x125b   : > { %7515 = vmatpush.msk.msrb.mxu1 %vm555_vm0, %v15227_v24  ;;  %7519 = vmatpush.msk.msrb.mxu0 %vm555_vm0, %v12488_v32  ;;  %v5497_v32 = vrot.slane %v12754_v5, 4  ;;  %v12967_v5 = vld [vmem:[%s14215_s3 + $0x118] sm:$0xff] }
0x125c   : > { %7526 = vmatmul.msk.f32.gmra.mxu3 %vm548_vm2, %v5432_v17  ;;  %7530 = vmatmul.msk.f32.gmra.mxu2 %vm548_vm2, %v5432_v17  ;;  %15236 = vst [vmem:[#allocation30_spill] sm:$0xff] %v12967_v5  ;;  %v12986_v17 = vld [vmem:[%s14215_s3 + $0xf8] sm:$0xff] }
0x125d   : > { %5381 = vmatpush.msrb.mxu1 %v15228_v9  ;;  %5407 = vmatpush.msrb.mxu0 %v12496_v30  ;;  %v5498_v30 = vrot.slane %v12791_v22, 4  ;;  %15239 = vst [vmem:[#allocation56_spill] sm:$0xff] %v12986_v17  ;;  %v12992_v9 = vld [vmem:[%s14215_s3 + $0xf0] sm:$0xff] }
0x125e   : > { %15240 = vst [vmem:[#allocation68_spill] sm:$0xff] %v12992_v9 }
0x125f   : > { %5382 = vmatpush.msrb.mxu1 %v15229_v10  ;;  %5408 = vmatpush.msrb.mxu0 %v12502_v49  ;;  %v5499_v49 = vsel %vm555_vm0, %v5497_v32, %v5498_v30  ;;  %v13001_v10 = vld [vmem:[%s14215_s3 + $0xe8] sm:$0xff] }
0x1260   : > { %15241 = vst [vmem:[#allocation57_spill] sm:$0xff] %v13001_v10 }
0x1261   : > { %5383 = vmatpush.msrb.mxu1 %v15230_v28  ;;  %5409 = vmatpush.msrb.mxu0 %v12510_v54  ;;  %v5238_v54 = vsel %vm540_vm1, %v5235_v46, %v5237_v52  ;;  %v12979_v46 = vld [vmem:[%s14215_s3 + $0x110] sm:$0xff]  ;;  %v13007_v28 = vld [vmem:[%s14215_s3 + $0xe0] sm:$0xff] }
0x1262   : > { %7501 = vmatmul.msk.f32.gmra.mxu1 %vm548_vm2, %v5236_v40  ;;  %7505 = vmatmul.msk.f32.gmra.mxu0 %vm548_vm2, %v5236_v40  ;;  %15238 = vst [vmem:[#allocation50_spill] sm:$0xff] %v12979_v46  ;;  %v5360_v40 = vrot.slane %v12909_v0, 2  ;;  %v13020_v52 = vld [vmem:[%s14215_s3 + $0xd0] sm:$0xff] }
0x1263   : > { %7531 = vmatpush.msk.msra.mxu1 %vm555_vm0, %v15231_v36  ;;  %7535 = vmatpush.msk.msra.mxu0 %vm555_vm0, %v12516_v12  ;;  %v14534_v12 = vrot.slane %v12822_v23, 4  ;;  %15242 = vst [vmem:[#allocation70_spill] sm:$0xff] %v13007_v28  ;;  %v13028_v36 = vld [vmem:[%s14215_s3 + $0xc8] sm:$0xff] }
0x1264   : > { %15244 = vst [vmem:[#allocation72_spill] sm:$0xff] %v13020_v52 }
0x1265   : > { %5523 = vmatpush.msra.mxu1 %v15232_v2  ;;  %5549 = vmatpush.msra.mxu0 %v12523_v60  ;;  %v5356_v60 = vrot.slane %v12791_v22, 2  ;;  %v5501_v35 = vsel %vm555_vm0, %v5498_v30, %v14534_v12  ;;  %v12973_v22 = vld [vmem:[%s14215_s3 + $0x100] sm:$0xff]  ;;  %v13014_v30 = vld [vmem:[%s14215_s3 + $0xd8] sm:$0xff]  ;;  %15245 = vst [vmem:[#allocation59_spill] sm:$0xff] %v13028_v36 }
0x1266   : > { %15237 = vst [vmem:[#allocation44_spill] sm:$0xff] %v12973_v22  ;;  %v13034_v2 = vld [vmem:[%s14215_s3 + $0xc0] sm:$0xff] }
0x1267   : > { %5524 = vmatpush.msra.mxu1 %v15233_v37  ;;  %5550 = vmatpush.msra.mxu0 %v12529_v1  ;;  %v5357_v1 = vsel %vm687_vm3, %v5355_v42, %v5356_v60  ;;  %15243 = vst [vmem:[#allocation58_spill] sm:$0xff] %v13014_v30  ;;  %v13046_v37 = vld [vmem:[%s14215_s3 + $0xb0] sm:$0xff]  ;;  %v13060_v42 = vld [vmem:[%s14217_s5 + $0x88] sm:$0xff]  ;;  %v13105_v12 = vld [vmem:[%s14217_s5 + $0x40] sm:$0xff] }
0x1268   : > { %15246 = vst [vmem:[#allocation74_spill] sm:$0xff] %v13034_v2 }
0x1269   : > { %5525 = vmatpush.msra.mxu1 %v15234_v34  ;;  %5551 = vmatpush.msra.mxu0 %v12537_v19  ;;  %v5358_v19 = vrot.slane %v12822_v23, 2  ;;  %15248 = vst [vmem:[#allocation76_spill] sm:$0xff] %v13046_v37  ;;  %v13054_v34 = vld [vmem:[%s14215_s3 + $0xa8] sm:$0xff] }
0x126a   : > { %7502 = vmatmul.msk.f32.gmra.mxu1 %vm548_vm2, %v5238_v54  ;;  %7506 = vmatmul.msk.f32.gmra.mxu0 %vm548_vm2, %v5238_v54  ;;  %v13040_v54 = vld [vmem:[%s14215_s3 + $0xb8] sm:$0xff]  ;;  %15249 = vst [vmem:[#allocation78_spill] sm:$0xff] %v13054_v34  ;;  %v13144_v23 = vld [vmem:[%s14217_s5 + $0x28] sm:$0xff] }
0x126b   : > { %v5359_v24 = vsel %vm687_vm3, %v5356_v60, %v5358_v19  ;;  %v5361_v32 = vsel %vm687_vm3, %v5358_v19, %v5360_v40  ;;  %15247 = vst [vmem:[#allocation60_spill] sm:$0xff] %v13040_v54  ;;  %v13066_v60 = vld [vmem:[%s14215_s3 + $0xa0] sm:$0xff]  ;;  %v13084_v19 = vld [vmem:[%s14217_s5 + $0x78] sm:$0xff]  ;;  %v13096_v40 = vld [vmem:[%s14217_s5 + $0x70] sm:$0xff] }
0x126c   : > { %15250 = vst [vmem:[#allocation82_spill] sm:$0xff] %v13060_v42 }
0x126d   : > { %15251 = vst [vmem:[#allocation32_spill] sm:$0xff] %v13066_v60 }
0x126e   : > { %15254 = vst [vmem:[#allocation40_spill] sm:$0xff] %v13084_v19 }
0x126f   : > { %15256 = vst [vmem:[#allocation45_spill] sm:$0xff] %v13096_v40 }
0x1270   : > { %15257 = vst [vmem:[#allocation48_spill] sm:$0xff] %v13105_v12 }
0x1271   : > { %15264 = vst [vmem:[#allocation53_spill] sm:$0xff] %v13144_v23 }
0x1272   : > { %7516 = vmatmul.msk.f32.vlgmr.msrb.gmra.mxu1 %vm548_vm2, %v5357_v1  ;;  %7520 = vmatmul.msk.f32.vlgmr.msrb.gmra.mxu0 %vm548_vm2, %v5357_v1  ;;  %v13078_v1 = vld [vmem:[%s14215_s3 + $0x98] sm:$0xff] }
0x1273   : > { %5641 = vmatpush.msrb.mxu1 %v12961_v61  ;;  %5681 = vmatpush.msrb.mxu0 %v12967_v5  ;;  %15253 = vst [vmem:[#allocation38_spill] sm:$0xff] %v13078_v1  ;;  %v15273_v5 = vld [vmem:[#allocation61_spill] sm:$0xff] }
0x1275   : > { %5642 = vmatpush.msrb.mxu1 %v12973_v22  ;;  %5682 = vmatpush.msrb.mxu0 %v12979_v46 }
0x1277   : > { %5643 = vmatpush.msrb.mxu1 %v12986_v17 }
0x1279   : > { %5644 = vmatpush.msrb.mxu1 %v12992_v9 }
0x127a   : > { %7517 = vmatmul.msk.f32.gmra.mxu1 %vm548_vm2, %v5359_v24  ;;  %7521 = vmatmul.msk.f32.gmra.mxu0 %vm548_vm2, %v5359_v24  ;;  %v13090_v24 = vld [vmem:[%s14215_s3 + $0x90] sm:$0xff] }
0x127b   : > { %5645 = vmatpush.msrb.mxu1 %v13001_v10  ;;  %15255 = vst [vmem:[#allocation36_spill] sm:$0xff] %v13090_v24 }
0x127d   : > { %5646 = vmatpush.msrb.mxu1 %v13007_v28 }
0x127f   : > { %5647 = vmatpush.msrb.mxu1 %v13014_v30 }
0x1281   : > { %5648 = vmatpush.msrb.mxu1 %v13020_v52 }
0x1282   : > { %7518 = vmatmul.msk.f32.gmra.mxu1 %vm548_vm2, %v5361_v32  ;;  %7522 = vmatmul.msk.f32.gmra.mxu0 %vm548_vm2, %v5361_v32  ;;  %v5502_v32 = vrot.slane %v12909_v0, 4  ;;  %v13123_v0 = vld [vmem:[%s14217_s5 + $0x60] sm:$0xff] }
0x1283   : > { %5649 = vmatpush.msrb.mxu1 %v13028_v36  ;;  %15260 = vst [vmem:[#allocation54_spill] sm:$0xff] %v13123_v0 }
0x1285   : > { %5650 = vmatpush.msrb.mxu1 %v13034_v2 }
0x1287   : > { %5651 = vmatpush.msrb.mxu1 %v13040_v54 }
0x1289   : > { %5652 = vmatpush.msrb.mxu1 %v13046_v37 }
0x128a   : > { %7532 = vmatmul.msk.f32.vlgmr.msra.gmra.mxu1 %vm548_vm2, %v5499_v49  ;;  %7536 = vmatmul.msk.f32.vlgmr.msra.gmra.mxu0 %vm548_vm2, %v5499_v49  ;;  %v13072_v49 = vld [vmem:[%s14217_s5 + $0x80] sm:$0xff] }
0x128b   : > { %5653 = vmatpush.msrb.mxu1 %v13054_v34  ;;  %5758 = vmatpush.msra.mxu0 %v13060_v42  ;;  %15252 = vst [vmem:[#allocation34_spill] sm:$0xff] %v13072_v49 }
0x128d   : > { %5654 = vmatpush.msrb.mxu1 %v13066_v60  ;;  %5759 = vmatpush.msra.mxu0 %v13072_v49 }
0x128f   : > { %5655 = vmatpush.msrb.mxu1 %v13078_v1  ;;  %5760 = vmatpush.msra.mxu0 %v13084_v19  ;;  %v13138_v19 = vld [vmem:[%s14217_s5 + $0x58] sm:$0xff] }
0x1290   : > { %15263 = vst [vmem:[#allocation47_spill] sm:$0xff] %v13138_v19 }
0x1291   : > { %5656 = vmatpush.msrb.mxu1 %v13090_v24  ;;  %5761 = vmatpush.msra.mxu0 %v13096_v40  ;;  %v5503_v40 = vsel %vm555_vm0, %v15261_v33, %v5502_v32  ;;  %v13150_v33 = vld [vmem:[%s14217_s5 + $0x50] sm:$0xff]  ;;  %v13158_v32 = vld [vmem:[%s14217_s5 + $0x20] sm:$0xff]  ;;  %v5346_v24 = vpop.f32.mrf.mxu2 }
0x1292   : > { %7533 = vmatmul.msk.f32.gmra.mxu1 %vm548_vm2, %v5501_v35  ;;  %7537 = vmatmul.msk.f32.gmra.mxu0 %vm548_vm2, %v5501_v35  ;;  %v13117_v35 = vld [vmem:[%s14217_s5 + $0x38] sm:$0xff]  ;;  %15265 = vst [vmem:[#allocation80_spill] sm:$0xff] %v13150_v33 }
0x1293   : > { %5780 = vmatpush.msra.mxu1 %v13105_v12  ;;  %5762 = vmatpush.msra.mxu0 %v13111_v4  ;;  %15259 = vst [vmem:[#allocation52_spill] sm:$0xff] %v13117_v35  ;;  %v13132_v4 = vld [vmem:[%s14217_s5 + $0x30] sm:$0xff]  ;;  %v5320_v12 = vpop.f32.mrf.mxu3 }
0x1294   : > { %15262 = vst [vmem:[#allocation55_spill] sm:$0xff] %v13132_v4 }
0x1295   : > { %5781 = vmatpush.msra.mxu1 %v13117_v35  ;;  %5763 = vmatpush.msra.mxu0 %v13123_v0  ;;  %15266 = vst [vmem:[#allocation84_spill] sm:$0xff] %v13158_v32  ;;  %v13182_v0 = vld [vmem:[%s14217_s5 + $0x8] sm:$0xff] }
0x1296   : > { %15270 = vst [vmem:[#allocation41_spill] sm:$0xff] %v13182_v0 }
0x1297   : > { %5782 = vmatpush.msra.mxu1 %v13132_v4  ;;  %5764 = vmatpush.msra.mxu0 %v13138_v19  ;;  %v13164_v19 = vld [vmem:[%s14217_s5 + $0x48] sm:$0xff] }
0x1298   : > { %15267 = vst [vmem:[#allocation33_spill] sm:$0xff] %v13164_v19 }
0x1299   : > { %5783 = vmatpush.msra.mxu1 %v13144_v23  ;;  %5765 = vmatpush.msra.mxu0 %v13150_v33  ;;  %v13170_v33 = vld [vmem:[%s14217_s5 + $0x18] sm:$0xff]  ;;  %v5349_v34 = vpop.f32.mrf.mxu2 }
0x129a   : > { %7534 = vmatmul.msk.f32.gmra.mxu1 %vm548_vm2, %v5503_v40  ;;  %7538 = vmatmul.msk.f32.gmra.mxu0 %vm548_vm2, %v5503_v40  ;;  %15268 = vst [vmem:[#allocation35_spill] sm:$0xff] %v13170_v33  ;;  %v13176_v40 = vld [vmem:[%s14217_s5 + $0x10] sm:$0xff] }
0x129b   : > { %5784 = vmatpush.msra.mxu1 %v13158_v32  ;;  %5766 = vmatpush.msra.mxu0 %v13164_v19  ;;  %15269 = vst [vmem:[#allocation39_spill] sm:$0xff] %v13176_v40  ;;  %v13188_v19 = vld [vmem:[%s14217_s5] sm:$0xff] }
0x129c   : > { %15271 = vst [vmem:[#allocation43_spill] sm:$0xff] %v13188_v19 }
0x129d   : > { %5785 = vmatpush.msra.mxu1 %v13170_v33 }
0x129f   : > { %5786 = vmatpush.msra.mxu1 %v13176_v40  ;;  %v3727_v40 = vrot.slane %v15273_v5, 3 }
0x12a1   : > { %5787 = vmatpush.msra.mxu1 %v13182_v0  ;;  %v5352_v54 = vpop.f32.mrf.mxu2 }
0x12a3   : > { %5788 = vmatpush.msra.mxu1 %v13188_v19  ;;  %v5323_v19 = vpop.f32.mrf.mxu3 }
0x12cf   : > { %v5186_v49 = vpop.f32.mrf.mxu1  ;;  %v5206_v42 = vpop.f32.mrf.mxu0 }
0x12d0   : > { %v13191_v46 = vmax.f32 %v5186_v49, %v5206_v42  ;;  %v5326_v49 = vpop.f32.mrf.mxu3 }
0x12d2   : > { %15272 = vst [vmem:[#allocation46_spill] sm:$0xff] %v13191_v46  ;;  %v5211_v33 = vrot.slane %v13191_v46, 1 }
0x12d4   : > { %v7699_v32 = vpack.i.bf16 %v5211_v33, %v3727_v40  ;;  %v5482_v33 = vpop.f32.mrf.mxu2 }
0x12d6   : > { %7700 = vrot.lane.b32.xlu2 %v7699_v32, %s8333_s29 }
0x12d7   : > { %v5262_v23 = vpop.f32.mrf.mxu1  ;;  %v5288_v0 = vpop.f32.mrf.mxu0 }
0x12d8   : > { %v5456_v46 = vpop.f32.mrf.mxu3  ;;  %v5321_v36 = vadd.f32 %v5320_v12, %v5262_v23  ;;  %v5347_v52 = vadd.f32 %v5346_v24, %v5288_v0  ;;  %v13249_v0 = vld [vmem:[%s14219_s7 + $0x60] sm:$0xff] }
0x12dc   : > { %v5485_v59 = vpop.f32.mrf.mxu2 }
0x12df   : > { %v5265_v4 = vpop.f32.mrf.mxu1  ;;  %v5291_v35 = vpop.f32.mrf.mxu0 }
0x12e0   : > { %v5324_v61 = vadd.f32 %v5323_v19, %v5265_v4  ;;  %v5350_v21 = vadd.f32 %v5349_v34, %v5291_v35  ;;  %v5459_v27 = vpop.f32.mrf.mxu3  ;;  %v13243_v35 = vld [vmem:[%s14217_s5 + $0x148] sm:$0xff] }
0x12e1   : > { %15277 = vst [vmem:[#allocation63_spill] sm:$0xff] %v13243_v35 }
0x12e7   : > { %v5268_v1 = vpop.f32.mrf.mxu1  ;;  %v5294_v60 = vpop.f32.mrf.mxu0 }
0x12ef   : > { %v5385_v37 = vpop.f32.mrf.mxu1  ;;  %v5411_v42 = vpop.f32.mrf.mxu0 }
0x12f0   : > { %v5420_v30 = vadd.f32 %v5385_v37, %v5321_v36  ;;  %v5421_v28 = vadd.f32 %v5411_v42, %v5347_v52 }
0x12f2   : > { %v5491_v10 = vadd.f32 %v5456_v46, %v5420_v30  ;;  %v5492_v9 = vadd.f32 %v5482_v33, %v5421_v28  ;;  %v5327_v46 = vadd.f32 %v5326_v49, %v5268_v1  ;;  %v13229_v30 = vld [vmem:[%s14217_s5 + $0x150] sm:$0xff]  ;;  %v13257_v49 = vld [vmem:[%s14217_s5 + $0x140] sm:$0xff]  ;;  %v13263_v33 = vld [vmem:[%s14219_s7 + $0x58] sm:$0xff] }
0x12f3   : > { %15276 = vst [vmem:[#allocation62_spill] sm:$0xff] %v13229_v30 }
0x12f4   : > { %15278 = vst [vmem:[#allocation64_spill] sm:$0xff] %v13257_v49 }
0x12f7   : > { %v5388_v5 = vpop.f32.mrf.mxu1  ;;  %v5414_v2 = vpop.f32.mrf.mxu0 }
0x12f8   : > { %v5422_v11 = vadd.f32 %v5388_v5, %v5324_v61  ;;  %v5423_v15 = vadd.f32 %v5414_v2, %v5350_v21  ;;  %v5462_v5 = vpop.f32.mrf.mxu3  ;;  %v13235_v2 = vld [vmem:[%s14219_s7 + $0x68] sm:$0xff] }
0x12fa   : > { %v5493_v36 = vadd.f32 %v5459_v27, %v5422_v11  ;;  %v5494_v52 = vadd.f32 %v5485_v59, %v5423_v15  ;;  %v13217_v27 = vld [vmem:[%s14217_s5 + $0x158] sm:$0xff] }
0x12fb   : > { %15275 = vst [vmem:[#allocation31_spill] sm:$0xff] %v13217_v27 }
0x12ff   : > { %v5391_v40 = vpop.f32.mrf.mxu1  ;;  %v5417_v32 = vpop.f32.mrf.mxu0 }
0x1307   : > { %v5527_v17 = vpop.f32.mrf.mxu1  ;;  %v5553_v22 = vpop.f32.mrf.mxu0 }
0x1308   : > { %v5562_v25 = vadd.f32 %v5527_v17, %v5491_v10  ;;  %v5563_v41 = vadd.f32 %v5553_v22, %v5492_v9  ;;  %v5353_v17 = vadd.f32 %v5352_v54, %v5294_v60  ;;  %v5488_v9 = vpop.f32.mrf.mxu2 }
0x130a   : > { %v5568_v57 = vadd.f32 %v5562_v25, %v14736_v8  ;;  %v5569_v44 = vadd.f32 %v5563_v41, %v15173_v50  ;;  %v13203_v41 = vld [vmem:[%s14217_s5 + $0x160] sm:$0xff]  ;;  %v5425_v15 = vadd.f32 %v5417_v32, %v5353_v17  ;;  %v13223_v25 = vld [vmem:[%s14219_s7 + $0x70] sm:$0xff]  ;;  %v13313_v17 = vld [vmem:[%s14219_s7 + $0x38] sm:$0xff] }
0x130b   : > { %15274 = vst [vmem:[#allocation49_spill] sm:$0xff] %v13203_v41 }
0x130c   : > { %v5574_v12 = vmax.f32 %v5568_v57, 0.0  ;;  %v5575_v24 = vmax.f32 %v5569_v44, 0.0  ;;  %v13209_v44 = vld [vmem:[%s14219_s7 + $0x78] sm:$0xff]  ;;  %v5424_v57 = vadd.f32 %v5391_v40, %v5327_v46  ;;  %v5496_v37 = vadd.f32 %v5488_v9, %v5425_v15  ;;  %v13295_v46 = vld [vmem:[%s14217_s5 + $0x128] sm:$0xff] }
0x130d   : > { %15281 = vst [vmem:[#allocation67_spill] sm:$0xff] %v13295_v46  ;;  %v13337_v15 = vld [vmem:[%s14219_s7 + $0x18] sm:$0xff] }
0x130e   : > { %5605 = vmatmul.f32.vlgmr.msrb.gmra.mxu3 %v5574_v12  ;;  %7539 = vmatmul.msk.f32.vlgmr.msra.gmra.mxu2 %vm974_vm5, %v5575_v24  ;;  %v5495_v54 = vadd.f32 %v5462_v5, %v5424_v57  ;;  %v13331_v57 = vld [vmem:[%s14219_s7 + $0x20] sm:$0xff] }
0x130f   : > { %5657 = vmatmul.f32.vlgmr.msrb.gmra.mxu1 %v5574_v12  ;;  %7542 = vmatmul.msk.f32.vlgmr.msrb.gmra.mxu0 %vm974_vm5, %v5575_v24  ;;  %v5530_v4 = vpop.f32.mrf.mxu1  ;;  %v5556_v22 = vpop.f32.mrf.mxu0  ;;  %v13269_v12 = vld [vmem:[%s14217_s5 + $0x138] sm:$0xff]  ;;  %v13275_v24 = vld [vmem:[%s14219_s7 + $0x50] sm:$0xff]  ;;  %v13355_v5 = vld [vmem:[%s14219_s7] sm:$0xff] }
0x1310   : > { %v5564_v61 = vadd.f32 %v5530_v4, %v5493_v36  ;;  %v5565_v21 = vadd.f32 %v5556_v22, %v5494_v52  ;;  %5857 = vmatpush.msrb.mxu0 %v13203_v41  ;;  %5873 = vmatpush.msrb.mxu1 %v13209_v44  ;;  %15279 = vst [vmem:[#allocation65_spill] sm:$0xff] %v13269_v12  ;;  %v13283_v36 = vld [vmem:[%s14217_s5 + $0x130] sm:$0xff]  ;;  %v13289_v52 = vld [vmem:[%s14219_s7 + $0x48] sm:$0xff]  ;;  %v13301_v4 = vld [vmem:[%s14219_s7 + $0x40] sm:$0xff] }
0x1311   : > { %15280 = vst [vmem:[#allocation66_spill] sm:$0xff] %v13283_v36  ;;  %v13307_v22 = vld [vmem:[%s14217_s5 + $0x120] sm:$0xff] }
0x1312   : > { %v5570_v11 = vadd.f32 %v5564_v61, %v14736_v8  ;;  %v5571_v59 = vadd.f32 %v5565_v21, %v15173_v50  ;;  %5858 = vmatpush.msrb.mxu0 %v13217_v27  ;;  %5874 = vmatpush.msrb.mxu1 %v13223_v25  ;;  %15282 = vst [vmem:[#allocation69_spill] sm:$0xff] %v13307_v22  ;;  %v13319_v61 = vld [vmem:[%s14219_s7 + $0x30] sm:$0xff]  ;;  %v13325_v21 = vld [vmem:[%s14219_s7 + $0x28] sm:$0xff]  ;;  %v13361_v41 = vld [vmem:[%s14216_s4] sm:$0xff] }
0x1314   : > { %v5576_v10 = vmax.f32 %v5570_v11, 0.0  ;;  %v5577_v28 = vmax.f32 %v5571_v59, 0.0  ;;  %5859 = vmatpush.msrb.mxu0 %v13229_v30  ;;  %5875 = vmatpush.msrb.mxu1 %v13235_v2  ;;  %v13343_v11 = vld [vmem:[%s14219_s7 + $0x10] sm:$0xff]  ;;  %v13349_v59 = vld [vmem:[%s14219_s7 + $0x8] sm:$0xff] }
0x1316   : > { %5608 = vmatmul.f32.gmra.mxu3 %v5576_v10  ;;  %7540 = vmatmul.msk.f32.gmra.mxu2 %vm974_vm5, %v5577_v28 }
0x1317   : > { %5660 = vmatmul.f32.gmra.mxu1 %v5576_v10  ;;  %7543 = vmatmul.msk.f32.gmra.mxu0 %vm974_vm5, %v5577_v28  ;;  %v5533_v34 = vpop.f32.mrf.mxu1  ;;  %v5559_v60 = vpop.f32.mrf.mxu0 }
0x1318   : > { %v5566_v1 = vadd.f32 %v5533_v34, %v5495_v54  ;;  %v5567_v19 = vadd.f32 %v5559_v60, %v5496_v37  ;;  %5860 = vmatpush.msrb.mxu0 %v13243_v35  ;;  %5876 = vmatpush.msrb.mxu1 %v13249_v0 }
0x131a   : > { %v5572_v23 = vadd.f32 %v5566_v1, %v14736_v8  ;;  %v5573_v42 = vadd.f32 %v5567_v19, %v15173_v50  ;;  %5861 = vmatpush.msrb.mxu0 %v13257_v49  ;;  %5877 = vmatpush.msrb.mxu1 %v13263_v33 }
0x131c   : > { %v5578_v40 = vmax.f32 %v5572_v23, 0.0  ;;  %v5579_v32 = vmax.f32 %v5573_v42, 0.0  ;;  %5862 = vmatpush.msrb.mxu0 %v13269_v12  ;;  %5878 = vmatpush.msrb.mxu1 %v13275_v24 }
0x131e   : > { %5611 = vmatmul.f32.gmra.mxu3 %v5578_v40  ;;  %7541 = vmatmul.msk.f32.gmra.mxu2 %vm974_vm5, %v5579_v32 }
0x131f   : > { %5663 = vmatmul.f32.gmra.mxu1 %v5578_v40  ;;  %7544 = vmatmul.msk.f32.gmra.mxu0 %vm974_vm5, %v5579_v32 }
0x1320   : > { %5863 = vmatpush.msrb.mxu0 %v13283_v36  ;;  %5879 = vmatpush.msrb.mxu1 %v13289_v52 }
0x1322   : > { %5864 = vmatpush.msrb.mxu0 %v13295_v46  ;;  %5880 = vmatpush.msrb.mxu1 %v13301_v4 }
0x1324   : > { %5865 = vmatpush.msrb.mxu0 %v13307_v22  ;;  %5881 = vmatpush.msrb.mxu1 %v13313_v17 }
0x1326   : > { %5882 = vmatpush.msrb.mxu1 %v13319_v61 }
0x1328   : > { %5883 = vmatpush.msrb.mxu1 %v13325_v21 }
0x132a   : > { %5884 = vmatpush.msrb.mxu1 %v13331_v57 }
0x132c   : > { %5885 = vmatpush.msrb.mxu1 %v13337_v15 }
0x132e   : > { %5886 = vmatpush.msrb.mxu1 %v13343_v11 }
0x1330   : > { %5887 = vmatpush.msrb.mxu1 %v13349_v59 }
0x1332   : > { %5888 = vmatpush.msrb.mxu1 %v13355_v5 }
0x138c   : > { %v5658_v9 = vpop.f32.mrf.mxu1  ;;  %v5684_v10 = vpop.f32.mrf.mxu0 }
0x138d   : > { %v5685_v35 = vadd.f32 %v5684_v10, %v5658_v9  ;;  %v13433_v9 = vld [vmem:[%s14217_s5 + $0xf8] sm:$0xff]  ;;  %v13439_v10 = vld [vmem:[%s14217_s5 + $0xa8] sm:$0xff] }
0x138e   : > { %15284 = vst [vmem:[#allocation73_spill] sm:$0xff] %v13433_v9 }
0x138f   : > { %15285 = vst [vmem:[#allocation75_spill] sm:$0xff] %v13439_v10 }
0x1391   : > { %v5606_v28 = vpop.f32.mrf.mxu3  ;;  %v5632_v54 = vpop.f32.mrf.mxu2 }
0x1392   : > { %v5633_v36 = vadd.f32 %v5632_v54, %v5606_v28  ;;  %v13445_v28 = vld [vmem:[%s14217_s5 + $0xf0] sm:$0xff]  ;;  %v13451_v54 = vld [vmem:[%s14217_s5 + $0xa0] sm:$0xff] }
0x1393   : > { %15286 = vst [vmem:[#allocation77_spill] sm:$0xff] %v13445_v28 }
0x1394   : > { %v5661_v37 = vpop.f32.mrf.mxu1  ;;  %v5687_v34 = vpop.f32.mrf.mxu0  ;;  %v5693_v27 = vmax.f32 %v5633_v36, %v5685_v35  ;;  %v13389_v35 = vld [vmem:[%s14217_s5 + $0xc0] sm:$0xff]  ;;  %v13420_v36 = vld [vmem:[%s14216_s4 + $0x18] sm:$0xf]  ;;  %15287 = vst [vmem:[#allocation79_spill] sm:$0xff] %v13451_v54 }
0x1395   : > { %v5688_v12 = vadd.f32 %v5687_v34, %v5661_v37  ;;  %v13457_v37 = vld [vmem:[%s14217_s5 + $0xe8] sm:$0xff]  ;;  %v13463_v34 = vld [vmem:[%s14217_s5 + $0x98] sm:$0xff] }
0x1396   : > { %15288 = vst [vmem:[#allocation81_spill] sm:$0xff] %v13457_v37 }
0x1397   : > { %15289 = vst [vmem:[#allocation83_spill] sm:$0xff] %v13463_v34 }
0x1399   : > { %v5609_v60 = vpop.f32.mrf.mxu3  ;;  %v5635_v1 = vpop.f32.mrf.mxu2 }
0x139a   : > { %v5636_v32 = vadd.f32 %v5635_v1, %v5609_v60  ;;  %v13469_v60 = vld [vmem:[%s14217_s5 + $0xe0] sm:$0xff]  ;;  %v13475_v1 = vld [vmem:[%s14217_s5 + $0x90] sm:$0xff] }
0x139b   : > { %15290 = vst [vmem:[#allocation85_spill] sm:$0xff] %v13469_v60 }
0x139c   : > { %v5664_v19 = vpop.f32.mrf.mxu1  ;;  %v5690_v23 = vpop.f32.mrf.mxu0  ;;  %v5694_v30 = vmax.f32 %v5636_v32, %v5688_v12  ;;  %v13413_v12 = vld [vmem:[%s14216_s4 + $0x8] sm:$0xf]  ;;  %15291 = vst [vmem:[#allocation86_spill] sm:$0xff] %v13475_v1  ;;  %v13505_v32 = vld [vmem:[%s14219_s7 + $0xe0] sm:$0xff] }
0x139d   : > { %v5691_v22 = vadd.f32 %v5690_v23, %v5664_v19  ;;  %v13481_v19 = vld [vmem:[%s14217_s5 + $0xd8] sm:$0xff]  ;;  %15296 = vst [vmem:[#allocation91_spill] sm:$0xff] %v13505_v32 }
0x139e   : > { %15292 = vst [vmem:[#allocation87_spill] sm:$0xff] %v13481_v19  ;;  %v13487_v23 = vld [vmem:[%s14219_s7 + $0xf8] sm:$0xff] }
0x139f   : > { %15293 = vst [vmem:[#allocation88_spill] sm:$0xff] %v13487_v23 }
0x13a1   : > { %v5612_v42 = vpop.f32.mrf.mxu3  ;;  %v5638_v40 = vpop.f32.mrf.mxu2 }
0x13a2   : > { %v5639_v46 = vadd.f32 %v5638_v40, %v5612_v42  ;;  %v13493_v42 = vld [vmem:[%s14219_s7 + $0xf0] sm:$0xff]  ;;  %v13499_v40 = vld [vmem:[%s14219_s7 + $0xe8] sm:$0xff] }
0x13a3   : > { %15294 = vst [vmem:[#allocation89_spill] sm:$0xff] %v13493_v42 }
0x13a4   : > { %v5695_v49 = vmax.f32 %v5639_v46, %v5691_v22  ;;  %v13368_v46 = vld [vmem:[%s14216_s4 + $0x10] sm:$0xff]  ;;  %15295 = vst [vmem:[#allocation90_spill] sm:$0xff] %v13499_v40 }
0x13a5   : > { %v13427_v22 = vld [vmem:[%s14217_s5 + $0xb0] sm:$0xff] }
0x13a6   : > { %5709 = vmatpush.msrb.mxu2 %v5695_v49  ;;  %5732 = vmatpush.msra.mxu3 %v5695_v49  ;;  %v13401_v49 = vld [vmem:[%s14217_s5 + $0xb8] sm:$0xff]  ;;  %15283 = vst [vmem:[#allocation71_spill] sm:$0xff] %v13427_v22 }
0x13a8   : > { %5710 = vmatpush.msrb.mxu2 %v5694_v30  ;;  %5733 = vmatpush.msra.mxu3 %v5694_v30  ;;  %v13382_v30 = vld [vmem:[%s14217_s5 + $0xc8] sm:$0xff] }
0x13aa   : > { %5711 = vmatpush.msrb.mxu2 %v5693_v27  ;;  %5734 = vmatpush.msra.mxu3 %v5693_v27  ;;  %v13375_v27 = vld [vmem:[%s14217_s5 + $0xd0] sm:$0xff] }
0x13ab   : > { %7545 = vmatmul.msk.f32.vlgmr.msrb.gmra.mxu2 %vm1112_vm6, %v13361_v41  ;;  %7547 = vmatmul.msk.f32.vlgmr.msra.gmra.mxu3 %vm1112_vm6, %v13368_v46 }
0x13ac   : > { %5805 = vmatpush.msra.mxu2 %v13375_v27  ;;  %5831 = vmatpush.msrb.mxu3 %v12614_v38  ;;  %v13395_v38 = vld [vmem:[%s14217_s5 + $0x108] sm:$0xff] }
0x13ae   : > { %5806 = vmatpush.msra.mxu2 %v13382_v30  ;;  %5832 = vmatpush.msrb.mxu3 %v12621_v55  ;;  %v13407_v55 = vld [vmem:[%s14217_s5 + $0x100] sm:$0xff] }
0x13b0   : > { %5807 = vmatpush.msra.mxu2 %v13389_v35  ;;  %5833 = vmatpush.msrb.mxu3 %v13395_v38 }
0x13b2   : > { %5808 = vmatpush.msra.mxu2 %v13401_v49  ;;  %5834 = vmatpush.msrb.mxu3 %v13407_v55 }
0x13b3   : > { %7546 = vmatmul.msk.f32.gmra.mxu2 %vm1112_vm6, %v13413_v12  ;;  %7548 = vmatmul.msk.f32.gmra.mxu3 %vm1112_vm6, %v13420_v36 }
0x13b4   : > { %5809 = vmatpush.msra.mxu2 %v13427_v22  ;;  %5835 = vmatpush.msrb.mxu3 %v13433_v9 }
0x13b6   : > { %5810 = vmatpush.msra.mxu2 %v13439_v10  ;;  %5836 = vmatpush.msrb.mxu3 %v13445_v28 }
0x13b8   : > { %5811 = vmatpush.msra.mxu2 %v13451_v54  ;;  %5837 = vmatpush.msrb.mxu3 %v13457_v37 }
0x13ba   : > { %5812 = vmatpush.msra.mxu2 %v13463_v34  ;;  %5838 = vmatpush.msrb.mxu3 %v13469_v60 }
0x13bc   : > { %5813 = vmatpush.msra.mxu2 %v13475_v1  ;;  %5839 = vmatpush.msrb.mxu3 %v13481_v19 }
0x13be   : > { %5893 = vmatpush.msrb.mxu2 %v13487_v23  ;;  %v13511_v23 = vld [vmem:[%s14219_s7 + $0xd8] sm:$0xff] }
0x13bf   : > { %15297 = vst [vmem:[#allocation92_spill] sm:$0xff] %v13511_v23 }
0x13c0   : > { %5894 = vmatpush.msrb.mxu2 %v13493_v42  ;;  %v13517_v42 = vld [vmem:[%s14219_s7 + $0xd0] sm:$0xff] }
0x13c1   : > { %15298 = vst [vmem:[#allocation93_spill] sm:$0xff] %v13517_v42 }
0x13c2   : > { %5895 = vmatpush.msrb.mxu2 %v13499_v40  ;;  %v13523_v40 = vld [vmem:[%s14219_s7 + $0xc8] sm:$0xff] }
0x13c3   : > { %15299 = vst [vmem:[#allocation94_spill] sm:$0xff] %v13523_v40 }
0x13c4   : > { %5896 = vmatpush.msrb.mxu2 %v13505_v32  ;;  %v13529_v32 = vld [vmem:[%s14219_s7 + $0xc0] sm:$0xff] }
0x13c5   : > { %15300 = vst [vmem:[#allocation95_spill] sm:$0xff] %v13529_v32 }
0x13c6   : > { %5897 = vmatpush.msrb.mxu2 %v13511_v23  ;;  %v13535_v23 = vld [vmem:[%s14219_s7 + $0xb8] sm:$0xff] }
0x13c7   : > { %15301 = vst [vmem:[#allocation96_spill] sm:$0xff] %v13535_v23 }
0x13c8   : > { %5898 = vmatpush.msrb.mxu2 %v13517_v42  ;;  %v13541_v42 = vld [vmem:[%s14219_s7 + $0xb0] sm:$0xff] }
0x13c9   : > { %15302 = vst [vmem:[#allocation27_spill] sm:$0xff] %v13541_v42 }
0x13ca   : > { %5899 = vmatpush.msrb.mxu2 %v13523_v40  ;;  %v13547_v40 = vld [vmem:[%s14219_s7 + $0xa8] sm:$0xff] }
0x13cb   : > { %15303 = vst [vmem:[#allocation12_spill] sm:$0xff] %v13547_v40 }
0x13cc   : > { %5900 = vmatpush.msrb.mxu2 %v13529_v32  ;;  %v13553_v32 = vld [vmem:[%s14219_s7 + $0xa0] sm:$0xff] }
0x13cd   : > { %15304 = vst [vmem:[#allocation97_spill] sm:$0xff] %v13553_v32 }
0x13ce   : > { %5901 = vmatpush.msrb.mxu2 %v13535_v23  ;;  %v13559_v23 = vld [vmem:[%s14219_s7 + $0x98] sm:$0xff] }
0x13cf   : > { %15305 = vst [vmem:[#allocation98_spill] sm:$0xff] %v13559_v23 }
0x13d0   : > { %5902 = vmatpush.msrb.mxu2 %v13541_v42  ;;  %v13565_v42 = vld [vmem:[%s14219_s7 + $0x90] sm:$0xff] }
0x13d1   : > { %15306 = vst [vmem:[#allocation13_spill] sm:$0xff] %v13565_v42 }
0x13d2   : > { %5903 = vmatpush.msrb.mxu2 %v13547_v40  ;;  %v13571_v40 = vld [vmem:[%s14219_s7 + $0x88] sm:$0xff] }
0x13d3   : > { %15307 = vst [vmem:[#allocation29_spill] sm:$0xff] %v13571_v40 }
0x13d4   : > { %5904 = vmatpush.msrb.mxu2 %v13553_v32  ;;  %v13577_v32 = vld [vmem:[%s14219_s7 + $0x80] sm:$0xff] }
0x13d5   : > { %15308 = vst [vmem:[#allocation14_spill] sm:$0xff] %v13577_v32 }
0x13d6   : > { %5905 = vmatpush.msrb.mxu2 %v13559_v23 }
0x13d8   : > { %5906 = vmatpush.msrb.mxu2 %v13565_v42  ;;  %v8200_v42 = vld [vmem:[%s14629_s1 + $0x30] sm:$0xf] }
0x13da   : > { %5907 = vmatpush.msrb.mxu2 %v13571_v40  ;;  %v8201_v40 = vld [vmem:[%s14629_s1 + $0x20] sm:$0xff] }
0x13dc   : > { %5908 = vmatpush.msrb.mxu2 %v13577_v32  ;;  %v8202_v32 = vld [vmem:[%s14629_s1 + $0x10] sm:$0xff] }
0x142e   : > { %v5713_v23 = vpop.f32.mrf.mxu2  ;;  %v5736_v19 = vpop.f32.mrf.mxu3 }
0x142f   : > { %v5742_v1 = vmax.f32 %v5713_v23, %v5736_v19 }
0x1431   : > { %7550 = vmatmul.msk.f32.vlgmr.msra.gmra.mxu1 %vm1200_vm7, %v5742_v1  ;;  %v5746_v23 = vrot.slane %v5742_v1, 1  ;;  %v5793_v37 = vrot.slane %v5742_v1, 2  ;;  %v5819_v10 = vrot.slane %v5742_v1, 3 }
0x1432   : > { %7568 = vmatpush.msk.msra.mxu1 %vm555_vm0, %v8200_v42 }
0x1434   : > { %6061 = vmatpush.msra.mxu1 %v8201_v40 }
0x1436   : > { %v5716_v60 = vpop.f32.mrf.mxu2  ;;  %v5739_v34 = vpop.f32.mrf.mxu3  ;;  %6062 = vmatpush.msra.mxu1 %v8202_v32 }
0x1437   : > { %v5743_v19 = vmax.f32 %v5716_v60, %v5739_v34  ;;  %v13632_v34 = vld [vmem:[%s8500_s25 + $0xe0] sm:$0xff]  ;;  %v13635_v60 = vld [vmem:[%s8500_s25 + $0xe8] sm:$0xff] }
0x1438   : > { %6063 = vmatpush.msra.mxu1 %v12666_v58  ;;  %v8203_v58 = vld [vmem:[%s14629_s1 + $0x70] sm:$0xf]  ;;  %v5978_v32 = vrot.slane %v13635_v60, 1 }
0x1439   : > { %v5747_v54 = vrot.slane %v5743_v19, 1  ;;  %v5794_v28 = vrot.slane %v5743_v19, 2  ;;  %v5820_v42 = vrot.slane %v5743_v19, 3 }
0x143b   : > { %v5748_v9 = vsel %vm540_vm1, %v5746_v23, %v5747_v54  ;;  %v5795_v40 = vsel %vm687_vm3, %v5793_v37, %v5794_v28  ;;  %v5821_v22 = vsel %vm774_vm4, %v5819_v10, %v5820_v42  ;;  %v5846_v54 = vrot.slane %v5743_v19, 4  ;;  %v8204_v10 = vld [vmem:[%s14629_s1 + $0x60] sm:$0xff]  ;;  %v8209_v37 = vld [vmem:[%s14629_s1 + $0x90] sm:$0xff] }
0x143c   : > { %7549 = vmatmul.msk.f32.vlgmr.msra.gmra.mxu0 %vm1200_vm7, %v5748_v9  ;;  %7551 = vmatmul.msk.f32.vlgmr.msra.gmra.mxu2 %vm1200_vm7, %v5795_v40  ;;  %v5845_v9 = vrot.slane %v5742_v1, 4  ;;  %v8206_v28 = vld [vmem:[%s14629_s1 + $0x40] sm:$0xff]  ;;  %v5977_v1 = vrot.slane %v13632_v34, 1  ;;  %v8211_v23 = vld [vmem:[%s14629_s1 + $0x130] sm:$0xf] }
0x143d   : > { %7552 = vmatmul.msk.f32.vlgmr.msrb.gmra.mxu3 %vm1200_vm7, %v5821_v22  ;;  %7560 = vmatpush.msk.msra.mxu0 %vm555_vm0, %v8203_v58  ;;  %v8205_v22 = vld [vmem:[%s14629_s1 + $0x50] sm:$0xff]  ;;  %v8212_v42 = vld [vmem:[%s14629_s1 + $0x120] sm:$0xff] }
0x143e   : > { %7572 = vmatpush.msk.msra.mxu2 %vm555_vm0, %v12678_v45  ;;  %v5847_v45 = vsel %vm555_vm0, %v5845_v9, %v5846_v54  ;;  %v13640_v19 = vsel %vm540_vm1, %v5977_v1, %v5978_v32  ;;  %v8213_v40 = vld [vmem:[%s14629_s1 + $0x110] sm:$0xff]  ;;  %v8214_v58 = vld [vmem:[%s14629_s1 + $0x100] sm:$0xff] }
0x143f   : > { %6003 = vmatpush.msra.mxu0 %v8204_v10 }
0x1440   : > { %6087 = vmatpush.msra.mxu2 %v12685_v51  ;;  %v8207_v51 = vld [vmem:[%s14629_s1 + $0xb0] sm:$0xf] }
0x1441   : > { %6004 = vmatpush.msra.mxu0 %v8205_v22 }
0x1442   : > { %6088 = vmatpush.msra.mxu2 %v12691_v62  ;;  %v8208_v62 = vld [vmem:[%s14629_s1 + $0xa0] sm:$0xff] }
0x1443   : > { %6005 = vmatpush.msra.mxu0 %v8206_v28 }
0x1444   : > { %7553 = vmatmul.msk.f32.vlgmr.msrb.gmra.mxu0 %vm1200_vm7, %v5847_v45  ;;  %6089 = vmatpush.msra.mxu2 %v12698_v16  ;;  %v8210_v16 = vld [vmem:[%s14629_s1 + $0x80] sm:$0xff] }
0x1445   : > { %7576 = vmatpush.msk.msrb.mxu0 %vm555_vm0, %v8207_v51 }
0x1447   : > { %6126 = vmatpush.msrb.mxu0 %v8208_v62 }
0x1449   : > { %6127 = vmatpush.msrb.mxu0 %v8209_v37 }
0x144b   : > { %6128 = vmatpush.msrb.mxu0 %v8210_v16  ;;  %v13660_v16 = vld [vmem:[%s14218_s6] ss:$0 sm:$0xff] }
0x144c   : > { %7561 = vmatmul.msk.f32.vlgmr.msra.gmra.mxu0 %vm548_vm2, %v13640_v19 }
0x144d   : > { %7592 = vmatpush.msk.msra.mxu0 %vm555_vm0, %v8211_v23 }
0x144f   : > { %6268 = vmatpush.msra.mxu0 %v8212_v42  ;;  %v15318_v42 = vld [vmem:[#allocation28_spill] sm:$0xff] }
0x1451   : > { %6269 = vmatpush.msra.mxu0 %v8213_v40  ;;  %v15319_v40 = vld [vmem:[#allocation44_spill] sm:$0xff] }
0x1453   : > { %6270 = vmatpush.msra.mxu0 %v8214_v58 }
0x14ae   : > { %v5790_v10 = vpop.f32.mrf.mxu1 }
0x14b9   : > { %v5768_v54 = vpop.f32.mrf.mxu0 }
0x14ba   : > { %v5791_v9 = vadd.f32 %v5790_v10, %v5768_v54  ;;  %v15320_v54 = vld [vmem:[#allocation56_spill] sm:$0xff] }
0x14bf   : > { %v5815_v22 = vpop.f32.mrf.mxu2 }
0x14c0   : > { %v5818_v45 = vadd.f32 %v5815_v22, %v5791_v9  ;;  %v5841_v28 = vpop.f32.mrf.mxu3  ;;  %v15321_v9 = vld [vmem:[#allocation68_spill] sm:$0xff]  ;;  %v15322_v22 = vld [vmem:[#allocation57_spill] sm:$0xff] }
0x14c1   : > { %v5867_v62 = vpop.f32.mrf.mxu0 }
0x14c2   : > { %v5844_v51 = vadd.f32 %v5841_v28, %v5818_v45  ;;  %v15323_v45 = vld [vmem:[#allocation70_spill] sm:$0xff] }
0x14c4   : > { %v5870_v37 = vadd.f32 %v5867_v62, %v5844_v51  ;;  %v15324_v51 = vld [vmem:[#allocation58_spill] sm:$0xff] }
0x14c6   : > { %v5871_v1 = vadd.f32 %v13660_v16, %v5870_v37  ;;  %v15325_v37 = vld [vmem:[#allocation72_spill] sm:$0xff] }
0x14c8   : > { %v5872_v23 = vmax.f32 %v5871_v1, 0.0 }
0x14ca   : > { %5889 = vmatmul.f32.vlgmr.msrb.gmra.mxu1 %v5872_v23  ;;  %5909 = vmatmul.f32.vlgmr.msrb.gmra.mxu2 %v5872_v23 }
0x14cb   : > { %7584 = vmatpush.msk.msrb.mxu1 %vm555_vm0, %v12706_v20  ;;  %7588 = vmatpush.msk.msrb.mxu2 %vm555_vm0, %v12713_v29  ;;  %v15309_v20 = vld [vmem:[#allocation114_spill] sm:$0xff]  ;;  %v15310_v29 = vld [vmem:[#allocation115_spill] sm:$0xff] }
0x14cd   : > { %6197 = vmatpush.msrb.mxu1 %v12720_v39  ;;  %6223 = vmatpush.msrb.mxu2 %v12726_v56  ;;  %v15311_v39 = vld [vmem:[#allocation116_spill] sm:$0xff]  ;;  %v15312_v56 = vld [vmem:[#allocation21_spill] sm:$0xff] }
0x14cf   : > { %6198 = vmatpush.msrb.mxu1 %v12732_v53  ;;  %6224 = vmatpush.msrb.mxu2 %v12738_v14  ;;  %v15313_v53 = vld [vmem:[#allocation22_spill] sm:$0xff]  ;;  %v15314_v14 = vld [vmem:[#allocation23_spill] sm:$0xff] }
0x14d1   : > { %6199 = vmatpush.msrb.mxu1 %v12744_v47  ;;  %6225 = vmatpush.msrb.mxu2 %v12750_v6  ;;  %v15315_v47 = vld [vmem:[#allocation24_spill] sm:$0xff]  ;;  %v15316_v6 = vld [vmem:[#allocation25_spill] sm:$0xff] }
0x14d2   : > { %7569 = vmatmul.msk.f32.vlgmr.msra.gmra.mxu1 %vm548_vm2, %v13632_v34  ;;  %7573 = vmatmul.msk.f32.vlgmr.msra.gmra.mxu2 %vm548_vm2, %v13632_v34 }
0x14d3   : > { %6334 = vmatpush.msra.mxu1 %v12763_v13  ;;  %6374 = vmatpush.msra.mxu2 %v12769_v3  ;;  %v15317_v13 = vld [vmem:[#allocation26_spill] sm:$0xff]  ;;  %v13700_v3 = vld [vmem:[%s8500_s25 + $0xf0] sm:$0xff] }
0x14d4   : > { %v6103_v58 = vrot.slane %v13700_v3, 2 }
0x14d5   : > { %6335 = vmatpush.msra.mxu1 %v12775_v31  ;;  %6375 = vmatpush.msra.mxu2 %v12781_v63  ;;  %v5980_v31 = vrot.slane %v13700_v3, 1 }
0x14d7   : > { %6336 = vmatpush.msra.mxu1 %v12787_v48  ;;  %v13708_v63 = vsel %vm540_vm1, %v5978_v32, %v5980_v31  ;;  %v13713_v48 = vld [vmem:[%s8500_s25 + $0xf8] sm:$0xf]  ;;  %s8282_s25 = scalar_lea.hbm %s14227_s15, 16 }
0x14d8   : > { %7562 = vmatmul.msk.f32.gmra.mxu0 %vm548_vm2, %v13708_v63  ;;  %v6105_v28 = vrot.slane %v13713_v48, 2 }
0x14d9   : > { %6337 = vmatpush.msra.mxu1 %v12796_v26  ;;  %v5982_v26 = vrot.slane %v13713_v48, 1 }
0x14da   : > { %7570 = vmatmul.msk.f32.gmra.mxu1 %vm548_vm2, %v13635_v60  ;;  %7574 = vmatmul.msk.f32.gmra.mxu2 %vm548_vm2, %v13635_v60  ;;  %v13743_v62 = vsel %vm687_vm3, %v6103_v58, %v6105_v28  ;;  %v8222_v28 = vld [vmem:[%s14629_s1 + $0xb8] sm:$0xf] }
0x14db   : > { %6338 = vmatpush.msra.mxu1 %v12806_v43  ;;  %v13717_v43 = vsel %vm540_vm1, %v5980_v31, %v5982_v26  ;;  %v15328_v31 = vld [vmem:[#allocation60_spill] sm:$0xff]  ;;  %v8217_v26 = vld [vmem:[%s14629_s1 + $0x78] sm:$0xf] }
0x14dd   : > { %6339 = vmatpush.msra.mxu1 %v12812_v18  ;;  %v6100_v18 = vrot.slane %v13632_v34, 2 }
0x14df   : > { %6340 = vmatpush.msra.mxu1 %v12818_v7  ;;  %v6101_v7 = vrot.slane %v13635_v60, 2 }
0x14e0   : > { %7563 = vmatmul.msk.f32.gmra.mxu0 %vm548_vm2, %v13717_v43 }
0x14e1   : > { %6341 = vmatpush.msra.mxu1 %v15309_v20  ;;  %v13724_v32 = vsel %vm687_vm3, %v6100_v18, %v6101_v7  ;;  %v13733_v10 = vsel %vm687_vm3, %v6101_v7, %v6103_v58  ;;  %v15326_v20 = vld [vmem:[#allocation59_spill] sm:$0xff]  ;;  %v8219_v7 = vld [vmem:[%s14629_s1 + $0x58] sm:$0xff]  ;;  %v13786_v58 = vld [vmem:[%s14220_s8 + $0x4] sm:$0xf] }
0x14e2   : > { %7571 = vmatmul.msk.f32.gmra.mxu1 %vm548_vm2, %v13700_v3  ;;  %7575 = vmatmul.msk.f32.gmra.mxu2 %vm548_vm2, %v13700_v3 }
0x14e3   : > { %6342 = vmatpush.msra.mxu1 %v15310_v29 }
0x14e5   : > { %6343 = vmatpush.msra.mxu1 %v15311_v39  ;;  %v6171_v39 = vrot.slane %v13632_v34, 3 }
0x14e7   : > { %6344 = vmatpush.msra.mxu1 %v15312_v56  ;;  %v6172_v56 = vrot.slane %v13635_v60, 3 }
0x14e8   : > { %7577 = vmatmul.msk.f32.vlgmr.msrb.gmra.mxu0 %vm548_vm2, %v13724_v32 }
0x14e9   : > { %6345 = vmatpush.msra.mxu1 %v15313_v53  ;;  %6386 = vmatpush.msrb.mxu0 %v15318_v42  ;;  %v15327_v53 = vld [vmem:[#allocation74_spill] sm:$0xff]  ;;  %v6174_v42 = vrot.slane %v13700_v3, 3 }
0x14eb   : > { %6346 = vmatpush.msra.mxu1 %v15314_v14  ;;  %6387 = vmatpush.msrb.mxu0 %v15319_v40  ;;  %v13755_v14 = vld [vmem:[%s14220_s8] sm:$0xf] }
0x14ec   : > { %v15330_v40 = vld [vmem:[#allocation78_spill] sm:$0xff] }
0x14ed   : > { %6347 = vmatpush.msra.mxu1 %v15315_v47  ;;  %6388 = vmatpush.msrb.mxu0 %v15320_v54  ;;  %v6173_v47 = vsel %vm774_vm4, %v6171_v39, %v6172_v56  ;;  %v6175_v54 = vsel %vm774_vm4, %v6172_v56, %v6174_v42  ;;  %v6247_v56 = vrot.slane %v13713_v48, 4 }
0x14ee   : > { %7585 = vmatmul.msk.f32.vlgmr.msrb.gmra.mxu1 %vm548_vm2, %v6173_v47  ;;  %7589 = vmatmul.msk.f32.vlgmr.msrb.gmra.mxu2 %vm548_vm2, %v6173_v47 }
0x14ef   : > { %6348 = vmatpush.msra.mxu1 %v15316_v6  ;;  %6389 = vmatpush.msrb.mxu0 %v15321_v9  ;;  %v6242_v6 = vrot.slane %v13632_v34, 4  ;;  %v8218_v34 = vld [vmem:[%s14629_s1 + $0x68] sm:$0xff]  ;;  %v6245_v9 = vrot.slane %v13700_v3, 4 }
0x14f0   : > { %7578 = vmatmul.msk.f32.gmra.mxu0 %vm548_vm2, %v13733_v10  ;;  %v8223_v3 = vld [vmem:[%s14629_s1 + $0xa8] sm:$0xff] }
0x14f1   : > { %6349 = vmatpush.msra.mxu1 %v15317_v13  ;;  %6390 = vmatpush.msrb.mxu0 %v15322_v22  ;;  %v6243_v13 = vrot.slane %v13635_v60, 4  ;;  %v15329_v60 = vld [vmem:[#allocation76_spill] sm:$0xff]  ;;  %v6248_v47 = vsel %vm555_vm0, %v6245_v9, %v6247_v56 }
0x14f2   : > { %v15331_v22 = vld [vmem:[#allocation32_spill] sm:$0xff] }
0x14f3   : > { %6391 = vmatpush.msrb.mxu0 %v15323_v45  ;;  %v13769_v18 = vsel %vm555_vm0, %v6242_v6, %v6243_v13  ;;  %v8221_v45 = vld [vmem:[%s14629_s1 + $0x48] sm:$0xff]  ;;  %v8226_v6 = vld [vmem:[%s14629_s1 + $0x138] sm:$0xf] }
0x14f5   : > { %6392 = vmatpush.msrb.mxu0 %v15324_v51  ;;  %v6246_v51 = vsel %vm555_vm0, %v6243_v13, %v6245_v9  ;;  %v8228_v13 = vld [vmem:[%s14629_s1 + $0x118] sm:$0xff]  ;;  %v15344_v9 = vld [vmem:[#allocation50_spill] sm:$0xff] }
0x14f6   : > { %7586 = vmatmul.msk.f32.gmra.mxu1 %vm548_vm2, %v6175_v54  ;;  %7590 = vmatmul.msk.f32.gmra.mxu2 %vm548_vm2, %v6175_v54  ;;  %v15342_v54 = vld [vmem:[#allocation43_spill] sm:$0xff] }
0x14f7   : > { %6393 = vmatpush.msrb.mxu0 %v15325_v37  ;;  %v15332_v37 = vld [vmem:[#allocation38_spill] sm:$0xff] }
0x14f8   : > { %7579 = vmatmul.msk.f32.gmra.mxu0 %vm548_vm2, %v13743_v62 }
0x14f9   : > { %6394 = vmatpush.msrb.mxu0 %v15326_v20  ;;  %v15333_v20 = vld [vmem:[#allocation36_spill] sm:$0xff] }
0x14fb   : > { %6395 = vmatpush.msrb.mxu0 %v15327_v53  ;;  %v8225_v53 = vld [vmem:[%s14629_s1 + $0x88] sm:$0xff] }
0x14fd   : > { %6396 = vmatpush.msrb.mxu0 %v15328_v31  ;;  %v15336_v31 = vld [vmem:[#allocation55_spill] sm:$0xff] }
0x14ff   : > { %6397 = vmatpush.msrb.mxu0 %v15329_v60  ;;  %v15338_v60 = vld [vmem:[#allocation84_spill] sm:$0xff] }
0x1500   : > { %7593 = vmatmul.msk.f32.vlgmr.msra.gmra.mxu0 %vm548_vm2, %v13769_v18 }
0x1501   : > { %6398 = vmatpush.msrb.mxu0 %v15330_v40  ;;  %v15341_v40 = vld [vmem:[#allocation41_spill] sm:$0xff] }
0x1503   : > { %6399 = vmatpush.msrb.mxu0 %v15331_v22  ;;  %v15346_v22 = vld [vmem:[#allocation34_spill] sm:$0xff] }
0x1505   : > { %6400 = vmatpush.msrb.mxu0 %v15332_v37  ;;  %v15351_v37 = vld [vmem:[#allocation47_spill] sm:$0xff] }
0x1507   : > { %6401 = vmatpush.msrb.mxu0 %v15333_v20 }
0x1508   : > { %7594 = vmatmul.msk.f32.gmra.mxu0 %vm548_vm2, %v6246_v51 }
0x1510   : > { %7595 = vmatmul.msk.f32.gmra.mxu0 %vm548_vm2, %v6248_v47 }
0x1547   : > { %v5890_v1 = vpop.f32.mrf.mxu1 }
0x154d   : > { %v5910_v23 = vpop.f32.mrf.mxu2 }
0x154e   : > { %v5913_v29 = vmax.f32 %v5890_v1, %v5910_v23  ;;  %v8224_v1 = vld [vmem:[%s14629_s1 + $0x98] sm:$0xff]  ;;  %v6176_v23 = vrot.slane %v13713_v48, 3  ;;  %v15335_v48 = vld [vmem:[#allocation52_spill] sm:$0xff] }
0x154f   : > { %v6065_v20 = vpop.f32.mrf.mxu1 }
0x1550   : > { %5929 = vmatpush.msra.mxu3 %v5913_v29  ;;  %v6177_v39 = vsel %vm774_vm4, %v6174_v42, %v6176_v23  ;;  %v15340_v42 = vld [vmem:[#allocation39_spill] sm:$0xff] }
0x1551   : > { %7554 = vmatmul.msk.f32.vlgmr.msra.gmra.mxu3 %vm1434_vm8, %v13755_v14  ;;  %7587 = vmatmul.msk.f32.gmra.mxu1 %vm548_vm2, %v6177_v39 }
0x1552   : > { %5949 = vmatpush.msrb.mxu3 %v5913_v29  ;;  %v15334_v29 = vld [vmem:[#allocation48_spill] sm:$0xff]  ;;  %7591 = vmatmul.msk.f32.gmra.mxu2 %vm548_vm2, %v6177_v39 }
0x1553   : > { %6525 = vmatpush.msra.mxu0 %v15334_v29 }
0x1554   : > { %7564 = vmatpush.msk.msra.mxu3 %vm555_vm0, %v8217_v26  ;;  %v15337_v26 = vld [vmem:[#allocation53_spill] sm:$0xff] }
0x1555   : > { %6526 = vmatpush.msra.mxu0 %v15335_v48 }
0x1556   : > { %6029 = vmatpush.msra.mxu3 %v8218_v34  ;;  %v8229_v34 = vld [vmem:[%s14629_s1 + $0x108] sm:$0xff] }
0x1557   : > { %6527 = vmatpush.msra.mxu0 %v15336_v31  ;;  %v6068_v39 = vpop.f32.mrf.mxu1 }
0x1558   : > { %6030 = vmatpush.msra.mxu3 %v8219_v7  ;;  %v15339_v7 = vld [vmem:[#allocation35_spill] sm:$0xff] }
0x1559   : > { %7555 = vmatmul.msk.f32.vlgmr.msrb.gmra.mxu3 %vm1434_vm8, %v13786_v58  ;;  %6528 = vmatpush.msra.mxu0 %v15337_v26 }
0x155a   : > { %6031 = vmatpush.msra.mxu3 %v8221_v45  ;;  %v15347_v45 = vld [vmem:[#allocation40_spill] sm:$0xff] }
0x155b   : > { %6529 = vmatpush.msra.mxu0 %v15338_v60 }
0x155c   : > { %7580 = vmatpush.msk.msrb.mxu3 %vm555_vm0, %v8222_v28  ;;  %v15349_v28 = vld [vmem:[#allocation51_spill] sm:$0xff] }
0x155d   : > { %6530 = vmatpush.msra.mxu0 %v15339_v7 }
0x155e   : > { %6152 = vmatpush.msrb.mxu3 %v8223_v3  ;;  %v15350_v3 = vld [vmem:[#allocation54_spill] sm:$0xff] }
0x155f   : > { %6531 = vmatpush.msra.mxu0 %v15340_v42 }
0x1560   : > { %6153 = vmatpush.msrb.mxu3 %v8224_v1 }
0x1561   : > { %7565 = vmatmul.msk.f32.vlgmr.msra.gmra.mxu3 %vm548_vm2, %v13640_v19  ;;  %v8227_v19 = vld [vmem:[%s14629_s1 + $0x128] sm:$0xff]  ;;  %6532 = vmatpush.msra.mxu0 %v15341_v40  ;;  %s8278_s1 = scalar_lea.hbm %s8277_s26, 8 }
0x1562   : > { %6154 = vmatpush.msrb.mxu3 %v8225_v53  ;;  %p8279_p0 = scmp.ne.s32.totalorder %s8277_s26, %s8278_s1  ;;  %p8284_p4 = scmp.lt.s32.totalorder %s8282_s25, %s8278_s1 }
0x1563   : > { %6533 = vmatpush.msra.mxu0 %v15342_v54 }
0x1564   : > { %7596 = vmatpush.msk.msra.mxu3 %vm555_vm0, %v8226_v6  ;;  %p8280_p1 = pnand %p8279_p0, %p8452_p5  ;;  %p8285_p7 = por %p8284_p4, %p8283_p3 }
0x1566   : > { %6294 = vmatpush.msra.mxu3 %v8227_v19  ;;  %p8281_p2 = pneg %p8280_p1 }
0x1568   : > { %6295 = vmatpush.msra.mxu3 %v8228_v13  ;;  %p8286_p8 = pnand %p8285_p7, %p8281_p2 }
0x1569   : > { %7566 = vmatmul.msk.f32.gmra.mxu3 %vm548_vm2, %v13708_v63  ;;  %v15343_v63 = vld [vmem:[#allocation30_spill] sm:$0xff] }
0x156a   : > { %6296 = vmatpush.msra.mxu3 %v8229_v34 }
0x1571   : > { %7567 = vmatmul.msk.f32.gmra.mxu3 %vm548_vm2, %v13717_v43  ;;  %v15345_v43 = vld [vmem:[#allocation82_spill] sm:$0xff] }
0x1579   : > { %7581 = vmatmul.msk.f32.vlgmr.msrb.gmra.mxu3 %vm548_vm2, %v13724_v32  ;;  %v15348_v32 = vld [vmem:[#allocation45_spill] sm:$0xff] }
0x157a   : > { %6426 = vmatpush.msrb.mxu3 %v15343_v63 }
0x157c   : > { %6427 = vmatpush.msrb.mxu3 %v15344_v9 }
0x1581   : > { %7582 = vmatmul.msk.f32.gmra.mxu3 %vm548_vm2, %v13733_v10  ;;  %v6007_v10 = vpop.f32.mrf.mxu0 }
0x1582   : > { %v6066_v53 = vadd.f32 %v6065_v20, %v6007_v10  ;;  %v15354_v10 = vld [vmem:[#allocation113_spill] sm:$0xff] }
0x1589   : > { %7583 = vmatmul.msk.f32.gmra.mxu3 %vm548_vm2, %v13743_v62  ;;  %v15352_v62 = vld [vmem:[#allocation80_spill] sm:$0xff]  ;;  %v6010_v1 = vpop.f32.mrf.mxu0 }
0x158a   : > { %v6069_v13 = vadd.f32 %v6068_v39, %v6010_v1 }
0x1591   : > { %7597 = vmatmul.msk.f32.vlgmr.msra.gmra.mxu3 %vm548_vm2, %v13769_v18  ;;  %v15353_v18 = vld [vmem:[#allocation33_spill] sm:$0xff]  ;;  %v6013_v23 = vpop.f32.mrf.mxu0 }
0x1592   : > { %6503 = vmatpush.msra.mxu3 %v15345_v43 }
0x1594   : > { %6504 = vmatpush.msra.mxu3 %v15346_v22 }
0x1596   : > { %6505 = vmatpush.msra.mxu3 %v15347_v45 }
0x1598   : > { %6506 = vmatpush.msra.mxu3 %v15348_v32 }
0x1599   : > { %7598 = vmatmul.msk.f32.gmra.mxu3 %vm548_vm2, %v6246_v51  ;;  %v6130_v29 = vpop.f32.mrf.mxu0  ;;  %v6071_v51 = vpop.f32.mrf.mxu1 }
0x159a   : > { %6507 = vmatpush.msra.mxu3 %v15349_v28  ;;  %v6165_v19 = vadd.f32 %v6130_v29, %v6066_v53  ;;  %v6072_v54 = vadd.f32 %v6071_v51, %v6013_v23 }
0x159c   : > { %6508 = vmatpush.msra.mxu3 %v15350_v3 }
0x159e   : > { %6509 = vmatpush.msra.mxu3 %v15351_v37  ;;  %v4472_v37 = vrot.slane %v15354_v10, 3 }
0x15a0   : > { %6510 = vmatpush.msra.mxu3 %v15352_v62 }
0x15a1   : > { %7599 = vmatmul.msk.f32.gmra.mxu3 %vm548_vm2, %v6248_v47  ;;  %v6133_v56 = vpop.f32.mrf.mxu0  ;;  %v6201_v48 = vpop.f32.mrf.mxu1 }
0x15a2   : > { %6511 = vmatpush.msra.mxu3 %v15353_v18  ;;  %v6236_v31 = vadd.f32 %v6201_v48, %v6165_v19  ;;  %v6167_v7 = vadd.f32 %v6133_v56, %v6069_v13  ;;  %v15355_v13 = vld [vmem:[#allocation49_spill] sm:$0xff] }
0x15a9   : > { %v6136_v6 = vpop.f32.mrf.mxu0  ;;  %v6204_v40 = vpop.f32.mrf.mxu1 }
0x15aa   : > { %v6238_v63 = vadd.f32 %v6204_v40, %v6167_v7  ;;  %v6169_v45 = vadd.f32 %v6136_v6, %v6072_v54  ;;  %v15358_v54 = vld [vmem:[#allocation63_spill] sm:$0xff] }
0x15b1   : > { %v6272_v26 = vpop.f32.mrf.mxu0 }
0x15b2   : > { %v6307_v34 = vadd.f32 %v6272_v26, %v6236_v31 }
0x15b4   : > { %v6313_v47 = vadd.f32 %v6307_v34, %v14736_v8  ;;  %v15356_v34 = vld [vmem:[#allocation31_spill] sm:$0xff] }
0x15b6   : > { %v6319_v42 = vmax.f32 %v6313_v47, 0.0 }
0x15b8   : > { %6350 = vmatmul.f32.vlgmr.msra.gmra.mxu1 %v6319_v42  ;;  %6402 = vmatmul.f32.vlgmr.msrb.gmra.mxu0 %v6319_v42  ;;  %v15357_v42 = vld [vmem:[#allocation62_spill] sm:$0xff] }
0x15b9   : > { %v6275_v9 = vpop.f32.mrf.mxu0  ;;  %6618 = vmatpush.msrb.mxu0 %v13209_v44 }
0x15ba   : > { %v6309_v43 = vadd.f32 %v6275_v9, %v6238_v63 }
0x15bb   : > { %6619 = vmatpush.msrb.mxu0 %v13223_v25 }
0x15bc   : > { %v6315_v32 = vadd.f32 %v6309_v43, %v14736_v8  ;;  %v15359_v43 = vld [vmem:[#allocation64_spill] sm:$0xff] }
0x15bd   : > { %6620 = vmatpush.msrb.mxu0 %v13235_v2 }
0x15be   : > { %v6321_v3 = vmax.f32 %v6315_v32, 0.0 }
0x15bf   : > { %6621 = vmatpush.msrb.mxu0 %v13249_v0 }
0x15c0   : > { %6353 = vmatmul.f32.gmra.mxu1 %v6321_v3  ;;  %6405 = vmatmul.f32.gmra.mxu0 %v6321_v3  ;;  %v15361_v3 = vld [vmem:[#allocation66_spill] sm:$0xff] }
0x15c1   : > { %v6278_v1 = vpop.f32.mrf.mxu0  ;;  %6622 = vmatpush.msrb.mxu0 %v13263_v33  ;;  %v6091_v33 = vpop.f32.mrf.mxu2 }
0x15c3   : > { %6623 = vmatpush.msrb.mxu0 %v13275_v24 }
0x15c5   : > { %6624 = vmatpush.msrb.mxu0 %v13289_v52 }
0x15c7   : > { %6625 = vmatpush.msrb.mxu0 %v13301_v4 }
0x15c9   : > { %6626 = vmatpush.msrb.mxu0 %v13313_v17  ;;  %v6094_v24 = vpop.f32.mrf.mxu2 }
0x15cb   : > { %6627 = vmatpush.msrb.mxu0 %v13319_v61 }
0x15cd   : > { %6628 = vmatpush.msrb.mxu0 %v13325_v21 }
0x15ce   : > { %v6207_v18 = vpop.f32.mrf.mxu1 }
0x15cf   : > { %v6240_v44 = vadd.f32 %v6207_v18, %v6169_v45  ;;  %6629 = vmatpush.msrb.mxu0 %v13331_v57  ;;  %v15360_v45 = vld [vmem:[#allocation65_spill] sm:$0xff] }
0x15d0   : > { %v15363_v18 = vld [vmem:[#allocation69_spill] sm:$0xff] }
0x15d1   : > { %v6311_v23 = vadd.f32 %v6278_v1, %v6240_v44  ;;  %6630 = vmatpush.msrb.mxu0 %v13337_v15  ;;  %v6097_v4 = vpop.f32.mrf.mxu2 }
0x15d3   : > { %v6317_v20 = vadd.f32 %v6311_v23, %v14736_v8  ;;  %6631 = vmatpush.msrb.mxu0 %v13343_v11 }
0x15d4   : > { %v5931_v60 = vpop.f32.mrf.mxu3 }
0x15d5   : > { %v6323_v29 = vmax.f32 %v6317_v20, 0.0  ;;  %6632 = vmatpush.msrb.mxu0 %v13349_v59 }
0x15d7   : > { %6356 = vmatmul.f32.gmra.mxu1 %v6323_v29  ;;  %6408 = vmatmul.f32.gmra.mxu0 %v6323_v29 }
0x15d8   : > { %6633 = vmatpush.msrb.mxu0 %v13355_v5 }
0x15d9   : > { %v6227_v61 = vpop.f32.mrf.mxu2 }
0x15dc   : > { %v5951_v22 = vpop.f32.mrf.mxu3 }
0x15dd   : > { %v13875_v28 = vmax.f32 %v5931_v60, %v5951_v22 }
0x15df   : > { %v5956_v62 = vrot.slane %v13875_v28, 1 }
0x15e1   : > { %v7704_v25 = vpack.i.bf16 %v5956_v62, %v4472_v37  ;;  %v6230_v15 = vpop.f32.mrf.mxu2  ;;  %v15362_v62 = vld [vmem:[#allocation67_spill] sm:$0xff] }
0x15e3   : > { %7705 = vrot.lane.b32.xlu2 %v7704_v25, %s8333_s29 }
0x15e4   : > { %v6033_v2 = vpop.f32.mrf.mxu3 }
0x15e5   : > { %v6092_v56 = vadd.f32 %v6091_v33, %v6033_v2 }
0x15e9   : > { %v6233_v47 = vpop.f32.mrf.mxu2 }
0x15ec   : > { %v6036_v0 = vpop.f32.mrf.mxu3 }
0x15ed   : > { %v6095_v53 = vadd.f32 %v6094_v24, %v6036_v0 }
0x15f4   : > { %v6039_v8 = vpop.f32.mrf.mxu3 }
0x15f5   : > { %v6098_v31 = vadd.f32 %v6097_v4, %v6039_v8 }
0x15fc   : > { %v6156_v52 = vpop.f32.mrf.mxu3 }
0x15fd   : > { %v6166_v21 = vadd.f32 %v6156_v52, %v6092_v56 }
0x15ff   : > { %v6237_v51 = vadd.f32 %v6227_v61, %v6166_v21 }
0x1604   : > { %v6159_v17 = vpop.f32.mrf.mxu3 }
0x1605   : > { %v6168_v19 = vadd.f32 %v6159_v17, %v6095_v53  ;;  %v8230_v53 = vld [vmem:[%s14217_s5 + $0x118] sm:$0xff] }
0x1607   : > { %v6239_v59 = vadd.f32 %v6230_v15, %v6168_v19  ;;  %v15373_v15 = vld [vmem:[#allocation87_spill] sm:$0xff]  ;;  %v15375_v19 = vld [vmem:[#allocation89_spill] sm:$0xff] }
0x160c   : > { %v6162_v39 = vpop.f32.mrf.mxu3 }
0x160d   : > { %v6170_v60 = vadd.f32 %v6162_v39, %v6098_v31  ;;  %v15381_v31 = vld [vmem:[#allocation95_spill] sm:$0xff] }
0x160f   : > { %v6241_v63 = vadd.f32 %v6233_v47, %v6170_v60  ;;  %v15384_v60 = vld [vmem:[#allocation12_spill] sm:$0xff]  ;;  %v15386_v47 = vld [vmem:[#allocation98_spill] sm:$0xff] }
0x1614   : > { %v6298_v57 = vpop.f32.mrf.mxu3 }
0x1615   : > { %v6308_v6 = vadd.f32 %v6298_v57, %v6237_v51 }
0x1617   : > { %v6314_v11 = vadd.f32 %v6308_v6, %v15173_v50  ;;  %v8231_v6 = vld [vmem:[%s14217_s5 + $0x110] sm:$0xff] }
0x1619   : > { %v6320_v48 = vmax.f32 %v6314_v11, 0.0  ;;  %v15376_v11 = vld [vmem:[#allocation90_spill] sm:$0xff] }
0x161b   : > { %7600 = vmatmul.msk.f32.vlgmr.msra.gmra.mxu2 %vm974_vm5, %v6320_v48  ;;  %7603 = vmatmul.msk.f32.vlgmr.msrb.gmra.mxu3 %vm974_vm5, %v6320_v48  ;;  %v15377_v48 = vld [vmem:[#allocation91_spill] sm:$0xff] }
0x161c   : > { %v6301_v5 = vpop.f32.mrf.mxu3  ;;  %6602 = vmatpush.msrb.mxu3 %v15355_v13  ;;  %v15380_v13 = vld [vmem:[#allocation94_spill] sm:$0xff] }
0x161d   : > { %v6310_v26 = vadd.f32 %v6301_v5, %v6239_v59  ;;  %v15378_v59 = vld [vmem:[#allocation92_spill] sm:$0xff]  ;;  %v15379_v5 = vld [vmem:[#allocation93_spill] sm:$0xff] }
0x161e   : > { %6603 = vmatpush.msrb.mxu3 %v15356_v34  ;;  %v15383_v34 = vld [vmem:[#allocation27_spill] sm:$0xff] }
0x161f   : > { %v6316_v7 = vadd.f32 %v6310_v26, %v15173_v50  ;;  %v15382_v26 = vld [vmem:[#allocation96_spill] sm:$0xff] }
0x1620   : > { %6604 = vmatpush.msrb.mxu3 %v15357_v42  ;;  %v15387_v42 = vld [vmem:[#allocation13_spill] sm:$0xff] }
0x1621   : > { %v6322_v40 = vmax.f32 %v6316_v7, 0.0  ;;  %v15385_v7 = vld [vmem:[#allocation97_spill] sm:$0xff] }
0x1622   : > { %6605 = vmatpush.msrb.mxu3 %v15358_v54  ;;  %v15389_v54 = vld [vmem:[#allocation14_spill] sm:$0xff] }
0x1623   : > { %7601 = vmatmul.msk.f32.gmra.mxu2 %vm974_vm5, %v6322_v40  ;;  %7604 = vmatmul.msk.f32.gmra.mxu3 %vm974_vm5, %v6322_v40  ;;  %v15388_v40 = vld [vmem:[#allocation29_spill] sm:$0xff] }
0x1624   : > { %v6304_v9 = vpop.f32.mrf.mxu3  ;;  %6606 = vmatpush.msrb.mxu3 %v15359_v43 }
0x1625   : > { %v6312_v22 = vadd.f32 %v6304_v9, %v6241_v63 }
0x1626   : > { %6607 = vmatpush.msrb.mxu3 %v15360_v45 }
0x1627   : > { %v6318_v32 = vadd.f32 %v6312_v22, %v15173_v50 }
0x1628   : > { %6608 = vmatpush.msrb.mxu3 %v15361_v3 }
0x1629   : > { %v6324_v37 = vmax.f32 %v6318_v32, 0.0 }
0x162a   : > { %6609 = vmatpush.msrb.mxu3 %v15362_v62 }
0x162b   : > { %7602 = vmatmul.msk.f32.gmra.mxu2 %vm974_vm5, %v6324_v37  ;;  %7605 = vmatmul.msk.f32.gmra.mxu3 %vm974_vm5, %v6324_v37 }
0x162c   : > { %6610 = vmatpush.msrb.mxu3 %v15363_v18 }
0x1635   : > { %v6351_v44 = vpop.f32.mrf.mxu1  ;;  %v6403_v25 = vpop.f32.mrf.mxu0 }
0x163d   : > { %v6354_v2 = vpop.f32.mrf.mxu1  ;;  %v6406_v20 = vpop.f32.mrf.mxu0 }
0x1654   : > { %v6357_v50 = vpop.f32.mrf.mxu1  ;;  %v6409_v33 = vpop.f32.mrf.mxu0 }
0x169e   : > { %v6377_v1 = vpop.f32.mrf.mxu2  ;;  %v6429_v23 = vpop.f32.mrf.mxu3 }
0x169f   : > { %v6378_v39 = vadd.f32 %v6377_v1, %v6351_v44  ;;  %v6430_v56 = vadd.f32 %v6429_v23, %v6403_v25 }
0x16a1   : > { %v6438_v57 = vmax.f32 %v6378_v39, %v6430_v56 }
0x16a6   : > { %v6380_v29 = vpop.f32.mrf.mxu2  ;;  %v6432_v0 = vpop.f32.mrf.mxu3 }
0x16a7   : > { %v6381_v52 = vadd.f32 %v6380_v29, %v6354_v2  ;;  %v6433_v4 = vadd.f32 %v6432_v0, %v6406_v20 }
0x16a9   : > { %v6439_v51 = vmax.f32 %v6381_v52, %v6433_v4 }
0x16ae   : > { %v6383_v8 = vpop.f32.mrf.mxu2  ;;  %v6435_v24 = vpop.f32.mrf.mxu3 }
0x16af   : > { %v6384_v17 = vadd.f32 %v6383_v8, %v6357_v50  ;;  %v6436_v61 = vadd.f32 %v6435_v24, %v6409_v33 }
0x16b1   : > { %v6440_v21 = vmax.f32 %v6384_v17, %v6436_v61 }
0x16b3   : > { %6454 = vmatpush.msrb.mxu1 %v6440_v21  ;;  %6477 = vmatpush.msrb.mxu2 %v6440_v21 }
0x16b5   : > { %6455 = vmatpush.msrb.mxu1 %v6439_v51  ;;  %6478 = vmatpush.msrb.mxu2 %v6439_v51 }
0x16b7   : > { %6456 = vmatpush.msrb.mxu1 %v6438_v57  ;;  %6479 = vmatpush.msrb.mxu2 %v6438_v57 }
0x16b8   : > { %7608 = vmatmul.msk.f32.vlgmr.msrb.gmra.mxu2 %vm1112_vm6, %v13368_v46  ;;  %7606 = vmatmul.msk.f32.vlgmr.msrb.gmra.mxu1 %vm1112_vm6, %v13361_v41  ;;  %v15364_v41 = vld [vmem:[#allocation71_spill] sm:$0xff]  ;;  %v15365_v46 = vld [vmem:[#allocation73_spill] sm:$0xff] }
0x16b9   : > { %6550 = vmatpush.msra.mxu1 %v13375_v27  ;;  %6576 = vmatpush.msra.mxu2 %v8230_v53  ;;  %v15366_v27 = vld [vmem:[#allocation75_spill] sm:$0xff] }
0x16bb   : > { %6551 = vmatpush.msra.mxu1 %v13382_v30  ;;  %6577 = vmatpush.msra.mxu2 %v8231_v6  ;;  %v15367_v30 = vld [vmem:[#allocation77_spill] sm:$0xff] }
0x16bc   : > { %v6787_v6 = vld [vmem:[%s14221_s9 + $0x78] sm:$0xff] }
0x16bd   : > { %6552 = vmatpush.msra.mxu1 %v13389_v35  ;;  %6578 = vmatpush.msra.mxu2 %v13395_v38  ;;  %v15368_v35 = vld [vmem:[#allocation79_spill] sm:$0xff]  ;;  %v15369_v38 = vld [vmem:[#allocation81_spill] sm:$0xff] }
0x16bf   : > { %6553 = vmatpush.msra.mxu1 %v13401_v49  ;;  %6579 = vmatpush.msra.mxu2 %v13407_v55  ;;  %v15370_v49 = vld [vmem:[#allocation83_spill] sm:$0xff]  ;;  %v15371_v55 = vld [vmem:[#allocation85_spill] sm:$0xff] }
0x16c0   : > { %7609 = vmatmul.msk.f32.gmra.mxu2 %vm1112_vm6, %v13420_v36  ;;  %7607 = vmatmul.msk.f32.gmra.mxu1 %vm1112_vm6, %v13413_v12  ;;  %v15372_v36 = vld [vmem:[#allocation86_spill] sm:$0xff]  ;;  %v15374_v12 = vld [vmem:[#allocation88_spill] sm:$0xff] }
0x16c1   : > { %6554 = vmatpush.msra.mxu1 %v15364_v41  ;;  %6580 = vmatpush.msra.mxu2 %v15365_v46  ;;  %v6803_v41 = vld [vmem:[%s14221_s9 + $0xf8] sm:$0xff]  ;;  %v6801_v46 = vld [vmem:[%s14221_s9 + $0xe8] sm:$0xff] }
0x16c3   : > { %6555 = vmatpush.msra.mxu1 %v15366_v27  ;;  %6581 = vmatpush.msra.mxu2 %v15367_v30  ;;  %v6784_v27 = vld [vmem:[%s14221_s9 + $0x60] sm:$0xff] }
0x16c4   : > { %v6800_v30 = vld [vmem:[%s14221_s9 + $0xe0] sm:$0xff] }
0x16c5   : > { %6556 = vmatpush.msra.mxu1 %v15368_v35  ;;  %6582 = vmatpush.msra.mxu2 %v15369_v38  ;;  %v6783_v35 = vld [vmem:[%s14221_s9 + $0x58] sm:$0xff] }
0x16c6   : > { %v6799_v38 = vld [vmem:[%s14221_s9 + $0xd8] sm:$0xff] }
0x16c7   : > { %6557 = vmatpush.msra.mxu1 %v15370_v49  ;;  %6583 = vmatpush.msra.mxu2 %v15371_v55  ;;  %v6782_v49 = vld [vmem:[%s14221_s9 + $0x50] sm:$0xff] }
0x16c8   : > { %v6798_v55 = vld [vmem:[%s14221_s9 + $0xd0] sm:$0xff] }
0x16c9   : > { %6558 = vmatpush.msra.mxu1 %v15372_v36  ;;  %6584 = vmatpush.msra.mxu2 %v15373_v15  ;;  %v6781_v36 = vld [vmem:[%s14221_s9 + $0x48] sm:$0xff] }
0x16ca   : > { %v6797_v15 = vld [vmem:[%s14221_s9 + $0xc8] sm:$0xff] }
0x16cb   : > { %6638 = vmatpush.msrb.mxu1 %v15374_v12  ;;  %v6780_v12 = vld [vmem:[%s14221_s9 + $0x40] sm:$0xff] }
0x16cd   : > { %6639 = vmatpush.msrb.mxu1 %v15375_v19  ;;  %v6796_v19 = vld [vmem:[%s14221_s9 + $0xc0] sm:$0xff] }
0x16cf   : > { %6640 = vmatpush.msrb.mxu1 %v15376_v11  ;;  %v6779_v11 = vld [vmem:[%s14221_s9 + $0x38] sm:$0xff] }
0x16d1   : > { %6641 = vmatpush.msrb.mxu1 %v15377_v48  ;;  %v6795_v48 = vld [vmem:[%s14221_s9 + $0xb8] sm:$0xff] }
0x16d3   : > { %6642 = vmatpush.msrb.mxu1 %v15378_v59  ;;  %v6778_v59 = vld [vmem:[%s14221_s9 + $0x30] sm:$0xff] }
0x16d5   : > { %6643 = vmatpush.msrb.mxu1 %v15379_v5  ;;  %v6794_v5 = vld [vmem:[%s14221_s9 + $0xb0] sm:$0xff] }
0x16d7   : > { %6644 = vmatpush.msrb.mxu1 %v15380_v13 }
0x16d9   : > { %6645 = vmatpush.msrb.mxu1 %v15381_v31  ;;  %v6777_v31 = vld [vmem:[%s14221_s9 + $0x28] sm:$0xff] }
0x16db   : > { %6646 = vmatpush.msrb.mxu1 %v15382_v26  ;;  %v6793_v26 = vld [vmem:[%s14221_s9 + $0xa8] sm:$0xff] }
0x16dd   : > { %6647 = vmatpush.msrb.mxu1 %v15383_v34  ;;  %v6776_v34 = vld [vmem:[%s14221_s9 + $0x20] sm:$0xff] }
0x16df   : > { %6648 = vmatpush.msrb.mxu1 %v15384_v60  ;;  %v6792_v60 = vld [vmem:[%s14221_s9 + $0xa0] sm:$0xff] }
0x16e1   : > { %6649 = vmatpush.msrb.mxu1 %v15385_v7  ;;  %v6775_v7 = vld [vmem:[%s14221_s9 + $0x18] sm:$0xff] }
0x16e3   : > { %6650 = vmatpush.msrb.mxu1 %v15386_v47 }
0x16e5   : > { %6651 = vmatpush.msrb.mxu1 %v15387_v42 }
0x16e7   : > { %6652 = vmatpush.msrb.mxu1 %v15388_v40  ;;  %v5962_v40 = vrot.slane %v13875_v28, 3 }
0x16e9   : > { %6653 = vmatpush.msrb.mxu1 %v15389_v54 }
0x1735   : > { %v6458_v63 = vpop.f32.mrf.mxu1 }
0x173b   : > { %v6481_v9 = vpop.f32.mrf.mxu2 }
0x173c   : > { %v6487_v43 = vmax.f32 %v6458_v63, %v6481_v9  ;;  %v15390_v63 = vld [vmem:[#allocation46_spill] sm:$0xff] }
0x173d   : > { %v6461_v22 = vpop.f32.mrf.mxu1  ;;  %v5217_v9 = vrot.slane %v15390_v63, 3 }
0x173e   : > { %7611 = vmatmul.msk.f32.vlgmr.msra.gmra.mxu0 %vm1200_vm7, %v6487_v43  ;;  %v6491_v3 = vrot.slane %v6487_v43, 1  ;;  %v6538_v37 = vrot.slane %v6487_v43, 2  ;;  %v6564_v25 = vrot.slane %v6487_v43, 3  ;;  %v6590_v29 = vrot.slane %v6487_v43, 4 }
0x1743   : > { %v6484_v45 = vpop.f32.mrf.mxu2 }
0x1744   : > { %v6488_v32 = vmax.f32 %v6461_v22, %v6484_v45 }
0x1746   : > { %v6492_v62 = vrot.slane %v6488_v32, 1  ;;  %v6539_v18 = vrot.slane %v6488_v32, 2  ;;  %v6565_v44 = vrot.slane %v6488_v32, 3  ;;  %v6591_v20 = vrot.slane %v6488_v32, 4  ;;  %v6774_v32 = vld [vmem:[%s14221_s9 + $0x10] sm:$0xff] }
0x1748   : > { %v6493_v1 = vsel %vm540_vm1, %v6491_v3, %v6492_v62  ;;  %v6540_v23 = vsel %vm687_vm3, %v6538_v37, %v6539_v18  ;;  %v6566_v2 = vsel %vm774_vm4, %v6564_v25, %v6565_v44  ;;  %v6592_v0 = vsel %vm555_vm0, %v6590_v29, %v6591_v20  ;;  %v6791_v3 = vld [vmem:[%s14221_s9 + $0x98] sm:$0xff]  ;;  %v7681_v37 = vpop.permute.xlu0 %7680  ;;  %v6773_v62 = vld [vmem:[%s14221_s9 + $0x8] sm:$0xff]  ;;  %v6790_v18 = vld [vmem:[%s14221_s9 + $0x90] sm:$0xff]  ;;  %v7691_v20 = vpop.permute.xlu1 %7690 }
0x1749   : > { %7610 = vmatmul.msk.f32.vlgmr.msra.gmra.mxu3 %vm1200_vm7, %v6493_v1  ;;  %7612 = vmatmul.msk.f32.vlgmr.msra.gmra.mxu1 %vm1200_vm7, %v6540_v23  ;;  %v6772_v44 = vld [vmem:[%s14221_s9] sm:$0xff]  ;;  %v6789_v25 = vld [vmem:[%s14221_s9 + $0x88] sm:$0xff]  ;;  %v6864_v23 = vld [vmem:[%s14223_s11 + $0x78] sm:$0xff] }
0x174a   : > { %7613 = vmatmul.msk.f32.vlgmr.msra.gmra.mxu2 %vm1200_vm7, %v6566_v2  ;;  %6808 = vmatpush.msra.mxu3 %v6787_v6  ;;  %v6788_v1 = vld [vmem:[%s14221_s9 + $0x80] sm:$0xff]  ;;  %v6863_v2 = vld [vmem:[%s14223_s11 + $0x70] sm:$0xff]  ;;  %v6862_v29 = vld [vmem:[%s14223_s11 + $0x68] sm:$0xff] }
0x174b   : > { %6869 = vmatpush.msra.mxu0 %v6864_v23 }
0x174d   : > { %6870 = vmatpush.msra.mxu0 %v6863_v2 }
0x174f   : > { %6871 = vmatpush.msra.mxu0 %v6862_v29  ;;  %v5960_v29 = vrot.slane %v13875_v28, 2 }
0x1751   : > { %7614 = vmatmul.msk.f32.vlgmr.msrb.gmra.mxu3 %vm1200_vm7, %v6592_v0  ;;  %v7686_v0 = vpop.permute.xlu0 %7685 }
0x17bb   : > { %v6535_v50 = vpop.f32.mrf.mxu0 }
0x17c6   : > { %v6560_v24 = vpop.f32.mrf.mxu1 }
0x17cc   : > { %v6513_v33 = vpop.f32.mrf.mxu3 }
0x17cd   : > { %v6536_v8 = vadd.f32 %v6535_v50, %v6513_v33  ;;  %v6586_v4 = vpop.f32.mrf.mxu2  ;;  %v6861_v50 = vld [vmem:[%s14223_s11 + $0x60] sm:$0xff]  ;;  %v7701_v33 = vpop.permute.xlu2 %7700 }
0x17ce   : > { %6872 = vmatpush.msra.mxu0 %v6861_v50 }
0x17cf   : > { %v6563_v52 = vadd.f32 %v6560_v24, %v6536_v8  ;;  %v7687_v8 = vunpack.i.l.bf16 %v7686_v0  ;;  %v6860_v24 = vld [vmem:[%s14223_s11 + $0x58] sm:$0xff] }
0x17d0   : > { %6873 = vmatpush.msra.mxu0 %v6860_v24 }
0x17d1   : > { %v6589_v17 = vadd.f32 %v6586_v4, %v6563_v52  ;;  %v7683_v52 = vunpack.i.h.bf16 %v7681_v37  ;;  %v6859_v4 = vld [vmem:[%s14223_s11 + $0x50] sm:$0xff] }
0x17d2   : > { %6874 = vmatpush.msra.mxu0 %v6859_v4 }
0x17d4   : > { %v6612_v61 = vpop.f32.mrf.mxu3 }
0x17d5   : > { %v6615_v39 = vadd.f32 %v6612_v61, %v6589_v17  ;;  %v7682_v17 = vunpack.i.l.bf16 %v7681_v37  ;;  %v7696_v61 = vpop.permute.xlu1 %7695 }
0x17d7   : > { %v6616_v56 = vadd.f32 %v13660_v16, %v6615_v39  ;;  %v6786_v16 = vld [vmem:[%s14221_s9 + $0x70] sm:$0xff]  ;;  %v15391_v39 = vld [vmem:[#allocation42_spill] sm:$0xff] }
0x17d8   : > { %6809 = vmatpush.msra.mxu3 %v6786_v16  ;;  %v7698_v16 = vunpack.i.h.bf16 %v7696_v61 }
0x17d9   : > { %v6617_v21 = vmax.f32 %v6616_v56, 0.0  ;;  %v2235_v56 = vrot.slane %v15391_v39, 2 }
0x17db   : > { %6634 = vmatmul.f32.vlgmr.msrb.gmra.mxu0 %v6617_v21  ;;  %6654 = vmatmul.f32.vlgmr.msrb.gmra.mxu1 %v6617_v21  ;;  %v7688_v21 = vunpack.i.h.bf16 %v7686_v0  ;;  %v2242_v6 = vsel %vm1495_vm9, %v2235_v56, %v7683_v52 }
0x1858   : > { %v6635_v51 = vpop.f32.mrf.mxu0  ;;  %v6655_v57 = vpop.f32.mrf.mxu1 }
0x1859   : > { %v6658_v53 = vmax.f32 %v6635_v51, %v6655_v57  ;;  %v2241_v51 = vsel %vm1495_vm9, %v15391_v39, %v7687_v8  ;;  %v6858_v57 = vld [vmem:[%s14223_s11 + $0x48] sm:$0xff] }
0x185a   : > { %6875 = vmatpush.msra.mxu0 %v6858_v57 }
0x185b   : > { %6674 = vmatpush.msrb.mxu2 %v6658_v53 }
0x185c   : > { %7615 = vmatmul.msk.f32.vlgmr.msrb.gmra.mxu2 %vm1434_vm8, %v13755_v14  ;;  %v6802_v14 = vld [vmem:[%s14221_s9 + $0xf0] sm:$0xff] }
0x185d   : > { %6694 = vmatpush.msra.mxu2 %v6658_v53  ;;  %v7692_v53 = vunpack.i.l.bf16 %v7691_v20 }
0x185f   : > { %6828 = vmatpush.msrb.mxu2 %v6803_v41  ;;  %v6857_v41 = vld [vmem:[%s14223_s11 + $0x40] sm:$0xff] }
0x1860   : > { %6876 = vmatpush.msra.mxu0 %v6857_v41 }
0x1861   : > { %6829 = vmatpush.msrb.mxu2 %v6802_v14  ;;  %v15392_v14 = vld [vmem:[#allocation37_spill] sm:$0xff] }
0x1863   : > { %6830 = vmatpush.msrb.mxu2 %v6801_v46  ;;  %v1496_v46 = vsel %vm1495_vm9, %v15392_v14, %v7682_v17 }
0x1864   : > { %7616 = vmatmul.msk.f32.vlgmr.msra.gmra.mxu2 %vm1434_vm8, %v13786_v58  ;;  %v6785_v58 = vld [vmem:[%s14221_s9 + $0x68] sm:$0xff] }
0x1865   : > { %6810 = vmatpush.msra.mxu3 %v6785_v58  ;;  %6831 = vmatpush.msrb.mxu2 %v6800_v30  ;;  %v1489_v58 = vrot.slane %v15392_v14, 2  ;;  %v7693_v30 = vunpack.i.h.bf16 %v7691_v20  ;;  %v5215_v20 = vrot.slane %v15390_v63, 2 }
0x1867   : > { %6811 = vmatpush.msra.mxu3 %v6784_v27  ;;  %6832 = vmatpush.msrb.mxu2 %v6799_v38  ;;  %v6715_v27 = vrot.slane %v2241_v51, 7  ;;  %v15393_v38 = vld [vmem:[#allocation20_spill] sm:$0xff] }
0x1869   : > { %6812 = vmatpush.msra.mxu3 %v6783_v35  ;;  %6833 = vmatpush.msrb.mxu2 %v6798_v55  ;;  %v7706_v35 = vpop.permute.xlu2 %7705  ;;  %v7697_v55 = vunpack.i.l.bf16 %v7696_v61 }
0x186b   : > { %6813 = vmatpush.msra.mxu3 %v6782_v49  ;;  %6834 = vmatpush.msrb.mxu2 %v6797_v15  ;;  %v2986_v49 = vsel %vm1495_vm9, %v15393_v38, %v7688_v21  ;;  %v6856_v15 = vld [vmem:[%s14223_s11 + $0x38] sm:$0xff] }
0x186c   : > { %6877 = vmatpush.msra.mxu0 %v6856_v15  ;;  %v6904_v15 = vld [vmem:[#allocation2 + $0x70] sm:$0xff] }
0x186d   : > { %6814 = vmatpush.msra.mxu3 %v6781_v36  ;;  %6835 = vmatpush.msrb.mxu2 %v6796_v19  ;;  %v7702_v36 = vunpack.i.l.bf16 %v7701_v33  ;;  %v2980_v19 = vrot.slane %v15393_v38, 2  ;;  %v6851_v38 = vld [vmem:[%s14223_s11 + $0x10] sm:$0xff] }
0x186f   : > { %6815 = vmatpush.msra.mxu3 %v6780_v12  ;;  %6836 = vmatpush.msrb.mxu2 %v6795_v48  ;;  %v6716_v12 = vrot.slane %v2242_v6, 7 }
0x1871   : > { %6816 = vmatpush.msra.mxu3 %v6779_v11  ;;  %6837 = vmatpush.msrb.mxu2 %v6794_v5  ;;  %v15394_v11 = vld [vmem:[#allocation61_spill] sm:$0xff] }
0x1872   : > { %v3731_v48 = vsel %vm1495_vm9, %v15394_v11, %v7692_v53  ;;  %v3725_v5 = vrot.slane %v15394_v11, 2  ;;  %v6901_v11 = vld [vmem:[#allocation2 + $0x58] sm:$0xff] }
0x1873   : > { %6817 = vmatpush.msra.mxu3 %v6778_v59  ;;  %6838 = vmatpush.msrb.mxu2 %v6793_v26  ;;  %v7703_v59 = vunpack.i.h.bf16 %v7701_v33  ;;  %v7707_v26 = vunpack.i.l.bf16 %v7706_v35 }
0x1875   : > { %6818 = vmatpush.msra.mxu3 %v6777_v31  ;;  %6839 = vmatpush.msrb.mxu2 %v6792_v60  ;;  %v7708_v31 = vunpack.i.h.bf16 %v7706_v35  ;;  %v6721_v60 = vrot.slane %v2986_v49, 6  ;;  %v6852_v35 = vld [vmem:[%s14223_s11 + $0x18] sm:$0xff]  ;;  %v6850_v49 = vld [vmem:[%s14223_s11 + $0x8] sm:$0xff] }
0x1877   : > { %6819 = vmatpush.msra.mxu3 %v6776_v34  ;;  %6840 = vmatpush.msrb.mxu2 %v6791_v3  ;;  %v6855_v34 = vld [vmem:[%s14223_s11 + $0x30] sm:$0xff]  ;;  %v5966_v37 = vsel %vm1495_vm9, %v13875_v28, %v7708_v31 }
0x1878   : > { %6878 = vmatpush.msra.mxu0 %v6855_v34  ;;  %v6745_v0 = vrot.slane %v5966_v37, 2  ;;  %v6896_v31 = vld [vmem:[#allocation2 + $0x30] sm:$0xff]  ;;  %v6894_v34 = vld [vmem:[#allocation2 + $0x20] sm:$0xff] }
0x1879   : > { %6820 = vmatpush.msra.mxu3 %v6775_v7  ;;  %6841 = vmatpush.msrb.mxu2 %v6790_v18  ;;  %v2987_v7 = vsel %vm1495_vm9, %v2980_v19, %v7693_v30  ;;  %v6902_v19 = vld [vmem:[#allocation2 + $0x60] sm:$0xff] }
0x187a   : > { %v6722_v3 = vrot.slane %v2987_v7, 6  ;;  %v6893_v7 = vld [vmem:[#allocation2 + $0x18] sm:$0xff] }
0x187b   : > { %6821 = vmatpush.msra.mxu3 %v6774_v32  ;;  %6842 = vmatpush.msrb.mxu2 %v6789_v25  ;;  %v5221_v32 = vsel %vm1495_vm9, %v15390_v63, %v7703_v59  ;;  %v6899_v59 = vld [vmem:[#allocation2 + $0x48] sm:$0xff] }
0x187c   : > { %v6739_v2 = vrot.slane %v5221_v32, 3  ;;  %v6890_v32 = vld [vmem:[#allocation2] sm:$0xff] }
0x187d   : > { %6822 = vmatpush.msra.mxu3 %v6773_v62  ;;  %6843 = vmatpush.msrb.mxu2 %v6788_v1 }
0x187f   : > { %6823 = vmatpush.msra.mxu3 %v6772_v44 }
0x18df   : > { %v6676_v13 = vpop.f32.mrf.mxu2 }
0x18e7   : > { %v6696_v47 = vpop.f32.mrf.mxu2 }
0x18e8   : > { %v14048_v42 = vmax.f32 %v6676_v13, %v6696_v47  ;;  %v1497_v13 = vsel %vm1495_vm9, %v1489_v58, %v7698_v16  ;;  %v6756_v47 = vsel %vm6755_vm10, %v1496_v46, %v6715_v27 }
0x18e9   : > { %v6759_v44 = vsel %vm6758_vm11, %v6756_v47, %v6721_v60  ;;  %v7720_v60 = vld [vmem:[%s14222_s10] ss:$0 sm:$0xff] }
0x18ea   : > { %v6707_v54 = vrot.slane %v14048_v42, 3  ;;  %v6701_v43 = vrot.slane %v14048_v42, 1  ;;  %v6705_v33 = vrot.slane %v14048_v42, 2 }
0x18ec   : > { %v7714_v22 = vpack.i.bf16 %v6707_v54, %v5962_v40  ;;  %v7709_v45 = vpack.i.bf16 %v6701_v43, %v5217_v9  ;;  %v6727_v40 = vrot.slane %v3731_v48, 5  ;;  %v4476_v54 = vsel %vm1495_vm9, %v15354_v10, %v7697_v55  ;;  %v6849_v55 = vld [vmem:[%s14223_s11] sm:$0xff]  ;;  %v6900_v48 = vld [vmem:[#allocation2 + $0x50] sm:$0xff] }
0x18ed   : > { %v3732_v9 = vsel %vm1495_vm9, %v3725_v5, %v7702_v36  ;;  %v4470_v43 = vrot.slane %v15354_v10, 2  ;;  %v6853_v10 = vld [vmem:[%s14223_s11 + $0x20] sm:$0xff]  ;;  %v6733_v18 = vrot.slane %v4476_v54, 4  ;;  %v6905_v36 = vld [vmem:[#allocation2 + $0x78] sm:$0xff] }
0x18ee   : > { %7715 = vrot.lane.b32.xlu1 %v7714_v22, %s8333_s29  ;;  %7710 = vrot.lane.b32.xlu0 %v7709_v45, %s8333_s29  ;;  %v6854_v22 = vld [vmem:[%s14223_s11 + $0x28] sm:$0xff]  ;;  %v6757_v45 = vsel %vm6755_vm10, %v1497_v13, %v6716_v12  ;;  %v6728_v25 = vrot.slane %v3732_v9, 5  ;;  %v6762_v23 = vsel %vm6761_vm12, %v6759_v44, %v6727_v40  ;;  %v6898_v5 = vld [vmem:[#allocation2 + $0x40] sm:$0xff]  ;;  %v6897_v13 = vld [vmem:[#allocation2 + $0x38] sm:$0xff] }
0x18ef   : > { %v4477_v62 = vsel %vm1495_vm9, %v4470_v43, %v7707_v26  ;;  %6879 = vmatpush.msra.mxu0 %v6854_v22  ;;  %v6760_v1 = vsel %vm6758_vm11, %v6757_v45, %v6722_v3  ;;  %v6764_v39 = vsel %vm555_vm0, %v6762_v23, %v6733_v18  ;;  %6910 = vmatpush.msra.mxu1 %v6905_v36  ;;  %v6903_v12 = vld [vmem:[#allocation2 + $0x68] sm:$0xff]  ;;  %v6892_v22 = vld [vmem:[#allocation2 + $0x10] sm:$0xff]  ;;  %v7721_v3 = vld [vmem:[%s14224_s12] ss:$0 sm:$0xff] }
0x18f0   : > { %v6734_v50 = vrot.slane %v4477_v62, 4  ;;  %v6763_v56 = vsel %vm6761_vm12, %v6760_v1, %v6728_v25  ;;  %v6766_v16 = vsel %vm774_vm4, %v6764_v39, %v6739_v2  ;;  %v6895_v26 = vld [vmem:[#allocation2 + $0x28] sm:$0xff]  ;;  %v7722_v18 = vld [vmem:[%s14226_s14] ss:$0 sm:$0xff] }
0x18f1   : > { %6880 = vmatpush.msra.mxu0 %v6853_v10  ;;  %v6768_v14 = vsel %vm687_vm3, %v6766_v16, %v6745_v0  ;;  %6911 = vmatpush.msra.mxu1 %v6904_v15  ;;  %v6891_v45 = vld [vmem:[#allocation2 + $0x8] sm:$0xff] }
0x18f2   : > { %v6765_v41 = vsel %vm555_vm0, %v6763_v56, %v6734_v50 }
0x18f3   : > { %6881 = vmatpush.msra.mxu0 %v6852_v35  ;;  %6912 = vmatpush.msra.mxu1 %v6903_v12 }
0x18f5   : > { %6882 = vmatpush.msra.mxu0 %v6851_v38  ;;  %6913 = vmatpush.msra.mxu1 %v6902_v19 }
0x18f7   : > { %6883 = vmatpush.msra.mxu0 %v6850_v49  ;;  %6914 = vmatpush.msra.mxu1 %v6901_v11 }
0x18f9   : > { %6884 = vmatpush.msra.mxu0 %v6849_v55  ;;  %6915 = vmatpush.msra.mxu1 %v6900_v48 }
0x18fb   : > { %6916 = vmatpush.msra.mxu1 %v6899_v59 }
0x18fd   : > { %6917 = vmatpush.msra.mxu1 %v6898_v5 }
0x18ff   : > { %6918 = vmatpush.msra.mxu1 %v6897_v13 }
0x1901   : > { %6919 = vmatpush.msra.mxu1 %v6896_v31 }
0x1903   : > { %6920 = vmatpush.msra.mxu1 %v6895_v26 }
0x1905   : > { %6921 = vmatpush.msra.mxu1 %v6894_v34 }
0x1907   : > { %6922 = vmatpush.msra.mxu1 %v6893_v7 }
0x1909   : > { %6923 = vmatpush.msra.mxu1 %v6892_v22 }
0x190b   : > { %6924 = vmatpush.msra.mxu1 %v6891_v45 }
0x190d   : > { %6925 = vmatpush.msra.mxu1 %v6890_v32 }
0x1960   : > { %v7716_v8 = vpop.permute.xlu1 %7715  ;;  %v7711_v24 = vpop.permute.xlu0 %7710 }
0x1961   : > { %v7718_v52 = vunpack.i.h.bf16 %v7716_v8  ;;  %v7717_v4 = vunpack.i.l.bf16 %v7716_v8  ;;  %v7713_v17 = vunpack.i.h.bf16 %v7711_v24  ;;  %v7712_v61 = vunpack.i.l.bf16 %v7711_v24 }
0x1963   : > { %v6712_v21 = vsel %vm1495_vm9, %v6705_v33, %v7718_v52  ;;  %v5967_v63 = vsel %vm1495_vm9, %v5960_v29, %v7717_v4  ;;  %v6711_v28 = vsel %vm1495_vm9, %v14048_v42, %v7713_v17  ;;  %v5222_v51 = vsel %vm1495_vm9, %v5215_v20, %v7712_v61 }
0x1964   : > { %v6746_v57 = vrot.slane %v5967_v63, 2  ;;  %v6751_v53 = vrot.slane %v6711_v28, 1  ;;  %v6740_v6 = vrot.slane %v5222_v51, 3  ;;  %v6752_v58 = vrot.slane %v6712_v21, 1 }
0x1966   : > { %v6767_v46 = vsel %vm774_vm4, %v6765_v41, %v6740_v6  ;;  %v6770_v27 = vsel %vm540_vm1, %v6768_v14, %v6751_v53 }
0x1967   : > { %6824 = vmatmul.f32.vlgmr.msra.gmra.mxu3 %v6770_v27  ;;  %v6769_v30 = vsel %vm687_vm3, %v6767_v46, %v6746_v57 }
0x1968   : > { %v6771_v42 = vsel %vm540_vm1, %v6769_v30, %v6752_v58 }
0x1969   : > { %6844 = vmatmul.f32.vlgmr.msrb.gmra.mxu2 %v6771_v42 }
0x19ea   : > { %v6825_v47 = vpop.f32.mrf.mxu3 }
0x19eb   : > { %v6826_v40 = vadd.f32 %v7720_v60, %v6825_v47 }
0x19ec   : > { %v6845_v54 = vpop.f32.mrf.mxu2 }
0x19ed   : > { %v6846_v9 = vadd.f32 %v6845_v54, %v6826_v40 }
0x19ef   : > { %v6848_v43 = vmax.f32 %v6846_v9, 0.0 }
0x19f1   : > { %6885 = vmatmul.f32.vlgmr.msra.gmra.mxu0 %v6848_v43 }
0x1a6e   : > { %v6886_v37 = vpop.f32.mrf.mxu0 }
0x1a6f   : > { %v6887_v62 = vadd.f32 %v7721_v3, %v6886_v37 }
0x1a71   : > { %v6889_v10 = vmax.f32 %v6887_v62, 0.0 }
0x1a73   : > { %6926 = vmatmul.f32.vlgmr.msra.gmra.mxu1 %v6889_v10 }
0x1af0   : > { %v6927_v44 = vpop.f32.mrf.mxu1 }
0x1af1   : > { %v6928_v25 = vadd.f32 %v7722_v18, %v6927_v44 }
0x1af3   : > { %6930 = vst [vmem:[%s507_s27] sm:$0xff] %v6928_v25 }
0x1af4   : > { %8289 = shalt.err (!%p8286_p8)
}
0x1af5   : > { %7630 = dma.vmem_to_hbm [thread:$0]  (%p8452_p5), %s6945_s17, 128, %s6947_s0, %s6932_s24  }
0x1af6 PF: > { %p7642_p9 = scmp.ge.s32.totalorder %s8328_s21, 2  ;;  %s6958_s23 = sand.u32 1, %s8316_s18  }
0x1af7   : > { %s6959_s20 = scalar_lea.sflag [#allocation4], %s6958_s23 }
0x1af8   : > { %p7637_p10 = pnand %p7642_p9, %p8456_p6 }
0x1afa   : > { %p7638_p11 = pneg %p7637_p10 }
0x1afc   : > { %8311 = dma.done.wait (%p7638_p11), %s6959_s20, 128  }
0x1afd   : > { %8313 = vsyncadd (%p7638_p11), %s6959_s20, 4294967168  ;;  %s15396_s21 = sld [smem:[#allocation9_spill]]  ;;  %s15399_s18 = smov %s8320_s19 }
0x1afe   : > { %s15397_s1 = sld [smem:[#allocation8_spill]] }
0x1aff   : > { %s15398_s20 = sld [smem:[#allocation10_spill]] }
0x1b03   : > { %p26_p12 = scmp.ge.s32.totalorder %s15396_s21, 4  }
0x1b04   : > { %s15400_s19 = smov %s15397_s1 }
0x1b05   :  { %28 = sbr.rel (!%p26_p12) target bundleno = 8 (0x8), region = 139 }
0x1b0a   :  { %6965 = vsyncpa [#allocation3], 1 }
0x1b0b   :  { %6967 = vsyncpa [#allocation3 + $0x1], 1 }
0x1b0c   :  { %6968 = vsyncpa [#allocation4], 1 }
0x1b0d   :  { %6970 = vsyncpa [#allocation4 + $0x1], 1 }

</bundles_post_ra>
